<compile_context>
chip_gen: v5e
topology: v5e:2x2
jax: 0.10.0
libtpu: 0.0.40
codegen_flags: <defaults>
</compile_context>

<pallas_src>
import functools

import jax
import jax.numpy as jnp
from jax.experimental import pallas as pl
from jax.experimental.pallas import tpu as pltpu

LANES = 128


# ---------------------------------------------------------------------------
# Pallas kernels
# ---------------------------------------------------------------------------
def _conv_relu_pool_kernel(cols_ref, w_ref, b_ref, o_ref):
    """Fused conv-as-matmul + bias + ReLU + 2x2 maxpool.

    cols_ref: (4, Mt, K)  im2col patches, leading axis = pooling quadrant
    w_ref:    (K, 128)    conv weights, out-channels zero-padded to 128 lanes
    b_ref:    (1, 128)
    o_ref:    (Mt, 128)   pooled activations, rows = (batch, Y, X)
    """
    w = w_ref[...]
    m00 = jnp.dot(cols_ref[0], w, preferred_element_type=jnp.float32)
    m01 = jnp.dot(cols_ref[1], w, preferred_element_type=jnp.float32)
    m10 = jnp.dot(cols_ref[2], w, preferred_element_type=jnp.float32)
    m11 = jnp.dot(cols_ref[3], w, preferred_element_type=jnp.float32)
    pooled = jnp.maximum(jnp.maximum(m00, m01), jnp.maximum(m10, m11))
    o_ref[...] = jnp.maximum(pooled + b_ref[...], 0.0).astype(o_ref.dtype)


def _tail_kernel(cols_ref, w2_ref, b2_ref, w3_ref, b3_ref, w4_ref, b4_ref,
                 w5_ref, b5_ref, o_ref, *, bp):
    """conv2 + ReLU + pool2 + conv3 + ReLU + fc1 + ReLU + fc2 in one kernel.

    cols_ref: (4, 25*bp, 150) conv2 patches, rows ordered (spatial s, batch b)
    w2_ref:   (150, 128)   w3_ref: (25, 16, 128)   w4_ref/w5_ref: (128, 128)
    o_ref:    (bp, 128) logits (lanes >= 10 are zero padding)
    """
    w2 = w2_ref[...]
    q0 = jnp.dot(cols_ref[0], w2, preferred_element_type=jnp.float32)
    q1 = jnp.dot(cols_ref[1], w2, preferred_element_type=jnp.float32)
    q2 = jnp.dot(cols_ref[2], w2, preferred_element_type=jnp.float32)
    q3 = jnp.dot(cols_ref[3], w2, preferred_element_type=jnp.float32)
    a2 = jnp.maximum(jnp.maximum(q0, q1), jnp.maximum(q2, q3))
    a2 = jnp.maximum(a2 + b2_ref[...], 0.0)          # (25*bp, 128); lanes>=16 = 0

    # conv3 on the 5x5 pooled map == sum over the 25 spatial positions of a
    # (bp, 16) @ (16, 120) matmul; rows of a2 are grouped by spatial position.
    acc = jnp.zeros((bp, LANES), jnp.float32)
    for s in range(25):
        blk = a2[s * bp:(s + 1) * bp, :16]            # (bp, 16)
        acc = acc + jnp.dot(blk, w3_ref[s], preferred_element_type=jnp.float32)
    h3 = jnp.maximum(acc + b3_ref[...], 0.0)          # (bp, 128); lanes>=120 = 0
    h4 = jnp.dot(h3, w4_ref[...], preferred_element_type=jnp.float32) + b4_ref[...]
    h4 = jnp.maximum(h4, 0.0)                          # (bp, 128); lanes>=84 = 0
    out = jnp.dot(h4, w5_ref[...], preferred_element_type=jnp.float32) + b5_ref[...]
    o_ref[...] = out.astype(o_ref.dtype)


# ---------------------------------------------------------------------------
# pallas_call wrappers
# ---------------------------------------------------------------------------
def _full_block(arr):
    zeros = (0,) * arr.ndim
    return pl.BlockSpec(arr.shape, lambda i, _z=zeros: _z)


def _conv1_pool(cols1, w1p, b1p, bp):
    m1 = bp * 14 * 14
    n_tiles = 2                      # rows split across 2 programs (v7x megacore)
    mt = m1 // n_tiles               # bp % 8 == 0  ->  mt % 8 == 0
    k = cols1.shape[-1]
    return pl.pallas_call(
        _conv_relu_pool_kernel,
        out_shape=jax.ShapeDtypeStruct((m1, LANES), jnp.float32),
        grid=(n_tiles,),
        in_specs=[
            pl.BlockSpec((4, mt, k), lambda i: (0, i, 0)),
            pl.BlockSpec(w1p.shape, lambda i: (0, 0)),
            pl.BlockSpec(b1p.shape, lambda i: (0, 0)),
        ],
        out_specs=pl.BlockSpec((mt, LANES), lambda i: (i, 0)),
        compiler_params=pltpu.CompilerParams(
            dimension_semantics=("parallel",)),
    )(cols1, w1p, b1p)


def _tail(cols2, pk, bp):
    kernel = functools.partial(_tail_kernel, bp=bp)
    args = (cols2, pk["w2"], pk["b2"], pk["w3"], pk["b3"],
            pk["w4"], pk["b4"], pk["w5"], pk["b5"])
    return pl.pallas_call(
        kernel,
        out_shape=jax.ShapeDtypeStruct((bp, LANES), jnp.float32),
        grid=(1,),
        in_specs=[_full_block(a) for a in args],
        out_specs=pl.BlockSpec((bp, LANES), lambda i: (0, 0)),
        compiler_params=pltpu.CompilerParams(
            dimension_semantics=("arbitrary",)),
    )(*args)


# ---------------------------------------------------------------------------
# Parameters: PyTorch-like init + one-time packing into kernel layouts
# ---------------------------------------------------------------------------
def init_params(key):
    def uinit(k, shape, fan_in):
        bound = 1.0 / jnp.sqrt(jnp.float32(fan_in))
        return jax.random.uniform(k, shape, jnp.float32, -bound, bound)

    ks = jax.random.split(key, 10)
    p = {}
    p["c1_w"] = uinit(ks[0], (6, 1, 5, 5), 1 * 5 * 5)
    p["c1_b"] = uinit(ks[1], (6,), 1 * 5 * 5)
    p["c2_w"] = uinit(ks[2], (16, 6, 5, 5), 6 * 5 * 5)
    p["c2_b"] = uinit(ks[3], (16,), 6 * 5 * 5)
    p["c3_w"] = uinit(ks[4], (120, 16, 5, 5), 16 * 5 * 5)
    p["c3_b"] = uinit(ks[5], (120,), 16 * 5 * 5)
    p["f1_w"] = uinit(ks[6], (84, 120), 120)      # torch Linear: (out, in)
    p["f1_b"] = uinit(ks[7], (84,), 120)
    p["out_w"] = uinit(ks[8], (10, 84), 84)
    p["out_b"] = uinit(ks[9], (10,), 84)
    return p


def pack_params(p):
    """One-time reshape/transpose/zero-pad of weights into (K, 128) layouts."""
    def pad_lanes(a):
        return jnp.pad(a, [(0, 0)] * (a.ndim - 1) + [(0, LANES - a.shape[-1])])

    pk = {}
    # conv1: (6,1,5,5) -> (25, 6) with row = i*5+j, padded to 128 lanes.
    pk["w1"] = pad_lanes(p["c1_w"].reshape(6, 25).T)
    pk["b1"] = pad_lanes(p["c1_b"].reshape(1, 6))
    # conv2: (16,6,5,5) -> (150, 16), feature order (i, j, ic).
    pk["w2"] = pad_lanes(p["c2_w"].transpose(2, 3, 1, 0).reshape(150, 16))
    pk["b2"] = pad_lanes(p["c2_b"].reshape(1, 16))
    # conv3: (120,16,5,5) -> (25, 16, 120), spatial-major for in-kernel accumulation.
    pk["w3"] = pad_lanes(p["c3_w"].transpose(2, 3, 1, 0).reshape(25, 16, 120))
    pk["b3"] = pad_lanes(p["c3_b"].reshape(1, 120))
    # fc1 / fc2: (K, N) padded to 128x128 so the tail matmuls are full vregs.
    pk["w4"] = jnp.zeros((LANES, LANES), jnp.float32).at[:120, :84].set(p["f1_w"].T)
    pk["b4"] = pad_lanes(p["f1_b"].reshape(1, 84))
    pk["w5"] = jnp.zeros((LANES, LANES), jnp.float32).at[:84, :10].set(p["out_w"].T)
    pk["b5"] = pad_lanes(p["out_b"].reshape(1, 10))
    return pk


# ---------------------------------------------------------------------------
# Forward pass (matches LeNet.forward for 1x28x28 inputs)
# ---------------------------------------------------------------------------
def lenet_forward(pk, x):
    B = x.shape[0]
    bp = ((B + 7) // 8) * 8                      # pad batch rows to sublane multiple
    x = x.astype(jnp.float32)

    # ---- stage 1: conv1(pad=2) + ReLU + maxpool2x2 (one pallas_call) ----
    xp = jnp.pad(x[:, 0], ((0, bp - B), (2, 2), (2, 2)))            # (bp, 32, 32)
    taps = jnp.stack([xp[:, i:i + 28, j:j + 28]
                      for i in range(5) for j in range(5)], axis=1)  # (bp,25,28,28)
    quads = jnp.stack([taps[:, :, qy::2, qx::2]
                       for qy in (0, 1) for qx in (0, 1)], axis=0)   # (4,bp,25,14,14)
    cols1 = quads.transpose(0, 1, 3, 4, 2).reshape(4, bp * 196, 25)
    out1 = _conv1_pool(cols1, pk["w1"], pk["b1"], bp)                # (bp*196, 128)

    # ---- stage 2: conv2+ReLU+pool2+conv3+ReLU+fc1+ReLU+fc2 (one pallas_call) ----
    p1 = out1.reshape(bp, 14, 14, LANES)[:, :, :, :6]                # (bp,14,14,6)
    taps2 = jnp.stack([p1[:, i:i + 10, j:j + 10, :]
                       for i in range(5) for j in range(5)], axis=1)  # (bp,25,10,10,6)
    quads2 = jnp.stack([taps2[:, :, qy::2, qx::2, :]
                        for qy in (0, 1) for qx in (0, 1)], axis=0)   # (4,bp,25,5,5,6)
    cols2 = quads2.transpose(0, 3, 4, 1, 2, 5).reshape(4, 25 * bp, 150)
    logits = _tail(cols2, pk, bp)                                     # (bp, 128)
    return logits[:B, :10]


if __name__ == "__main__":
    key = jax.random.PRNGKey(0)
    k_param, k_x = jax.random.split(key)
    params = init_params(k_param)
    packed = pack_params(params)          # weight layout work hoisted out of forward
    # LeNet's flatten-to-120 requires a 1x28x28 input; batch kept small.
    x = jax.random.normal(k_x, (2, 1, 28, 28), dtype=jnp.float32)

    fwd = jax.jit(lenet_forward)
    out = fwd(packed, x)
    jax.block_until_ready(out)
    assert out.shape == (2, 10) and out.dtype == jnp.float32
    print("KERNEL_OK")
</pallas_src>

<mosaic_0001>
module attributes {stable_mosaic.version = 11 : i64} {
  func.func @_conv_relu_pool_kernel(%arg0: i32, %arg1: memref<4x784x25xf32, #tpu.memory_space<vmem>>, %arg2: memref<25x128xf32, #tpu.memory_space<vmem>>, %arg3: memref<1x128xf32, #tpu.memory_space<vmem>>, %arg4: memref<784x128xf32, #tpu.memory_space<vmem>>) attributes {dimension_semantics = [#tpu.dimension_semantics<parallel>], iteration_bounds = array<i64: 2>, scalar_prefetch = 0 : i64, scratch_operands = 0 : i64, tpu.core_type = #tpu.core_type<tc>, window_params = [{transform_indices = @transform_0, window_bounds = array<i64: 4, 784, 25>}, {pipeline_mode = #tpu.pipeline_mode<synchronous>, transform_indices = @transform_1, window_bounds = array<i64: 25, 128>}, {pipeline_mode = #tpu.pipeline_mode<synchronous>, transform_indices = @transform_2, window_bounds = array<i64: 1, 128>}, {transform_indices = @transform_3, window_bounds = array<i64: 784, 128>}]} {
    %c0 = arith.constant 0 : index
    %c0_0 = arith.constant 0 : index
    %0 = vector.load %arg2[%c0, %c0_0] : memref<25x128xf32, #tpu.memory_space<vmem>>, vector<25x128xf32>
    %c0_1 = arith.constant 0 : index
    %c0_2 = arith.constant 0 : index
    %c0_3 = arith.constant 0 : index
    %1 = vector.load %arg1[%c0_1, %c0_2, %c0_3] : memref<4x784x25xf32, #tpu.memory_space<vmem>>, vector<1x784x25xf32>
    %2 = vector.shape_cast %1 : vector<1x784x25xf32> to vector<784x25xf32>
    %cst = arith.constant dense<0.000000e+00> : vector<784x128xf32>
    %3 = tpu.matmul %2, %0, %cst {dimension_numbers = #tpu.dot_dimension_numbers<[1], [0], [0], [1], [0, 0, 1, 1], [], []>} : vector<784x25xf32>, vector<25x128xf32>, vector<784x128xf32> -> vector<784x128xf32>
    %c1 = arith.constant 1 : index
    %c0_4 = arith.constant 0 : index
    %c0_5 = arith.constant 0 : index
    %4 = vector.load %arg1[%c1, %c0_4, %c0_5] : memref<4x784x25xf32, #tpu.memory_space<vmem>>, vector<1x784x25xf32>
    %5 = vector.shape_cast %4 : vector<1x784x25xf32> to vector<784x25xf32>
    %cst_6 = arith.constant dense<0.000000e+00> : vector<784x128xf32>
    %6 = tpu.matmul %5, %0, %cst_6 {dimension_numbers = #tpu.dot_dimension_numbers<[1], [0], [0], [1], [0, 0, 1, 1], [], []>} : vector<784x25xf32>, vector<25x128xf32>, vector<784x128xf32> -> vector<784x128xf32>
    %c2 = arith.constant 2 : index
    %c0_7 = arith.constant 0 : index
    %c0_8 = arith.constant 0 : index
    %7 = vector.load %arg1[%c2, %c0_7, %c0_8] : memref<4x784x25xf32, #tpu.memory_space<vmem>>, vector<1x784x25xf32>
    %8 = vector.shape_cast %7 : vector<1x784x25xf32> to vector<784x25xf32>
    %cst_9 = arith.constant dense<0.000000e+00> : vector<784x128xf32>
    %9 = tpu.matmul %8, %0, %cst_9 {dimension_numbers = #tpu.dot_dimension_numbers<[1], [0], [0], [1], [0, 0, 1, 1], [], []>} : vector<784x25xf32>, vector<25x128xf32>, vector<784x128xf32> -> vector<784x128xf32>
    %c3 = arith.constant 3 : index
    %c0_10 = arith.constant 0 : index
    %c0_11 = arith.constant 0 : index
    %10 = vector.load %arg1[%c3, %c0_10, %c0_11] : memref<4x784x25xf32, #tpu.memory_space<vmem>>, vector<1x784x25xf32>
    %11 = vector.shape_cast %10 : vector<1x784x25xf32> to vector<784x25xf32>
    %cst_12 = arith.constant dense<0.000000e+00> : vector<784x128xf32>
    %12 = tpu.matmul %11, %0, %cst_12 {dimension_numbers = #tpu.dot_dimension_numbers<[1], [0], [0], [1], [0, 0, 1, 1], [], []>} : vector<784x25xf32>, vector<25x128xf32>, vector<784x128xf32> -> vector<784x128xf32>
    %13 = arith.maximumf %3, %6 : vector<784x128xf32>
    %14 = arith.maximumf %9, %12 : vector<784x128xf32>
    %15 = arith.maximumf %13, %14 : vector<784x128xf32>
    %c0_13 = arith.constant 0 : index
    %c0_14 = arith.constant 0 : index
    %16 = vector.load %arg3[%c0_13, %c0_14] : memref<1x128xf32, #tpu.memory_space<vmem>>, vector<1x128xf32>
    %17 = vector.broadcast %16 : vector<1x128xf32> to vector<784x128xf32>
    %18 = arith.addf %15, %17 : vector<784x128xf32>
    %cst_15 = arith.constant 0.000000e+00 : f32
    %19 = vector.broadcast %cst_15 : f32 to vector<784x128xf32>
    %20 = arith.maximumf %18, %19 : vector<784x128xf32>
    %c0_16 = arith.constant 0 : index
    %c0_17 = arith.constant 0 : index
    %21 = vector.load %arg4[%c0_16, %c0_17] : memref<784x128xf32, #tpu.memory_space<vmem>>, vector<784x128xf32>
    tpu.vector_store %arg4[%c0_16, %c0_17], %20 {strides = array<i32>} : memref<784x128xf32, #tpu.memory_space<vmem>>, vector<784x128xf32>,
    return
  }
  func.func @transform_0(%arg0: i32) -> (i32, i32, i32) {
    %c0_i32 = arith.constant 0 : i32
    %c0_i32_0 = arith.constant 0 : i32
    %c0_i32_1 = arith.constant 0 : i32
    return %c0_i32, %arg0, %c0_i32_0 : i32, i32, i32
  }
  func.func @transform_1(%arg0: i32) -> (i32, i32) {
    %c0_i32 = arith.constant 0 : i32
    %c0_i32_0 = arith.constant 0 : i32
    %c0_i32_1 = arith.constant 0 : i32
    return %c0_i32, %c0_i32_0 : i32, i32
  }
  func.func @transform_2(%arg0: i32) -> (i32, i32) {
    %c0_i32 = arith.constant 0 : i32
    %c0_i32_0 = arith.constant 0 : i32
    %c0_i32_1 = arith.constant 0 : i32
    return %c0_i32, %c0_i32_0 : i32, i32
  }
  func.func @transform_3(%arg0: i32) -> (i32, i32) {
    %c0_i32 = arith.constant 0 : i32
    %c0_i32_0 = arith.constant 0 : i32
    return %arg0, %c0_i32 : i32, i32
  }
}

module attributes {stable_mosaic.version = 11 : i64} {
  func.func @_tail_kernel(%arg0: i32, %arg1: memref<4x200x150xf32, #tpu.memory_space<vmem>>, %arg2: memref<150x128xf32, #tpu.memory_space<vmem>>, %arg3: memref<1x128xf32, #tpu.memory_space<vmem>>, %arg4: memref<25x16x128xf32, #tpu.memory_space<vmem>>, %arg5: memref<1x128xf32, #tpu.memory_space<vmem>>, %arg6: memref<128x128xf32, #tpu.memory_space<vmem>>, %arg7: memref<1x128xf32, #tpu.memory_space<vmem>>, %arg8: memref<128x128xf32, #tpu.memory_space<vmem>>, %arg9: memref<1x128xf32, #tpu.memory_space<vmem>>, %arg10: memref<8x128xf32, #tpu.memory_space<vmem>>) attributes {dimension_semantics = [#tpu.dimension_semantics<arbitrary>], iteration_bounds = array<i64: 1>, scalar_prefetch = 0 : i64, scratch_operands = 0 : i64, tpu.core_type = #tpu.core_type<tc>, window_params = [{pipeline_mode = #tpu.pipeline_mode<synchronous>, transform_indices = @transform_0, window_bounds = array<i64: 4, 200, 150>}, {pipeline_mode = #tpu.pipeline_mode<synchronous>, transform_indices = @transform_1, window_bounds = array<i64: 150, 128>}, {pipeline_mode = #tpu.pipeline_mode<synchronous>, transform_indices = @transform_2, window_bounds = array<i64: 1, 128>}, {pipeline_mode = #tpu.pipeline_mode<synchronous>, transform_indices = @transform_3, window_bounds = array<i64: 25, 16, 128>}, {pipeline_mode = #tpu.pipeline_mode<synchronous>, transform_indices = @transform_4, window_bounds = array<i64: 1, 128>}, {pipeline_mode = #tpu.pipeline_mode<synchronous>, transform_indices = @transform_5, window_bounds = array<i64: 128, 128>}, {pipeline_mode = #tpu.pipeline_mode<synchronous>, transform_indices = @transform_6, window_bounds = array<i64: 1, 128>}, {pipeline_mode = #tpu.pipeline_mode<synchronous>, transform_indices = @transform_7, window_bounds = array<i64: 128, 128>}, {pipeline_mode = #tpu.pipeline_mode<synchronous>, transform_indices = @transform_8, window_bounds = array<i64: 1, 128>}, {pipeline_mode = #tpu.pipeline_mode<synchronous>, transform_indices = @transform_9, window_bounds = array<i64: 8, 128>}]} {
    %c0 = arith.constant 0 : index
    %c0_0 = arith.constant 0 : index
    %0 = vector.load %arg2[%c0, %c0_0] : memref<150x128xf32, #tpu.memory_space<vmem>>, vector<150x128xf32>
    %c0_1 = arith.constant 0 : index
    %c0_2 = arith.constant 0 : index
    %c0_3 = arith.constant 0 : index
    %1 = vector.load %arg1[%c0_1, %c0_2, %c0_3] : memref<4x200x150xf32, #tpu.memory_space<vmem>>, vector<1x200x150xf32>
    %2 = vector.shape_cast %1 : vector<1x200x150xf32> to vector<200x150xf32>
    %cst = arith.constant dense<0.000000e+00> : vector<200x128xf32>
    %3 = tpu.matmul %2, %0, %cst {dimension_numbers = #tpu.dot_dimension_numbers<[1], [0], [0], [1], [0, 0, 1, 1], [], []>} : vector<200x150xf32>, vector<150x128xf32>, vector<200x128xf32> -> vector<200x128xf32>
    %c1 = arith.constant 1 : index
    %c0_4 = arith.constant 0 : index
    %c0_5 = arith.constant 0 : index
    %4 = vector.load %arg1[%c1, %c0_4, %c0_5] : memref<4x200x150xf32, #tpu.memory_space<vmem>>, vector<1x200x150xf32>
    %5 = vector.shape_cast %4 : vector<1x200x150xf32> to vector<200x150xf32>
    %cst_6 = arith.constant dense<0.000000e+00> : vector<200x128xf32>
    %6 = tpu.matmul %5, %0, %cst_6 {dimension_numbers = #tpu.dot_dimension_numbers<[1], [0], [0], [1], [0, 0, 1, 1], [], []>} : vector<200x150xf32>, vector<150x128xf32>, vector<200x128xf32> -> vector<200x128xf32>
    %c2 = arith.constant 2 : index
    %c0_7 = arith.constant 0 : index
    %c0_8 = arith.constant 0 : index
    %7 = vector.load %arg1[%c2, %c0_7, %c0_8] : memref<4x200x150xf32, #tpu.memory_space<vmem>>, vector<1x200x150xf32>
    %8 = vector.shape_cast %7 : vector<1x200x150xf32> to vector<200x150xf32>
    %cst_9 = arith.constant dense<0.000000e+00> : vector<200x128xf32>
    %9 = tpu.matmul %8, %0, %cst_9 {dimension_numbers = #tpu.dot_dimension_numbers<[1], [0], [0], [1], [0, 0, 1, 1], [], []>} : vector<200x150xf32>, vector<150x128xf32>, vector<200x128xf32> -> vector<200x128xf32>
    %c3 = arith.constant 3 : index
    %c0_10 = arith.constant 0 : index
    %c0_11 = arith.constant 0 : index
    %10 = vector.load %arg1[%c3, %c0_10, %c0_11] : memref<4x200x150xf32, #tpu.memory_space<vmem>>, vector<1x200x150xf32>
    %11 = vector.shape_cast %10 : vector<1x200x150xf32> to vector<200x150xf32>
    %cst_12 = arith.constant dense<0.000000e+00> : vector<200x128xf32>
    %12 = tpu.matmul %11, %0, %cst_12 {dimension_numbers = #tpu.dot_dimension_numbers<[1], [0], [0], [1], [0, 0, 1, 1], [], []>} : vector<200x150xf32>, vector<150x128xf32>, vector<200x128xf32> -> vector<200x128xf32>
    %13 = arith.maximumf %3, %6 : vector<200x128xf32>
    %14 = arith.maximumf %9, %12 : vector<200x128xf32>
    %15 = arith.maximumf %13, %14 : vector<200x128xf32>
    %c0_13 = arith.constant 0 : index
    %c0_14 = arith.constant 0 : index
    %16 = vector.load %arg3[%c0_13, %c0_14] : memref<1x128xf32, #tpu.memory_space<vmem>>, vector<1x128xf32>
    %17 = vector.broadcast %16 : vector<1x128xf32> to vector<200x128xf32>
    %18 = arith.addf %15, %17 : vector<200x128xf32>
    %cst_15 = arith.constant 0.000000e+00 : f32
    %19 = vector.broadcast %cst_15 : f32 to vector<200x128xf32>
    %20 = arith.maximumf %18, %19 : vector<200x128xf32>
    %cst_16 = arith.constant 0.000000e+00 : f32
    %21 = vector.broadcast %cst_16 : f32 to vector<8x128xf32>
    %22 = vector.extract_strided_slice %20 {offsets = [0, 0], sizes = [8, 16], strides = [1, 1]} : vector<200x128xf32> to vector<8x16xf32>
    %c0_17 = arith.constant 0 : index
    %c0_18 = arith.constant 0 : index
    %c0_19 = arith.constant 0 : index
    %23 = vector.load %arg4[%c0_17, %c0_18, %c0_19] : memref<25x16x128xf32, #tpu.memory_space<vmem>>, vector<1x16x128xf32>
    %24 = vector.shape_cast %23 : vector<1x16x128xf32> to vector<16x128xf32>
    %cst_20 = arith.constant dense<0.000000e+00> : vector<8x128xf32>
    %25 = tpu.matmul %22, %24, %cst_20 {dimension_numbers = #tpu.dot_dimension_numbers<[1], [0], [0], [1], [0, 0, 1, 1], [], []>} : vector<8x16xf32>, vector<16x128xf32>, vector<8x128xf32> -> vector<8x128xf32>
    %26 = arith.addf %21, %25 : vector<8x128xf32>
    %27 = vector.extract_strided_slice %20 {offsets = [8, 0], sizes = [8, 16], strides = [1, 1]} : vector<200x128xf32> to vector<8x16xf32>
    %c1_21 = arith.constant 1 : index
    %c0_22 = arith.constant 0 : index
    %c0_23 = arith.constant 0 : index
    %28 = vector.load %arg4[%c1_21, %c0_22, %c0_23] : memref<25x16x128xf32, #tpu.memory_space<vmem>>, vector<1x16x128xf32>
    %29 = vector.shape_cast %28 : vector<1x16x128xf32> to vector<16x128xf32>
    %cst_24 = arith.constant dense<0.000000e+00> : vector<8x128xf32>
    %30 = tpu.matmul %27, %29, %cst_24 {dimension_numbers = #tpu.dot_dimension_numbers<[1], [0], [0], [1], [0, 0, 1, 1], [], []>} : vector<8x16xf32>, vector<16x128xf32>, vector<8x128xf32> -> vector<8x128xf32>
    %31 = arith.addf %26, %30 : vector<8x128xf32>
    %32 = vector.extract_strided_slice %20 {offsets = [16, 0], sizes = [8, 16], strides = [1, 1]} : vector<200x128xf32> to vector<8x16xf32>
    %c2_25 = arith.constant 2 : index
    %c0_26 = arith.constant 0 : index
    %c0_27 = arith.constant 0 : index
    %33 = vector.load %arg4[%c2_25, %c0_26, %c0_27] : memref<25x16x128xf32, #tpu.memory_space<vmem>>, vector<1x16x128xf32>
    %34 = vector.shape_cast %33 : vector<1x16x128xf32> to vector<16x128xf32>
    %cst_28 = arith.constant dense<0.000000e+00> : vector<8x128xf32>
    %35 = tpu.matmul %32, %34, %cst_28 {dimension_numbers = #tpu.dot_dimension_numbers<[1], [0], [0], [1], [0, 0, 1, 1], [], []>} : vector<8x16xf32>, vector<16x128xf32>, vector<8x128xf32> -> vector<8x128xf32>
    %36 = arith.addf %31, %35 : vector<8x128xf32>
    %37 = vector.extract_strided_slice %20 {offsets = [24, 0], sizes = [8, 16], strides = [1, 1]} : vector<200x128xf32> to vector<8x16xf32>
    %c3_29 = arith.constant 3 : index
    %c0_30 = arith.constant 0 : index
    %c0_31 = arith.constant 0 : index
    %38 = vector.load %arg4[%c3_29, %c0_30, %c0_31] : memref<25x16x128xf32, #tpu.memory_space<vmem>>, vector<1x16x128xf32>
    %39 = vector.shape_cast %38 : vector<1x16x128xf32> to vector<16x128xf32>
    %cst_32 = arith.constant dense<0.000000e+00> : vector<8x128xf32>
    %40 = tpu.matmul %37, %39, %cst_32 {dimension_numbers = #tpu.dot_dimension_numbers<[1], [0], [0], [1], [0, 0, 1, 1], [], []>} : vector<8x16xf32>, vector<16x128xf32>, vector<8x128xf32> -> vector<8x128xf32>
    %41 = arith.addf %36, %40 : vector<8x128xf32>
    %42 = vector.extract_strided_slice %20 {offsets = [32, 0], sizes = [8, 16], strides = [1, 1]} : vector<200x128xf32> to vector<8x16xf32>
    %c4 = arith.constant 4 : index
    %c0_33 = arith.constant 0 : index
    %c0_34 = arith.constant 0 : index
    %43 = vector.load %arg4[%c4, %c0_33, %c0_34] : memref<25x16x128xf32, #tpu.memory_space<vmem>>, vector<1x16x128xf32>
    %44 = vector.shape_cast %43 : vector<1x16x128xf32> to vector<16x128xf32>
    %cst_35 = arith.constant dense<0.000000e+00> : vector<8x128xf32>
    %45 = tpu.matmul %42, %44, %cst_35 {dimension_numbers = #tpu.dot_dimension_numbers<[1], [0], [0], [1], [0, 0, 1, 1], [], []>} : vector<8x16xf32>, vector<16x128xf32>, vector<8x128xf32> -> vector<8x128xf32>
    %46 = arith.addf %41, %45 : vector<8x128xf32>
    %47 = vector.extract_strided_slice %20 {offsets = [40, 0], sizes = [8, 16], strides = [1, 1]} : vector<200x128xf32> to vector<8x16xf32>
    %c5 = arith.constant 5 : index
    %c0_36 = arith.constant 0 : index
    %c0_37 = arith.constant 0 : index
    %48 = vector.load %arg4[%c5, %c0_36, %c0_37] : memref<25x16x128xf32, #tpu.memory_space<vmem>>, vector<1x16x128xf32>
    %49 = vector.shape_cast %48 : vector<1x16x128xf32> to vector<16x128xf32>
    %cst_38 = arith.constant dense<0.000000e+00> : vector<8x128xf32>
    %50 = tpu.matmul %47, %49, %cst_38 {dimension_numbers = #tpu.dot_dimension_numbers<[1], [0], [0], [1], [0, 0, 1, 1], [], []>} : vector<8x16xf32>, vector<16x128xf32>, vector<8x128xf32> -> vector<8x128xf32>
    %51 = arith.addf %46, %50 : vector<8x128xf32>
    %52 = vector.extract_strided_slice %20 {offsets = [48, 0], sizes = [8, 16], strides = [1, 1]} : vector<200x128xf32> to vector<8x16xf32>
    %c6 = arith.constant 6 : index
    %c0_39 = arith.constant 0 : index
    %c0_40 = arith.constant 0 : index
    %53 = vector.load %arg4[%c6, %c0_39, %c0_40] : memref<25x16x128xf32, #tpu.memory_space<vmem>>, vector<1x16x128xf32>
    %54 = vector.shape_cast %53 : vector<1x16x128xf32> to vector<16x128xf32>
    %cst_41 = arith.constant dense<0.000000e+00> : vector<8x128xf32>
    %55 = tpu.matmul %52, %54, %cst_41 {dimension_numbers = #tpu.dot_dimension_numbers<[1], [0], [0], [1], [0, 0, 1, 1], [], []>} : vector<8x16xf32>, vector<16x128xf32>, vector<8x128xf32> -> vector<8x128xf32>
    %56 = arith.addf %51, %55 : vector<8x128xf32>
    %57 = vector.extract_strided_slice %20 {offsets = [56, 0], sizes = [8, 16], strides = [1, 1]} : vector<200x128xf32> to vector<8x16xf32>
    %c7 = arith.constant 7 : index
    %c0_42 = arith.constant 0 : index
    %c0_43 = arith.constant 0 : index
    %58 = vector.load %arg4[%c7, %c0_42, %c0_43] : memref<25x16x128xf32, #tpu.memory_space<vmem>>, vector<1x16x128xf32>
    %59 = vector.shape_cast %58 : vector<1x16x128xf32> to vector<16x128xf32>
    %cst_44 = arith.constant dense<0.000000e+00> : vector<8x128xf32>
    %60 = tpu.matmul %57, %59, %cst_44 {dimension_numbers = #tpu.dot_dimension_numbers<[1], [0], [0], [1], [0, 0, 1, 1], [], []>} : vector<8x16xf32>, vector<16x128xf32>, vector<8x128xf32> -> vector<8x128xf32>
    %61 = arith.addf %56, %60 : vector<8x128xf32>
    %62 = vector.extract_strided_slice %20 {offsets = [64, 0], sizes = [8, 16], strides = [1, 1]} : vector<200x128xf32> to vector<8x16xf32>
    %c8 = arith.constant 8 : index
    %c0_45 = arith.constant 0 : index
    %c0_46 = arith.constant 0 : index
    %63 = vector.load %arg4[%c8, %c0_45, %c0_46] : memref<25x16x128xf32, #tpu.memory_space<vmem>>, vector<1x16x128xf32>
    %64 = vector.shape_cast %63 : vector<1x16x128xf32> to vector<16x128xf32>
    %cst_47 = arith.constant dense<0.000000e+00> : vector<8x128xf32>
    %65 = tpu.matmul %62, %64, %cst_47 {dimension_numbers = #tpu.dot_dimension_numbers<[1], [0], [0], [1], [0, 0, 1, 1], [], []>} : vector<8x16xf32>, vector<16x128xf32>, vector<8x128xf32> -> vector<8x128xf32>
    %66 = arith.addf %61, %65 : vector<8x128xf32>
    %67 = vector.extract_strided_slice %20 {offsets = [72, 0], sizes = [8, 16], strides = [1, 1]} : vector<200x128xf32> to vector<8x16xf32>
    %c9 = arith.constant 9 : index
    %c0_48 = arith.constant 0 : index
    %c0_49 = arith.constant 0 : index
    %68 = vector.load %arg4[%c9, %c0_48, %c0_49] : memref<25x16x128xf32, #tpu.memory_space<vmem>>, vector<1x16x128xf32>
    %69 = vector.shape_cast %68 : vector<1x16x128xf32> to vector<16x128xf32>
    %cst_50 = arith.constant dense<0.000000e+00> : vector<8x128xf32>
    %70 = tpu.matmul %67, %69, %cst_50 {dimension_numbers = #tpu.dot_dimension_numbers<[1], [0], [0], [1], [0, 0, 1, 1], [], []>} : vector<8x16xf32>, vector<16x128xf32>, vector<8x128xf32> -> vector<8x128xf32>
    %71 = arith.addf %66, %70 : vector<8x128xf32>
    %72 = vector.extract_strided_slice %20 {offsets = [80, 0], sizes = [8, 16], strides = [1, 1]} : vector<200x128xf32> to vector<8x16xf32>
    %c10 = arith.constant 10 : index
    %c0_51 = arith.constant 0 : index
    %c0_52 = arith.constant 0 : index
    %73 = vector.load %arg4[%c10, %c0_51, %c0_52] : memref<25x16x128xf32, #tpu.memory_space<vmem>>, vector<1x16x128xf32>
    %74 = vector.shape_cast %73 : vector<1x16x128xf32> to vector<16x128xf32>
    %cst_53 = arith.constant dense<0.000000e+00> : vector<8x128xf32>
    %75 = tpu.matmul %72, %74, %cst_53 {dimension_numbers = #tpu.dot_dimension_numbers<[1], [0], [0], [1], [0, 0, 1, 1], [], []>} : vector<8x16xf32>, vector<16x128xf32>, vector<8x128xf32> -> vector<8x128xf32>
    %76 = arith.addf %71, %75 : vector<8x128xf32>
    %77 = vector.extract_strided_slice %20 {offsets = [88, 0], sizes = [8, 16], strides = [1, 1]} : vector<200x128xf32> to vector<8x16xf32>
    %c11 = arith.constant 11 : index
    %c0_54 = arith.constant 0 : index
    %c0_55 = arith.constant 0 : index
    %78 = vector.load %arg4[%c11, %c0_54, %c0_55] : memref<25x16x128xf32, #tpu.memory_space<vmem>>, vector<1x16x128xf32>
    %79 = vector.shape_cast %78 : vector<1x16x128xf32> to vector<16x128xf32>
    %cst_56 = arith.constant dense<0.000000e+00> : vector<8x128xf32>
    %80 = tpu.matmul %77, %79, %cst_56 {dimension_numbers = #tpu.dot_dimension_numbers<[1], [0], [0], [1], [0, 0, 1, 1], [], []>} : vector<8x16xf32>, vector<16x128xf32>, vector<8x128xf32> -> vector<8x128xf32>
    %81 = arith.addf %76, %80 : vector<8x128xf32>
    %82 = vector.extract_strided_slice %20 {offsets = [96, 0], sizes = [8, 16], strides = [1, 1]} : vector<200x128xf32> to vector<8x16xf32>
    %c12 = arith.constant 12 : index
    %c0_57 = arith.constant 0 : index
    %c0_58 = arith.constant 0 : index
    %83 = vector.load %arg4[%c12, %c0_57, %c0_58] : memref<25x16x128xf32, #tpu.memory_space<vmem>>, vector<1x16x128xf32>
    %84 = vector.shape_cast %83 : vector<1x16x128xf32> to vector<16x128xf32>
    %cst_59 = arith.constant dense<0.000000e+00> : vector<8x128xf32>
    %85 = tpu.matmul %82, %84, %cst_59 {dimension_numbers = #tpu.dot_dimension_numbers<[1], [0], [0], [1], [0, 0, 1, 1], [], []>} : vector<8x16xf32>, vector<16x128xf32>, vector<8x128xf32> -> vector<8x128xf32>
    %86 = arith.addf %81, %85 : vector<8x128xf32>
    %87 = vector.extract_strided_slice %20 {offsets = [104, 0], sizes = [8, 16], strides = [1, 1]} : vector<200x128xf32> to vector<8x16xf32>
    %c13 = arith.constant 13 : index
    %c0_60 = arith.constant 0 : index
    %c0_61 = arith.constant 0 : index
    %88 = vector.load %arg4[%c13, %c0_60, %c0_61] : memref<25x16x128xf32, #tpu.memory_space<vmem>>, vector<1x16x128xf32>
    %89 = vector.shape_cast %88 : vector<1x16x128xf32> to vector<16x128xf32>
    %cst_62 = arith.constant dense<0.000000e+00> : vector<8x128xf32>
    %90 = tpu.matmul %87, %89, %cst_62 {dimension_numbers = #tpu.dot_dimension_numbers<[1], [0], [0], [1], [0, 0, 1, 1], [], []>} : vector<8x16xf32>, vector<16x128xf32>, vector<8x128xf32> -> vector<8x128xf32>
    %91 = arith.addf %86, %90 : vector<8x128xf32>
    %92 = vector.extract_strided_slice %20 {offsets = [112, 0], sizes = [8, 16], strides = [1, 1]} : vector<200x128xf32> to vector<8x16xf32>
    %c14 = arith.constant 14 : index
    %c0_63 = arith.constant 0 : index
    %c0_64 = arith.constant 0 : index
    %93 = vector.load %arg4[%c14, %c0_63, %c0_64] : memref<25x16x128xf32, #tpu.memory_space<vmem>>, vector<1x16x128xf32>
    %94 = vector.shape_cast %93 : vector<1x16x128xf32> to vector<16x128xf32>
    %cst_65 = arith.constant dense<0.000000e+00> : vector<8x128xf32>
    %95 = tpu.matmul %92, %94, %cst_65 {dimension_numbers = #tpu.dot_dimension_numbers<[1], [0], [0], [1], [0, 0, 1, 1], [], []>} : vector<8x16xf32>, vector<16x128xf32>, vector<8x128xf32> -> vector<8x128xf32>
    %96 = arith.addf %91, %95 : vector<8x128xf32>
    %97 = vector.extract_strided_slice %20 {offsets = [120, 0], sizes = [8, 16], strides = [1, 1]} : vector<200x128xf32> to vector<8x16xf32>
    %c15 = arith.constant 15 : index
    %c0_66 = arith.constant 0 : index
    %c0_67 = arith.constant 0 : index
    %98 = vector.load %arg4[%c15, %c0_66, %c0_67] : memref<25x16x128xf32, #tpu.memory_space<vmem>>, vector<1x16x128xf32>
    %99 = vector.shape_cast %98 : vector<1x16x128xf32> to vector<16x128xf32>
    %cst_68 = arith.constant dense<0.000000e+00> : vector<8x128xf32>
    %100 = tpu.matmul %97, %99, %cst_68 {dimension_numbers = #tpu.dot_dimension_numbers<[1], [0], [0], [1], [0, 0, 1, 1], [], []>} : vector<8x16xf32>, vector<16x128xf32>, vector<8x128xf32> -> vector<8x128xf32>
    %101 = arith.addf %96, %100 : vector<8x128xf32>
    %102 = vector.extract_strided_slice %20 {offsets = [128, 0], sizes = [8, 16], strides = [1, 1]} : vector<200x128xf32> to vector<8x16xf32>
    %c16 = arith.constant 16 : index
    %c0_69 = arith.constant 0 : index
    %c0_70 = arith.constant 0 : index
    %103 = vector.load %arg4[%c16, %c0_69, %c0_70] : memref<25x16x128xf32, #tpu.memory_space<vmem>>, vector<1x16x128xf32>
    %104 = vector.shape_cast %103 : vector<1x16x128xf32> to vector<16x128xf32>
    %cst_71 = arith.constant dense<0.000000e+00> : vector<8x128xf32>
    %105 = tpu.matmul %102, %104, %cst_71 {dimension_numbers = #tpu.dot_dimension_numbers<[1], [0], [0], [1], [0, 0, 1, 1], [], []>} : vector<8x16xf32>, vector<16x128xf32>, vector<8x128xf32> -> vector<8x128xf32>
    %106 = arith.addf %101, %105 : vector<8x128xf32>
    %107 = vector.extract_strided_slice %20 {offsets = [136, 0], sizes = [8, 16], strides = [1, 1]} : vector<200x128xf32> to vector<8x16xf32>
    %c17 = arith.constant 17 : index
    %c0_72 = arith.constant 0 : index
    %c0_73 = arith.constant 0 : index
    %108 = vector.load %arg4[%c17, %c0_72, %c0_73] : memref<25x16x128xf32, #tpu.memory_space<vmem>>, vector<1x16x128xf32>
    %109 = vector.shape_cast %108 : vector<1x16x128xf32> to vector<16x128xf32>
    %cst_74 = arith.constant dense<0.000000e+00> : vector<8x128xf32>
    %110 = tpu.matmul %107, %109, %cst_74 {dimension_numbers = #tpu.dot_dimension_numbers<[1], [0], [0], [1], [0, 0, 1, 1], [], []>} : vector<8x16xf32>, vector<16x128xf32>, vector<8x128xf32> -> vector<8x128xf32>
    %111 = arith.addf %106, %110 : vector<8x128xf32>
    %112 = vector.extract_strided_slice %20 {offsets = [144, 0], sizes = [8, 16], strides = [1, 1]} : vector<200x128xf32> to vector<8x16xf32>
    %c18 = arith.constant 18 : index
    %c0_75 = arith.constant 0 : index
    %c0_76 = arith.constant 0 : index
    %113 = vector.load %arg4[%c18, %c0_75, %c0_76] : memref<25x16x128xf32, #tpu.memory_space<vmem>>, vector<1x16x128xf32>
    %114 = vector.shape_cast %113 : vector<1x16x128xf32> to vector<16x128xf32>
    %cst_77 = arith.constant dense<0.000000e+00> : vector<8x128xf32>
    %115 = tpu.matmul %112, %114, %cst_77 {dimension_numbers = #tpu.dot_dimension_numbers<[1], [0], [0], [1], [0, 0, 1, 1], [], []>} : vector<8x16xf32>, vector<16x128xf32>, vector<8x128xf32> -> vector<8x128xf32>
    %116 = arith.addf %111, %115 : vector<8x128xf32>
    %117 = vector.extract_strided_slice %20 {offsets = [152, 0], sizes = [8, 16], strides = [1, 1]} : vector<200x128xf32> to vector<8x16xf32>
    %c19 = arith.constant 19 : index
    %c0_78 = arith.constant 0 : index
    %c0_79 = arith.constant 0 : index
    %118 = vector.load %arg4[%c19, %c0_78, %c0_79] : memref<25x16x128xf32, #tpu.memory_space<vmem>>, vector<1x16x128xf32>
    %119 = vector.shape_cast %118 : vector<1x16x128xf32> to vector<16x128xf32>
    %cst_80 = arith.constant dense<0.000000e+00> : vector<8x128xf32>
    %120 = tpu.matmul %117, %119, %cst_80 {dimension_numbers = #tpu.dot_dimension_numbers<[1], [0], [0], [1], [0, 0, 1, 1], [], []>} : vector<8x16xf32>, vector<16x128xf32>, vector<8x128xf32> -> vector<8x128xf32>
    %121 = arith.addf %116, %120 : vector<8x128xf32>
    %122 = vector.extract_strided_slice %20 {offsets = [160, 0], sizes = [8, 16], strides = [1, 1]} : vector<200x128xf32> to vector<8x16xf32>
    %c20 = arith.constant 20 : index
    %c0_81 = arith.constant 0 : index
    %c0_82 = arith.constant 0 : index
    %123 = vector.load %arg4[%c20, %c0_81, %c0_82] : memref<25x16x128xf32, #tpu.memory_space<vmem>>, vector<1x16x128xf32>
    %124 = vector.shape_cast %123 : vector<1x16x128xf32> to vector<16x128xf32>
    %cst_83 = arith.constant dense<0.000000e+00> : vector<8x128xf32>
    %125 = tpu.matmul %122, %124, %cst_83 {dimension_numbers = #tpu.dot_dimension_numbers<[1], [0], [0], [1], [0, 0, 1, 1], [], []>} : vector<8x16xf32>, vector<16x128xf32>, vector<8x128xf32> -> vector<8x128xf32>
    %126 = arith.addf %121, %125 : vector<8x128xf32>
    %127 = vector.extract_strided_slice %20 {offsets = [168, 0], sizes = [8, 16], strides = [1, 1]} : vector<200x128xf32> to vector<8x16xf32>
    %c21 = arith.constant 21 : index
    %c0_84 = arith.constant 0 : index
    %c0_85 = arith.constant 0 : index
    %128 = vector.load %arg4[%c21, %c0_84, %c0_85] : memref<25x16x128xf32, #tpu.memory_space<vmem>>, vector<1x16x128xf32>
    %129 = vector.shape_cast %128 : vector<1x16x128xf32> to vector<16x128xf32>
    %cst_86 = arith.constant dense<0.000000e+00> : vector<8x128xf32>
    %130 = tpu.matmul %127, %129, %cst_86 {dimension_numbers = #tpu.dot_dimension_numbers<[1], [0], [0], [1], [0, 0, 1, 1], [], []>} : vector<8x16xf32>, vector<16x128xf32>, vector<8x128xf32> -> vector<8x128xf32>
    %131 = arith.addf %126, %130 : vector<8x128xf32>
    %132 = vector.extract_strided_slice %20 {offsets = [176, 0], sizes = [8, 16], strides = [1, 1]} : vector<200x128xf32> to vector<8x16xf32>
    %c22 = arith.constant 22 : index
    %c0_87 = arith.constant 0 : index
    %c0_88 = arith.constant 0 : index
    %133 = vector.load %arg4[%c22, %c0_87, %c0_88] : memref<25x16x128xf32, #tpu.memory_space<vmem>>, vector<1x16x128xf32>
    %134 = vector.shape_cast %133 : vector<1x16x128xf32> to vector<16x128xf32>
    %cst_89 = arith.constant dense<0.000000e+00> : vector<8x128xf32>
    %135 = tpu.matmul %132, %134, %cst_89 {dimension_numbers = #tpu.dot_dimension_numbers<[1], [0], [0], [1], [0, 0, 1, 1], [], []>} : vector<8x16xf32>, vector<16x128xf32>, vector<8x128xf32> -> vector<8x128xf32>
    %136 = arith.addf %131, %135 : vector<8x128xf32>
    %137 = vector.extract_strided_slice %20 {offsets = [184, 0], sizes = [8, 16], strides = [1, 1]} : vector<200x128xf32> to vector<8x16xf32>
    %c23 = arith.constant 23 : index
    %c0_90 = arith.constant 0 : index
    %c0_91 = arith.constant 0 : index
    %138 = vector.load %arg4[%c23, %c0_90, %c0_91] : memref<25x16x128xf32, #tpu.memory_space<vmem>>, vector<1x16x128xf32>
    %139 = vector.shape_cast %138 : vector<1x16x128xf32> to vector<16x128xf32>
    %cst_92 = arith.constant dense<0.000000e+00> : vector<8x128xf32>
    %140 = tpu.matmul %137, %139, %cst_92 {dimension_numbers = #tpu.dot_dimension_numbers<[1], [0], [0], [1], [0, 0, 1, 1], [], []>} : vector<8x16xf32>, vector<16x128xf32>, vector<8x128xf32> -> vector<8x128xf32>
    %141 = arith.addf %136, %140 : vector<8x128xf32>
    %142 = vector.extract_strided_slice %20 {offsets = [192, 0], sizes = [8, 16], strides = [1, 1]} : vector<200x128xf32> to vector<8x16xf32>
    %c24 = arith.constant 24 : index
    %c0_93 = arith.constant 0 : index
    %c0_94 = arith.constant 0 : index
    %143 = vector.load %arg4[%c24, %c0_93, %c0_94] : memref<25x16x128xf32, #tpu.memory_space<vmem>>, vector<1x16x128xf32>
    %144 = vector.shape_cast %143 : vector<1x16x128xf32> to vector<16x128xf32>
    %cst_95 = arith.constant dense<0.000000e+00> : vector<8x128xf32>
    %145 = tpu.matmul %142, %144, %cst_95 {dimension_numbers = #tpu.dot_dimension_numbers<[1], [0], [0], [1], [0, 0, 1, 1], [], []>} : vector<8x16xf32>, vector<16x128xf32>, vector<8x128xf32> -> vector<8x128xf32>
    %146 = arith.addf %141, %145 : vector<8x128xf32>
    %c0_96 = arith.constant 0 : index
    %c0_97 = arith.constant 0 : index
    %147 = vector.load %arg5[%c0_96, %c0_97] : memref<1x128xf32, #tpu.memory_space<vmem>>, vector<1x128xf32>
    %148 = vector.broadcast %147 : vector<1x128xf32> to vector<8x128xf32>
    %149 = arith.addf %146, %148 : vector<8x128xf32>
    %cst_98 = arith.constant 0.000000e+00 : f32
    %150 = vector.broadcast %cst_98 : f32 to vector<8x128xf32>
    %151 = arith.maximumf %149, %150 : vector<8x128xf32>
    %c0_99 = arith.constant 0 : index
    %c0_100 = arith.constant 0 : index
    %152 = vector.load %arg6[%c0_99, %c0_100] : memref<128x128xf32, #tpu.memory_space<vmem>>, vector<128x128xf32>
    %cst_101 = arith.constant dense<0.000000e+00> : vector<8x128xf32>
    %153 = tpu.matmul %151, %152, %cst_101 {dimension_numbers = #tpu.dot_dimension_numbers<[1], [0], [0], [1], [0, 0, 1, 1], [], []>} : vector<8x128xf32>, vector<128x128xf32>, vector<8x128xf32> -> vector<8x128xf32>
    %c0_102 = arith.constant 0 : index
    %c0_103 = arith.constant 0 : index
    %154 = vector.load %arg7[%c0_102, %c0_103] : memref<1x128xf32, #tpu.memory_space<vmem>>, vector<1x128xf32>
    %155 = vector.broadcast %154 : vector<1x128xf32> to vector<8x128xf32>
    %156 = arith.addf %153, %155 : vector<8x128xf32>
    %cst_104 = arith.constant 0.000000e+00 : f32
    %157 = vector.broadcast %cst_104 : f32 to vector<8x128xf32>
    %158 = arith.maximumf %156, %157 : vector<8x128xf32>
    %c0_105 = arith.constant 0 : index
    %c0_106 = arith.constant 0 : index
    %159 = vector.load %arg8[%c0_105, %c0_106] : memref<128x128xf32, #tpu.memory_space<vmem>>, vector<128x128xf32>
    %cst_107 = arith.constant dense<0.000000e+00> : vector<8x128xf32>
    %160 = tpu.matmul %158, %159, %cst_107 {dimension_numbers = #tpu.dot_dimension_numbers<[1], [0], [0], [1], [0, 0, 1, 1], [], []>} : vector<8x128xf32>, vector<128x128xf32>, vector<8x128xf32> -> vector<8x128xf32>
    %c0_108 = arith.constant 0 : index
    %c0_109 = arith.constant 0 : index
    %161 = vector.load %arg9[%c0_108, %c0_109] : memref<1x128xf32, #tpu.memory_space<vmem>>, vector<1x128xf32>
    %162 = vector.broadcast %161 : vector<1x128xf32> to vector<8x128xf32>
    %163 = arith.addf %160, %162 : vector<8x128xf32>
    %c0_110 = arith.constant 0 : index
    %c0_111 = arith.constant 0 : index
    %164 = vector.load %arg10[%c0_110, %c0_111] : memref<8x128xf32, #tpu.memory_space<vmem>>, vector<8x128xf32>
    tpu.vector_store %arg10[%c0_110, %c0_111], %163 {strides = array<i32>} : memref<8x128xf32, #tpu.memory_space<vmem>>, vector<8x128xf32>,
    return
  }
  func.func @transform_0(%arg0: i32) -> (i32, i32, i32) {
    %c0_i32 = arith.constant 0 : i32
    %c0_i32_0 = arith.constant 0 : i32
    %c0_i32_1 = arith.constant 0 : i32
    %c0_i32_2 = arith.constant 0 : i32
    return %c0_i32, %c0_i32_0, %c0_i32_1 : i32, i32, i32
  }
  func.func @transform_1(%arg0: i32) -> (i32, i32) {
    %c0_i32 = arith.constant 0 : i32
    %c0_i32_0 = arith.constant 0 : i32
    %c0_i32_1 = arith.constant 0 : i32
    return %c0_i32, %c0_i32_0 : i32, i32
  }
  func.func @transform_2(%arg0: i32) -> (i32, i32) {
    %c0_i32 = arith.constant 0 : i32
    %c0_i32_0 = arith.constant 0 : i32
    %c0_i32_1 = arith.constant 0 : i32
    return %c0_i32, %c0_i32_0 : i32, i32
  }
  func.func @transform_3(%arg0: i32) -> (i32, i32, i32) {
    %c0_i32 = arith.constant 0 : i32
    %c0_i32_0 = arith.constant 0 : i32
    %c0_i32_1 = arith.constant 0 : i32
    %c0_i32_2 = arith.constant 0 : i32
    return %c0_i32, %c0_i32_0, %c0_i32_1 : i32, i32, i32
  }
  func.func @transform_4(%arg0: i32) -> (i32, i32) {
    %c0_i32 = arith.constant 0 : i32
    %c0_i32_0 = arith.constant 0 : i32
    %c0_i32_1 = arith.constant 0 : i32
    return %c0_i32, %c0_i32_0 : i32, i32
  }
  func.func @transform_5(%arg0: i32) -> (i32, i32) {
    %c0_i32 = arith.constant 0 : i32
    %c0_i32_0 = arith.constant 0 : i32
    %c0_i32_1 = arith.constant 0 : i32
    return %c0_i32, %c0_i32_0 : i32, i32
  }
  func.func @transform_6(%arg0: i32) -> (i32, i32) {
    %c0_i32 = arith.constant 0 : i32
    %c0_i32_0 = arith.constant 0 : i32
    %c0_i32_1 = arith.constant 0 : i32
    return %c0_i32, %c0_i32_0 : i32, i32
  }
  func.func @transform_7(%arg0: i32) -> (i32, i32) {
    %c0_i32 = arith.constant 0 : i32
    %c0_i32_0 = arith.constant 0 : i32
    %c0_i32_1 = arith.constant 0 : i32
    return %c0_i32, %c0_i32_0 : i32, i32
  }
  func.func @transform_8(%arg0: i32) -> (i32, i32) {
    %c0_i32 = arith.constant 0 : i32
    %c0_i32_0 = arith.constant 0 : i32
    %c0_i32_1 = arith.constant 0 : i32
    return %c0_i32, %c0_i32_0 : i32, i32
  }
  func.func @transform_9(%arg0: i32) -> (i32, i32) {
    %c0_i32 = arith.constant 0 : i32
    %c0_i32_0 = arith.constant 0 : i32
    %c0_i32_1 = arith.constant 0 : i32
    return %c0_i32, %c0_i32_0 : i32, i32
  }
}

</mosaic_0001>

<bundles_post_ra>
// kernel: lenet_forward.2
= control target key start
LH: loop header
LB: loop body
LE: loop exit
PB: predicated region body
PF: predicated region fallthrough
CT: control target
= control target key end

     0   :  { %s7638_s12 = smov 0   ;;  %s7640_s13 = smov 0   ;;  %s9494_s0 = inlined_call_operand.vmem [shape: f32[4,1568,25], index: 0, kind: input, shape index: {}]   ;;  %s9495_s1 = inlined_call_operand.vmem [shape: f32[25,128], index: 1, kind: input, shape index: {}]   ;;  %s9496_s2 = inlined_call_operand.vmem [shape: f32[1,128], index: 2, kind: input, shape index: {}]   ;;  %s9497_s3 = inlined_call_operand.vmem [shape: f32[1568,128], index: 3, kind: output, shape index: {}]  }
   0x1   :  { %s7642_s14 = smov 0  }
   0x2 LB: > { %s6864_s15 = sadd.s32 4294967295, %s7616_s14   ;;  %s7655_s16 = sadd.s32 1, %s7616_s14   ;;  %s7616_s14 = sphi %s7642_s14, %s9500_s14   ;;  %s7612_s13 = sphi %s7640_s13, %s9499_s13   ;;  %s7608_s12 = sphi %s7638_s12, %s9498_s12  }
   0x3   : > { %s17_s17 = ssub.s32 %s7616_s14, %s7655_s16  ;;  %s20_s18 = sadd.s32 1, %s7612_s13 }
   0x4   : > { %p18_p0 = scmp.eq.s32.totalorder %s17_s17, 0  ;;  %p27_p1 = scmp.ne.s32.totalorder %s7612_s13, %s7608_s12 }
   0x5   : > { %p28_p2 = scmp.eq.s32.totalorder %s7616_s14, 0  ;;  %p6867_p4 = scmp.ge.s32.totalorder %s7616_s14, 2 }
   0x6   : > { %s7664_s19 = scalar_select %p18_p0, %s7612_s13, %s20_s18  }
   0x7   : > { %p29_p3 = por %p28_p2, %p27_p1  ;;  %127 = sbr.rel (%p6867_p4) target bundleno = 409 (0x199), region = 24 }
   0xc   : > { %130 = sbr.rel (!%p29_p3) target bundleno = 409 (0x199), region = 28  ;;  %s132_s20 = sand.u32 (%p29_p3), 1, %s7612_s13  }
   0xd   : > { %s7563_s21 = smul.u32 (%p29_p3), 784, %s7616_s14 }
   0xe   : > { %s7564_s22 = smul.u32 (%p29_p3), 3136, %s132_s20 }
   0xf   : > { %s7672_s25 = scalar_lea.vmem (%p29_p3), %s9494_s0, %s7563_s21 }
  0x10   : > { %v949_v0 = vld [vmem:[%s7672_s25] sm:$0xff] (%p29_p3)  ;;  %v951_v1 = vld [vmem:[%s7672_s25 + $0x8] sm:$0xff] (%p29_p3)  ;;  %v953_v2 = vld [vmem:[%s7672_s25 + $0x10] sm:$0xff] (%p29_p3)  ;;  %s7677_s26 = scalar_lea.vmem (%p29_p3), [#allocation2], %s7564_s22 }
  0x11   : > { %950 = vst [vmem:[%s7677_s26] sm:$0xff] %v949_v0  ;;  %v955_v3 = vld [vmem:[%s7672_s25 + $0x18] sm:$0xff]  ;;  %v957_v4 = vld [vmem:[%s7672_s25 + $0x20] sm:$0xff]  ;;  %v959_v5 = vld [vmem:[%s7672_s25 + $0x28] sm:$0xff] }
  0x12   : > { %952 = vst [vmem:[%s7677_s26 + $0x8] sm:$0xff] %v951_v1  ;;  %v961_v6 = vld [vmem:[%s7672_s25 + $0x30] sm:$0xff]  ;;  %v963_v7 = vld [vmem:[%s7672_s25 + $0x38] sm:$0xff]  ;;  %v965_v8 = vld [vmem:[%s7672_s25 + $0x40] sm:$0xff] }
  0x13   : > { %954 = vst [vmem:[%s7677_s26 + $0x10] sm:$0xff] %v953_v2  ;;  %v967_v9 = vld [vmem:[%s7672_s25 + $0x48] sm:$0xff]  ;;  %v969_v10 = vld [vmem:[%s7672_s25 + $0x50] sm:$0xff]  ;;  %v971_v11 = vld [vmem:[%s7672_s25 + $0x58] sm:$0xff] }
  0x14   : > { %956 = vst [vmem:[%s7677_s26 + $0x18] sm:$0xff] %v955_v3  ;;  %v973_v12 = vld [vmem:[%s7672_s25 + $0x60] sm:$0xff]  ;;  %v975_v13 = vld [vmem:[%s7672_s25 + $0x68] sm:$0xff]  ;;  %v977_v14 = vld [vmem:[%s7672_s25 + $0x70] sm:$0xff] }
  0x15   : > { %958 = vst [vmem:[%s7677_s26 + $0x20] sm:$0xff] %v957_v4  ;;  %v979_v15 = vld [vmem:[%s7672_s25 + $0x78] sm:$0xff]  ;;  %v981_v16 = vld [vmem:[%s7672_s25 + $0x80] sm:$0xff]  ;;  %v983_v17 = vld [vmem:[%s7672_s25 + $0x88] sm:$0xff] }
  0x16   : > { %960 = vst [vmem:[%s7677_s26 + $0x28] sm:$0xff] %v959_v5  ;;  %v985_v18 = vld [vmem:[%s7672_s25 + $0x90] sm:$0xff]  ;;  %v987_v19 = vld [vmem:[%s7672_s25 + $0x98] sm:$0xff]  ;;  %v989_v20 = vld [vmem:[%s7672_s25 + $0xa0] sm:$0xff] }
  0x17   : > { %962 = vst [vmem:[%s7677_s26 + $0x30] sm:$0xff] %v961_v6  ;;  %v991_v21 = vld [vmem:[%s7672_s25 + $0xa8] sm:$0xff]  ;;  %v993_v22 = vld [vmem:[%s7672_s25 + $0xb0] sm:$0xff]  ;;  %v995_v23 = vld [vmem:[%s7672_s25 + $0xb8] sm:$0xff] }
  0x18   : > { %964 = vst [vmem:[%s7677_s26 + $0x38] sm:$0xff] %v963_v7  ;;  %v997_v24 = vld [vmem:[%s7672_s25 + $0xc0] sm:$0xff]  ;;  %v999_v25 = vld [vmem:[%s7672_s25 + $0xc8] sm:$0xff]  ;;  %v1001_v26 = vld [vmem:[%s7672_s25 + $0xd0] sm:$0xff] }
  0x19   : > { %966 = vst [vmem:[%s7677_s26 + $0x40] sm:$0xff] %v965_v8  ;;  %v1003_v27 = vld [vmem:[%s7672_s25 + $0xd8] sm:$0xff]  ;;  %v1005_v28 = vld [vmem:[%s7672_s25 + $0xe0] sm:$0xff]  ;;  %v1007_v29 = vld [vmem:[%s7672_s25 + $0xe8] sm:$0xff] }
  0x1a   : > { %968 = vst [vmem:[%s7677_s26 + $0x48] sm:$0xff] %v967_v9  ;;  %v1009_v30 = vld [vmem:[%s7672_s25 + $0xf0] sm:$0xff]  ;;  %v1011_v31 = vld [vmem:[%s7672_s25 + $0xf8] sm:$0xff]  ;;  %v1013_v32 = vld [vmem:[%s7672_s25 + $0x100] sm:$0xff] }
  0x1b   : > { %970 = vst [vmem:[%s7677_s26 + $0x50] sm:$0xff] %v969_v10  ;;  %v1015_v33 = vld [vmem:[%s7672_s25 + $0x108] sm:$0xff]  ;;  %v1017_v34 = vld [vmem:[%s7672_s25 + $0x110] sm:$0xff]  ;;  %v1019_v35 = vld [vmem:[%s7672_s25 + $0x118] sm:$0xff] }
  0x1c   : > { %972 = vst [vmem:[%s7677_s26 + $0x58] sm:$0xff] %v971_v11  ;;  %v1021_v36 = vld [vmem:[%s7672_s25 + $0x120] sm:$0xff]  ;;  %v1023_v37 = vld [vmem:[%s7672_s25 + $0x128] sm:$0xff]  ;;  %v1025_v38 = vld [vmem:[%s7672_s25 + $0x130] sm:$0xff] }
  0x1d   : > { %974 = vst [vmem:[%s7677_s26 + $0x60] sm:$0xff] %v973_v12  ;;  %v1027_v39 = vld [vmem:[%s7672_s25 + $0x138] sm:$0xff]  ;;  %v1029_v40 = vld [vmem:[%s7672_s25 + $0x140] sm:$0xff]  ;;  %v1031_v41 = vld [vmem:[%s7672_s25 + $0x148] sm:$0xff] }
  0x1e   : > { %976 = vst [vmem:[%s7677_s26 + $0x68] sm:$0xff] %v975_v13  ;;  %v1033_v42 = vld [vmem:[%s7672_s25 + $0x150] sm:$0xff]  ;;  %v1035_v43 = vld [vmem:[%s7672_s25 + $0x158] sm:$0xff]  ;;  %v1037_v44 = vld [vmem:[%s7672_s25 + $0x160] sm:$0xff] }
  0x1f   : > { %978 = vst [vmem:[%s7677_s26 + $0x70] sm:$0xff] %v977_v14  ;;  %v1039_v45 = vld [vmem:[%s7672_s25 + $0x168] sm:$0xff]  ;;  %v1041_v46 = vld [vmem:[%s7672_s25 + $0x170] sm:$0xff]  ;;  %v1043_v47 = vld [vmem:[%s7672_s25 + $0x178] sm:$0xff] }
  0x20   : > { %980 = vst [vmem:[%s7677_s26 + $0x78] sm:$0xff] %v979_v15  ;;  %v1045_v48 = vld [vmem:[%s7672_s25 + $0x180] sm:$0xff]  ;;  %v1047_v49 = vld [vmem:[%s7672_s25 + $0x188] sm:$0xff]  ;;  %v1049_v50 = vld [vmem:[%s7672_s25 + $0x190] sm:$0xff] }
  0x21   : > { %982 = vst [vmem:[%s7677_s26 + $0x80] sm:$0xff] %v981_v16  ;;  %v1051_v51 = vld [vmem:[%s7672_s25 + $0x198] sm:$0xff]  ;;  %v1053_v52 = vld [vmem:[%s7672_s25 + $0x1a0] sm:$0xff]  ;;  %v1055_v53 = vld [vmem:[%s7672_s25 + $0x1a8] sm:$0xff] }
  0x22   : > { %984 = vst [vmem:[%s7677_s26 + $0x88] sm:$0xff] %v983_v17  ;;  %v1057_v54 = vld [vmem:[%s7672_s25 + $0x1b0] sm:$0xff]  ;;  %v1059_v55 = vld [vmem:[%s7672_s25 + $0x1b8] sm:$0xff]  ;;  %v1061_v56 = vld [vmem:[%s7672_s25 + $0x1c0] sm:$0xff] }
  0x23   : > { %986 = vst [vmem:[%s7677_s26 + $0x90] sm:$0xff] %v985_v18  ;;  %v1063_v57 = vld [vmem:[%s7672_s25 + $0x1c8] sm:$0xff]  ;;  %v1065_v58 = vld [vmem:[%s7672_s25 + $0x1d0] sm:$0xff]  ;;  %v1067_v59 = vld [vmem:[%s7672_s25 + $0x1d8] sm:$0xff] }
  0x24   : > { %988 = vst [vmem:[%s7677_s26 + $0x98] sm:$0xff] %v987_v19  ;;  %v1069_v60 = vld [vmem:[%s7672_s25 + $0x1e0] sm:$0xff]  ;;  %v1071_v61 = vld [vmem:[%s7672_s25 + $0x1e8] sm:$0xff]  ;;  %v1073_v62 = vld [vmem:[%s7672_s25 + $0x1f0] sm:$0xff] }
  0x25   : > { %990 = vst [vmem:[%s7677_s26 + $0xa0] sm:$0xff] %v989_v20  ;;  %v1075_v63 = vld [vmem:[%s7672_s25 + $0x1f8] sm:$0xff]  ;;  %v1077_v0 = vld [vmem:[%s7672_s25 + $0x200] sm:$0xff]  ;;  %v1079_v1 = vld [vmem:[%s7672_s25 + $0x208] sm:$0xff] }
  0x26   : > { %992 = vst [vmem:[%s7677_s26 + $0xa8] sm:$0xff] %v991_v21  ;;  %v1081_v2 = vld [vmem:[%s7672_s25 + $0x210] sm:$0xff]  ;;  %v1083_v3 = vld [vmem:[%s7672_s25 + $0x218] sm:$0xff]  ;;  %v1085_v4 = vld [vmem:[%s7672_s25 + $0x220] sm:$0xff] }
  0x27   : > { %994 = vst [vmem:[%s7677_s26 + $0xb0] sm:$0xff] %v993_v22  ;;  %v1087_v5 = vld [vmem:[%s7672_s25 + $0x228] sm:$0xff]  ;;  %v1089_v6 = vld [vmem:[%s7672_s25 + $0x230] sm:$0xff]  ;;  %v1091_v7 = vld [vmem:[%s7672_s25 + $0x238] sm:$0xff] }
  0x28   : > { %996 = vst [vmem:[%s7677_s26 + $0xb8] sm:$0xff] %v995_v23  ;;  %v1093_v8 = vld [vmem:[%s7672_s25 + $0x240] sm:$0xff]  ;;  %v1095_v9 = vld [vmem:[%s7672_s25 + $0x248] sm:$0xff]  ;;  %v1097_v10 = vld [vmem:[%s7672_s25 + $0x250] sm:$0xff] }
  0x29   : > { %998 = vst [vmem:[%s7677_s26 + $0xc0] sm:$0xff] %v997_v24  ;;  %v1099_v11 = vld [vmem:[%s7672_s25 + $0x258] sm:$0xff]  ;;  %v1101_v12 = vld [vmem:[%s7672_s25 + $0x260] sm:$0xff]  ;;  %v1103_v13 = vld [vmem:[%s7672_s25 + $0x268] sm:$0xff] }
  0x2a   : > { %1000 = vst [vmem:[%s7677_s26 + $0xc8] sm:$0xff] %v999_v25  ;;  %v1105_v14 = vld [vmem:[%s7672_s25 + $0x270] sm:$0xff]  ;;  %v1107_v15 = vld [vmem:[%s7672_s25 + $0x278] sm:$0xff]  ;;  %v1109_v16 = vld [vmem:[%s7672_s25 + $0x280] sm:$0xff] }
  0x2b   : > { %1002 = vst [vmem:[%s7677_s26 + $0xd0] sm:$0xff] %v1001_v26  ;;  %v1111_v17 = vld [vmem:[%s7672_s25 + $0x288] sm:$0xff]  ;;  %v1113_v18 = vld [vmem:[%s7672_s25 + $0x290] sm:$0xff]  ;;  %v1115_v19 = vld [vmem:[%s7672_s25 + $0x298] sm:$0xff] }
  0x2c   : > { %1004 = vst [vmem:[%s7677_s26 + $0xd8] sm:$0xff] %v1003_v27  ;;  %v1117_v20 = vld [vmem:[%s7672_s25 + $0x2a0] sm:$0xff]  ;;  %v1119_v21 = vld [vmem:[%s7672_s25 + $0x2a8] sm:$0xff]  ;;  %v1121_v22 = vld [vmem:[%s7672_s25 + $0x2b0] sm:$0xff] }
  0x2d   : > { %1006 = vst [vmem:[%s7677_s26 + $0xe0] sm:$0xff] %v1005_v28  ;;  %v1123_v23 = vld [vmem:[%s7672_s25 + $0x2b8] sm:$0xff]  ;;  %v1125_v24 = vld [vmem:[%s7672_s25 + $0x2c0] sm:$0xff]  ;;  %v1127_v25 = vld [vmem:[%s7672_s25 + $0x2c8] sm:$0xff] }
  0x2e   : > { %1008 = vst [vmem:[%s7677_s26 + $0xe8] sm:$0xff] %v1007_v29  ;;  %v1129_v26 = vld [vmem:[%s7672_s25 + $0x2d0] sm:$0xff]  ;;  %v1131_v27 = vld [vmem:[%s7672_s25 + $0x2d8] sm:$0xff]  ;;  %v1133_v28 = vld [vmem:[%s7672_s25 + $0x2e0] sm:$0xff] }
  0x2f   : > { %1010 = vst [vmem:[%s7677_s26 + $0xf0] sm:$0xff] %v1009_v30  ;;  %v1135_v29 = vld [vmem:[%s7672_s25 + $0x2e8] sm:$0xff]  ;;  %v1137_v30 = vld [vmem:[%s7672_s25 + $0x2f0] sm:$0xff] }
  0x30   : > { %1012 = vst [vmem:[%s7677_s26 + $0xf8] sm:$0xff] %v1011_v31  ;;  %v1139_v31 = vld [vmem:[%s7672_s25 + $0x2f8] sm:$0xff] }
  0x31   : > { %1014 = vst [vmem:[%s7677_s26 + $0x100] sm:$0xff] %v1013_v32  ;;  %v1141_v32 = vld [vmem:[%s7672_s25 + $0x300] sm:$0xff] }
  0x32   : > { %1016 = vst [vmem:[%s7677_s26 + $0x108] sm:$0xff] %v1015_v33  ;;  %v1143_v33 = vld [vmem:[%s7672_s25 + $0x308] sm:$0xff] }
  0x33   : > { %1018 = vst [vmem:[%s7677_s26 + $0x110] sm:$0xff] %v1017_v34  ;;  %v1145_v34 = vld [vmem:[%s7672_s25 + $0x620] sm:$0xff] }
  0x34   : > { %1020 = vst [vmem:[%s7677_s26 + $0x118] sm:$0xff] %v1019_v35  ;;  %v1147_v35 = vld [vmem:[%s7672_s25 + $0x628] sm:$0xff] }
  0x35   : > { %1022 = vst [vmem:[%s7677_s26 + $0x120] sm:$0xff] %v1021_v36  ;;  %v1149_v36 = vld [vmem:[%s7672_s25 + $0x630] sm:$0xff] }
  0x36   : > { %1024 = vst [vmem:[%s7677_s26 + $0x128] sm:$0xff] %v1023_v37  ;;  %v1151_v37 = vld [vmem:[%s7672_s25 + $0x638] sm:$0xff] }
  0x37   : > { %1026 = vst [vmem:[%s7677_s26 + $0x130] sm:$0xff] %v1025_v38  ;;  %v1153_v38 = vld [vmem:[%s7672_s25 + $0x640] sm:$0xff] }
  0x38   : > { %1028 = vst [vmem:[%s7677_s26 + $0x138] sm:$0xff] %v1027_v39  ;;  %v1155_v39 = vld [vmem:[%s7672_s25 + $0x648] sm:$0xff] }
  0x39   : > { %1030 = vst [vmem:[%s7677_s26 + $0x140] sm:$0xff] %v1029_v40  ;;  %v1157_v40 = vld [vmem:[%s7672_s25 + $0x650] sm:$0xff] }
  0x3a   : > { %1032 = vst [vmem:[%s7677_s26 + $0x148] sm:$0xff] %v1031_v41  ;;  %v1159_v41 = vld [vmem:[%s7672_s25 + $0x658] sm:$0xff] }
  0x3b   : > { %1034 = vst [vmem:[%s7677_s26 + $0x150] sm:$0xff] %v1033_v42  ;;  %v1161_v42 = vld [vmem:[%s7672_s25 + $0x660] sm:$0xff] }
  0x3c   : > { %1036 = vst [vmem:[%s7677_s26 + $0x158] sm:$0xff] %v1035_v43  ;;  %v1163_v43 = vld [vmem:[%s7672_s25 + $0x668] sm:$0xff] }
  0x3d   : > { %1038 = vst [vmem:[%s7677_s26 + $0x160] sm:$0xff] %v1037_v44  ;;  %v1165_v44 = vld [vmem:[%s7672_s25 + $0x670] sm:$0xff] }
  0x3e   : > { %1040 = vst [vmem:[%s7677_s26 + $0x168] sm:$0xff] %v1039_v45  ;;  %v1167_v45 = vld [vmem:[%s7672_s25 + $0x678] sm:$0xff] }
  0x3f   : > { %1042 = vst [vmem:[%s7677_s26 + $0x170] sm:$0xff] %v1041_v46  ;;  %v1169_v46 = vld [vmem:[%s7672_s25 + $0x680] sm:$0xff] }
  0x40   : > { %1044 = vst [vmem:[%s7677_s26 + $0x178] sm:$0xff] %v1043_v47  ;;  %v1171_v47 = vld [vmem:[%s7672_s25 + $0x688] sm:$0xff] }
  0x41   : > { %1046 = vst [vmem:[%s7677_s26 + $0x180] sm:$0xff] %v1045_v48  ;;  %v1173_v48 = vld [vmem:[%s7672_s25 + $0x690] sm:$0xff] }
  0x42   : > { %1048 = vst [vmem:[%s7677_s26 + $0x188] sm:$0xff] %v1047_v49  ;;  %v1175_v49 = vld [vmem:[%s7672_s25 + $0x698] sm:$0xff] }
  0x43   : > { %1050 = vst [vmem:[%s7677_s26 + $0x190] sm:$0xff] %v1049_v50  ;;  %v1177_v50 = vld [vmem:[%s7672_s25 + $0x6a0] sm:$0xff] }
  0x44   : > { %1052 = vst [vmem:[%s7677_s26 + $0x198] sm:$0xff] %v1051_v51  ;;  %v1179_v51 = vld [vmem:[%s7672_s25 + $0x6a8] sm:$0xff] }
  0x45   : > { %1054 = vst [vmem:[%s7677_s26 + $0x1a0] sm:$0xff] %v1053_v52  ;;  %v1181_v52 = vld [vmem:[%s7672_s25 + $0x6b0] sm:$0xff] }
  0x46   : > { %1056 = vst [vmem:[%s7677_s26 + $0x1a8] sm:$0xff] %v1055_v53  ;;  %v1183_v53 = vld [vmem:[%s7672_s25 + $0x6b8] sm:$0xff] }
  0x47   : > { %1058 = vst [vmem:[%s7677_s26 + $0x1b0] sm:$0xff] %v1057_v54  ;;  %v1185_v54 = vld [vmem:[%s7672_s25 + $0x6c0] sm:$0xff] }
  0x48   : > { %1060 = vst [vmem:[%s7677_s26 + $0x1b8] sm:$0xff] %v1059_v55  ;;  %v1187_v55 = vld [vmem:[%s7672_s25 + $0x6c8] sm:$0xff] }
  0x49   : > { %1062 = vst [vmem:[%s7677_s26 + $0x1c0] sm:$0xff] %v1061_v56  ;;  %v1189_v56 = vld [vmem:[%s7672_s25 + $0x6d0] sm:$0xff] }
  0x4a   : > { %1064 = vst [vmem:[%s7677_s26 + $0x1c8] sm:$0xff] %v1063_v57  ;;  %v1191_v57 = vld [vmem:[%s7672_s25 + $0x6d8] sm:$0xff] }
  0x4b   : > { %1066 = vst [vmem:[%s7677_s26 + $0x1d0] sm:$0xff] %v1065_v58  ;;  %v1193_v58 = vld [vmem:[%s7672_s25 + $0x6e0] sm:$0xff] }
  0x4c   : > { %1068 = vst [vmem:[%s7677_s26 + $0x1d8] sm:$0xff] %v1067_v59  ;;  %v1195_v59 = vld [vmem:[%s7672_s25 + $0x6e8] sm:$0xff] }
  0x4d   : > { %1070 = vst [vmem:[%s7677_s26 + $0x1e0] sm:$0xff] %v1069_v60  ;;  %v1197_v60 = vld [vmem:[%s7672_s25 + $0x6f0] sm:$0xff] }
  0x4e   : > { %1072 = vst [vmem:[%s7677_s26 + $0x1e8] sm:$0xff] %v1071_v61  ;;  %v1199_v61 = vld [vmem:[%s7672_s25 + $0x6f8] sm:$0xff] }
  0x4f   : > { %1074 = vst [vmem:[%s7677_s26 + $0x1f0] sm:$0xff] %v1073_v62  ;;  %v1201_v62 = vld [vmem:[%s7672_s25 + $0x700] sm:$0xff] }
  0x50   : > { %1076 = vst [vmem:[%s7677_s26 + $0x1f8] sm:$0xff] %v1075_v63  ;;  %v1203_v63 = vld [vmem:[%s7672_s25 + $0x708] sm:$0xff] }
  0x51   : > { %1078 = vst [vmem:[%s7677_s26 + $0x200] sm:$0xff] %v1077_v0  ;;  %v1205_v0 = vld [vmem:[%s7672_s25 + $0x710] sm:$0xff] }
  0x52   : > { %1080 = vst [vmem:[%s7677_s26 + $0x208] sm:$0xff] %v1079_v1  ;;  %v1207_v1 = vld [vmem:[%s7672_s25 + $0x718] sm:$0xff] }
  0x53   : > { %1082 = vst [vmem:[%s7677_s26 + $0x210] sm:$0xff] %v1081_v2  ;;  %v1209_v2 = vld [vmem:[%s7672_s25 + $0x720] sm:$0xff] }
  0x54   : > { %1084 = vst [vmem:[%s7677_s26 + $0x218] sm:$0xff] %v1083_v3  ;;  %v1211_v3 = vld [vmem:[%s7672_s25 + $0x728] sm:$0xff] }
  0x55   : > { %1086 = vst [vmem:[%s7677_s26 + $0x220] sm:$0xff] %v1085_v4  ;;  %v1213_v4 = vld [vmem:[%s7672_s25 + $0x730] sm:$0xff] }
  0x56   : > { %1088 = vst [vmem:[%s7677_s26 + $0x228] sm:$0xff] %v1087_v5  ;;  %v1215_v5 = vld [vmem:[%s7672_s25 + $0x738] sm:$0xff] }
  0x57   : > { %1090 = vst [vmem:[%s7677_s26 + $0x230] sm:$0xff] %v1089_v6  ;;  %v1217_v6 = vld [vmem:[%s7672_s25 + $0x740] sm:$0xff] }
  0x58   : > { %1092 = vst [vmem:[%s7677_s26 + $0x238] sm:$0xff] %v1091_v7  ;;  %v1219_v7 = vld [vmem:[%s7672_s25 + $0x748] sm:$0xff] }
  0x59   : > { %1094 = vst [vmem:[%s7677_s26 + $0x240] sm:$0xff] %v1093_v8  ;;  %v1221_v8 = vld [vmem:[%s7672_s25 + $0x750] sm:$0xff] }
  0x5a   : > { %1096 = vst [vmem:[%s7677_s26 + $0x248] sm:$0xff] %v1095_v9  ;;  %v1223_v9 = vld [vmem:[%s7672_s25 + $0x758] sm:$0xff] }
  0x5b   : > { %1098 = vst [vmem:[%s7677_s26 + $0x250] sm:$0xff] %v1097_v10  ;;  %v1225_v10 = vld [vmem:[%s7672_s25 + $0x760] sm:$0xff] }
  0x5c   : > { %1100 = vst [vmem:[%s7677_s26 + $0x258] sm:$0xff] %v1099_v11  ;;  %v1227_v11 = vld [vmem:[%s7672_s25 + $0x768] sm:$0xff] }
  0x5d   : > { %1102 = vst [vmem:[%s7677_s26 + $0x260] sm:$0xff] %v1101_v12  ;;  %v1229_v12 = vld [vmem:[%s7672_s25 + $0x770] sm:$0xff] }
  0x5e   : > { %1104 = vst [vmem:[%s7677_s26 + $0x268] sm:$0xff] %v1103_v13  ;;  %v1231_v13 = vld [vmem:[%s7672_s25 + $0x778] sm:$0xff] }
  0x5f   : > { %1106 = vst [vmem:[%s7677_s26 + $0x270] sm:$0xff] %v1105_v14  ;;  %v1233_v14 = vld [vmem:[%s7672_s25 + $0x780] sm:$0xff] }
  0x60   : > { %1108 = vst [vmem:[%s7677_s26 + $0x278] sm:$0xff] %v1107_v15  ;;  %v1235_v15 = vld [vmem:[%s7672_s25 + $0x788] sm:$0xff] }
  0x61   : > { %1110 = vst [vmem:[%s7677_s26 + $0x280] sm:$0xff] %v1109_v16  ;;  %v1237_v16 = vld [vmem:[%s7672_s25 + $0x790] sm:$0xff] }
  0x62   : > { %1112 = vst [vmem:[%s7677_s26 + $0x288] sm:$0xff] %v1111_v17  ;;  %v1239_v17 = vld [vmem:[%s7672_s25 + $0x798] sm:$0xff] }
  0x63   : > { %1114 = vst [vmem:[%s7677_s26 + $0x290] sm:$0xff] %v1113_v18  ;;  %v1241_v18 = vld [vmem:[%s7672_s25 + $0x7a0] sm:$0xff] }
  0x64   : > { %1116 = vst [vmem:[%s7677_s26 + $0x298] sm:$0xff] %v1115_v19  ;;  %v1243_v19 = vld [vmem:[%s7672_s25 + $0x7a8] sm:$0xff] }
  0x65   : > { %1118 = vst [vmem:[%s7677_s26 + $0x2a0] sm:$0xff] %v1117_v20  ;;  %v1245_v20 = vld [vmem:[%s7672_s25 + $0x7b0] sm:$0xff] }
  0x66   : > { %1120 = vst [vmem:[%s7677_s26 + $0x2a8] sm:$0xff] %v1119_v21  ;;  %v1247_v21 = vld [vmem:[%s7672_s25 + $0x7b8] sm:$0xff] }
  0x67   : > { %1122 = vst [vmem:[%s7677_s26 + $0x2b0] sm:$0xff] %v1121_v22  ;;  %v1249_v22 = vld [vmem:[%s7672_s25 + $0x7c0] sm:$0xff] }
  0x68   : > { %1124 = vst [vmem:[%s7677_s26 + $0x2b8] sm:$0xff] %v1123_v23  ;;  %v1251_v23 = vld [vmem:[%s7672_s25 + $0x7c8] sm:$0xff] }
  0x69   : > { %1126 = vst [vmem:[%s7677_s26 + $0x2c0] sm:$0xff] %v1125_v24  ;;  %v1253_v24 = vld [vmem:[%s7672_s25 + $0x7d0] sm:$0xff] }
  0x6a   : > { %1128 = vst [vmem:[%s7677_s26 + $0x2c8] sm:$0xff] %v1127_v25  ;;  %v1255_v25 = vld [vmem:[%s7672_s25 + $0x7d8] sm:$0xff] }
  0x6b   : > { %1130 = vst [vmem:[%s7677_s26 + $0x2d0] sm:$0xff] %v1129_v26  ;;  %v1257_v26 = vld [vmem:[%s7672_s25 + $0x7e0] sm:$0xff] }
  0x6c   : > { %1132 = vst [vmem:[%s7677_s26 + $0x2d8] sm:$0xff] %v1131_v27  ;;  %v1259_v27 = vld [vmem:[%s7672_s25 + $0x7e8] sm:$0xff] }
  0x6d   : > { %1134 = vst [vmem:[%s7677_s26 + $0x2e0] sm:$0xff] %v1133_v28  ;;  %v1261_v28 = vld [vmem:[%s7672_s25 + $0x7f0] sm:$0xff] }
  0x6e   : > { %1136 = vst [vmem:[%s7677_s26 + $0x2e8] sm:$0xff] %v1135_v29  ;;  %v1263_v29 = vld [vmem:[%s7672_s25 + $0x7f8] sm:$0xff] }
  0x6f   : > { %1138 = vst [vmem:[%s7677_s26 + $0x2f0] sm:$0xff] %v1137_v30  ;;  %v1265_v30 = vld [vmem:[%s7672_s25 + $0x800] sm:$0xff] }
  0x70   : > { %1140 = vst [vmem:[%s7677_s26 + $0x2f8] sm:$0xff] %v1139_v31  ;;  %v1267_v31 = vld [vmem:[%s7672_s25 + $0x808] sm:$0xff] }
  0x71   : > { %1142 = vst [vmem:[%s7677_s26 + $0x300] sm:$0xff] %v1141_v32  ;;  %v1269_v32 = vld [vmem:[%s7672_s25 + $0x810] sm:$0xff] }
  0x72   : > { %1144 = vst [vmem:[%s7677_s26 + $0x308] sm:$0xff] %v1143_v33  ;;  %v1271_v33 = vld [vmem:[%s7672_s25 + $0x818] sm:$0xff] }
  0x73   : > { %1146 = vst [vmem:[%s7677_s26 + $0x310] sm:$0xff] %v1145_v34  ;;  %v1273_v34 = vld [vmem:[%s7672_s25 + $0x820] sm:$0xff] }
  0x74   : > { %1148 = vst [vmem:[%s7677_s26 + $0x318] sm:$0xff] %v1147_v35  ;;  %v1275_v35 = vld [vmem:[%s7672_s25 + $0x828] sm:$0xff] }
  0x75   : > { %1150 = vst [vmem:[%s7677_s26 + $0x320] sm:$0xff] %v1149_v36  ;;  %v1277_v36 = vld [vmem:[%s7672_s25 + $0x830] sm:$0xff] }
  0x76   : > { %1152 = vst [vmem:[%s7677_s26 + $0x328] sm:$0xff] %v1151_v37  ;;  %v1279_v37 = vld [vmem:[%s7672_s25 + $0x838] sm:$0xff] }
  0x77   : > { %1154 = vst [vmem:[%s7677_s26 + $0x330] sm:$0xff] %v1153_v38  ;;  %v1281_v38 = vld [vmem:[%s7672_s25 + $0x840] sm:$0xff] }
  0x78   : > { %1156 = vst [vmem:[%s7677_s26 + $0x338] sm:$0xff] %v1155_v39  ;;  %v1283_v39 = vld [vmem:[%s7672_s25 + $0x848] sm:$0xff] }
  0x79   : > { %1158 = vst [vmem:[%s7677_s26 + $0x340] sm:$0xff] %v1157_v40  ;;  %v1285_v40 = vld [vmem:[%s7672_s25 + $0x850] sm:$0xff] }
  0x7a   : > { %1160 = vst [vmem:[%s7677_s26 + $0x348] sm:$0xff] %v1159_v41  ;;  %v1287_v41 = vld [vmem:[%s7672_s25 + $0x858] sm:$0xff] }
  0x7b   : > { %1162 = vst [vmem:[%s7677_s26 + $0x350] sm:$0xff] %v1161_v42  ;;  %v1289_v42 = vld [vmem:[%s7672_s25 + $0x860] sm:$0xff] }
  0x7c   : > { %1164 = vst [vmem:[%s7677_s26 + $0x358] sm:$0xff] %v1163_v43  ;;  %v1291_v43 = vld [vmem:[%s7672_s25 + $0x868] sm:$0xff] }
  0x7d   : > { %1166 = vst [vmem:[%s7677_s26 + $0x360] sm:$0xff] %v1165_v44  ;;  %v1293_v44 = vld [vmem:[%s7672_s25 + $0x870] sm:$0xff] }
  0x7e   : > { %1168 = vst [vmem:[%s7677_s26 + $0x368] sm:$0xff] %v1167_v45  ;;  %v1295_v45 = vld [vmem:[%s7672_s25 + $0x878] sm:$0xff] }
  0x7f   : > { %1170 = vst [vmem:[%s7677_s26 + $0x370] sm:$0xff] %v1169_v46  ;;  %v1297_v46 = vld [vmem:[%s7672_s25 + $0x880] sm:$0xff] }
  0x80   : > { %1172 = vst [vmem:[%s7677_s26 + $0x378] sm:$0xff] %v1171_v47  ;;  %v1299_v47 = vld [vmem:[%s7672_s25 + $0x888] sm:$0xff] }
  0x81   : > { %1174 = vst [vmem:[%s7677_s26 + $0x380] sm:$0xff] %v1173_v48  ;;  %v1301_v48 = vld [vmem:[%s7672_s25 + $0x890] sm:$0xff] }
  0x82   : > { %1176 = vst [vmem:[%s7677_s26 + $0x388] sm:$0xff] %v1175_v49  ;;  %v1303_v49 = vld [vmem:[%s7672_s25 + $0x898] sm:$0xff] }
  0x83   : > { %1178 = vst [vmem:[%s7677_s26 + $0x390] sm:$0xff] %v1177_v50  ;;  %v1305_v50 = vld [vmem:[%s7672_s25 + $0x8a0] sm:$0xff] }
  0x84   : > { %1180 = vst [vmem:[%s7677_s26 + $0x398] sm:$0xff] %v1179_v51  ;;  %v1307_v51 = vld [vmem:[%s7672_s25 + $0x8a8] sm:$0xff] }
  0x85   : > { %1182 = vst [vmem:[%s7677_s26 + $0x3a0] sm:$0xff] %v1181_v52  ;;  %v1309_v52 = vld [vmem:[%s7672_s25 + $0x8b0] sm:$0xff] }
  0x86   : > { %1184 = vst [vmem:[%s7677_s26 + $0x3a8] sm:$0xff] %v1183_v53  ;;  %v1311_v53 = vld [vmem:[%s7672_s25 + $0x8b8] sm:$0xff] }
  0x87   : > { %1186 = vst [vmem:[%s7677_s26 + $0x3b0] sm:$0xff] %v1185_v54  ;;  %v1313_v54 = vld [vmem:[%s7672_s25 + $0x8c0] sm:$0xff] }
  0x88   : > { %1188 = vst [vmem:[%s7677_s26 + $0x3b8] sm:$0xff] %v1187_v55  ;;  %v1315_v55 = vld [vmem:[%s7672_s25 + $0x8c8] sm:$0xff] }
  0x89   : > { %1190 = vst [vmem:[%s7677_s26 + $0x3c0] sm:$0xff] %v1189_v56  ;;  %v1317_v56 = vld [vmem:[%s7672_s25 + $0x8d0] sm:$0xff] }
  0x8a   : > { %1192 = vst [vmem:[%s7677_s26 + $0x3c8] sm:$0xff] %v1191_v57  ;;  %v1319_v57 = vld [vmem:[%s7672_s25 + $0x8d8] sm:$0xff] }
  0x8b   : > { %1194 = vst [vmem:[%s7677_s26 + $0x3d0] sm:$0xff] %v1193_v58  ;;  %v1321_v58 = vld [vmem:[%s7672_s25 + $0x8e0] sm:$0xff] }
  0x8c   : > { %1196 = vst [vmem:[%s7677_s26 + $0x3d8] sm:$0xff] %v1195_v59  ;;  %v1323_v59 = vld [vmem:[%s7672_s25 + $0x8e8] sm:$0xff] }
  0x8d   : > { %1198 = vst [vmem:[%s7677_s26 + $0x3e0] sm:$0xff] %v1197_v60  ;;  %v1325_v60 = vld [vmem:[%s7672_s25 + $0x8f0] sm:$0xff] }
  0x8e   : > { %1200 = vst [vmem:[%s7677_s26 + $0x3e8] sm:$0xff] %v1199_v61  ;;  %v1327_v61 = vld [vmem:[%s7672_s25 + $0x8f8] sm:$0xff] }
  0x8f   : > { %1202 = vst [vmem:[%s7677_s26 + $0x3f0] sm:$0xff] %v1201_v62  ;;  %v1329_v62 = vld [vmem:[%s7672_s25 + $0x900] sm:$0xff] }
  0x90   : > { %1204 = vst [vmem:[%s7677_s26 + $0x3f8] sm:$0xff] %v1203_v63  ;;  %v1331_v63 = vld [vmem:[%s7672_s25 + $0x908] sm:$0xff] }
  0x91   : > { %1206 = vst [vmem:[%s7677_s26 + $0x400] sm:$0xff] %v1205_v0  ;;  %v1333_v0 = vld [vmem:[%s7672_s25 + $0x910] sm:$0xff] }
  0x92   : > { %1208 = vst [vmem:[%s7677_s26 + $0x408] sm:$0xff] %v1207_v1  ;;  %v1335_v1 = vld [vmem:[%s7672_s25 + $0x918] sm:$0xff] }
  0x93   : > { %1210 = vst [vmem:[%s7677_s26 + $0x410] sm:$0xff] %v1209_v2  ;;  %v1337_v2 = vld [vmem:[%s7672_s25 + $0x920] sm:$0xff] }
  0x94   : > { %1212 = vst [vmem:[%s7677_s26 + $0x418] sm:$0xff] %v1211_v3  ;;  %v1339_v3 = vld [vmem:[%s7672_s25 + $0x928] sm:$0xff] }
  0x95   : > { %1214 = vst [vmem:[%s7677_s26 + $0x420] sm:$0xff] %v1213_v4  ;;  %v1341_v4 = vld [vmem:[%s7672_s25 + $0xc40] sm:$0xff] }
  0x96   : > { %1216 = vst [vmem:[%s7677_s26 + $0x428] sm:$0xff] %v1215_v5  ;;  %v1343_v5 = vld [vmem:[%s7672_s25 + $0xc48] sm:$0xff] }
  0x97   : > { %1218 = vst [vmem:[%s7677_s26 + $0x430] sm:$0xff] %v1217_v6  ;;  %v1345_v6 = vld [vmem:[%s7672_s25 + $0xc50] sm:$0xff] }
  0x98   : > { %1220 = vst [vmem:[%s7677_s26 + $0x438] sm:$0xff] %v1219_v7  ;;  %v1347_v7 = vld [vmem:[%s7672_s25 + $0xc58] sm:$0xff] }
  0x99   : > { %1222 = vst [vmem:[%s7677_s26 + $0x440] sm:$0xff] %v1221_v8  ;;  %v1349_v8 = vld [vmem:[%s7672_s25 + $0xc60] sm:$0xff] }
  0x9a   : > { %1224 = vst [vmem:[%s7677_s26 + $0x448] sm:$0xff] %v1223_v9  ;;  %v1351_v9 = vld [vmem:[%s7672_s25 + $0xc68] sm:$0xff] }
  0x9b   : > { %1226 = vst [vmem:[%s7677_s26 + $0x450] sm:$0xff] %v1225_v10  ;;  %v1353_v10 = vld [vmem:[%s7672_s25 + $0xc70] sm:$0xff] }
  0x9c   : > { %1228 = vst [vmem:[%s7677_s26 + $0x458] sm:$0xff] %v1227_v11  ;;  %v1355_v11 = vld [vmem:[%s7672_s25 + $0xc78] sm:$0xff] }
  0x9d   : > { %1230 = vst [vmem:[%s7677_s26 + $0x460] sm:$0xff] %v1229_v12  ;;  %v1357_v12 = vld [vmem:[%s7672_s25 + $0xc80] sm:$0xff] }
  0x9e   : > { %1232 = vst [vmem:[%s7677_s26 + $0x468] sm:$0xff] %v1231_v13  ;;  %v1359_v13 = vld [vmem:[%s7672_s25 + $0xc88] sm:$0xff] }
  0x9f   : > { %1234 = vst [vmem:[%s7677_s26 + $0x470] sm:$0xff] %v1233_v14  ;;  %v1361_v14 = vld [vmem:[%s7672_s25 + $0xc90] sm:$0xff] }
  0xa0   : > { %1236 = vst [vmem:[%s7677_s26 + $0x478] sm:$0xff] %v1235_v15  ;;  %v1363_v15 = vld [vmem:[%s7672_s25 + $0xc98] sm:$0xff] }
  0xa1   : > { %1238 = vst [vmem:[%s7677_s26 + $0x480] sm:$0xff] %v1237_v16  ;;  %v1365_v16 = vld [vmem:[%s7672_s25 + $0xca0] sm:$0xff] }
  0xa2   : > { %1240 = vst [vmem:[%s7677_s26 + $0x488] sm:$0xff] %v1239_v17  ;;  %v1367_v17 = vld [vmem:[%s7672_s25 + $0xca8] sm:$0xff] }
  0xa3   : > { %1242 = vst [vmem:[%s7677_s26 + $0x490] sm:$0xff] %v1241_v18  ;;  %v1369_v18 = vld [vmem:[%s7672_s25 + $0xcb0] sm:$0xff] }
  0xa4   : > { %1244 = vst [vmem:[%s7677_s26 + $0x498] sm:$0xff] %v1243_v19  ;;  %v1371_v19 = vld [vmem:[%s7672_s25 + $0xcb8] sm:$0xff] }
  0xa5   : > { %1246 = vst [vmem:[%s7677_s26 + $0x4a0] sm:$0xff] %v1245_v20  ;;  %v1373_v20 = vld [vmem:[%s7672_s25 + $0xcc0] sm:$0xff] }
  0xa6   : > { %1248 = vst [vmem:[%s7677_s26 + $0x4a8] sm:$0xff] %v1247_v21  ;;  %v1375_v21 = vld [vmem:[%s7672_s25 + $0xcc8] sm:$0xff] }
  0xa7   : > { %1250 = vst [vmem:[%s7677_s26 + $0x4b0] sm:$0xff] %v1249_v22  ;;  %v1377_v22 = vld [vmem:[%s7672_s25 + $0xcd0] sm:$0xff] }
  0xa8   : > { %1252 = vst [vmem:[%s7677_s26 + $0x4b8] sm:$0xff] %v1251_v23  ;;  %v1379_v23 = vld [vmem:[%s7672_s25 + $0xcd8] sm:$0xff] }
  0xa9   : > { %1254 = vst [vmem:[%s7677_s26 + $0x4c0] sm:$0xff] %v1253_v24  ;;  %v1381_v24 = vld [vmem:[%s7672_s25 + $0xce0] sm:$0xff] }
  0xaa   : > { %1256 = vst [vmem:[%s7677_s26 + $0x4c8] sm:$0xff] %v1255_v25  ;;  %v1383_v25 = vld [vmem:[%s7672_s25 + $0xce8] sm:$0xff] }
  0xab   : > { %1258 = vst [vmem:[%s7677_s26 + $0x4d0] sm:$0xff] %v1257_v26  ;;  %v1385_v26 = vld [vmem:[%s7672_s25 + $0xcf0] sm:$0xff] }
  0xac   : > { %1260 = vst [vmem:[%s7677_s26 + $0x4d8] sm:$0xff] %v1259_v27  ;;  %v1387_v27 = vld [vmem:[%s7672_s25 + $0xcf8] sm:$0xff] }
  0xad   : > { %1262 = vst [vmem:[%s7677_s26 + $0x4e0] sm:$0xff] %v1261_v28  ;;  %v1389_v28 = vld [vmem:[%s7672_s25 + $0xd00] sm:$0xff] }
  0xae   : > { %1264 = vst [vmem:[%s7677_s26 + $0x4e8] sm:$0xff] %v1263_v29  ;;  %v1391_v29 = vld [vmem:[%s7672_s25 + $0xd08] sm:$0xff] }
  0xaf   : > { %1266 = vst [vmem:[%s7677_s26 + $0x4f0] sm:$0xff] %v1265_v30  ;;  %v1393_v30 = vld [vmem:[%s7672_s25 + $0xd10] sm:$0xff] }
  0xb0   : > { %1268 = vst [vmem:[%s7677_s26 + $0x4f8] sm:$0xff] %v1267_v31  ;;  %v1395_v31 = vld [vmem:[%s7672_s25 + $0xd18] sm:$0xff] }
  0xb1   : > { %1270 = vst [vmem:[%s7677_s26 + $0x500] sm:$0xff] %v1269_v32  ;;  %v1397_v32 = vld [vmem:[%s7672_s25 + $0xd20] sm:$0xff] }
  0xb2   : > { %1272 = vst [vmem:[%s7677_s26 + $0x508] sm:$0xff] %v1271_v33  ;;  %v1399_v33 = vld [vmem:[%s7672_s25 + $0xd28] sm:$0xff] }
  0xb3   : > { %1274 = vst [vmem:[%s7677_s26 + $0x510] sm:$0xff] %v1273_v34  ;;  %v1401_v34 = vld [vmem:[%s7672_s25 + $0xd30] sm:$0xff] }
  0xb4   : > { %1276 = vst [vmem:[%s7677_s26 + $0x518] sm:$0xff] %v1275_v35  ;;  %v1403_v35 = vld [vmem:[%s7672_s25 + $0xd38] sm:$0xff] }
  0xb5   : > { %1278 = vst [vmem:[%s7677_s26 + $0x520] sm:$0xff] %v1277_v36  ;;  %v1405_v36 = vld [vmem:[%s7672_s25 + $0xd40] sm:$0xff] }
  0xb6   : > { %1280 = vst [vmem:[%s7677_s26 + $0x528] sm:$0xff] %v1279_v37  ;;  %v1407_v37 = vld [vmem:[%s7672_s25 + $0xd48] sm:$0xff] }
  0xb7   : > { %1282 = vst [vmem:[%s7677_s26 + $0x530] sm:$0xff] %v1281_v38  ;;  %v1409_v38 = vld [vmem:[%s7672_s25 + $0xd50] sm:$0xff] }
  0xb8   : > { %1284 = vst [vmem:[%s7677_s26 + $0x538] sm:$0xff] %v1283_v39  ;;  %v1411_v39 = vld [vmem:[%s7672_s25 + $0xd58] sm:$0xff] }
  0xb9   : > { %1286 = vst [vmem:[%s7677_s26 + $0x540] sm:$0xff] %v1285_v40  ;;  %v1413_v40 = vld [vmem:[%s7672_s25 + $0xd60] sm:$0xff] }
  0xba   : > { %1288 = vst [vmem:[%s7677_s26 + $0x548] sm:$0xff] %v1287_v41  ;;  %v1415_v41 = vld [vmem:[%s7672_s25 + $0xd68] sm:$0xff] }
  0xbb   : > { %1290 = vst [vmem:[%s7677_s26 + $0x550] sm:$0xff] %v1289_v42  ;;  %v1417_v42 = vld [vmem:[%s7672_s25 + $0xd70] sm:$0xff] }
  0xbc   : > { %1292 = vst [vmem:[%s7677_s26 + $0x558] sm:$0xff] %v1291_v43  ;;  %v1419_v43 = vld [vmem:[%s7672_s25 + $0xd78] sm:$0xff] }
  0xbd   : > { %1294 = vst [vmem:[%s7677_s26 + $0x560] sm:$0xff] %v1293_v44  ;;  %v1421_v44 = vld [vmem:[%s7672_s25 + $0xd80] sm:$0xff] }
  0xbe   : > { %1296 = vst [vmem:[%s7677_s26 + $0x568] sm:$0xff] %v1295_v45  ;;  %v1423_v45 = vld [vmem:[%s7672_s25 + $0xd88] sm:$0xff] }
  0xbf   : > { %1298 = vst [vmem:[%s7677_s26 + $0x570] sm:$0xff] %v1297_v46  ;;  %v1425_v46 = vld [vmem:[%s7672_s25 + $0xd90] sm:$0xff] }
  0xc0   : > { %1300 = vst [vmem:[%s7677_s26 + $0x578] sm:$0xff] %v1299_v47  ;;  %v1427_v47 = vld [vmem:[%s7672_s25 + $0xd98] sm:$0xff] }
  0xc1   : > { %1302 = vst [vmem:[%s7677_s26 + $0x580] sm:$0xff] %v1301_v48  ;;  %v1429_v48 = vld [vmem:[%s7672_s25 + $0xda0] sm:$0xff] }
  0xc2   : > { %1304 = vst [vmem:[%s7677_s26 + $0x588] sm:$0xff] %v1303_v49  ;;  %v1431_v49 = vld [vmem:[%s7672_s25 + $0xda8] sm:$0xff] }
  0xc3   : > { %1306 = vst [vmem:[%s7677_s26 + $0x590] sm:$0xff] %v1305_v50  ;;  %v1433_v50 = vld [vmem:[%s7672_s25 + $0xdb0] sm:$0xff] }
  0xc4   : > { %1308 = vst [vmem:[%s7677_s26 + $0x598] sm:$0xff] %v1307_v51  ;;  %v1435_v51 = vld [vmem:[%s7672_s25 + $0xdb8] sm:$0xff] }
  0xc5   : > { %1310 = vst [vmem:[%s7677_s26 + $0x5a0] sm:$0xff] %v1309_v52  ;;  %v1437_v52 = vld [vmem:[%s7672_s25 + $0xdc0] sm:$0xff] }
  0xc6   : > { %1312 = vst [vmem:[%s7677_s26 + $0x5a8] sm:$0xff] %v1311_v53  ;;  %v1439_v53 = vld [vmem:[%s7672_s25 + $0xdc8] sm:$0xff] }
  0xc7   : > { %1314 = vst [vmem:[%s7677_s26 + $0x5b0] sm:$0xff] %v1313_v54  ;;  %v1441_v54 = vld [vmem:[%s7672_s25 + $0xdd0] sm:$0xff] }
  0xc8   : > { %1316 = vst [vmem:[%s7677_s26 + $0x5b8] sm:$0xff] %v1315_v55  ;;  %v1443_v55 = vld [vmem:[%s7672_s25 + $0xdd8] sm:$0xff] }
  0xc9   : > { %1318 = vst [vmem:[%s7677_s26 + $0x5c0] sm:$0xff] %v1317_v56  ;;  %v1445_v56 = vld [vmem:[%s7672_s25 + $0xde0] sm:$0xff] }
  0xca   : > { %1320 = vst [vmem:[%s7677_s26 + $0x5c8] sm:$0xff] %v1319_v57  ;;  %v1447_v57 = vld [vmem:[%s7672_s25 + $0xde8] sm:$0xff] }
  0xcb   : > { %1322 = vst [vmem:[%s7677_s26 + $0x5d0] sm:$0xff] %v1321_v58  ;;  %v1449_v58 = vld [vmem:[%s7672_s25 + $0xdf0] sm:$0xff] }
  0xcc   : > { %1324 = vst [vmem:[%s7677_s26 + $0x5d8] sm:$0xff] %v1323_v59  ;;  %v1451_v59 = vld [vmem:[%s7672_s25 + $0xdf8] sm:$0xff] }
  0xcd   : > { %1326 = vst [vmem:[%s7677_s26 + $0x5e0] sm:$0xff] %v1325_v60  ;;  %v1453_v60 = vld [vmem:[%s7672_s25 + $0xe00] sm:$0xff] }
  0xce   : > { %1328 = vst [vmem:[%s7677_s26 + $0x5e8] sm:$0xff] %v1327_v61  ;;  %v1455_v61 = vld [vmem:[%s7672_s25 + $0xe08] sm:$0xff] }
  0xcf   : > { %1330 = vst [vmem:[%s7677_s26 + $0x5f0] sm:$0xff] %v1329_v62  ;;  %v1457_v62 = vld [vmem:[%s7672_s25 + $0xe10] sm:$0xff] }
  0xd0   : > { %1332 = vst [vmem:[%s7677_s26 + $0x5f8] sm:$0xff] %v1331_v63  ;;  %v1459_v63 = vld [vmem:[%s7672_s25 + $0xe18] sm:$0xff] }
  0xd1   : > { %1334 = vst [vmem:[%s7677_s26 + $0x600] sm:$0xff] %v1333_v0  ;;  %v1461_v0 = vld [vmem:[%s7672_s25 + $0xe20] sm:$0xff] }
  0xd2   : > { %1336 = vst [vmem:[%s7677_s26 + $0x608] sm:$0xff] %v1335_v1  ;;  %v1463_v1 = vld [vmem:[%s7672_s25 + $0xe28] sm:$0xff] }
  0xd3   : > { %1338 = vst [vmem:[%s7677_s26 + $0x610] sm:$0xff] %v1337_v2  ;;  %v1465_v2 = vld [vmem:[%s7672_s25 + $0xe30] sm:$0xff] }
  0xd4   : > { %1340 = vst [vmem:[%s7677_s26 + $0x618] sm:$0xff] %v1339_v3  ;;  %v1467_v3 = vld [vmem:[%s7672_s25 + $0xe38] sm:$0xff] }
  0xd5   : > { %1342 = vst [vmem:[%s7677_s26 + $0x620] sm:$0xff] %v1341_v4  ;;  %v1469_v4 = vld [vmem:[%s7672_s25 + $0xe40] sm:$0xff] }
  0xd6   : > { %1344 = vst [vmem:[%s7677_s26 + $0x628] sm:$0xff] %v1343_v5  ;;  %v1471_v5 = vld [vmem:[%s7672_s25 + $0xe48] sm:$0xff] }
  0xd7   : > { %1346 = vst [vmem:[%s7677_s26 + $0x630] sm:$0xff] %v1345_v6  ;;  %v1473_v6 = vld [vmem:[%s7672_s25 + $0xe50] sm:$0xff] }
  0xd8   : > { %1348 = vst [vmem:[%s7677_s26 + $0x638] sm:$0xff] %v1347_v7  ;;  %v1475_v7 = vld [vmem:[%s7672_s25 + $0xe58] sm:$0xff] }
  0xd9   : > { %1350 = vst [vmem:[%s7677_s26 + $0x640] sm:$0xff] %v1349_v8  ;;  %v1477_v8 = vld [vmem:[%s7672_s25 + $0xe60] sm:$0xff] }
  0xda   : > { %1352 = vst [vmem:[%s7677_s26 + $0x648] sm:$0xff] %v1351_v9  ;;  %v1479_v9 = vld [vmem:[%s7672_s25 + $0xe68] sm:$0xff] }
  0xdb   : > { %1354 = vst [vmem:[%s7677_s26 + $0x650] sm:$0xff] %v1353_v10  ;;  %v1481_v10 = vld [vmem:[%s7672_s25 + $0xe70] sm:$0xff] }
  0xdc   : > { %1356 = vst [vmem:[%s7677_s26 + $0x658] sm:$0xff] %v1355_v11  ;;  %v1483_v11 = vld [vmem:[%s7672_s25 + $0xe78] sm:$0xff] }
  0xdd   : > { %1358 = vst [vmem:[%s7677_s26 + $0x660] sm:$0xff] %v1357_v12  ;;  %v1485_v12 = vld [vmem:[%s7672_s25 + $0xe80] sm:$0xff] }
  0xde   : > { %1360 = vst [vmem:[%s7677_s26 + $0x668] sm:$0xff] %v1359_v13  ;;  %v1487_v13 = vld [vmem:[%s7672_s25 + $0xe88] sm:$0xff] }
  0xdf   : > { %1362 = vst [vmem:[%s7677_s26 + $0x670] sm:$0xff] %v1361_v14  ;;  %v1489_v14 = vld [vmem:[%s7672_s25 + $0xe90] sm:$0xff] }
  0xe0   : > { %1364 = vst [vmem:[%s7677_s26 + $0x678] sm:$0xff] %v1363_v15  ;;  %v1491_v15 = vld [vmem:[%s7672_s25 + $0xe98] sm:$0xff] }
  0xe1   : > { %1366 = vst [vmem:[%s7677_s26 + $0x680] sm:$0xff] %v1365_v16  ;;  %v1493_v16 = vld [vmem:[%s7672_s25 + $0xea0] sm:$0xff] }
  0xe2   : > { %1368 = vst [vmem:[%s7677_s26 + $0x688] sm:$0xff] %v1367_v17  ;;  %v1495_v17 = vld [vmem:[%s7672_s25 + $0xea8] sm:$0xff] }
  0xe3   : > { %1370 = vst [vmem:[%s7677_s26 + $0x690] sm:$0xff] %v1369_v18  ;;  %v1497_v18 = vld [vmem:[%s7672_s25 + $0xeb0] sm:$0xff] }
  0xe4   : > { %1372 = vst [vmem:[%s7677_s26 + $0x698] sm:$0xff] %v1371_v19  ;;  %v1499_v19 = vld [vmem:[%s7672_s25 + $0xeb8] sm:$0xff] }
  0xe5   : > { %1374 = vst [vmem:[%s7677_s26 + $0x6a0] sm:$0xff] %v1373_v20  ;;  %v1501_v20 = vld [vmem:[%s7672_s25 + $0xec0] sm:$0xff] }
  0xe6   : > { %1376 = vst [vmem:[%s7677_s26 + $0x6a8] sm:$0xff] %v1375_v21  ;;  %v1503_v21 = vld [vmem:[%s7672_s25 + $0xec8] sm:$0xff] }
  0xe7   : > { %1378 = vst [vmem:[%s7677_s26 + $0x6b0] sm:$0xff] %v1377_v22  ;;  %v1505_v22 = vld [vmem:[%s7672_s25 + $0xed0] sm:$0xff] }
  0xe8   : > { %1380 = vst [vmem:[%s7677_s26 + $0x6b8] sm:$0xff] %v1379_v23  ;;  %v1507_v23 = vld [vmem:[%s7672_s25 + $0xed8] sm:$0xff] }
  0xe9   : > { %1382 = vst [vmem:[%s7677_s26 + $0x6c0] sm:$0xff] %v1381_v24  ;;  %v1509_v24 = vld [vmem:[%s7672_s25 + $0xee0] sm:$0xff] }
  0xea   : > { %1384 = vst [vmem:[%s7677_s26 + $0x6c8] sm:$0xff] %v1383_v25  ;;  %v1511_v25 = vld [vmem:[%s7672_s25 + $0xee8] sm:$0xff] }
  0xeb   : > { %1386 = vst [vmem:[%s7677_s26 + $0x6d0] sm:$0xff] %v1385_v26  ;;  %v1513_v26 = vld [vmem:[%s7672_s25 + $0xef0] sm:$0xff] }
  0xec   : > { %1388 = vst [vmem:[%s7677_s26 + $0x6d8] sm:$0xff] %v1387_v27  ;;  %v1515_v27 = vld [vmem:[%s7672_s25 + $0xef8] sm:$0xff] }
  0xed   : > { %1390 = vst [vmem:[%s7677_s26 + $0x6e0] sm:$0xff] %v1389_v28  ;;  %v1517_v28 = vld [vmem:[%s7672_s25 + $0xf00] sm:$0xff] }
  0xee   : > { %1392 = vst [vmem:[%s7677_s26 + $0x6e8] sm:$0xff] %v1391_v29  ;;  %v1519_v29 = vld [vmem:[%s7672_s25 + $0xf08] sm:$0xff] }
  0xef   : > { %1394 = vst [vmem:[%s7677_s26 + $0x6f0] sm:$0xff] %v1393_v30  ;;  %v1521_v30 = vld [vmem:[%s7672_s25 + $0xf10] sm:$0xff] }
  0xf0   : > { %1396 = vst [vmem:[%s7677_s26 + $0x6f8] sm:$0xff] %v1395_v31  ;;  %v1523_v31 = vld [vmem:[%s7672_s25 + $0xf18] sm:$0xff] }
  0xf1   : > { %1398 = vst [vmem:[%s7677_s26 + $0x700] sm:$0xff] %v1397_v32  ;;  %v1525_v32 = vld [vmem:[%s7672_s25 + $0xf20] sm:$0xff] }
  0xf2   : > { %1400 = vst [vmem:[%s7677_s26 + $0x708] sm:$0xff] %v1399_v33  ;;  %v1527_v33 = vld [vmem:[%s7672_s25 + $0xf28] sm:$0xff] }
  0xf3   : > { %1402 = vst [vmem:[%s7677_s26 + $0x710] sm:$0xff] %v1401_v34  ;;  %v1529_v34 = vld [vmem:[%s7672_s25 + $0xf30] sm:$0xff] }
  0xf4   : > { %1404 = vst [vmem:[%s7677_s26 + $0x718] sm:$0xff] %v1403_v35  ;;  %v1531_v35 = vld [vmem:[%s7672_s25 + $0xf38] sm:$0xff] }
  0xf5   : > { %1406 = vst [vmem:[%s7677_s26 + $0x720] sm:$0xff] %v1405_v36  ;;  %v1533_v36 = vld [vmem:[%s7672_s25 + $0xf40] sm:$0xff] }
  0xf6   : > { %1408 = vst [vmem:[%s7677_s26 + $0x728] sm:$0xff] %v1407_v37  ;;  %v1535_v37 = vld [vmem:[%s7672_s25 + $0xf48] sm:$0xff] }
  0xf7   : > { %1410 = vst [vmem:[%s7677_s26 + $0x730] sm:$0xff] %v1409_v38  ;;  %v1537_v38 = vld [vmem:[%s7672_s25 + $0x1260] sm:$0xff] }
  0xf8   : > { %1412 = vst [vmem:[%s7677_s26 + $0x738] sm:$0xff] %v1411_v39  ;;  %v1539_v39 = vld [vmem:[%s7672_s25 + $0x1268] sm:$0xff] }
  0xf9   : > { %1414 = vst [vmem:[%s7677_s26 + $0x740] sm:$0xff] %v1413_v40  ;;  %v1541_v40 = vld [vmem:[%s7672_s25 + $0x1270] sm:$0xff] }
  0xfa   : > { %1416 = vst [vmem:[%s7677_s26 + $0x748] sm:$0xff] %v1415_v41  ;;  %v1543_v41 = vld [vmem:[%s7672_s25 + $0x1278] sm:$0xff] }
  0xfb   : > { %1418 = vst [vmem:[%s7677_s26 + $0x750] sm:$0xff] %v1417_v42  ;;  %v1545_v42 = vld [vmem:[%s7672_s25 + $0x1280] sm:$0xff] }
  0xfc   : > { %1420 = vst [vmem:[%s7677_s26 + $0x758] sm:$0xff] %v1419_v43  ;;  %v1547_v43 = vld [vmem:[%s7672_s25 + $0x1288] sm:$0xff] }
  0xfd   : > { %1422 = vst [vmem:[%s7677_s26 + $0x760] sm:$0xff] %v1421_v44  ;;  %v1549_v44 = vld [vmem:[%s7672_s25 + $0x1290] sm:$0xff] }
  0xfe   : > { %1424 = vst [vmem:[%s7677_s26 + $0x768] sm:$0xff] %v1423_v45  ;;  %v1551_v45 = vld [vmem:[%s7672_s25 + $0x1298] sm:$0xff] }
  0xff   : > { %1426 = vst [vmem:[%s7677_s26 + $0x770] sm:$0xff] %v1425_v46  ;;  %v1553_v46 = vld [vmem:[%s7672_s25 + $0x12a0] sm:$0xff] }
 0x100   : > { %1428 = vst [vmem:[%s7677_s26 + $0x778] sm:$0xff] %v1427_v47  ;;  %v1555_v47 = vld [vmem:[%s7672_s25 + $0x12a8] sm:$0xff] }
 0x101   : > { %1430 = vst [vmem:[%s7677_s26 + $0x780] sm:$0xff] %v1429_v48  ;;  %v1557_v48 = vld [vmem:[%s7672_s25 + $0x12b0] sm:$0xff] }
 0x102   : > { %1432 = vst [vmem:[%s7677_s26 + $0x788] sm:$0xff] %v1431_v49  ;;  %v1559_v49 = vld [vmem:[%s7672_s25 + $0x12b8] sm:$0xff] }
 0x103   : > { %1434 = vst [vmem:[%s7677_s26 + $0x790] sm:$0xff] %v1433_v50  ;;  %v1561_v50 = vld [vmem:[%s7672_s25 + $0x12c0] sm:$0xff] }
 0x104   : > { %1436 = vst [vmem:[%s7677_s26 + $0x798] sm:$0xff] %v1435_v51  ;;  %v1563_v51 = vld [vmem:[%s7672_s25 + $0x12c8] sm:$0xff] }
 0x105   : > { %1438 = vst [vmem:[%s7677_s26 + $0x7a0] sm:$0xff] %v1437_v52  ;;  %v1565_v52 = vld [vmem:[%s7672_s25 + $0x12d0] sm:$0xff] }
 0x106   : > { %1440 = vst [vmem:[%s7677_s26 + $0x7a8] sm:$0xff] %v1439_v53  ;;  %v1567_v53 = vld [vmem:[%s7672_s25 + $0x12d8] sm:$0xff] }
 0x107   : > { %1442 = vst [vmem:[%s7677_s26 + $0x7b0] sm:$0xff] %v1441_v54  ;;  %v1569_v54 = vld [vmem:[%s7672_s25 + $0x12e0] sm:$0xff] }
 0x108   : > { %1444 = vst [vmem:[%s7677_s26 + $0x7b8] sm:$0xff] %v1443_v55  ;;  %v1571_v55 = vld [vmem:[%s7672_s25 + $0x12e8] sm:$0xff] }
 0x109   : > { %1446 = vst [vmem:[%s7677_s26 + $0x7c0] sm:$0xff] %v1445_v56  ;;  %v1573_v56 = vld [vmem:[%s7672_s25 + $0x12f0] sm:$0xff] }
 0x10a   : > { %1448 = vst [vmem:[%s7677_s26 + $0x7c8] sm:$0xff] %v1447_v57  ;;  %v1575_v57 = vld [vmem:[%s7672_s25 + $0x12f8] sm:$0xff] }
 0x10b   : > { %1450 = vst [vmem:[%s7677_s26 + $0x7d0] sm:$0xff] %v1449_v58  ;;  %v1577_v58 = vld [vmem:[%s7672_s25 + $0x1300] sm:$0xff] }
 0x10c   : > { %1452 = vst [vmem:[%s7677_s26 + $0x7d8] sm:$0xff] %v1451_v59  ;;  %v1579_v59 = vld [vmem:[%s7672_s25 + $0x1308] sm:$0xff] }
 0x10d   : > { %1454 = vst [vmem:[%s7677_s26 + $0x7e0] sm:$0xff] %v1453_v60  ;;  %v1581_v60 = vld [vmem:[%s7672_s25 + $0x1310] sm:$0xff] }
 0x10e   : > { %1456 = vst [vmem:[%s7677_s26 + $0x7e8] sm:$0xff] %v1455_v61  ;;  %v1583_v61 = vld [vmem:[%s7672_s25 + $0x1318] sm:$0xff] }
 0x10f   : > { %1458 = vst [vmem:[%s7677_s26 + $0x7f0] sm:$0xff] %v1457_v62  ;;  %v1585_v62 = vld [vmem:[%s7672_s25 + $0x1320] sm:$0xff] }
 0x110   : > { %1460 = vst [vmem:[%s7677_s26 + $0x7f8] sm:$0xff] %v1459_v63  ;;  %v1587_v63 = vld [vmem:[%s7672_s25 + $0x1328] sm:$0xff] }
 0x111   : > { %1462 = vst [vmem:[%s7677_s26 + $0x800] sm:$0xff] %v1461_v0  ;;  %v1589_v0 = vld [vmem:[%s7672_s25 + $0x1330] sm:$0xff] }
 0x112   : > { %1464 = vst [vmem:[%s7677_s26 + $0x808] sm:$0xff] %v1463_v1  ;;  %v1591_v1 = vld [vmem:[%s7672_s25 + $0x1338] sm:$0xff] }
 0x113   : > { %1466 = vst [vmem:[%s7677_s26 + $0x810] sm:$0xff] %v1465_v2  ;;  %v1593_v2 = vld [vmem:[%s7672_s25 + $0x1340] sm:$0xff] }
 0x114   : > { %1468 = vst [vmem:[%s7677_s26 + $0x818] sm:$0xff] %v1467_v3  ;;  %v1595_v3 = vld [vmem:[%s7672_s25 + $0x1348] sm:$0xff] }
 0x115   : > { %1470 = vst [vmem:[%s7677_s26 + $0x820] sm:$0xff] %v1469_v4  ;;  %v1597_v4 = vld [vmem:[%s7672_s25 + $0x1350] sm:$0xff] }
 0x116   : > { %1472 = vst [vmem:[%s7677_s26 + $0x828] sm:$0xff] %v1471_v5  ;;  %v1599_v5 = vld [vmem:[%s7672_s25 + $0x1358] sm:$0xff] }
 0x117   : > { %1474 = vst [vmem:[%s7677_s26 + $0x830] sm:$0xff] %v1473_v6  ;;  %v1601_v6 = vld [vmem:[%s7672_s25 + $0x1360] sm:$0xff] }
 0x118   : > { %1476 = vst [vmem:[%s7677_s26 + $0x838] sm:$0xff] %v1475_v7  ;;  %v1603_v7 = vld [vmem:[%s7672_s25 + $0x1368] sm:$0xff] }
 0x119   : > { %1478 = vst [vmem:[%s7677_s26 + $0x840] sm:$0xff] %v1477_v8  ;;  %v1605_v8 = vld [vmem:[%s7672_s25 + $0x1370] sm:$0xff] }
 0x11a   : > { %1480 = vst [vmem:[%s7677_s26 + $0x848] sm:$0xff] %v1479_v9  ;;  %v1607_v9 = vld [vmem:[%s7672_s25 + $0x1378] sm:$0xff] }
 0x11b   : > { %1482 = vst [vmem:[%s7677_s26 + $0x850] sm:$0xff] %v1481_v10  ;;  %v1609_v10 = vld [vmem:[%s7672_s25 + $0x1380] sm:$0xff] }
 0x11c   : > { %1484 = vst [vmem:[%s7677_s26 + $0x858] sm:$0xff] %v1483_v11  ;;  %v1611_v11 = vld [vmem:[%s7672_s25 + $0x1388] sm:$0xff] }
 0x11d   : > { %1486 = vst [vmem:[%s7677_s26 + $0x860] sm:$0xff] %v1485_v12  ;;  %v1613_v12 = vld [vmem:[%s7672_s25 + $0x1390] sm:$0xff] }
 0x11e   : > { %1488 = vst [vmem:[%s7677_s26 + $0x868] sm:$0xff] %v1487_v13  ;;  %v1615_v13 = vld [vmem:[%s7672_s25 + $0x1398] sm:$0xff] }
 0x11f   : > { %1490 = vst [vmem:[%s7677_s26 + $0x870] sm:$0xff] %v1489_v14  ;;  %v1617_v14 = vld [vmem:[%s7672_s25 + $0x13a0] sm:$0xff] }
 0x120   : > { %1492 = vst [vmem:[%s7677_s26 + $0x878] sm:$0xff] %v1491_v15  ;;  %v1619_v15 = vld [vmem:[%s7672_s25 + $0x13a8] sm:$0xff] }
 0x121   : > { %1494 = vst [vmem:[%s7677_s26 + $0x880] sm:$0xff] %v1493_v16  ;;  %v1621_v16 = vld [vmem:[%s7672_s25 + $0x13b0] sm:$0xff] }
 0x122   : > { %1496 = vst [vmem:[%s7677_s26 + $0x888] sm:$0xff] %v1495_v17  ;;  %v1623_v17 = vld [vmem:[%s7672_s25 + $0x13b8] sm:$0xff] }
 0x123   : > { %1498 = vst [vmem:[%s7677_s26 + $0x890] sm:$0xff] %v1497_v18  ;;  %v1625_v18 = vld [vmem:[%s7672_s25 + $0x13c0] sm:$0xff] }
 0x124   : > { %1500 = vst [vmem:[%s7677_s26 + $0x898] sm:$0xff] %v1499_v19  ;;  %v1627_v19 = vld [vmem:[%s7672_s25 + $0x13c8] sm:$0xff] }
 0x125   : > { %1502 = vst [vmem:[%s7677_s26 + $0x8a0] sm:$0xff] %v1501_v20  ;;  %v1629_v20 = vld [vmem:[%s7672_s25 + $0x13d0] sm:$0xff] }
 0x126   : > { %1504 = vst [vmem:[%s7677_s26 + $0x8a8] sm:$0xff] %v1503_v21  ;;  %v1631_v21 = vld [vmem:[%s7672_s25 + $0x13d8] sm:$0xff] }
 0x127   : > { %1506 = vst [vmem:[%s7677_s26 + $0x8b0] sm:$0xff] %v1505_v22  ;;  %v1633_v22 = vld [vmem:[%s7672_s25 + $0x13e0] sm:$0xff] }
 0x128   : > { %1508 = vst [vmem:[%s7677_s26 + $0x8b8] sm:$0xff] %v1507_v23  ;;  %v1635_v23 = vld [vmem:[%s7672_s25 + $0x13e8] sm:$0xff] }
 0x129   : > { %1510 = vst [vmem:[%s7677_s26 + $0x8c0] sm:$0xff] %v1509_v24  ;;  %v1637_v24 = vld [vmem:[%s7672_s25 + $0x13f0] sm:$0xff] }
 0x12a   : > { %1512 = vst [vmem:[%s7677_s26 + $0x8c8] sm:$0xff] %v1511_v25  ;;  %v1639_v25 = vld [vmem:[%s7672_s25 + $0x13f8] sm:$0xff] }
 0x12b   : > { %1514 = vst [vmem:[%s7677_s26 + $0x8d0] sm:$0xff] %v1513_v26  ;;  %v1641_v26 = vld [vmem:[%s7672_s25 + $0x1400] sm:$0xff] }
 0x12c   : > { %1516 = vst [vmem:[%s7677_s26 + $0x8d8] sm:$0xff] %v1515_v27  ;;  %v1643_v27 = vld [vmem:[%s7672_s25 + $0x1408] sm:$0xff] }
 0x12d   : > { %1518 = vst [vmem:[%s7677_s26 + $0x8e0] sm:$0xff] %v1517_v28  ;;  %v1645_v28 = vld [vmem:[%s7672_s25 + $0x1410] sm:$0xff] }
 0x12e   : > { %1520 = vst [vmem:[%s7677_s26 + $0x8e8] sm:$0xff] %v1519_v29  ;;  %v1647_v29 = vld [vmem:[%s7672_s25 + $0x1418] sm:$0xff] }
 0x12f   : > { %1522 = vst [vmem:[%s7677_s26 + $0x8f0] sm:$0xff] %v1521_v30  ;;  %v1649_v30 = vld [vmem:[%s7672_s25 + $0x1420] sm:$0xff] }
 0x130   : > { %1524 = vst [vmem:[%s7677_s26 + $0x8f8] sm:$0xff] %v1523_v31  ;;  %v1651_v31 = vld [vmem:[%s7672_s25 + $0x1428] sm:$0xff] }
 0x131   : > { %1526 = vst [vmem:[%s7677_s26 + $0x900] sm:$0xff] %v1525_v32  ;;  %v1653_v32 = vld [vmem:[%s7672_s25 + $0x1430] sm:$0xff] }
 0x132   : > { %1528 = vst [vmem:[%s7677_s26 + $0x908] sm:$0xff] %v1527_v33  ;;  %v1655_v33 = vld [vmem:[%s7672_s25 + $0x1438] sm:$0xff] }
 0x133   : > { %1530 = vst [vmem:[%s7677_s26 + $0x910] sm:$0xff] %v1529_v34  ;;  %v1657_v34 = vld [vmem:[%s7672_s25 + $0x1440] sm:$0xff] }
 0x134   : > { %1532 = vst [vmem:[%s7677_s26 + $0x918] sm:$0xff] %v1531_v35  ;;  %v1659_v35 = vld [vmem:[%s7672_s25 + $0x1448] sm:$0xff] }
 0x135   : > { %1534 = vst [vmem:[%s7677_s26 + $0x920] sm:$0xff] %v1533_v36  ;;  %v1661_v36 = vld [vmem:[%s7672_s25 + $0x1450] sm:$0xff] }
 0x136   : > { %1536 = vst [vmem:[%s7677_s26 + $0x928] sm:$0xff] %v1535_v37  ;;  %v1663_v37 = vld [vmem:[%s7672_s25 + $0x1458] sm:$0xff] }
 0x137   : > { %1538 = vst [vmem:[%s7677_s26 + $0x930] sm:$0xff] %v1537_v38  ;;  %v1665_v38 = vld [vmem:[%s7672_s25 + $0x1460] sm:$0xff] }
 0x138   : > { %1540 = vst [vmem:[%s7677_s26 + $0x938] sm:$0xff] %v1539_v39  ;;  %v1667_v39 = vld [vmem:[%s7672_s25 + $0x1468] sm:$0xff] }
 0x139   : > { %1542 = vst [vmem:[%s7677_s26 + $0x940] sm:$0xff] %v1541_v40  ;;  %v1669_v40 = vld [vmem:[%s7672_s25 + $0x1470] sm:$0xff] }
 0x13a   : > { %1544 = vst [vmem:[%s7677_s26 + $0x948] sm:$0xff] %v1543_v41  ;;  %v1671_v41 = vld [vmem:[%s7672_s25 + $0x1478] sm:$0xff] }
 0x13b   : > { %1546 = vst [vmem:[%s7677_s26 + $0x950] sm:$0xff] %v1545_v42  ;;  %v1673_v42 = vld [vmem:[%s7672_s25 + $0x1480] sm:$0xff] }
 0x13c   : > { %1548 = vst [vmem:[%s7677_s26 + $0x958] sm:$0xff] %v1547_v43  ;;  %v1675_v43 = vld [vmem:[%s7672_s25 + $0x1488] sm:$0xff] }
 0x13d   : > { %1550 = vst [vmem:[%s7677_s26 + $0x960] sm:$0xff] %v1549_v44  ;;  %v1677_v44 = vld [vmem:[%s7672_s25 + $0x1490] sm:$0xff] }
 0x13e   : > { %1552 = vst [vmem:[%s7677_s26 + $0x968] sm:$0xff] %v1551_v45  ;;  %v1679_v45 = vld [vmem:[%s7672_s25 + $0x1498] sm:$0xff] }
 0x13f   : > { %1554 = vst [vmem:[%s7677_s26 + $0x970] sm:$0xff] %v1553_v46  ;;  %v1681_v46 = vld [vmem:[%s7672_s25 + $0x14a0] sm:$0xff] }
 0x140   : > { %1556 = vst [vmem:[%s7677_s26 + $0x978] sm:$0xff] %v1555_v47  ;;  %v1683_v47 = vld [vmem:[%s7672_s25 + $0x14a8] sm:$0xff] }
 0x141   : > { %1558 = vst [vmem:[%s7677_s26 + $0x980] sm:$0xff] %v1557_v48  ;;  %v1685_v48 = vld [vmem:[%s7672_s25 + $0x14b0] sm:$0xff] }
 0x142   : > { %1560 = vst [vmem:[%s7677_s26 + $0x988] sm:$0xff] %v1559_v49  ;;  %v1687_v49 = vld [vmem:[%s7672_s25 + $0x14b8] sm:$0xff] }
 0x143   : > { %1562 = vst [vmem:[%s7677_s26 + $0x990] sm:$0xff] %v1561_v50  ;;  %v1689_v50 = vld [vmem:[%s7672_s25 + $0x14c0] sm:$0xff] }
 0x144   : > { %1564 = vst [vmem:[%s7677_s26 + $0x998] sm:$0xff] %v1563_v51  ;;  %v1691_v51 = vld [vmem:[%s7672_s25 + $0x14c8] sm:$0xff] }
 0x145   : > { %1566 = vst [vmem:[%s7677_s26 + $0x9a0] sm:$0xff] %v1565_v52  ;;  %v1693_v52 = vld [vmem:[%s7672_s25 + $0x14d0] sm:$0xff] }
 0x146   : > { %1568 = vst [vmem:[%s7677_s26 + $0x9a8] sm:$0xff] %v1567_v53  ;;  %v1695_v53 = vld [vmem:[%s7672_s25 + $0x14d8] sm:$0xff] }
 0x147   : > { %1570 = vst [vmem:[%s7677_s26 + $0x9b0] sm:$0xff] %v1569_v54  ;;  %v1697_v54 = vld [vmem:[%s7672_s25 + $0x14e0] sm:$0xff] }
 0x148   : > { %1572 = vst [vmem:[%s7677_s26 + $0x9b8] sm:$0xff] %v1571_v55  ;;  %v1699_v55 = vld [vmem:[%s7672_s25 + $0x14e8] sm:$0xff] }
 0x149   : > { %1574 = vst [vmem:[%s7677_s26 + $0x9c0] sm:$0xff] %v1573_v56  ;;  %v1701_v56 = vld [vmem:[%s7672_s25 + $0x14f0] sm:$0xff] }
 0x14a   : > { %1576 = vst [vmem:[%s7677_s26 + $0x9c8] sm:$0xff] %v1575_v57  ;;  %v1703_v57 = vld [vmem:[%s7672_s25 + $0x14f8] sm:$0xff] }
 0x14b   : > { %1578 = vst [vmem:[%s7677_s26 + $0x9d0] sm:$0xff] %v1577_v58  ;;  %v1705_v58 = vld [vmem:[%s7672_s25 + $0x1500] sm:$0xff] }
 0x14c   : > { %1580 = vst [vmem:[%s7677_s26 + $0x9d8] sm:$0xff] %v1579_v59  ;;  %v1707_v59 = vld [vmem:[%s7672_s25 + $0x1508] sm:$0xff] }
 0x14d   : > { %1582 = vst [vmem:[%s7677_s26 + $0x9e0] sm:$0xff] %v1581_v60  ;;  %v1709_v60 = vld [vmem:[%s7672_s25 + $0x1510] sm:$0xff] }
 0x14e   : > { %1584 = vst [vmem:[%s7677_s26 + $0x9e8] sm:$0xff] %v1583_v61  ;;  %v1711_v61 = vld [vmem:[%s7672_s25 + $0x1518] sm:$0xff] }
 0x14f   : > { %1586 = vst [vmem:[%s7677_s26 + $0x9f0] sm:$0xff] %v1585_v62  ;;  %v1713_v62 = vld [vmem:[%s7672_s25 + $0x1520] sm:$0xff] }
 0x150   : > { %1588 = vst [vmem:[%s7677_s26 + $0x9f8] sm:$0xff] %v1587_v63  ;;  %v1715_v63 = vld [vmem:[%s7672_s25 + $0x1528] sm:$0xff] }
 0x151   : > { %1590 = vst [vmem:[%s7677_s26 + $0xa00] sm:$0xff] %v1589_v0  ;;  %v1717_v0 = vld [vmem:[%s7672_s25 + $0x1530] sm:$0xff] }
 0x152   : > { %1592 = vst [vmem:[%s7677_s26 + $0xa08] sm:$0xff] %v1591_v1  ;;  %v1719_v1 = vld [vmem:[%s7672_s25 + $0x1538] sm:$0xff] }
 0x153   : > { %1594 = vst [vmem:[%s7677_s26 + $0xa10] sm:$0xff] %v1593_v2  ;;  %v1721_v2 = vld [vmem:[%s7672_s25 + $0x1540] sm:$0xff] }
 0x154   : > { %1596 = vst [vmem:[%s7677_s26 + $0xa18] sm:$0xff] %v1595_v3  ;;  %v1723_v3 = vld [vmem:[%s7672_s25 + $0x1548] sm:$0xff] }
 0x155   : > { %1598 = vst [vmem:[%s7677_s26 + $0xa20] sm:$0xff] %v1597_v4  ;;  %v1725_v4 = vld [vmem:[%s7672_s25 + $0x1550] sm:$0xff] }
 0x156   : > { %1600 = vst [vmem:[%s7677_s26 + $0xa28] sm:$0xff] %v1599_v5  ;;  %v1727_v5 = vld [vmem:[%s7672_s25 + $0x1558] sm:$0xff] }
 0x157   : > { %1602 = vst [vmem:[%s7677_s26 + $0xa30] sm:$0xff] %v1601_v6  ;;  %v1729_v6 = vld [vmem:[%s7672_s25 + $0x1560] sm:$0xff] }
 0x158   : > { %1604 = vst [vmem:[%s7677_s26 + $0xa38] sm:$0xff] %v1603_v7  ;;  %v1731_v7 = vld [vmem:[%s7672_s25 + $0x1568] sm:$0xff] }
 0x159   : > { %1606 = vst [vmem:[%s7677_s26 + $0xa40] sm:$0xff] %v1605_v8 }
 0x15a   : > { %1608 = vst [vmem:[%s7677_s26 + $0xa48] sm:$0xff] %v1607_v9 }
 0x15b   : > { %1610 = vst [vmem:[%s7677_s26 + $0xa50] sm:$0xff] %v1609_v10 }
 0x15c   : > { %1612 = vst [vmem:[%s7677_s26 + $0xa58] sm:$0xff] %v1611_v11 }
 0x15d   : > { %1614 = vst [vmem:[%s7677_s26 + $0xa60] sm:$0xff] %v1613_v12 }
 0x15e   : > { %1616 = vst [vmem:[%s7677_s26 + $0xa68] sm:$0xff] %v1615_v13 }
 0x15f   : > { %1618 = vst [vmem:[%s7677_s26 + $0xa70] sm:$0xff] %v1617_v14 }
 0x160   : > { %1620 = vst [vmem:[%s7677_s26 + $0xa78] sm:$0xff] %v1619_v15 }
 0x161   : > { %1622 = vst [vmem:[%s7677_s26 + $0xa80] sm:$0xff] %v1621_v16 }
 0x162   : > { %1624 = vst [vmem:[%s7677_s26 + $0xa88] sm:$0xff] %v1623_v17 }
 0x163   : > { %1626 = vst [vmem:[%s7677_s26 + $0xa90] sm:$0xff] %v1625_v18 }
 0x164   : > { %1628 = vst [vmem:[%s7677_s26 + $0xa98] sm:$0xff] %v1627_v19 }
 0x165   : > { %1630 = vst [vmem:[%s7677_s26 + $0xaa0] sm:$0xff] %v1629_v20 }
 0x166   : > { %1632 = vst [vmem:[%s7677_s26 + $0xaa8] sm:$0xff] %v1631_v21 }
 0x167   : > { %1634 = vst [vmem:[%s7677_s26 + $0xab0] sm:$0xff] %v1633_v22 }
 0x168   : > { %1636 = vst [vmem:[%s7677_s26 + $0xab8] sm:$0xff] %v1635_v23 }
 0x169   : > { %1638 = vst [vmem:[%s7677_s26 + $0xac0] sm:$0xff] %v1637_v24 }
 0x16a   : > { %1640 = vst [vmem:[%s7677_s26 + $0xac8] sm:$0xff] %v1639_v25 }
 0x16b   : > { %1642 = vst [vmem:[%s7677_s26 + $0xad0] sm:$0xff] %v1641_v26 }
 0x16c   : > { %1644 = vst [vmem:[%s7677_s26 + $0xad8] sm:$0xff] %v1643_v27 }
 0x16d   : > { %1646 = vst [vmem:[%s7677_s26 + $0xae0] sm:$0xff] %v1645_v28 }
 0x16e   : > { %1648 = vst [vmem:[%s7677_s26 + $0xae8] sm:$0xff] %v1647_v29 }
 0x16f   : > { %1650 = vst [vmem:[%s7677_s26 + $0xaf0] sm:$0xff] %v1649_v30 }
 0x170   : > { %1652 = vst [vmem:[%s7677_s26 + $0xaf8] sm:$0xff] %v1651_v31 }
 0x171   : > { %1654 = vst [vmem:[%s7677_s26 + $0xb00] sm:$0xff] %v1653_v32 }
 0x172   : > { %1656 = vst [vmem:[%s7677_s26 + $0xb08] sm:$0xff] %v1655_v33 }
 0x173   : > { %1658 = vst [vmem:[%s7677_s26 + $0xb10] sm:$0xff] %v1657_v34 }
 0x174   : > { %1660 = vst [vmem:[%s7677_s26 + $0xb18] sm:$0xff] %v1659_v35 }
 0x175   : > { %1662 = vst [vmem:[%s7677_s26 + $0xb20] sm:$0xff] %v1661_v36 }
 0x176   : > { %1664 = vst [vmem:[%s7677_s26 + $0xb28] sm:$0xff] %v1663_v37 }
 0x177   : > { %1666 = vst [vmem:[%s7677_s26 + $0xb30] sm:$0xff] %v1665_v38 }
 0x178   : > { %1668 = vst [vmem:[%s7677_s26 + $0xb38] sm:$0xff] %v1667_v39 }
 0x179   : > { %1670 = vst [vmem:[%s7677_s26 + $0xb40] sm:$0xff] %v1669_v40 }
 0x17a   : > { %1672 = vst [vmem:[%s7677_s26 + $0xb48] sm:$0xff] %v1671_v41 }
 0x17b   : > { %1674 = vst [vmem:[%s7677_s26 + $0xb50] sm:$0xff] %v1673_v42 }
 0x17c   : > { %1676 = vst [vmem:[%s7677_s26 + $0xb58] sm:$0xff] %v1675_v43 }
 0x17d   : > { %1678 = vst [vmem:[%s7677_s26 + $0xb60] sm:$0xff] %v1677_v44 }
 0x17e   : > { %1680 = vst [vmem:[%s7677_s26 + $0xb68] sm:$0xff] %v1679_v45 }
 0x17f   : > { %1682 = vst [vmem:[%s7677_s26 + $0xb70] sm:$0xff] %v1681_v46 }
 0x180   : > { %1684 = vst [vmem:[%s7677_s26 + $0xb78] sm:$0xff] %v1683_v47 }
 0x181   : > { %1686 = vst [vmem:[%s7677_s26 + $0xb80] sm:$0xff] %v1685_v48 }
 0x182   : > { %1688 = vst [vmem:[%s7677_s26 + $0xb88] sm:$0xff] %v1687_v49 }
 0x183   : > { %1690 = vst [vmem:[%s7677_s26 + $0xb90] sm:$0xff] %v1689_v50 }
 0x184   : > { %1692 = vst [vmem:[%s7677_s26 + $0xb98] sm:$0xff] %v1691_v51 }
 0x185   : > { %1694 = vst [vmem:[%s7677_s26 + $0xba0] sm:$0xff] %v1693_v52 }
 0x186   : > { %1696 = vst [vmem:[%s7677_s26 + $0xba8] sm:$0xff] %v1695_v53 }
 0x187   : > { %1698 = vst [vmem:[%s7677_s26 + $0xbb0] sm:$0xff] %v1697_v54 }
 0x188   : > { %1700 = vst [vmem:[%s7677_s26 + $0xbb8] sm:$0xff] %v1699_v55 }
 0x189   : > { %1702 = vst [vmem:[%s7677_s26 + $0xbc0] sm:$0xff] %v1701_v56 }
 0x18a   : > { %1704 = vst [vmem:[%s7677_s26 + $0xbc8] sm:$0xff] %v1703_v57 }
 0x18b   : > { %1706 = vst [vmem:[%s7677_s26 + $0xbd0] sm:$0xff] %v1705_v58 }
 0x18c   : > { %1708 = vst [vmem:[%s7677_s26 + $0xbd8] sm:$0xff] %v1707_v59 }
 0x18d   : > { %1710 = vst [vmem:[%s7677_s26 + $0xbe0] sm:$0xff] %v1709_v60 }
 0x18e   : > { %1712 = vst [vmem:[%s7677_s26 + $0xbe8] sm:$0xff] %v1711_v61 }
 0x18f   : > { %1714 = vst [vmem:[%s7677_s26 + $0xbf0] sm:$0xff] %v1713_v62 }
 0x190   : > { %1716 = vst [vmem:[%s7677_s26 + $0xbf8] sm:$0xff] %v1715_v63 }
 0x191   : > { %1718 = vst [vmem:[%s7677_s26 + $0xc00] sm:$0xff] %v1717_v0 }
 0x192   : > { %1720 = vst [vmem:[%s7677_s26 + $0xc08] sm:$0xff] %v1719_v1 }
 0x193   : > { %1722 = vst [vmem:[%s7677_s26 + $0xc10] sm:$0xff] %v1721_v2 }
 0x194   : > { %1724 = vst [vmem:[%s7677_s26 + $0xc18] sm:$0xff] %v1723_v3 }
 0x195   : > { %1726 = vst [vmem:[%s7677_s26 + $0xc20] sm:$0xff] %v1725_v4 }
 0x196   : > { %1728 = vst [vmem:[%s7677_s26 + $0xc28] sm:$0xff] %v1727_v5 }
 0x197   : > { %1730 = vst [vmem:[%s7677_s26 + $0xc30] sm:$0xff] %v1729_v6 }
 0x198   : > { %1732 = vst [vmem:[%s7677_s26 + $0xc38] sm:$0xff] %v1731_v7 }
 0x199 PF: > { %p6869_p5 = scmp.ge.s32.totalorder %s7616_s14, 1  ;;  %p3340_p6 = scmp.lt.s32.totalorder %s7616_s14, 3 }
 0x19b   : > { %p3341_p7 = pnand %p6869_p5, %p3340_p6 }
 0x19c   : > { %s3347_s4 = sand.u32 (!%p3341_p7), 1, %s7608_s12   ;;  %s3371_s11 = smul.u32 (!%p3341_p7), 98, %s6864_s15 }
 0x19d   : > { %3344 = sbr.rel (%p3341_p7) target bundleno = 1343 (0x53f), region = 80 }
 0x19e   : > { %s7565_s5 = smul.u32 (!%p3341_p7), 3136, %s3347_s4  ;;  %p3372_p8 = scmp.lt.s32.totalorder (!%p3341_p7), %s3371_s11, 195 }
 0x1a0   : > { %s8475_s10 = scalar_lea.vmem (!%p3341_p7), [#allocation2], %s7565_s5 }
 0x1a2   : > { %v3380_v8 = vld [vmem:[%s9495_s1 + $0x18] sm:$0x1]  ;;  %vm3774_vm0 = vcmask 1040384   ;;  %v3379_v9 = vld [vmem:[%s9495_s1 + $0x10] sm:$0xff]  ;;  %v3378_v10 = vld [vmem:[%s9495_s1 + $0x8] sm:$0xff]  ;;  %vm3479_vm1 = vcmask 203776  }
 0x1a3   : > { %7265 = vmatpush.msk.msra.mxu2 %vm3774_vm0, %v3380_v8  ;;  %7462 = vmatpush.msk.msra.mxu3 %vm3774_vm0, %v3380_v8  ;;  %v3377_v11 = vld [vmem:[%s9495_s1] sm:$0xff]  ;;  %v7364_v13 = vld [vmem:[%s8475_s10 + $0x930] sm:$0xff]  ;;  %v7168_v16 = vld [vmem:[%s8475_s10 + $0x628] sm:$0xff]  ;;  %s9502_s11 = smov (!%p3372_p8, %s3371_s11), 195 }
 0x1a4   : > { %6871 = vmatpush.msk.msra.mxu0 %vm3774_vm0, %v3380_v8  ;;  %7068 = vmatpush.msk.msra.mxu1 %vm3774_vm0, %v3380_v8  ;;  %v7167_v12 = vld [vmem:[%s8475_s10 + $0x620] sm:$0xff]  ;;  %v6970_v15 = vld [vmem:[%s8475_s10 + $0x310] sm:$0xff]  ;;  %v7365_v17 = vld [vmem:[%s8475_s10 + $0x938] sm:$0xff]  ;;  %s6870_s15 = sshll.u32 %s9502_s11, 3 }
 0x1a5   : > { %5199 = vmatpush.msra.mxu2 %v3379_v9  ;;  %5903 = vmatpush.msra.mxu3 %v3379_v9  ;;  %v3381_v14 = vld [vmem:[%s8475_s10] sm:$0xff]  ;;  %v3382_v18 = vld [vmem:[%s8475_s10 + $0x8] sm:$0xff]  ;;  %v6971_v19 = vld [vmem:[%s8475_s10 + $0x318] sm:$0xff]  ;;  %s8630_s20 = scalar_lea.vmem %s9497_s3, %s6870_s15 }
 0x1a6   : > { %3791 = vmatpush.msra.mxu0 %v3379_v9  ;;  %4495 = vmatpush.msra.mxu1 %v3379_v9  ;;  %v7169_v20 = vld [vmem:[%s8475_s10 + $0x630] sm:$0xff]  ;;  %v7366_v21 = vld [vmem:[%s8475_s10 + $0x940] sm:$0xff]  ;;  %v7170_v24 = vld [vmem:[%s8475_s10 + $0x638] sm:$0xff] }
 0x1a7   : > { %5200 = vmatpush.msra.mxu2 %v3378_v10  ;;  %5904 = vmatpush.msra.mxu3 %v3378_v10  ;;  %v3383_v22 = vld [vmem:[%s8475_s10 + $0x10] sm:$0xff]  ;;  %v6972_v23 = vld [vmem:[%s8475_s10 + $0x320] sm:$0xff]  ;;  %v7367_v25 = vld [vmem:[%s8475_s10 + $0x948] sm:$0xff] }
 0x1a8   : > { %3792 = vmatpush.msra.mxu0 %v3378_v10  ;;  %4496 = vmatpush.msra.mxu1 %v3378_v10  ;;  %v3384_v26 = vld [vmem:[%s8475_s10 + $0x18] sm:$0xff]  ;;  %v6973_v27 = vld [vmem:[%s8475_s10 + $0x328] sm:$0xff]  ;;  %v7171_v28 = vld [vmem:[%s8475_s10 + $0x640] sm:$0xff] }
 0x1a9   : > { %5201 = vmatpush.msra.mxu2 %v3377_v11  ;;  %5905 = vmatpush.msra.mxu3 %v3377_v11  ;;  %v7368_v29 = vld [vmem:[%s8475_s10 + $0x950] sm:$0xff]  ;;  %v3385_v30 = vld [vmem:[%s8475_s10 + $0x20] sm:$0xff]  ;;  %v7172_v32 = vld [vmem:[%s8475_s10 + $0x648] sm:$0xff] }
 0x1aa   : > { %7266 = vmatmul.msk.f32.vlgmr.msra.gmra.mxu2 %vm3479_vm1, %v7167_v12  ;;  %7463 = vmatmul.msk.f32.vlgmr.msra.gmra.mxu3 %vm3479_vm1, %v7364_v13  ;;  %v6974_v31 = vld [vmem:[%s8475_s10 + $0x330] sm:$0xff]  ;;  %v7369_v33 = vld [vmem:[%s8475_s10 + $0x958] sm:$0xff]  ;;  %v3386_v34 = vld [vmem:[%s8475_s10 + $0x28] sm:$0xff] }
 0x1ab   : > { %3793 = vmatpush.msra.mxu0 %v3377_v11  ;;  %4497 = vmatpush.msra.mxu1 %v3377_v11  ;;  %v6975_v35 = vld [vmem:[%s8475_s10 + $0x338] sm:$0xff]  ;;  %v7173_v36 = vld [vmem:[%s8475_s10 + $0x650] sm:$0xff]  ;;  %v7370_v37 = vld [vmem:[%s8475_s10 + $0x960] sm:$0xff] }
 0x1ac   : > { %6872 = vmatmul.msk.f32.vlgmr.msra.gmra.mxu0 %vm3479_vm1, %v3381_v14  ;;  %7069 = vmatmul.msk.f32.vlgmr.msra.gmra.mxu1 %vm3479_vm1, %v6970_v15  ;;  %v3387_v38 = vld [vmem:[%s8475_s10 + $0x30] sm:$0xff]  ;;  %v6976_v39 = vld [vmem:[%s8475_s10 + $0x340] sm:$0xff]  ;;  %v7174_v40 = vld [vmem:[%s8475_s10 + $0x658] sm:$0xff] }
 0x1ad   : > { %v7371_v41 = vld [vmem:[%s8475_s10 + $0x968] sm:$0xff]  ;;  %v3388_v42 = vld [vmem:[%s8475_s10 + $0x38] sm:$0xff]  ;;  %v7175_v44 = vld [vmem:[%s8475_s10 + $0x660] sm:$0xff] }
 0x1ae   : > { %v6977_v43 = vld [vmem:[%s8475_s10 + $0x348] sm:$0xff]  ;;  %v7372_v45 = vld [vmem:[%s8475_s10 + $0x970] sm:$0xff]  ;;  %v3389_v46 = vld [vmem:[%s8475_s10 + $0x40] sm:$0xff] }
 0x1af   : > { %v6978_v47 = vld [vmem:[%s8475_s10 + $0x350] sm:$0xff]  ;;  %v7176_v48 = vld [vmem:[%s8475_s10 + $0x668] sm:$0xff]  ;;  %v7373_v49 = vld [vmem:[%s8475_s10 + $0x978] sm:$0xff] }
 0x1b0   : > { %v3390_v50 = vld [vmem:[%s8475_s10 + $0x48] sm:$0xff]  ;;  %v6979_v51 = vld [vmem:[%s8475_s10 + $0x358] sm:$0xff]  ;;  %v7177_v52 = vld [vmem:[%s8475_s10 + $0x670] sm:$0xff] }
 0x1b1   : > { %v7374_v53 = vld [vmem:[%s8475_s10 + $0x980] sm:$0xff]  ;;  %v3391_v54 = vld [vmem:[%s8475_s10 + $0x50] sm:$0xff]  ;;  %v7178_v56 = vld [vmem:[%s8475_s10 + $0x678] sm:$0xff] }
 0x1b2   : > { %7267 = vmatmul.msk.f32.gmra.mxu2 %vm3479_vm1, %v7168_v16  ;;  %7464 = vmatmul.msk.f32.gmra.mxu3 %vm3479_vm1, %v7365_v17  ;;  %v6980_v55 = vld [vmem:[%s8475_s10 + $0x360] sm:$0xff]  ;;  %v7375_v57 = vld [vmem:[%s8475_s10 + $0x988] sm:$0xff]  ;;  %v3392_v58 = vld [vmem:[%s8475_s10 + $0x58] sm:$0xff] }
 0x1b3   : > { %v6981_v59 = vld [vmem:[%s8475_s10 + $0x368] sm:$0xff]  ;;  %v7179_v60 = vld [vmem:[%s8475_s10 + $0x680] sm:$0xff]  ;;  %v7376_v61 = vld [vmem:[%s8475_s10 + $0x990] sm:$0xff] }
 0x1b4   : > { %6873 = vmatmul.msk.f32.gmra.mxu0 %vm3479_vm1, %v3382_v18  ;;  %7070 = vmatmul.msk.f32.gmra.mxu1 %vm3479_vm1, %v6971_v19  ;;  %v3393_v62 = vld [vmem:[%s8475_s10 + $0x60] sm:$0xff]  ;;  %v6982_v63 = vld [vmem:[%s8475_s10 + $0x370] sm:$0xff]  ;;  %v7180_v0 = vld [vmem:[%s8475_s10 + $0x688] sm:$0xff] }
 0x1b5   : > { %v7377_v1 = vld [vmem:[%s8475_s10 + $0x998] sm:$0xff]  ;;  %v3394_v2 = vld [vmem:[%s8475_s10 + $0x68] sm:$0xff]  ;;  %v7181_v4 = vld [vmem:[%s8475_s10 + $0x690] sm:$0xff] }
 0x1b6   : > { %v6983_v3 = vld [vmem:[%s8475_s10 + $0x378] sm:$0xff]  ;;  %v7378_v5 = vld [vmem:[%s8475_s10 + $0x9a0] sm:$0xff]  ;;  %v3395_v6 = vld [vmem:[%s8475_s10 + $0x70] sm:$0xff] }
 0x1b7   : > { %v6984_v7 = vld [vmem:[%s8475_s10 + $0x380] sm:$0xff]  ;;  %v7182_v8 = vld [vmem:[%s8475_s10 + $0x698] sm:$0xff]  ;;  %v7379_v9 = vld [vmem:[%s8475_s10 + $0x9a8] sm:$0xff] }
 0x1b8   : > { %v3396_v10 = vld [vmem:[%s8475_s10 + $0x78] sm:$0xff]  ;;  %v6985_v11 = vld [vmem:[%s8475_s10 + $0x388] sm:$0xff]  ;;  %v7183_v12 = vld [vmem:[%s8475_s10 + $0x6a0] sm:$0xff] }
 0x1b9   : > { %v7380_v13 = vld [vmem:[%s8475_s10 + $0x9b0] sm:$0xff]  ;;  %v3397_v16 = vld [vmem:[%s8475_s10 + $0x80] sm:$0xff] }
 0x1ba   : > { %7268 = vmatmul.msk.f32.gmra.mxu2 %vm3479_vm1, %v7169_v20  ;;  %7465 = vmatmul.msk.f32.gmra.mxu3 %vm3479_vm1, %v7366_v21  ;;  %v6986_v17 = vld [vmem:[%s8475_s10 + $0x390] sm:$0xff] }
 0x1bc   : > { %6874 = vmatmul.msk.f32.gmra.mxu0 %vm3479_vm1, %v3383_v22  ;;  %7071 = vmatmul.msk.f32.gmra.mxu1 %vm3479_vm1, %v6972_v23  ;;  %v8618_v22 = vld [vmem:[%s9496_s2] ss:$0 sm:$0xff]  ;;  %v7184_v23 = vld [vmem:[%s8475_s10 + $0x6a8] sm:$0xff] }
 0x1c2   : > { %7269 = vmatmul.msk.f32.gmra.mxu2 %vm3479_vm1, %v7170_v24  ;;  %7466 = vmatmul.msk.f32.gmra.mxu3 %vm3479_vm1, %v7367_v25  ;;  %v7381_v24 = vld [vmem:[%s8475_s10 + $0x9b8] sm:$0xff] }
 0x1c4   : > { %6875 = vmatmul.msk.f32.gmra.mxu0 %vm3479_vm1, %v3384_v26  ;;  %7072 = vmatmul.msk.f32.gmra.mxu1 %vm3479_vm1, %v6973_v27 }
 0x1ca   : > { %7270 = vmatmul.msk.f32.gmra.mxu2 %vm3479_vm1, %v7171_v28  ;;  %7467 = vmatmul.msk.f32.gmra.mxu3 %vm3479_vm1, %v7368_v29  ;;  %v3398_v28 = vld [vmem:[%s8475_s10 + $0x88] sm:$0xff]  ;;  %v6987_v29 = vld [vmem:[%s8475_s10 + $0x398] sm:$0xff] }
 0x1cc   : > { %6876 = vmatmul.msk.f32.gmra.mxu0 %vm3479_vm1, %v3385_v30  ;;  %7073 = vmatmul.msk.f32.gmra.mxu1 %vm3479_vm1, %v6974_v31 }
 0x1d2   : > { %7271 = vmatmul.msk.f32.gmra.mxu2 %vm3479_vm1, %v7172_v32  ;;  %7468 = vmatmul.msk.f32.gmra.mxu3 %vm3479_vm1, %v7369_v33 }
 0x1d4   : > { %6877 = vmatmul.msk.f32.gmra.mxu0 %vm3479_vm1, %v3386_v34  ;;  %7074 = vmatmul.msk.f32.gmra.mxu1 %vm3479_vm1, %v6975_v35 }
 0x1da   : > { %7272 = vmatmul.msk.f32.gmra.mxu2 %vm3479_vm1, %v7173_v36  ;;  %7469 = vmatmul.msk.f32.gmra.mxu3 %vm3479_vm1, %v7370_v37  ;;  %v7185_v36 = vld [vmem:[%s8475_s10 + $0x6b0] sm:$0xff]  ;;  %v7382_v37 = vld [vmem:[%s8475_s10 + $0x9c0] sm:$0xff] }
 0x1dc   : > { %6878 = vmatmul.msk.f32.gmra.mxu0 %vm3479_vm1, %v3387_v38  ;;  %7075 = vmatmul.msk.f32.gmra.mxu1 %vm3479_vm1, %v6976_v39 }
 0x1e2   : > { %7273 = vmatmul.msk.f32.gmra.mxu2 %vm3479_vm1, %v7174_v40  ;;  %7470 = vmatmul.msk.f32.gmra.mxu3 %vm3479_vm1, %v7371_v41  ;;  %v3399_v41 = vld [vmem:[%s8475_s10 + $0x90] sm:$0xff] }
 0x1e4   : > { %6879 = vmatmul.msk.f32.gmra.mxu0 %vm3479_vm1, %v3388_v42  ;;  %7076 = vmatmul.msk.f32.gmra.mxu1 %vm3479_vm1, %v6977_v43  ;;  %v6988_v42 = vld [vmem:[%s8475_s10 + $0x3a0] sm:$0xff] }
 0x1ea   : > { %7274 = vmatmul.msk.f32.gmra.mxu2 %vm3479_vm1, %v7175_v44  ;;  %7471 = vmatmul.msk.f32.gmra.mxu3 %vm3479_vm1, %v7372_v45 }
 0x1ec   : > { %6880 = vmatmul.msk.f32.gmra.mxu0 %vm3479_vm1, %v3389_v46  ;;  %7077 = vmatmul.msk.f32.gmra.mxu1 %vm3479_vm1, %v6978_v47 }
 0x1f2   : > { %7275 = vmatmul.msk.f32.gmra.mxu2 %vm3479_vm1, %v7176_v48  ;;  %7472 = vmatmul.msk.f32.gmra.mxu3 %vm3479_vm1, %v7373_v49  ;;  %v7186_v49 = vld [vmem:[%s8475_s10 + $0x6b8] sm:$0xff] }
 0x1f4   : > { %6881 = vmatmul.msk.f32.gmra.mxu0 %vm3479_vm1, %v3390_v50  ;;  %7078 = vmatmul.msk.f32.gmra.mxu1 %vm3479_vm1, %v6979_v51  ;;  %v7383_v50 = vld [vmem:[%s8475_s10 + $0x9c8] sm:$0xff] }
 0x1fa   : > { %7276 = vmatmul.msk.f32.gmra.mxu2 %vm3479_vm1, %v7177_v52  ;;  %7473 = vmatmul.msk.f32.gmra.mxu3 %vm3479_vm1, %v7374_v53 }
 0x1fc   : > { %6882 = vmatmul.msk.f32.gmra.mxu0 %vm3479_vm1, %v3391_v54  ;;  %7079 = vmatmul.msk.f32.gmra.mxu1 %vm3479_vm1, %v6980_v55  ;;  %v3400_v54 = vld [vmem:[%s8475_s10 + $0x98] sm:$0xff]  ;;  %v6989_v55 = vld [vmem:[%s8475_s10 + $0x3a8] sm:$0xff] }
 0x202   : > { %7277 = vmatmul.msk.f32.gmra.mxu2 %vm3479_vm1, %v7178_v56  ;;  %7474 = vmatmul.msk.f32.gmra.mxu3 %vm3479_vm1, %v7375_v57 }
 0x204   : > { %6883 = vmatmul.msk.f32.gmra.mxu0 %vm3479_vm1, %v3392_v58  ;;  %7080 = vmatmul.msk.f32.gmra.mxu1 %vm3479_vm1, %v6981_v59 }
 0x20a   : > { %7278 = vmatmul.msk.f32.gmra.mxu2 %vm3479_vm1, %v7179_v60  ;;  %7475 = vmatmul.msk.f32.gmra.mxu3 %vm3479_vm1, %v7376_v61 }
 0x20c   : > { %6884 = vmatmul.msk.f32.gmra.mxu0 %vm3479_vm1, %v3393_v62  ;;  %7081 = vmatmul.msk.f32.gmra.mxu1 %vm3479_vm1, %v6982_v63  ;;  %v7187_v62 = vld [vmem:[%s8475_s10 + $0x6c0] sm:$0xff]  ;;  %v7384_v63 = vld [vmem:[%s8475_s10 + $0x9d0] sm:$0xff] }
 0x212   : > { %7279 = vmatmul.msk.f32.gmra.mxu2 %vm3479_vm1, %v7180_v0  ;;  %7476 = vmatmul.msk.f32.gmra.mxu3 %vm3479_vm1, %v7377_v1 }
 0x214   : > { %6885 = vmatmul.msk.f32.gmra.mxu0 %vm3479_vm1, %v3394_v2  ;;  %7082 = vmatmul.msk.f32.gmra.mxu1 %vm3479_vm1, %v6983_v3  ;;  %v3401_v3 = vld [vmem:[%s8475_s10 + $0xa0] sm:$0xff] }
 0x21a   : > { %7280 = vmatmul.msk.f32.gmra.mxu2 %vm3479_vm1, %v7181_v4  ;;  %7477 = vmatmul.msk.f32.gmra.mxu3 %vm3479_vm1, %v7378_v5  ;;  %v6990_v4 = vld [vmem:[%s8475_s10 + $0x3b0] sm:$0xff] }
 0x21c   : > { %6886 = vmatmul.msk.f32.gmra.mxu0 %vm3479_vm1, %v3395_v6  ;;  %7083 = vmatmul.msk.f32.gmra.mxu1 %vm3479_vm1, %v6984_v7 }
 0x222   : > { %7281 = vmatmul.msk.f32.gmra.mxu2 %vm3479_vm1, %v7182_v8  ;;  %7478 = vmatmul.msk.f32.gmra.mxu3 %vm3479_vm1, %v7379_v9 }
 0x224   : > { %6887 = vmatmul.msk.f32.gmra.mxu0 %vm3479_vm1, %v3396_v10  ;;  %7084 = vmatmul.msk.f32.gmra.mxu1 %vm3479_vm1, %v6985_v11  ;;  %v7188_v11 = vld [vmem:[%s8475_s10 + $0x6c8] sm:$0xff] }
 0x229   : > { %v3795_v14 = vpop.f32.mrf.mxu0  ;;  %v4499_v15 = vpop.f32.mrf.mxu1 }
 0x22a   : > { %7282 = vmatmul.msk.f32.gmra.mxu2 %vm3479_vm1, %v7183_v12  ;;  %7479 = vmatmul.msk.f32.gmra.mxu3 %vm3479_vm1, %v7380_v13  ;;  %v6201_v18 = vmax.f32 %v3795_v14, %v4499_v15  ;;  %v7385_v12 = vld [vmem:[%s8475_s10 + $0x9d8] sm:$0xff] }
 0x22c   : > { %6888 = vmatmul.msk.f32.gmra.mxu0 %vm3479_vm1, %v3397_v16  ;;  %7085 = vmatmul.msk.f32.gmra.mxu1 %vm3479_vm1, %v6986_v17  ;;  %v3402_v16 = vld [vmem:[%s8475_s10 + $0xa8] sm:$0xff]  ;;  %v6991_v17 = vld [vmem:[%s8475_s10 + $0x3b8] sm:$0xff] }
 0x22d   : > { %v5203_v19 = vpop.f32.mrf.mxu2  ;;  %v5907_v20 = vpop.f32.mrf.mxu3 }
 0x22e   : > { %v6299_v21 = vmax.f32 %v5203_v19, %v5907_v20 }
 0x230   : > { %v6397_v25 = vmax.f32 %v6201_v18, %v6299_v21 }
 0x231   : > { %v3798_v26 = vpop.f32.mrf.mxu0  ;;  %v4502_v27 = vpop.f32.mrf.mxu1 }
 0x232   : > { %v6499_v30 = vadd.f32 %v8618_v22, %v6397_v25  ;;  %7283 = vmatmul.msk.f32.gmra.mxu2 %vm3479_vm1, %v7184_v23  ;;  %7480 = vmatmul.msk.f32.gmra.mxu3 %vm3479_vm1, %v7381_v24  ;;  %v6202_v32 = vmax.f32 %v3798_v26, %v4502_v27  ;;  %v7189_v25 = vld [vmem:[%s8475_s10 + $0x6d0] sm:$0xff]  ;;  %v7386_v26 = vld [vmem:[%s8475_s10 + $0x9e0] sm:$0xff] }
 0x234   : > { %v6597_v31 = vmax.f32 %v6499_v30, 0.0  ;;  %6889 = vmatmul.msk.f32.gmra.mxu0 %vm3479_vm1, %v3398_v28  ;;  %7086 = vmatmul.msk.f32.gmra.mxu1 %vm3479_vm1, %v6987_v29  ;;  %v3403_v30 = vld [vmem:[%s8475_s10 + $0xb0] sm:$0xff] }
 0x235   : > { %v5206_v33 = vpop.f32.mrf.mxu2  ;;  %v5910_v34 = vpop.f32.mrf.mxu3 }
 0x236   : > { %6695 = vst [vmem:[%s8630_s20] sm:$0xff] %v6597_v31  ;;  %v6300_v35 = vmax.f32 %v5206_v33, %v5910_v34  ;;  %v6992_v31 = vld [vmem:[%s8475_s10 + $0x3c0] sm:$0xff] }
 0x238   : > { %v6398_v38 = vmax.f32 %v6202_v32, %v6300_v35 }
 0x239   : > { %v3801_v39 = vpop.f32.mrf.mxu0  ;;  %v4505_v40 = vpop.f32.mrf.mxu1 }
 0x23a   : > { %v6500_v43 = vadd.f32 %v8618_v22, %v6398_v38  ;;  %7284 = vmatmul.msk.f32.gmra.mxu2 %vm3479_vm1, %v7185_v36  ;;  %7481 = vmatmul.msk.f32.gmra.mxu3 %vm3479_vm1, %v7382_v37  ;;  %v6203_v45 = vmax.f32 %v3801_v39, %v4505_v40  ;;  %v7190_v38 = vld [vmem:[%s8475_s10 + $0x6d8] sm:$0xff]  ;;  %v7387_v39 = vld [vmem:[%s8475_s10 + $0x9e8] sm:$0xff] }
 0x23c   : > { %v6598_v44 = vmax.f32 %v6500_v43, 0.0  ;;  %6890 = vmatmul.msk.f32.gmra.mxu0 %vm3479_vm1, %v3399_v41  ;;  %7087 = vmatmul.msk.f32.gmra.mxu1 %vm3479_vm1, %v6988_v42  ;;  %v3404_v43 = vld [vmem:[%s8475_s10 + $0xb8] sm:$0xff] }
 0x23d   : > { %v5209_v46 = vpop.f32.mrf.mxu2  ;;  %v5913_v47 = vpop.f32.mrf.mxu3 }
 0x23e   : > { %6696 = vst [vmem:[%s8630_s20 + $0x8] sm:$0xff] %v6598_v44  ;;  %v6301_v48 = vmax.f32 %v5209_v46, %v5913_v47  ;;  %v6993_v44 = vld [vmem:[%s8475_s10 + $0x3c8] sm:$0xff] }
 0x240   : > { %v6399_v51 = vmax.f32 %v6203_v45, %v6301_v48 }
 0x241   : > { %v3804_v52 = vpop.f32.mrf.mxu0  ;;  %v4508_v53 = vpop.f32.mrf.mxu1 }
 0x242   : > { %v6501_v56 = vadd.f32 %v8618_v22, %v6399_v51  ;;  %7285 = vmatmul.msk.f32.gmra.mxu2 %vm3479_vm1, %v7186_v49  ;;  %7482 = vmatmul.msk.f32.gmra.mxu3 %vm3479_vm1, %v7383_v50  ;;  %v6204_v58 = vmax.f32 %v3804_v52, %v4508_v53  ;;  %v7191_v51 = vld [vmem:[%s8475_s10 + $0x6e0] sm:$0xff]  ;;  %v7388_v52 = vld [vmem:[%s8475_s10 + $0x9f0] sm:$0xff] }
 0x244   : > { %v6599_v57 = vmax.f32 %v6501_v56, 0.0  ;;  %6891 = vmatmul.msk.f32.gmra.mxu0 %vm3479_vm1, %v3400_v54  ;;  %7088 = vmatmul.msk.f32.gmra.mxu1 %vm3479_vm1, %v6989_v55  ;;  %v3405_v56 = vld [vmem:[%s8475_s10 + $0xc0] sm:$0xff] }
 0x245   : > { %v5212_v59 = vpop.f32.mrf.mxu2  ;;  %v5916_v60 = vpop.f32.mrf.mxu3 }
 0x246   : > { %6697 = vst [vmem:[%s8630_s20 + $0x10] sm:$0xff] %v6599_v57  ;;  %v6302_v61 = vmax.f32 %v5212_v59, %v5916_v60  ;;  %v6994_v57 = vld [vmem:[%s8475_s10 + $0x3d0] sm:$0xff] }
 0x248   : > { %v6400_v0 = vmax.f32 %v6204_v58, %v6302_v61 }
 0x249   : > { %v3807_v1 = vpop.f32.mrf.mxu0  ;;  %v4511_v2 = vpop.f32.mrf.mxu1 }
 0x24a   : > { %v6502_v5 = vadd.f32 %v8618_v22, %v6400_v0  ;;  %7286 = vmatmul.msk.f32.gmra.mxu2 %vm3479_vm1, %v7187_v62  ;;  %7483 = vmatmul.msk.f32.gmra.mxu3 %vm3479_vm1, %v7384_v63  ;;  %v6205_v7 = vmax.f32 %v3807_v1, %v4511_v2  ;;  %v7192_v0 = vld [vmem:[%s8475_s10 + $0x6e8] sm:$0xff]  ;;  %v7389_v1 = vld [vmem:[%s8475_s10 + $0x9f8] sm:$0xff] }
 0x24c   : > { %v6600_v6 = vmax.f32 %v6502_v5, 0.0  ;;  %6892 = vmatmul.msk.f32.gmra.mxu0 %vm3479_vm1, %v3401_v3  ;;  %7089 = vmatmul.msk.f32.gmra.mxu1 %vm3479_vm1, %v6990_v4  ;;  %v3406_v5 = vld [vmem:[%s8475_s10 + $0xc8] sm:$0xff] }
 0x24d   : > { %v5215_v8 = vpop.f32.mrf.mxu2  ;;  %v5919_v9 = vpop.f32.mrf.mxu3 }
 0x24e   : > { %6698 = vst [vmem:[%s8630_s20 + $0x18] sm:$0xff] %v6600_v6  ;;  %v6303_v10 = vmax.f32 %v5215_v8, %v5919_v9  ;;  %v6995_v6 = vld [vmem:[%s8475_s10 + $0x3d8] sm:$0xff] }
 0x250   : > { %v6401_v13 = vmax.f32 %v6205_v7, %v6303_v10 }
 0x251   : > { %v3810_v14 = vpop.f32.mrf.mxu0  ;;  %v4514_v15 = vpop.f32.mrf.mxu1 }
 0x252   : > { %v6503_v18 = vadd.f32 %v8618_v22, %v6401_v13  ;;  %7287 = vmatmul.msk.f32.gmra.mxu2 %vm3479_vm1, %v7188_v11  ;;  %7484 = vmatmul.msk.f32.gmra.mxu3 %vm3479_vm1, %v7385_v12  ;;  %v6206_v20 = vmax.f32 %v3810_v14, %v4514_v15  ;;  %v7193_v13 = vld [vmem:[%s8475_s10 + $0x6f0] sm:$0xff]  ;;  %v7390_v14 = vld [vmem:[%s8475_s10 + $0xa00] sm:$0xff] }
 0x254   : > { %v6601_v19 = vmax.f32 %v6503_v18, 0.0  ;;  %6893 = vmatmul.msk.f32.gmra.mxu0 %vm3479_vm1, %v3402_v16  ;;  %7090 = vmatmul.msk.f32.gmra.mxu1 %vm3479_vm1, %v6991_v17  ;;  %v3407_v18 = vld [vmem:[%s8475_s10 + $0xd0] sm:$0xff] }
 0x255   : > { %v5218_v21 = vpop.f32.mrf.mxu2  ;;  %v5922_v23 = vpop.f32.mrf.mxu3 }
 0x256   : > { %6699 = vst [vmem:[%s8630_s20 + $0x20] sm:$0xff] %v6601_v19  ;;  %v6304_v24 = vmax.f32 %v5218_v21, %v5922_v23  ;;  %v6996_v19 = vld [vmem:[%s8475_s10 + $0x3e0] sm:$0xff] }
 0x258   : > { %v6402_v27 = vmax.f32 %v6206_v20, %v6304_v24 }
 0x259   : > { %v3813_v28 = vpop.f32.mrf.mxu0  ;;  %v4517_v29 = vpop.f32.mrf.mxu1 }
 0x25a   : > { %v6504_v32 = vadd.f32 %v8618_v22, %v6402_v27  ;;  %7288 = vmatmul.msk.f32.gmra.mxu2 %vm3479_vm1, %v7189_v25  ;;  %7485 = vmatmul.msk.f32.gmra.mxu3 %vm3479_vm1, %v7386_v26  ;;  %v6207_v34 = vmax.f32 %v3813_v28, %v4517_v29  ;;  %v7194_v27 = vld [vmem:[%s8475_s10 + $0x6f8] sm:$0xff]  ;;  %v7391_v28 = vld [vmem:[%s8475_s10 + $0xa08] sm:$0xff] }
 0x25c   : > { %v6602_v33 = vmax.f32 %v6504_v32, 0.0  ;;  %6894 = vmatmul.msk.f32.gmra.mxu0 %vm3479_vm1, %v3403_v30  ;;  %7091 = vmatmul.msk.f32.gmra.mxu1 %vm3479_vm1, %v6992_v31  ;;  %v3408_v32 = vld [vmem:[%s8475_s10 + $0xd8] sm:$0xff] }
 0x25d   : > { %v5221_v35 = vpop.f32.mrf.mxu2  ;;  %v5925_v36 = vpop.f32.mrf.mxu3 }
 0x25e   : > { %6700 = vst [vmem:[%s8630_s20 + $0x28] sm:$0xff] %v6602_v33  ;;  %v6305_v37 = vmax.f32 %v5221_v35, %v5925_v36  ;;  %v6997_v33 = vld [vmem:[%s8475_s10 + $0x3e8] sm:$0xff] }
 0x260   : > { %v6403_v40 = vmax.f32 %v6207_v34, %v6305_v37 }
 0x261   : > { %v3816_v41 = vpop.f32.mrf.mxu0  ;;  %v4520_v42 = vpop.f32.mrf.mxu1 }
 0x262   : > { %v6505_v45 = vadd.f32 %v8618_v22, %v6403_v40  ;;  %7289 = vmatmul.msk.f32.gmra.mxu2 %vm3479_vm1, %v7190_v38  ;;  %7486 = vmatmul.msk.f32.gmra.mxu3 %vm3479_vm1, %v7387_v39  ;;  %v6208_v47 = vmax.f32 %v3816_v41, %v4520_v42  ;;  %v7195_v40 = vld [vmem:[%s8475_s10 + $0x700] sm:$0xff]  ;;  %v7392_v41 = vld [vmem:[%s8475_s10 + $0xa10] sm:$0xff] }
 0x264   : > { %v6603_v46 = vmax.f32 %v6505_v45, 0.0  ;;  %6895 = vmatmul.msk.f32.gmra.mxu0 %vm3479_vm1, %v3404_v43  ;;  %7092 = vmatmul.msk.f32.gmra.mxu1 %vm3479_vm1, %v6993_v44  ;;  %v3409_v45 = vld [vmem:[%s8475_s10 + $0xe0] sm:$0xff] }
 0x265   : > { %v5224_v48 = vpop.f32.mrf.mxu2  ;;  %v5928_v49 = vpop.f32.mrf.mxu3 }
 0x266   : > { %6701 = vst [vmem:[%s8630_s20 + $0x30] sm:$0xff] %v6603_v46  ;;  %v6306_v50 = vmax.f32 %v5224_v48, %v5928_v49  ;;  %v6998_v46 = vld [vmem:[%s8475_s10 + $0x3f0] sm:$0xff] }
 0x268   : > { %v6404_v53 = vmax.f32 %v6208_v47, %v6306_v50 }
 0x269   : > { %v3819_v54 = vpop.f32.mrf.mxu0  ;;  %v4523_v55 = vpop.f32.mrf.mxu1 }
 0x26a   : > { %v6506_v58 = vadd.f32 %v8618_v22, %v6404_v53  ;;  %7290 = vmatmul.msk.f32.gmra.mxu2 %vm3479_vm1, %v7191_v51  ;;  %7487 = vmatmul.msk.f32.gmra.mxu3 %vm3479_vm1, %v7388_v52  ;;  %v6209_v60 = vmax.f32 %v3819_v54, %v4523_v55  ;;  %v7196_v53 = vld [vmem:[%s8475_s10 + $0x708] sm:$0xff]  ;;  %v7393_v54 = vld [vmem:[%s8475_s10 + $0xa18] sm:$0xff] }
 0x26c   : > { %v6604_v59 = vmax.f32 %v6506_v58, 0.0  ;;  %6896 = vmatmul.msk.f32.gmra.mxu0 %vm3479_vm1, %v3405_v56  ;;  %7093 = vmatmul.msk.f32.gmra.mxu1 %vm3479_vm1, %v6994_v57  ;;  %v3410_v58 = vld [vmem:[%s8475_s10 + $0xe8] sm:$0xff] }
 0x26d   : > { %v5227_v61 = vpop.f32.mrf.mxu2  ;;  %v5931_v62 = vpop.f32.mrf.mxu3 }
 0x26e   : > { %6702 = vst [vmem:[%s8630_s20 + $0x38] sm:$0xff] %v6604_v59  ;;  %v6307_v63 = vmax.f32 %v5227_v61, %v5931_v62  ;;  %v6999_v59 = vld [vmem:[%s8475_s10 + $0x3f8] sm:$0xff] }
 0x270   : > { %v6405_v2 = vmax.f32 %v6209_v60, %v6307_v63 }
 0x271   : > { %v3822_v3 = vpop.f32.mrf.mxu0  ;;  %v4526_v4 = vpop.f32.mrf.mxu1 }
 0x272   : > { %v6507_v7 = vadd.f32 %v8618_v22, %v6405_v2  ;;  %7291 = vmatmul.msk.f32.gmra.mxu2 %vm3479_vm1, %v7192_v0  ;;  %7488 = vmatmul.msk.f32.gmra.mxu3 %vm3479_vm1, %v7389_v1  ;;  %v6210_v9 = vmax.f32 %v3822_v3, %v4526_v4  ;;  %v7197_v2 = vld [vmem:[%s8475_s10 + $0x710] sm:$0xff]  ;;  %v7394_v3 = vld [vmem:[%s8475_s10 + $0xa20] sm:$0xff] }
 0x274   : > { %v6605_v8 = vmax.f32 %v6507_v7, 0.0  ;;  %6897 = vmatmul.msk.f32.gmra.mxu0 %vm3479_vm1, %v3406_v5  ;;  %7094 = vmatmul.msk.f32.gmra.mxu1 %vm3479_vm1, %v6995_v6  ;;  %v3411_v7 = vld [vmem:[%s8475_s10 + $0xf0] sm:$0xff] }
 0x275   : > { %v5230_v10 = vpop.f32.mrf.mxu2  ;;  %v5934_v11 = vpop.f32.mrf.mxu3 }
 0x276   : > { %6703 = vst [vmem:[%s8630_s20 + $0x40] sm:$0xff] %v6605_v8  ;;  %v6308_v12 = vmax.f32 %v5230_v10, %v5934_v11  ;;  %v7000_v8 = vld [vmem:[%s8475_s10 + $0x400] sm:$0xff] }
 0x278   : > { %v6406_v15 = vmax.f32 %v6210_v9, %v6308_v12 }
 0x279   : > { %v3825_v16 = vpop.f32.mrf.mxu0  ;;  %v4529_v17 = vpop.f32.mrf.mxu1 }
 0x27a   : > { %v6508_v20 = vadd.f32 %v8618_v22, %v6406_v15  ;;  %7292 = vmatmul.msk.f32.gmra.mxu2 %vm3479_vm1, %v7193_v13  ;;  %7489 = vmatmul.msk.f32.gmra.mxu3 %vm3479_vm1, %v7390_v14  ;;  %v6211_v23 = vmax.f32 %v3825_v16, %v4529_v17  ;;  %v7198_v15 = vld [vmem:[%s8475_s10 + $0x718] sm:$0xff]  ;;  %v7395_v16 = vld [vmem:[%s8475_s10 + $0xa28] sm:$0xff] }
 0x27c   : > { %v6606_v21 = vmax.f32 %v6508_v20, 0.0  ;;  %6898 = vmatmul.msk.f32.gmra.mxu0 %vm3479_vm1, %v3407_v18  ;;  %7095 = vmatmul.msk.f32.gmra.mxu1 %vm3479_vm1, %v6996_v19  ;;  %v3412_v20 = vld [vmem:[%s8475_s10 + $0xf8] sm:$0xff] }
 0x27d   : > { %v5233_v24 = vpop.f32.mrf.mxu2  ;;  %v5937_v25 = vpop.f32.mrf.mxu3 }
 0x27e   : > { %6704 = vst [vmem:[%s8630_s20 + $0x48] sm:$0xff] %v6606_v21  ;;  %v6309_v26 = vmax.f32 %v5233_v24, %v5937_v25  ;;  %v7001_v21 = vld [vmem:[%s8475_s10 + $0x408] sm:$0xff] }
 0x280   : > { %v6407_v29 = vmax.f32 %v6211_v23, %v6309_v26 }
 0x281   : > { %v3828_v30 = vpop.f32.mrf.mxu0  ;;  %v4532_v31 = vpop.f32.mrf.mxu1 }
 0x282   : > { %v6509_v34 = vadd.f32 %v8618_v22, %v6407_v29  ;;  %7293 = vmatmul.msk.f32.gmra.mxu2 %vm3479_vm1, %v7194_v27  ;;  %7490 = vmatmul.msk.f32.gmra.mxu3 %vm3479_vm1, %v7391_v28  ;;  %v6212_v36 = vmax.f32 %v3828_v30, %v4532_v31  ;;  %v7199_v29 = vld [vmem:[%s8475_s10 + $0x720] sm:$0xff]  ;;  %v7396_v30 = vld [vmem:[%s8475_s10 + $0xa30] sm:$0xff] }
 0x284   : > { %v6607_v35 = vmax.f32 %v6509_v34, 0.0  ;;  %6899 = vmatmul.msk.f32.gmra.mxu0 %vm3479_vm1, %v3408_v32  ;;  %7096 = vmatmul.msk.f32.gmra.mxu1 %vm3479_vm1, %v6997_v33  ;;  %v3413_v34 = vld [vmem:[%s8475_s10 + $0x100] sm:$0xff] }
 0x285   : > { %v5236_v37 = vpop.f32.mrf.mxu2  ;;  %v5940_v38 = vpop.f32.mrf.mxu3 }
 0x286   : > { %6705 = vst [vmem:[%s8630_s20 + $0x50] sm:$0xff] %v6607_v35  ;;  %v6310_v39 = vmax.f32 %v5236_v37, %v5940_v38  ;;  %v7002_v35 = vld [vmem:[%s8475_s10 + $0x410] sm:$0xff] }
 0x288   : > { %v6408_v42 = vmax.f32 %v6212_v36, %v6310_v39 }
 0x289   : > { %v3831_v43 = vpop.f32.mrf.mxu0  ;;  %v4535_v44 = vpop.f32.mrf.mxu1 }
 0x28a   : > { %v6510_v47 = vadd.f32 %v8618_v22, %v6408_v42  ;;  %7294 = vmatmul.msk.f32.gmra.mxu2 %vm3479_vm1, %v7195_v40  ;;  %7491 = vmatmul.msk.f32.gmra.mxu3 %vm3479_vm1, %v7392_v41  ;;  %v6213_v49 = vmax.f32 %v3831_v43, %v4535_v44  ;;  %v7200_v42 = vld [vmem:[%s8475_s10 + $0x728] sm:$0xff]  ;;  %v7397_v43 = vld [vmem:[%s8475_s10 + $0xa38] sm:$0xff] }
 0x28c   : > { %v6608_v48 = vmax.f32 %v6510_v47, 0.0  ;;  %6900 = vmatmul.msk.f32.gmra.mxu0 %vm3479_vm1, %v3409_v45  ;;  %7097 = vmatmul.msk.f32.gmra.mxu1 %vm3479_vm1, %v6998_v46  ;;  %v3414_v47 = vld [vmem:[%s8475_s10 + $0x108] sm:$0xff] }
 0x28d   : > { %v5239_v50 = vpop.f32.mrf.mxu2  ;;  %v5943_v51 = vpop.f32.mrf.mxu3 }
 0x28e   : > { %6706 = vst [vmem:[%s8630_s20 + $0x58] sm:$0xff] %v6608_v48  ;;  %v6311_v52 = vmax.f32 %v5239_v50, %v5943_v51  ;;  %v7003_v48 = vld [vmem:[%s8475_s10 + $0x418] sm:$0xff] }
 0x290   : > { %v6409_v55 = vmax.f32 %v6213_v49, %v6311_v52 }
 0x291   : > { %v3834_v56 = vpop.f32.mrf.mxu0  ;;  %v4538_v57 = vpop.f32.mrf.mxu1 }
 0x292   : > { %v6511_v60 = vadd.f32 %v8618_v22, %v6409_v55  ;;  %7295 = vmatmul.msk.f32.gmra.mxu2 %vm3479_vm1, %v7196_v53  ;;  %7492 = vmatmul.msk.f32.gmra.mxu3 %vm3479_vm1, %v7393_v54  ;;  %v6214_v62 = vmax.f32 %v3834_v56, %v4538_v57  ;;  %v7201_v55 = vld [vmem:[%s8475_s10 + $0x730] sm:$0xff]  ;;  %v7398_v56 = vld [vmem:[%s8475_s10 + $0xa40] sm:$0xff] }
 0x294   : > { %v6609_v61 = vmax.f32 %v6511_v60, 0.0  ;;  %6901 = vmatmul.msk.f32.gmra.mxu0 %vm3479_vm1, %v3410_v58  ;;  %7098 = vmatmul.msk.f32.gmra.mxu1 %vm3479_vm1, %v6999_v59  ;;  %v3415_v60 = vld [vmem:[%s8475_s10 + $0x110] sm:$0xff] }
 0x295   : > { %v5242_v63 = vpop.f32.mrf.mxu2  ;;  %v5946_v0 = vpop.f32.mrf.mxu3 }
 0x296   : > { %6707 = vst [vmem:[%s8630_s20 + $0x60] sm:$0xff] %v6609_v61  ;;  %v6312_v1 = vmax.f32 %v5242_v63, %v5946_v0  ;;  %v7004_v61 = vld [vmem:[%s8475_s10 + $0x420] sm:$0xff] }
 0x298   : > { %v6410_v4 = vmax.f32 %v6214_v62, %v6312_v1 }
 0x299   : > { %v3837_v5 = vpop.f32.mrf.mxu0  ;;  %v4541_v6 = vpop.f32.mrf.mxu1 }
 0x29a   : > { %v6512_v9 = vadd.f32 %v8618_v22, %v6410_v4  ;;  %7296 = vmatmul.msk.f32.gmra.mxu2 %vm3479_vm1, %v7197_v2  ;;  %7493 = vmatmul.msk.f32.gmra.mxu3 %vm3479_vm1, %v7394_v3  ;;  %v6215_v11 = vmax.f32 %v3837_v5, %v4541_v6  ;;  %v7202_v4 = vld [vmem:[%s8475_s10 + $0x738] sm:$0xff]  ;;  %v7399_v5 = vld [vmem:[%s8475_s10 + $0xa48] sm:$0xff] }
 0x29c   : > { %v6610_v10 = vmax.f32 %v6512_v9, 0.0  ;;  %6902 = vmatmul.msk.f32.gmra.mxu0 %vm3479_vm1, %v3411_v7  ;;  %7099 = vmatmul.msk.f32.gmra.mxu1 %vm3479_vm1, %v7000_v8  ;;  %v3416_v9 = vld [vmem:[%s8475_s10 + $0x118] sm:$0xff] }
 0x29d   : > { %v5245_v12 = vpop.f32.mrf.mxu2  ;;  %v5949_v13 = vpop.f32.mrf.mxu3 }
 0x29e   : > { %6708 = vst [vmem:[%s8630_s20 + $0x68] sm:$0xff] %v6610_v10  ;;  %v6313_v14 = vmax.f32 %v5245_v12, %v5949_v13  ;;  %v7005_v10 = vld [vmem:[%s8475_s10 + $0x428] sm:$0xff] }
 0x2a0   : > { %v6411_v17 = vmax.f32 %v6215_v11, %v6313_v14 }
 0x2a1   : > { %v3840_v18 = vpop.f32.mrf.mxu0  ;;  %v4544_v19 = vpop.f32.mrf.mxu1 }
 0x2a2   : > { %v6513_v23 = vadd.f32 %v8618_v22, %v6411_v17  ;;  %7297 = vmatmul.msk.f32.gmra.mxu2 %vm3479_vm1, %v7198_v15  ;;  %7494 = vmatmul.msk.f32.gmra.mxu3 %vm3479_vm1, %v7395_v16  ;;  %v6216_v25 = vmax.f32 %v3840_v18, %v4544_v19  ;;  %v7203_v17 = vld [vmem:[%s8475_s10 + $0x740] sm:$0xff]  ;;  %v7400_v18 = vld [vmem:[%s8475_s10 + $0xa50] sm:$0xff] }
 0x2a4   : > { %v6611_v24 = vmax.f32 %v6513_v23, 0.0  ;;  %6903 = vmatmul.msk.f32.gmra.mxu0 %vm3479_vm1, %v3412_v20  ;;  %7100 = vmatmul.msk.f32.gmra.mxu1 %vm3479_vm1, %v7001_v21  ;;  %v3417_v23 = vld [vmem:[%s8475_s10 + $0x120] sm:$0xff] }
 0x2a5   : > { %v5248_v26 = vpop.f32.mrf.mxu2  ;;  %v5952_v27 = vpop.f32.mrf.mxu3 }
 0x2a6   : > { %6709 = vst [vmem:[%s8630_s20 + $0x70] sm:$0xff] %v6611_v24  ;;  %v6314_v28 = vmax.f32 %v5248_v26, %v5952_v27  ;;  %v7006_v24 = vld [vmem:[%s8475_s10 + $0x430] sm:$0xff] }
 0x2a8   : > { %v6412_v31 = vmax.f32 %v6216_v25, %v6314_v28 }
 0x2a9   : > { %v3843_v32 = vpop.f32.mrf.mxu0  ;;  %v4547_v33 = vpop.f32.mrf.mxu1 }
 0x2aa   : > { %v6514_v36 = vadd.f32 %v8618_v22, %v6412_v31  ;;  %7298 = vmatmul.msk.f32.gmra.mxu2 %vm3479_vm1, %v7199_v29  ;;  %7495 = vmatmul.msk.f32.gmra.mxu3 %vm3479_vm1, %v7396_v30  ;;  %v6217_v38 = vmax.f32 %v3843_v32, %v4547_v33  ;;  %v7204_v31 = vld [vmem:[%s8475_s10 + $0x748] sm:$0xff]  ;;  %v7401_v32 = vld [vmem:[%s8475_s10 + $0xa58] sm:$0xff] }
 0x2ac   : > { %v6612_v37 = vmax.f32 %v6514_v36, 0.0  ;;  %6904 = vmatmul.msk.f32.gmra.mxu0 %vm3479_vm1, %v3413_v34  ;;  %7101 = vmatmul.msk.f32.gmra.mxu1 %vm3479_vm1, %v7002_v35  ;;  %v3418_v36 = vld [vmem:[%s8475_s10 + $0x128] sm:$0xff] }
 0x2ad   : > { %v5251_v39 = vpop.f32.mrf.mxu2  ;;  %v5955_v40 = vpop.f32.mrf.mxu3 }
 0x2ae   : > { %6710 = vst [vmem:[%s8630_s20 + $0x78] sm:$0xff] %v6612_v37  ;;  %v6315_v41 = vmax.f32 %v5251_v39, %v5955_v40  ;;  %v7007_v37 = vld [vmem:[%s8475_s10 + $0x438] sm:$0xff] }
 0x2b0   : > { %v6413_v44 = vmax.f32 %v6217_v38, %v6315_v41 }
 0x2b1   : > { %v3846_v45 = vpop.f32.mrf.mxu0  ;;  %v4550_v46 = vpop.f32.mrf.mxu1 }
 0x2b2   : > { %v6515_v49 = vadd.f32 %v8618_v22, %v6413_v44  ;;  %7299 = vmatmul.msk.f32.gmra.mxu2 %vm3479_vm1, %v7200_v42  ;;  %7496 = vmatmul.msk.f32.gmra.mxu3 %vm3479_vm1, %v7397_v43  ;;  %v6218_v51 = vmax.f32 %v3846_v45, %v4550_v46  ;;  %v7205_v44 = vld [vmem:[%s8475_s10 + $0x750] sm:$0xff]  ;;  %v7402_v45 = vld [vmem:[%s8475_s10 + $0xa60] sm:$0xff] }
 0x2b4   : > { %v6613_v50 = vmax.f32 %v6515_v49, 0.0  ;;  %6905 = vmatmul.msk.f32.gmra.mxu0 %vm3479_vm1, %v3414_v47  ;;  %7102 = vmatmul.msk.f32.gmra.mxu1 %vm3479_vm1, %v7003_v48  ;;  %v3419_v49 = vld [vmem:[%s8475_s10 + $0x130] sm:$0xff] }
 0x2b5   : > { %v5254_v52 = vpop.f32.mrf.mxu2  ;;  %v5958_v53 = vpop.f32.mrf.mxu3 }
 0x2b6   : > { %6711 = vst [vmem:[%s8630_s20 + $0x80] sm:$0xff] %v6613_v50  ;;  %v6316_v54 = vmax.f32 %v5254_v52, %v5958_v53  ;;  %v7008_v50 = vld [vmem:[%s8475_s10 + $0x440] sm:$0xff] }
 0x2b8   : > { %v6414_v57 = vmax.f32 %v6218_v51, %v6316_v54 }
 0x2b9   : > { %v3849_v58 = vpop.f32.mrf.mxu0  ;;  %v4553_v59 = vpop.f32.mrf.mxu1 }
 0x2ba   : > { %v6516_v62 = vadd.f32 %v8618_v22, %v6414_v57  ;;  %7300 = vmatmul.msk.f32.gmra.mxu2 %vm3479_vm1, %v7201_v55  ;;  %7497 = vmatmul.msk.f32.gmra.mxu3 %vm3479_vm1, %v7398_v56  ;;  %v6219_v0 = vmax.f32 %v3849_v58, %v4553_v59  ;;  %v7206_v57 = vld [vmem:[%s8475_s10 + $0x758] sm:$0xff]  ;;  %v7403_v58 = vld [vmem:[%s8475_s10 + $0xa68] sm:$0xff] }
 0x2bc   : > { %v6614_v63 = vmax.f32 %v6516_v62, 0.0  ;;  %6906 = vmatmul.msk.f32.gmra.mxu0 %vm3479_vm1, %v3415_v60  ;;  %7103 = vmatmul.msk.f32.gmra.mxu1 %vm3479_vm1, %v7004_v61  ;;  %v3420_v62 = vld [vmem:[%s8475_s10 + $0x138] sm:$0xff] }
 0x2bd   : > { %v5257_v1 = vpop.f32.mrf.mxu2  ;;  %v5961_v2 = vpop.f32.mrf.mxu3 }
 0x2be   : > { %6712 = vst [vmem:[%s8630_s20 + $0x88] sm:$0xff] %v6614_v63  ;;  %v6317_v3 = vmax.f32 %v5257_v1, %v5961_v2  ;;  %v7009_v63 = vld [vmem:[%s8475_s10 + $0x448] sm:$0xff] }
 0x2c0   : > { %v6415_v6 = vmax.f32 %v6219_v0, %v6317_v3 }
 0x2c1   : > { %v3852_v7 = vpop.f32.mrf.mxu0  ;;  %v4556_v8 = vpop.f32.mrf.mxu1 }
 0x2c2   : > { %v6517_v11 = vadd.f32 %v8618_v22, %v6415_v6  ;;  %7301 = vmatmul.msk.f32.gmra.mxu2 %vm3479_vm1, %v7202_v4  ;;  %7498 = vmatmul.msk.f32.gmra.mxu3 %vm3479_vm1, %v7399_v5  ;;  %v6220_v13 = vmax.f32 %v3852_v7, %v4556_v8  ;;  %v7207_v6 = vld [vmem:[%s8475_s10 + $0x760] sm:$0xff]  ;;  %v7404_v7 = vld [vmem:[%s8475_s10 + $0xa70] sm:$0xff] }
 0x2c4   : > { %v6615_v12 = vmax.f32 %v6517_v11, 0.0  ;;  %6907 = vmatmul.msk.f32.gmra.mxu0 %vm3479_vm1, %v3416_v9  ;;  %7104 = vmatmul.msk.f32.gmra.mxu1 %vm3479_vm1, %v7005_v10  ;;  %v3421_v11 = vld [vmem:[%s8475_s10 + $0x140] sm:$0xff] }
 0x2c5   : > { %v5260_v14 = vpop.f32.mrf.mxu2  ;;  %v5964_v15 = vpop.f32.mrf.mxu3 }
 0x2c6   : > { %6713 = vst [vmem:[%s8630_s20 + $0x90] sm:$0xff] %v6615_v12  ;;  %v6318_v16 = vmax.f32 %v5260_v14, %v5964_v15  ;;  %v7010_v12 = vld [vmem:[%s8475_s10 + $0x450] sm:$0xff] }
 0x2c8   : > { %v6416_v19 = vmax.f32 %v6220_v13, %v6318_v16 }
 0x2c9   : > { %v3855_v20 = vpop.f32.mrf.mxu0  ;;  %v4559_v21 = vpop.f32.mrf.mxu1 }
 0x2ca   : > { %v6518_v25 = vadd.f32 %v8618_v22, %v6416_v19  ;;  %7302 = vmatmul.msk.f32.gmra.mxu2 %vm3479_vm1, %v7203_v17  ;;  %7499 = vmatmul.msk.f32.gmra.mxu3 %vm3479_vm1, %v7400_v18  ;;  %v6221_v27 = vmax.f32 %v3855_v20, %v4559_v21  ;;  %v7208_v19 = vld [vmem:[%s8475_s10 + $0x768] sm:$0xff]  ;;  %v7405_v20 = vld [vmem:[%s8475_s10 + $0xa78] sm:$0xff] }
 0x2cc   : > { %v6616_v26 = vmax.f32 %v6518_v25, 0.0  ;;  %6908 = vmatmul.msk.f32.gmra.mxu0 %vm3479_vm1, %v3417_v23  ;;  %7105 = vmatmul.msk.f32.gmra.mxu1 %vm3479_vm1, %v7006_v24  ;;  %v3422_v25 = vld [vmem:[%s8475_s10 + $0x148] sm:$0xff] }
 0x2cd   : > { %v5263_v28 = vpop.f32.mrf.mxu2  ;;  %v5967_v29 = vpop.f32.mrf.mxu3 }
 0x2ce   : > { %6714 = vst [vmem:[%s8630_s20 + $0x98] sm:$0xff] %v6616_v26  ;;  %v6319_v30 = vmax.f32 %v5263_v28, %v5967_v29  ;;  %v7011_v26 = vld [vmem:[%s8475_s10 + $0x458] sm:$0xff] }
 0x2d0   : > { %v6417_v33 = vmax.f32 %v6221_v27, %v6319_v30 }
 0x2d1   : > { %v3858_v34 = vpop.f32.mrf.mxu0  ;;  %v4562_v35 = vpop.f32.mrf.mxu1 }
 0x2d2   : > { %v6519_v38 = vadd.f32 %v8618_v22, %v6417_v33  ;;  %7303 = vmatmul.msk.f32.gmra.mxu2 %vm3479_vm1, %v7204_v31  ;;  %7500 = vmatmul.msk.f32.gmra.mxu3 %vm3479_vm1, %v7401_v32  ;;  %v6222_v40 = vmax.f32 %v3858_v34, %v4562_v35  ;;  %v7209_v33 = vld [vmem:[%s8475_s10 + $0x770] sm:$0xff]  ;;  %v7406_v34 = vld [vmem:[%s8475_s10 + $0xa80] sm:$0xff] }
 0x2d4   : > { %v6617_v39 = vmax.f32 %v6519_v38, 0.0  ;;  %6909 = vmatmul.msk.f32.gmra.mxu0 %vm3479_vm1, %v3418_v36  ;;  %7106 = vmatmul.msk.f32.gmra.mxu1 %vm3479_vm1, %v7007_v37  ;;  %v3423_v38 = vld [vmem:[%s8475_s10 + $0x150] sm:$0xff] }
 0x2d5   : > { %v5266_v41 = vpop.f32.mrf.mxu2  ;;  %v5970_v42 = vpop.f32.mrf.mxu3 }
 0x2d6   : > { %6715 = vst [vmem:[%s8630_s20 + $0xa0] sm:$0xff] %v6617_v39  ;;  %v6320_v43 = vmax.f32 %v5266_v41, %v5970_v42  ;;  %v7012_v39 = vld [vmem:[%s8475_s10 + $0x460] sm:$0xff] }
 0x2d8   : > { %v6418_v46 = vmax.f32 %v6222_v40, %v6320_v43 }
 0x2d9   : > { %v3861_v47 = vpop.f32.mrf.mxu0  ;;  %v4565_v48 = vpop.f32.mrf.mxu1 }
 0x2da   : > { %v6520_v51 = vadd.f32 %v8618_v22, %v6418_v46  ;;  %7304 = vmatmul.msk.f32.gmra.mxu2 %vm3479_vm1, %v7205_v44  ;;  %7501 = vmatmul.msk.f32.gmra.mxu3 %vm3479_vm1, %v7402_v45  ;;  %v6223_v53 = vmax.f32 %v3861_v47, %v4565_v48  ;;  %v7210_v46 = vld [vmem:[%s8475_s10 + $0x778] sm:$0xff]  ;;  %v7407_v47 = vld [vmem:[%s8475_s10 + $0xa88] sm:$0xff] }
 0x2dc   : > { %v6618_v52 = vmax.f32 %v6520_v51, 0.0  ;;  %6910 = vmatmul.msk.f32.gmra.mxu0 %vm3479_vm1, %v3419_v49  ;;  %7107 = vmatmul.msk.f32.gmra.mxu1 %vm3479_vm1, %v7008_v50  ;;  %v3424_v51 = vld [vmem:[%s8475_s10 + $0x158] sm:$0xff] }
 0x2dd   : > { %v5269_v54 = vpop.f32.mrf.mxu2  ;;  %v5973_v55 = vpop.f32.mrf.mxu3 }
 0x2de   : > { %6716 = vst [vmem:[%s8630_s20 + $0xa8] sm:$0xff] %v6618_v52  ;;  %v6321_v56 = vmax.f32 %v5269_v54, %v5973_v55  ;;  %v7013_v52 = vld [vmem:[%s8475_s10 + $0x468] sm:$0xff] }
 0x2e0   : > { %v6419_v59 = vmax.f32 %v6223_v53, %v6321_v56 }
 0x2e1   : > { %v3864_v60 = vpop.f32.mrf.mxu0  ;;  %v4568_v61 = vpop.f32.mrf.mxu1 }
 0x2e2   : > { %v6521_v0 = vadd.f32 %v8618_v22, %v6419_v59  ;;  %7305 = vmatmul.msk.f32.gmra.mxu2 %vm3479_vm1, %v7206_v57  ;;  %7502 = vmatmul.msk.f32.gmra.mxu3 %vm3479_vm1, %v7403_v58  ;;  %v6224_v2 = vmax.f32 %v3864_v60, %v4568_v61  ;;  %v7211_v59 = vld [vmem:[%s8475_s10 + $0x780] sm:$0xff]  ;;  %v7408_v60 = vld [vmem:[%s8475_s10 + $0xa90] sm:$0xff] }
 0x2e4   : > { %v6619_v1 = vmax.f32 %v6521_v0, 0.0  ;;  %6911 = vmatmul.msk.f32.gmra.mxu0 %vm3479_vm1, %v3420_v62  ;;  %7108 = vmatmul.msk.f32.gmra.mxu1 %vm3479_vm1, %v7009_v63  ;;  %v3425_v0 = vld [vmem:[%s8475_s10 + $0x160] sm:$0xff] }
 0x2e5   : > { %v5272_v3 = vpop.f32.mrf.mxu2  ;;  %v5976_v4 = vpop.f32.mrf.mxu3 }
 0x2e6   : > { %6717 = vst [vmem:[%s8630_s20 + $0xb0] sm:$0xff] %v6619_v1  ;;  %v6322_v5 = vmax.f32 %v5272_v3, %v5976_v4  ;;  %v7014_v1 = vld [vmem:[%s8475_s10 + $0x470] sm:$0xff] }
 0x2e8   : > { %v6420_v8 = vmax.f32 %v6224_v2, %v6322_v5 }
 0x2e9   : > { %v3867_v9 = vpop.f32.mrf.mxu0  ;;  %v4571_v10 = vpop.f32.mrf.mxu1 }
 0x2ea   : > { %v6522_v13 = vadd.f32 %v8618_v22, %v6420_v8  ;;  %7306 = vmatmul.msk.f32.gmra.mxu2 %vm3479_vm1, %v7207_v6  ;;  %7503 = vmatmul.msk.f32.gmra.mxu3 %vm3479_vm1, %v7404_v7  ;;  %v6225_v15 = vmax.f32 %v3867_v9, %v4571_v10  ;;  %v7212_v8 = vld [vmem:[%s8475_s10 + $0x788] sm:$0xff]  ;;  %v7409_v9 = vld [vmem:[%s8475_s10 + $0xa98] sm:$0xff] }
 0x2ec   : > { %v6620_v14 = vmax.f32 %v6522_v13, 0.0  ;;  %6912 = vmatmul.msk.f32.gmra.mxu0 %vm3479_vm1, %v3421_v11  ;;  %7109 = vmatmul.msk.f32.gmra.mxu1 %vm3479_vm1, %v7010_v12  ;;  %v3426_v12 = vld [vmem:[%s8475_s10 + $0x168] sm:$0xff]  ;;  %v7015_v13 = vld [vmem:[%s8475_s10 + $0x478] sm:$0xff] }
 0x2ed   : > { %v5275_v16 = vpop.f32.mrf.mxu2  ;;  %v5979_v17 = vpop.f32.mrf.mxu3 }
 0x2ee   : > { %6718 = vst [vmem:[%s8630_s20 + $0xb8] sm:$0xff] %v6620_v14  ;;  %v6323_v18 = vmax.f32 %v5275_v16, %v5979_v17  ;;  %v8912_v14 = vld [vmem:[%s9496_s2] ss:$0 sm:$0xff] }
 0x2f0   : > { %v6421_v21 = vmax.f32 %v6225_v15, %v6323_v18 }
 0x2f1   : > { %v3870_v23 = vpop.f32.mrf.mxu0  ;;  %v4574_v24 = vpop.f32.mrf.mxu1 }
 0x2f2   : > { %v6523_v27 = vadd.f32 %v8618_v22, %v6421_v21  ;;  %7307 = vmatmul.msk.f32.gmra.mxu2 %vm3479_vm1, %v7208_v19  ;;  %7504 = vmatmul.msk.f32.gmra.mxu3 %vm3479_vm1, %v7405_v20  ;;  %v6226_v29 = vmax.f32 %v3870_v23, %v4574_v24  ;;  %v7213_v21 = vld [vmem:[%s8475_s10 + $0x790] sm:$0xff]  ;;  %v7410_v23 = vld [vmem:[%s8475_s10 + $0xaa0] sm:$0xff] }
 0x2f4   : > { %v6621_v28 = vmax.f32 %v6523_v27, 0.0  ;;  %6913 = vmatmul.msk.f32.gmra.mxu0 %vm3479_vm1, %v3422_v25  ;;  %7110 = vmatmul.msk.f32.gmra.mxu1 %vm3479_vm1, %v7011_v26  ;;  %v3427_v27 = vld [vmem:[%s8475_s10 + $0x170] sm:$0xff] }
 0x2f5   : > { %v5278_v30 = vpop.f32.mrf.mxu2  ;;  %v5982_v31 = vpop.f32.mrf.mxu3 }
 0x2f6   : > { %6719 = vst [vmem:[%s8630_s20 + $0xc0] sm:$0xff] %v6621_v28  ;;  %v6324_v32 = vmax.f32 %v5278_v30, %v5982_v31  ;;  %v7016_v28 = vld [vmem:[%s8475_s10 + $0x480] sm:$0xff] }
 0x2f8   : > { %v6422_v35 = vmax.f32 %v6226_v29, %v6324_v32 }
 0x2f9   : > { %v3873_v36 = vpop.f32.mrf.mxu0  ;;  %v4577_v37 = vpop.f32.mrf.mxu1 }
 0x2fa   : > { %v6524_v40 = vadd.f32 %v8618_v22, %v6422_v35  ;;  %7308 = vmatmul.msk.f32.gmra.mxu2 %vm3479_vm1, %v7209_v33  ;;  %7505 = vmatmul.msk.f32.gmra.mxu3 %vm3479_vm1, %v7406_v34  ;;  %v6227_v42 = vmax.f32 %v3873_v36, %v4577_v37  ;;  %v7214_v35 = vld [vmem:[%s8475_s10 + $0x798] sm:$0xff]  ;;  %v7411_v36 = vld [vmem:[%s8475_s10 + $0xaa8] sm:$0xff] }
 0x2fc   : > { %v6622_v41 = vmax.f32 %v6524_v40, 0.0  ;;  %6914 = vmatmul.msk.f32.gmra.mxu0 %vm3479_vm1, %v3423_v38  ;;  %7111 = vmatmul.msk.f32.gmra.mxu1 %vm3479_vm1, %v7012_v39  ;;  %v3428_v40 = vld [vmem:[%s8475_s10 + $0x178] sm:$0xff] }
 0x2fd   : > { %v5281_v43 = vpop.f32.mrf.mxu2  ;;  %v5985_v44 = vpop.f32.mrf.mxu3 }
 0x2fe   : > { %6720 = vst [vmem:[%s8630_s20 + $0xc8] sm:$0xff] %v6622_v41  ;;  %v6325_v45 = vmax.f32 %v5281_v43, %v5985_v44  ;;  %v7017_v41 = vld [vmem:[%s8475_s10 + $0x488] sm:$0xff] }
 0x300   : > { %v6423_v48 = vmax.f32 %v6227_v42, %v6325_v45 }
 0x301   : > { %v3876_v49 = vpop.f32.mrf.mxu0  ;;  %v4580_v50 = vpop.f32.mrf.mxu1 }
 0x302   : > { %v6525_v53 = vadd.f32 %v8618_v22, %v6423_v48  ;;  %7309 = vmatmul.msk.f32.gmra.mxu2 %vm3479_vm1, %v7210_v46  ;;  %7506 = vmatmul.msk.f32.gmra.mxu3 %vm3479_vm1, %v7407_v47  ;;  %v6228_v55 = vmax.f32 %v3876_v49, %v4580_v50  ;;  %v7215_v48 = vld [vmem:[%s8475_s10 + $0x7a0] sm:$0xff]  ;;  %v7412_v49 = vld [vmem:[%s8475_s10 + $0xab0] sm:$0xff] }
 0x304   : > { %v6623_v54 = vmax.f32 %v6525_v53, 0.0  ;;  %6915 = vmatmul.msk.f32.gmra.mxu0 %vm3479_vm1, %v3424_v51  ;;  %7112 = vmatmul.msk.f32.gmra.mxu1 %vm3479_vm1, %v7013_v52  ;;  %v3429_v53 = vld [vmem:[%s8475_s10 + $0x180] sm:$0xff] }
 0x305   : > { %v5284_v56 = vpop.f32.mrf.mxu2  ;;  %v5988_v57 = vpop.f32.mrf.mxu3 }
 0x306   : > { %6721 = vst [vmem:[%s8630_s20 + $0xd0] sm:$0xff] %v6623_v54  ;;  %v6326_v58 = vmax.f32 %v5284_v56, %v5988_v57  ;;  %v7018_v54 = vld [vmem:[%s8475_s10 + $0x490] sm:$0xff] }
 0x308   : > { %v6424_v61 = vmax.f32 %v6228_v55, %v6326_v58 }
 0x309   : > { %v3879_v62 = vpop.f32.mrf.mxu0  ;;  %v4583_v63 = vpop.f32.mrf.mxu1 }
 0x30a   : > { %v6526_v2 = vadd.f32 %v8618_v22, %v6424_v61  ;;  %7310 = vmatmul.msk.f32.gmra.mxu2 %vm3479_vm1, %v7211_v59  ;;  %7507 = vmatmul.msk.f32.gmra.mxu3 %vm3479_vm1, %v7408_v60  ;;  %v6229_v4 = vmax.f32 %v3879_v62, %v4583_v63  ;;  %v7216_v61 = vld [vmem:[%s8475_s10 + $0x7a8] sm:$0xff]  ;;  %v7413_v62 = vld [vmem:[%s8475_s10 + $0xab8] sm:$0xff] }
 0x30c   : > { %v6624_v3 = vmax.f32 %v6526_v2, 0.0  ;;  %6916 = vmatmul.msk.f32.gmra.mxu0 %vm3479_vm1, %v3425_v0  ;;  %7113 = vmatmul.msk.f32.gmra.mxu1 %vm3479_vm1, %v7014_v1  ;;  %v3430_v2 = vld [vmem:[%s8475_s10 + $0x188] sm:$0xff] }
 0x30d   : > { %v5287_v5 = vpop.f32.mrf.mxu2  ;;  %v5991_v6 = vpop.f32.mrf.mxu3 }
 0x30e   : > { %6722 = vst [vmem:[%s8630_s20 + $0xd8] sm:$0xff] %v6624_v3  ;;  %v6327_v7 = vmax.f32 %v5287_v5, %v5991_v6  ;;  %v7019_v3 = vld [vmem:[%s8475_s10 + $0x498] sm:$0xff] }
 0x310   : > { %v6425_v22 = vmax.f32 %v6229_v4, %v6327_v7 }
 0x311   : > { %v3882_v10 = vpop.f32.mrf.mxu0  ;;  %v4586_v11 = vpop.f32.mrf.mxu1 }
 0x312   : > { %v6527_v15 = vadd.f32 %v8912_v14, %v6425_v22  ;;  %7311 = vmatmul.msk.f32.gmra.mxu2 %vm3479_vm1, %v7212_v8  ;;  %7508 = vmatmul.msk.f32.gmra.mxu3 %vm3479_vm1, %v7409_v9  ;;  %v6230_v17 = vmax.f32 %v3882_v10, %v4586_v11  ;;  %v7217_v22 = vld [vmem:[%s8475_s10 + $0x7b0] sm:$0xff]  ;;  %v7414_v10 = vld [vmem:[%s8475_s10 + $0xac0] sm:$0xff] }
 0x314   : > { %v6625_v16 = vmax.f32 %v6527_v15, 0.0  ;;  %6917 = vmatmul.msk.f32.gmra.mxu0 %vm3479_vm1, %v3426_v12  ;;  %7114 = vmatmul.msk.f32.gmra.mxu1 %vm3479_vm1, %v7015_v13  ;;  %v3431_v15 = vld [vmem:[%s8475_s10 + $0x190] sm:$0xff] }
 0x315   : > { %v5290_v18 = vpop.f32.mrf.mxu2  ;;  %v5994_v19 = vpop.f32.mrf.mxu3 }
 0x316   : > { %6723 = vst [vmem:[%s8630_s20 + $0xe0] sm:$0xff] %v6625_v16  ;;  %v6328_v20 = vmax.f32 %v5290_v18, %v5994_v19  ;;  %v7020_v16 = vld [vmem:[%s8475_s10 + $0x4a0] sm:$0xff] }
 0x318   : > { %v6426_v24 = vmax.f32 %v6230_v17, %v6328_v20 }
 0x319   : > { %v3885_v25 = vpop.f32.mrf.mxu0  ;;  %v4589_v26 = vpop.f32.mrf.mxu1 }
 0x31a   : > { %v6528_v29 = vadd.f32 %v8912_v14, %v6426_v24  ;;  %7312 = vmatmul.msk.f32.gmra.mxu2 %vm3479_vm1, %v7213_v21  ;;  %7509 = vmatmul.msk.f32.gmra.mxu3 %vm3479_vm1, %v7410_v23  ;;  %v6231_v31 = vmax.f32 %v3885_v25, %v4589_v26  ;;  %v7218_v24 = vld [vmem:[%s8475_s10 + $0x7b8] sm:$0xff]  ;;  %v7415_v25 = vld [vmem:[%s8475_s10 + $0xac8] sm:$0xff] }
 0x31c   : > { %v6626_v30 = vmax.f32 %v6528_v29, 0.0  ;;  %6918 = vmatmul.msk.f32.gmra.mxu0 %vm3479_vm1, %v3427_v27  ;;  %7115 = vmatmul.msk.f32.gmra.mxu1 %vm3479_vm1, %v7016_v28  ;;  %v3432_v29 = vld [vmem:[%s8475_s10 + $0x198] sm:$0xff] }
 0x31d   : > { %v5293_v32 = vpop.f32.mrf.mxu2  ;;  %v5997_v33 = vpop.f32.mrf.mxu3 }
 0x31e   : > { %6724 = vst [vmem:[%s8630_s20 + $0xe8] sm:$0xff] %v6626_v30  ;;  %v6329_v34 = vmax.f32 %v5293_v32, %v5997_v33  ;;  %v7021_v30 = vld [vmem:[%s8475_s10 + $0x4a8] sm:$0xff] }
 0x320   : > { %v6427_v37 = vmax.f32 %v6231_v31, %v6329_v34 }
 0x321   : > { %v3888_v38 = vpop.f32.mrf.mxu0  ;;  %v4592_v39 = vpop.f32.mrf.mxu1 }
 0x322   : > { %v6529_v42 = vadd.f32 %v8912_v14, %v6427_v37  ;;  %7313 = vmatmul.msk.f32.gmra.mxu2 %vm3479_vm1, %v7214_v35  ;;  %7510 = vmatmul.msk.f32.gmra.mxu3 %vm3479_vm1, %v7411_v36  ;;  %v6232_v44 = vmax.f32 %v3888_v38, %v4592_v39  ;;  %v7219_v37 = vld [vmem:[%s8475_s10 + $0x7c0] sm:$0xff]  ;;  %v7416_v38 = vld [vmem:[%s8475_s10 + $0xad0] sm:$0xff] }
 0x324   : > { %v6627_v43 = vmax.f32 %v6529_v42, 0.0  ;;  %6919 = vmatmul.msk.f32.gmra.mxu0 %vm3479_vm1, %v3428_v40  ;;  %7116 = vmatmul.msk.f32.gmra.mxu1 %vm3479_vm1, %v7017_v41  ;;  %v3433_v42 = vld [vmem:[%s8475_s10 + $0x1a0] sm:$0xff] }
 0x325   : > { %v5296_v45 = vpop.f32.mrf.mxu2  ;;  %v6000_v46 = vpop.f32.mrf.mxu3 }
 0x326   : > { %6725 = vst [vmem:[%s8630_s20 + $0xf0] sm:$0xff] %v6627_v43  ;;  %v6330_v47 = vmax.f32 %v5296_v45, %v6000_v46  ;;  %v7022_v43 = vld [vmem:[%s8475_s10 + $0x4b0] sm:$0xff] }
 0x328   : > { %v6428_v50 = vmax.f32 %v6232_v44, %v6330_v47 }
 0x329   : > { %v3891_v51 = vpop.f32.mrf.mxu0  ;;  %v4595_v52 = vpop.f32.mrf.mxu1 }
 0x32a   : > { %v6530_v55 = vadd.f32 %v8912_v14, %v6428_v50  ;;  %7314 = vmatmul.msk.f32.gmra.mxu2 %vm3479_vm1, %v7215_v48  ;;  %7511 = vmatmul.msk.f32.gmra.mxu3 %vm3479_vm1, %v7412_v49  ;;  %v6233_v57 = vmax.f32 %v3891_v51, %v4595_v52  ;;  %v7220_v50 = vld [vmem:[%s8475_s10 + $0x7c8] sm:$0xff]  ;;  %v7417_v51 = vld [vmem:[%s8475_s10 + $0xad8] sm:$0xff] }
 0x32c   : > { %v6628_v56 = vmax.f32 %v6530_v55, 0.0  ;;  %6920 = vmatmul.msk.f32.gmra.mxu0 %vm3479_vm1, %v3429_v53  ;;  %7117 = vmatmul.msk.f32.gmra.mxu1 %vm3479_vm1, %v7018_v54  ;;  %v3434_v55 = vld [vmem:[%s8475_s10 + $0x1a8] sm:$0xff] }
 0x32d   : > { %v5299_v58 = vpop.f32.mrf.mxu2  ;;  %v6003_v59 = vpop.f32.mrf.mxu3 }
 0x32e   : > { %6726 = vst [vmem:[%s8630_s20 + $0xf8] sm:$0xff] %v6628_v56  ;;  %v6331_v60 = vmax.f32 %v5299_v58, %v6003_v59  ;;  %v7023_v56 = vld [vmem:[%s8475_s10 + $0x4b8] sm:$0xff] }
 0x330   : > { %v6429_v63 = vmax.f32 %v6233_v57, %v6331_v60 }
 0x331   : > { %v3894_v0 = vpop.f32.mrf.mxu0  ;;  %v4598_v1 = vpop.f32.mrf.mxu1 }
 0x332   : > { %v6531_v4 = vadd.f32 %v8912_v14, %v6429_v63  ;;  %7315 = vmatmul.msk.f32.gmra.mxu2 %vm3479_vm1, %v7216_v61  ;;  %7512 = vmatmul.msk.f32.gmra.mxu3 %vm3479_vm1, %v7413_v62  ;;  %v6234_v6 = vmax.f32 %v3894_v0, %v4598_v1  ;;  %v7221_v63 = vld [vmem:[%s8475_s10 + $0x7d0] sm:$0xff]  ;;  %v7418_v0 = vld [vmem:[%s8475_s10 + $0xae0] sm:$0xff] }
 0x334   : > { %v6629_v5 = vmax.f32 %v6531_v4, 0.0  ;;  %6921 = vmatmul.msk.f32.gmra.mxu0 %vm3479_vm1, %v3430_v2  ;;  %7118 = vmatmul.msk.f32.gmra.mxu1 %vm3479_vm1, %v7019_v3  ;;  %v3435_v4 = vld [vmem:[%s8475_s10 + $0x1b0] sm:$0xff] }
 0x335   : > { %v5302_v7 = vpop.f32.mrf.mxu2  ;;  %v6006_v8 = vpop.f32.mrf.mxu3 }
 0x336   : > { %6727 = vst [vmem:[%s8630_s20 + $0x100] sm:$0xff] %v6629_v5  ;;  %v6332_v9 = vmax.f32 %v5302_v7, %v6006_v8  ;;  %v7024_v5 = vld [vmem:[%s8475_s10 + $0x4c0] sm:$0xff] }
 0x338   : > { %v6430_v11 = vmax.f32 %v6234_v6, %v6332_v9 }
 0x339   : > { %v3897_v12 = vpop.f32.mrf.mxu0  ;;  %v4601_v13 = vpop.f32.mrf.mxu1 }
 0x33a   : > { %v6532_v17 = vadd.f32 %v8912_v14, %v6430_v11  ;;  %7316 = vmatmul.msk.f32.gmra.mxu2 %vm3479_vm1, %v7217_v22  ;;  %7513 = vmatmul.msk.f32.gmra.mxu3 %vm3479_vm1, %v7414_v10  ;;  %v6235_v19 = vmax.f32 %v3897_v12, %v4601_v13  ;;  %v7222_v11 = vld [vmem:[%s8475_s10 + $0x7d8] sm:$0xff]  ;;  %v7419_v12 = vld [vmem:[%s8475_s10 + $0xae8] sm:$0xff] }
 0x33c   : > { %v6630_v18 = vmax.f32 %v6532_v17, 0.0  ;;  %6922 = vmatmul.msk.f32.gmra.mxu0 %vm3479_vm1, %v3431_v15  ;;  %7119 = vmatmul.msk.f32.gmra.mxu1 %vm3479_vm1, %v7020_v16  ;;  %v3436_v17 = vld [vmem:[%s8475_s10 + $0x1b8] sm:$0xff] }
 0x33d   : > { %v5305_v20 = vpop.f32.mrf.mxu2  ;;  %v6009_v21 = vpop.f32.mrf.mxu3 }
 0x33e   : > { %6728 = vst [vmem:[%s8630_s20 + $0x108] sm:$0xff] %v6630_v18  ;;  %v6333_v23 = vmax.f32 %v5305_v20, %v6009_v21  ;;  %v7025_v18 = vld [vmem:[%s8475_s10 + $0x4c8] sm:$0xff] }
 0x340   : > { %v6431_v26 = vmax.f32 %v6235_v19, %v6333_v23 }
 0x341   : > { %v3900_v27 = vpop.f32.mrf.mxu0  ;;  %v4604_v28 = vpop.f32.mrf.mxu1 }
 0x342   : > { %v6533_v31 = vadd.f32 %v8912_v14, %v6431_v26  ;;  %7317 = vmatmul.msk.f32.gmra.mxu2 %vm3479_vm1, %v7218_v24  ;;  %7514 = vmatmul.msk.f32.gmra.mxu3 %vm3479_vm1, %v7415_v25  ;;  %v6236_v33 = vmax.f32 %v3900_v27, %v4604_v28  ;;  %v7223_v26 = vld [vmem:[%s8475_s10 + $0x7e0] sm:$0xff]  ;;  %v7420_v27 = vld [vmem:[%s8475_s10 + $0xaf0] sm:$0xff] }
 0x344   : > { %v6631_v32 = vmax.f32 %v6533_v31, 0.0  ;;  %6923 = vmatmul.msk.f32.gmra.mxu0 %vm3479_vm1, %v3432_v29  ;;  %7120 = vmatmul.msk.f32.gmra.mxu1 %vm3479_vm1, %v7021_v30  ;;  %v3437_v31 = vld [vmem:[%s8475_s10 + $0x1c0] sm:$0xff] }
 0x345   : > { %v5308_v34 = vpop.f32.mrf.mxu2  ;;  %v6012_v35 = vpop.f32.mrf.mxu3 }
 0x346   : > { %6729 = vst [vmem:[%s8630_s20 + $0x110] sm:$0xff] %v6631_v32  ;;  %v6334_v36 = vmax.f32 %v5308_v34, %v6012_v35  ;;  %v7026_v32 = vld [vmem:[%s8475_s10 + $0x4d0] sm:$0xff] }
 0x348   : > { %v6432_v39 = vmax.f32 %v6236_v33, %v6334_v36 }
 0x349   : > { %v3903_v40 = vpop.f32.mrf.mxu0  ;;  %v4607_v41 = vpop.f32.mrf.mxu1 }
 0x34a   : > { %v6534_v44 = vadd.f32 %v8912_v14, %v6432_v39  ;;  %7318 = vmatmul.msk.f32.gmra.mxu2 %vm3479_vm1, %v7219_v37  ;;  %7515 = vmatmul.msk.f32.gmra.mxu3 %vm3479_vm1, %v7416_v38  ;;  %v6237_v46 = vmax.f32 %v3903_v40, %v4607_v41  ;;  %v7224_v39 = vld [vmem:[%s8475_s10 + $0x7e8] sm:$0xff]  ;;  %v7421_v40 = vld [vmem:[%s8475_s10 + $0xaf8] sm:$0xff] }
 0x34c   : > { %v6632_v45 = vmax.f32 %v6534_v44, 0.0  ;;  %6924 = vmatmul.msk.f32.gmra.mxu0 %vm3479_vm1, %v3433_v42  ;;  %7121 = vmatmul.msk.f32.gmra.mxu1 %vm3479_vm1, %v7022_v43  ;;  %v3438_v44 = vld [vmem:[%s8475_s10 + $0x1c8] sm:$0xff] }
 0x34d   : > { %v5311_v47 = vpop.f32.mrf.mxu2  ;;  %v6015_v48 = vpop.f32.mrf.mxu3 }
 0x34e   : > { %6730 = vst [vmem:[%s8630_s20 + $0x118] sm:$0xff] %v6632_v45  ;;  %v6335_v49 = vmax.f32 %v5311_v47, %v6015_v48  ;;  %v7027_v45 = vld [vmem:[%s8475_s10 + $0x4d8] sm:$0xff] }
 0x350   : > { %v6433_v52 = vmax.f32 %v6237_v46, %v6335_v49 }
 0x351   : > { %v3906_v53 = vpop.f32.mrf.mxu0  ;;  %v4610_v54 = vpop.f32.mrf.mxu1 }
 0x352   : > { %v6535_v57 = vadd.f32 %v8912_v14, %v6433_v52  ;;  %7319 = vmatmul.msk.f32.gmra.mxu2 %vm3479_vm1, %v7220_v50  ;;  %7516 = vmatmul.msk.f32.gmra.mxu3 %vm3479_vm1, %v7417_v51  ;;  %v6238_v59 = vmax.f32 %v3906_v53, %v4610_v54  ;;  %v7225_v52 = vld [vmem:[%s8475_s10 + $0x7f0] sm:$0xff]  ;;  %v7422_v53 = vld [vmem:[%s8475_s10 + $0xb00] sm:$0xff] }
 0x354   : > { %v6633_v58 = vmax.f32 %v6535_v57, 0.0  ;;  %6925 = vmatmul.msk.f32.gmra.mxu0 %vm3479_vm1, %v3434_v55  ;;  %7122 = vmatmul.msk.f32.gmra.mxu1 %vm3479_vm1, %v7023_v56  ;;  %v3439_v57 = vld [vmem:[%s8475_s10 + $0x1d0] sm:$0xff] }
 0x355   : > { %v5314_v60 = vpop.f32.mrf.mxu2  ;;  %v6018_v61 = vpop.f32.mrf.mxu3 }
 0x356   : > { %6731 = vst [vmem:[%s8630_s20 + $0x120] sm:$0xff] %v6633_v58  ;;  %v6336_v62 = vmax.f32 %v5314_v60, %v6018_v61  ;;  %v7028_v58 = vld [vmem:[%s8475_s10 + $0x4e0] sm:$0xff] }
 0x358   : > { %v6434_v1 = vmax.f32 %v6238_v59, %v6336_v62 }
 0x359   : > { %v3909_v2 = vpop.f32.mrf.mxu0  ;;  %v4613_v3 = vpop.f32.mrf.mxu1 }
 0x35a   : > { %v6536_v6 = vadd.f32 %v8912_v14, %v6434_v1  ;;  %7320 = vmatmul.msk.f32.gmra.mxu2 %vm3479_vm1, %v7221_v63  ;;  %7517 = vmatmul.msk.f32.gmra.mxu3 %vm3479_vm1, %v7418_v0  ;;  %v6239_v8 = vmax.f32 %v3909_v2, %v4613_v3  ;;  %v7226_v1 = vld [vmem:[%s8475_s10 + $0x7f8] sm:$0xff]  ;;  %v7423_v2 = vld [vmem:[%s8475_s10 + $0xb08] sm:$0xff] }
 0x35c   : > { %v6634_v7 = vmax.f32 %v6536_v6, 0.0  ;;  %6926 = vmatmul.msk.f32.gmra.mxu0 %vm3479_vm1, %v3435_v4  ;;  %7123 = vmatmul.msk.f32.gmra.mxu1 %vm3479_vm1, %v7024_v5  ;;  %v3440_v6 = vld [vmem:[%s8475_s10 + $0x1d8] sm:$0xff] }
 0x35d   : > { %v5317_v9 = vpop.f32.mrf.mxu2  ;;  %v6021_v22 = vpop.f32.mrf.mxu3 }
 0x35e   : > { %6732 = vst [vmem:[%s8630_s20 + $0x128] sm:$0xff] %v6634_v7  ;;  %v6337_v10 = vmax.f32 %v5317_v9, %v6021_v22  ;;  %v7029_v7 = vld [vmem:[%s8475_s10 + $0x4e8] sm:$0xff] }
 0x360   : > { %v6435_v13 = vmax.f32 %v6239_v8, %v6337_v10 }
 0x361   : > { %v3912_v15 = vpop.f32.mrf.mxu0  ;;  %v4616_v16 = vpop.f32.mrf.mxu1 }
 0x362   : > { %v6537_v19 = vadd.f32 %v8912_v14, %v6435_v13  ;;  %7321 = vmatmul.msk.f32.gmra.mxu2 %vm3479_vm1, %v7222_v11  ;;  %7518 = vmatmul.msk.f32.gmra.mxu3 %vm3479_vm1, %v7419_v12  ;;  %v6240_v21 = vmax.f32 %v3912_v15, %v4616_v16  ;;  %v7227_v13 = vld [vmem:[%s8475_s10 + $0x800] sm:$0xff]  ;;  %v7424_v15 = vld [vmem:[%s8475_s10 + $0xb10] sm:$0xff] }
 0x364   : > { %v6635_v20 = vmax.f32 %v6537_v19, 0.0  ;;  %6927 = vmatmul.msk.f32.gmra.mxu0 %vm3479_vm1, %v3436_v17  ;;  %7124 = vmatmul.msk.f32.gmra.mxu1 %vm3479_vm1, %v7025_v18  ;;  %v3441_v19 = vld [vmem:[%s8475_s10 + $0x1e0] sm:$0xff] }
 0x365   : > { %v5320_v23 = vpop.f32.mrf.mxu2  ;;  %v6024_v24 = vpop.f32.mrf.mxu3 }
 0x366   : > { %6733 = vst [vmem:[%s8630_s20 + $0x130] sm:$0xff] %v6635_v20  ;;  %v6338_v25 = vmax.f32 %v5320_v23, %v6024_v24  ;;  %v7030_v20 = vld [vmem:[%s8475_s10 + $0x4f0] sm:$0xff] }
 0x368   : > { %v6436_v28 = vmax.f32 %v6240_v21, %v6338_v25 }
 0x369   : > { %v3915_v29 = vpop.f32.mrf.mxu0  ;;  %v4619_v30 = vpop.f32.mrf.mxu1 }
 0x36a   : > { %v6538_v33 = vadd.f32 %v8912_v14, %v6436_v28  ;;  %7322 = vmatmul.msk.f32.gmra.mxu2 %vm3479_vm1, %v7223_v26  ;;  %7519 = vmatmul.msk.f32.gmra.mxu3 %vm3479_vm1, %v7420_v27  ;;  %v6241_v35 = vmax.f32 %v3915_v29, %v4619_v30  ;;  %v7228_v28 = vld [vmem:[%s8475_s10 + $0x808] sm:$0xff]  ;;  %v7425_v29 = vld [vmem:[%s8475_s10 + $0xb18] sm:$0xff] }
 0x36c   : > { %v6636_v34 = vmax.f32 %v6538_v33, 0.0  ;;  %6928 = vmatmul.msk.f32.gmra.mxu0 %vm3479_vm1, %v3437_v31  ;;  %7125 = vmatmul.msk.f32.gmra.mxu1 %vm3479_vm1, %v7026_v32  ;;  %v3442_v33 = vld [vmem:[%s8475_s10 + $0x1e8] sm:$0xff] }
 0x36d   : > { %v5323_v36 = vpop.f32.mrf.mxu2  ;;  %v6027_v37 = vpop.f32.mrf.mxu3 }
 0x36e   : > { %6734 = vst [vmem:[%s8630_s20 + $0x138] sm:$0xff] %v6636_v34  ;;  %v6339_v38 = vmax.f32 %v5323_v36, %v6027_v37  ;;  %v7031_v34 = vld [vmem:[%s8475_s10 + $0x4f8] sm:$0xff] }
 0x370   : > { %v6437_v41 = vmax.f32 %v6241_v35, %v6339_v38 }
 0x371   : > { %v3918_v42 = vpop.f32.mrf.mxu0  ;;  %v4622_v43 = vpop.f32.mrf.mxu1 }
 0x372   : > { %v6539_v46 = vadd.f32 %v8912_v14, %v6437_v41  ;;  %7323 = vmatmul.msk.f32.gmra.mxu2 %vm3479_vm1, %v7224_v39  ;;  %7520 = vmatmul.msk.f32.gmra.mxu3 %vm3479_vm1, %v7421_v40  ;;  %v6242_v48 = vmax.f32 %v3918_v42, %v4622_v43  ;;  %v7229_v41 = vld [vmem:[%s8475_s10 + $0x810] sm:$0xff]  ;;  %v7426_v42 = vld [vmem:[%s8475_s10 + $0xb20] sm:$0xff] }
 0x374   : > { %v6637_v47 = vmax.f32 %v6539_v46, 0.0  ;;  %6929 = vmatmul.msk.f32.gmra.mxu0 %vm3479_vm1, %v3438_v44  ;;  %7126 = vmatmul.msk.f32.gmra.mxu1 %vm3479_vm1, %v7027_v45  ;;  %v3443_v46 = vld [vmem:[%s8475_s10 + $0x1f0] sm:$0xff] }
 0x375   : > { %v5326_v49 = vpop.f32.mrf.mxu2  ;;  %v6030_v50 = vpop.f32.mrf.mxu3 }
 0x376   : > { %6735 = vst [vmem:[%s8630_s20 + $0x140] sm:$0xff] %v6637_v47  ;;  %v6340_v51 = vmax.f32 %v5326_v49, %v6030_v50  ;;  %v7032_v47 = vld [vmem:[%s8475_s10 + $0x500] sm:$0xff] }
 0x378   : > { %v6438_v54 = vmax.f32 %v6242_v48, %v6340_v51 }
 0x379   : > { %v3921_v55 = vpop.f32.mrf.mxu0  ;;  %v4625_v56 = vpop.f32.mrf.mxu1 }
 0x37a   : > { %v6540_v59 = vadd.f32 %v8912_v14, %v6438_v54  ;;  %7324 = vmatmul.msk.f32.gmra.mxu2 %vm3479_vm1, %v7225_v52  ;;  %7521 = vmatmul.msk.f32.gmra.mxu3 %vm3479_vm1, %v7422_v53  ;;  %v6243_v61 = vmax.f32 %v3921_v55, %v4625_v56  ;;  %v7230_v54 = vld [vmem:[%s8475_s10 + $0x818] sm:$0xff]  ;;  %v7427_v55 = vld [vmem:[%s8475_s10 + $0xb28] sm:$0xff] }
 0x37c   : > { %v6638_v60 = vmax.f32 %v6540_v59, 0.0  ;;  %6930 = vmatmul.msk.f32.gmra.mxu0 %vm3479_vm1, %v3439_v57  ;;  %7127 = vmatmul.msk.f32.gmra.mxu1 %vm3479_vm1, %v7028_v58  ;;  %v3444_v59 = vld [vmem:[%s8475_s10 + $0x1f8] sm:$0xff] }
 0x37d   : > { %v5329_v62 = vpop.f32.mrf.mxu2  ;;  %v6033_v63 = vpop.f32.mrf.mxu3 }
 0x37e   : > { %6736 = vst [vmem:[%s8630_s20 + $0x148] sm:$0xff] %v6638_v60  ;;  %v6341_v0 = vmax.f32 %v5329_v62, %v6033_v63  ;;  %v7033_v60 = vld [vmem:[%s8475_s10 + $0x508] sm:$0xff] }
 0x380   : > { %v6439_v3 = vmax.f32 %v6243_v61, %v6341_v0 }
 0x381   : > { %v3924_v4 = vpop.f32.mrf.mxu0  ;;  %v4628_v5 = vpop.f32.mrf.mxu1 }
 0x382   : > { %v6541_v8 = vadd.f32 %v8912_v14, %v6439_v3  ;;  %7325 = vmatmul.msk.f32.gmra.mxu2 %vm3479_vm1, %v7226_v1  ;;  %7522 = vmatmul.msk.f32.gmra.mxu3 %vm3479_vm1, %v7423_v2  ;;  %v6244_v22 = vmax.f32 %v3924_v4, %v4628_v5  ;;  %v7231_v3 = vld [vmem:[%s8475_s10 + $0x820] sm:$0xff]  ;;  %v7428_v4 = vld [vmem:[%s8475_s10 + $0xb30] sm:$0xff] }
 0x384   : > { %v6639_v9 = vmax.f32 %v6541_v8, 0.0  ;;  %6931 = vmatmul.msk.f32.gmra.mxu0 %vm3479_vm1, %v3440_v6  ;;  %7128 = vmatmul.msk.f32.gmra.mxu1 %vm3479_vm1, %v7029_v7  ;;  %v3445_v8 = vld [vmem:[%s8475_s10 + $0x200] sm:$0xff] }
 0x385   : > { %v5332_v10 = vpop.f32.mrf.mxu2  ;;  %v6036_v11 = vpop.f32.mrf.mxu3 }
 0x386   : > { %6737 = vst [vmem:[%s8630_s20 + $0x150] sm:$0xff] %v6639_v9  ;;  %v6342_v12 = vmax.f32 %v5332_v10, %v6036_v11  ;;  %v7034_v9 = vld [vmem:[%s8475_s10 + $0x510] sm:$0xff] }
 0x388   : > { %v6440_v16 = vmax.f32 %v6244_v22, %v6342_v12 }
 0x389   : > { %v3927_v17 = vpop.f32.mrf.mxu0  ;;  %v4631_v18 = vpop.f32.mrf.mxu1 }
 0x38a   : > { %v6542_v21 = vadd.f32 %v8912_v14, %v6440_v16  ;;  %7326 = vmatmul.msk.f32.gmra.mxu2 %vm3479_vm1, %v7227_v13  ;;  %7523 = vmatmul.msk.f32.gmra.mxu3 %vm3479_vm1, %v7424_v15  ;;  %v6245_v24 = vmax.f32 %v3927_v17, %v4631_v18  ;;  %v7232_v16 = vld [vmem:[%s8475_s10 + $0x828] sm:$0xff]  ;;  %v7429_v17 = vld [vmem:[%s8475_s10 + $0xb38] sm:$0xff] }
 0x38c   : > { %v6640_v23 = vmax.f32 %v6542_v21, 0.0  ;;  %6932 = vmatmul.msk.f32.gmra.mxu0 %vm3479_vm1, %v3441_v19  ;;  %7129 = vmatmul.msk.f32.gmra.mxu1 %vm3479_vm1, %v7030_v20  ;;  %v3446_v21 = vld [vmem:[%s8475_s10 + $0x208] sm:$0xff] }
 0x38d   : > { %v5335_v25 = vpop.f32.mrf.mxu2  ;;  %v6039_v26 = vpop.f32.mrf.mxu3 }
 0x38e   : > { %6738 = vst [vmem:[%s8630_s20 + $0x158] sm:$0xff] %v6640_v23  ;;  %v6343_v27 = vmax.f32 %v5335_v25, %v6039_v26  ;;  %v7035_v23 = vld [vmem:[%s8475_s10 + $0x518] sm:$0xff] }
 0x390   : > { %v6441_v30 = vmax.f32 %v6245_v24, %v6343_v27 }
 0x391   : > { %v3930_v31 = vpop.f32.mrf.mxu0  ;;  %v4634_v32 = vpop.f32.mrf.mxu1 }
 0x392   : > { %v6543_v35 = vadd.f32 %v8912_v14, %v6441_v30  ;;  %7327 = vmatmul.msk.f32.gmra.mxu2 %vm3479_vm1, %v7228_v28  ;;  %7524 = vmatmul.msk.f32.gmra.mxu3 %vm3479_vm1, %v7425_v29  ;;  %v6246_v37 = vmax.f32 %v3930_v31, %v4634_v32  ;;  %v7233_v30 = vld [vmem:[%s8475_s10 + $0x830] sm:$0xff]  ;;  %v7430_v31 = vld [vmem:[%s8475_s10 + $0xb40] sm:$0xff] }
 0x394   : > { %v6641_v36 = vmax.f32 %v6543_v35, 0.0  ;;  %6933 = vmatmul.msk.f32.gmra.mxu0 %vm3479_vm1, %v3442_v33  ;;  %7130 = vmatmul.msk.f32.gmra.mxu1 %vm3479_vm1, %v7031_v34  ;;  %v3447_v35 = vld [vmem:[%s8475_s10 + $0x210] sm:$0xff] }
 0x395   : > { %v5338_v38 = vpop.f32.mrf.mxu2  ;;  %v6042_v39 = vpop.f32.mrf.mxu3 }
 0x396   : > { %6739 = vst [vmem:[%s8630_s20 + $0x160] sm:$0xff] %v6641_v36  ;;  %v6344_v40 = vmax.f32 %v5338_v38, %v6042_v39  ;;  %v7036_v36 = vld [vmem:[%s8475_s10 + $0x520] sm:$0xff] }
 0x398   : > { %v6442_v43 = vmax.f32 %v6246_v37, %v6344_v40 }
 0x399   : > { %v3933_v44 = vpop.f32.mrf.mxu0  ;;  %v4637_v45 = vpop.f32.mrf.mxu1 }
 0x39a   : > { %v6544_v48 = vadd.f32 %v8912_v14, %v6442_v43  ;;  %7328 = vmatmul.msk.f32.gmra.mxu2 %vm3479_vm1, %v7229_v41  ;;  %7525 = vmatmul.msk.f32.gmra.mxu3 %vm3479_vm1, %v7426_v42  ;;  %v6247_v50 = vmax.f32 %v3933_v44, %v4637_v45  ;;  %v7234_v43 = vld [vmem:[%s8475_s10 + $0x838] sm:$0xff]  ;;  %v7431_v44 = vld [vmem:[%s8475_s10 + $0xb48] sm:$0xff] }
 0x39c   : > { %v6642_v49 = vmax.f32 %v6544_v48, 0.0  ;;  %6934 = vmatmul.msk.f32.gmra.mxu0 %vm3479_vm1, %v3443_v46  ;;  %7131 = vmatmul.msk.f32.gmra.mxu1 %vm3479_vm1, %v7032_v47  ;;  %v3448_v48 = vld [vmem:[%s8475_s10 + $0x218] sm:$0xff] }
 0x39d   : > { %v5341_v51 = vpop.f32.mrf.mxu2  ;;  %v6045_v52 = vpop.f32.mrf.mxu3 }
 0x39e   : > { %6740 = vst [vmem:[%s8630_s20 + $0x168] sm:$0xff] %v6642_v49  ;;  %v6345_v53 = vmax.f32 %v5341_v51, %v6045_v52  ;;  %v7037_v49 = vld [vmem:[%s8475_s10 + $0x528] sm:$0xff] }
 0x3a0   : > { %v6443_v56 = vmax.f32 %v6247_v50, %v6345_v53 }
 0x3a1   : > { %v3936_v57 = vpop.f32.mrf.mxu0  ;;  %v4640_v58 = vpop.f32.mrf.mxu1 }
 0x3a2   : > { %v6545_v61 = vadd.f32 %v8912_v14, %v6443_v56  ;;  %7329 = vmatmul.msk.f32.gmra.mxu2 %vm3479_vm1, %v7230_v54  ;;  %7526 = vmatmul.msk.f32.gmra.mxu3 %vm3479_vm1, %v7427_v55  ;;  %v6248_v63 = vmax.f32 %v3936_v57, %v4640_v58  ;;  %v7235_v56 = vld [vmem:[%s8475_s10 + $0x840] sm:$0xff]  ;;  %v7432_v57 = vld [vmem:[%s8475_s10 + $0xb50] sm:$0xff] }
 0x3a4   : > { %v6643_v62 = vmax.f32 %v6545_v61, 0.0  ;;  %6935 = vmatmul.msk.f32.gmra.mxu0 %vm3479_vm1, %v3444_v59  ;;  %7132 = vmatmul.msk.f32.gmra.mxu1 %vm3479_vm1, %v7033_v60  ;;  %v3449_v61 = vld [vmem:[%s8475_s10 + $0x220] sm:$0xff] }
 0x3a5   : > { %v5344_v0 = vpop.f32.mrf.mxu2  ;;  %v6048_v1 = vpop.f32.mrf.mxu3 }
 0x3a6   : > { %6741 = vst [vmem:[%s8630_s20 + $0x170] sm:$0xff] %v6643_v62  ;;  %v6346_v2 = vmax.f32 %v5344_v0, %v6048_v1  ;;  %v7038_v62 = vld [vmem:[%s8475_s10 + $0x530] sm:$0xff] }
 0x3a8   : > { %v6444_v5 = vmax.f32 %v6248_v63, %v6346_v2 }
 0x3a9   : > { %v3939_v6 = vpop.f32.mrf.mxu0  ;;  %v4643_v7 = vpop.f32.mrf.mxu1 }
 0x3aa   : > { %v6546_v22 = vadd.f32 %v8912_v14, %v6444_v5  ;;  %7330 = vmatmul.msk.f32.gmra.mxu2 %vm3479_vm1, %v7231_v3  ;;  %7527 = vmatmul.msk.f32.gmra.mxu3 %vm3479_vm1, %v7428_v4  ;;  %v6249_v11 = vmax.f32 %v3939_v6, %v4643_v7  ;;  %v7236_v5 = vld [vmem:[%s8475_s10 + $0x848] sm:$0xff]  ;;  %v7433_v6 = vld [vmem:[%s8475_s10 + $0xb58] sm:$0xff] }
 0x3ac   : > { %v6644_v10 = vmax.f32 %v6546_v22, 0.0  ;;  %6936 = vmatmul.msk.f32.gmra.mxu0 %vm3479_vm1, %v3445_v8  ;;  %7133 = vmatmul.msk.f32.gmra.mxu1 %vm3479_vm1, %v7034_v9  ;;  %v3450_v22 = vld [vmem:[%s8475_s10 + $0x228] sm:$0xff] }
 0x3ad   : > { %v5347_v12 = vpop.f32.mrf.mxu2  ;;  %v6051_v13 = vpop.f32.mrf.mxu3 }
 0x3ae   : > { %6742 = vst [vmem:[%s8630_s20 + $0x178] sm:$0xff] %v6644_v10  ;;  %v6347_v15 = vmax.f32 %v5347_v12, %v6051_v13  ;;  %v7039_v10 = vld [vmem:[%s8475_s10 + $0x538] sm:$0xff] }
 0x3b0   : > { %v6445_v18 = vmax.f32 %v6249_v11, %v6347_v15 }
 0x3b1   : > { %v3942_v19 = vpop.f32.mrf.mxu0  ;;  %v4646_v20 = vpop.f32.mrf.mxu1 }
 0x3b2   : > { %v6547_v24 = vadd.f32 %v8912_v14, %v6445_v18  ;;  %7331 = vmatmul.msk.f32.gmra.mxu2 %vm3479_vm1, %v7232_v16  ;;  %7528 = vmatmul.msk.f32.gmra.mxu3 %vm3479_vm1, %v7429_v17  ;;  %v6250_v26 = vmax.f32 %v3942_v19, %v4646_v20  ;;  %v7237_v18 = vld [vmem:[%s8475_s10 + $0x850] sm:$0xff]  ;;  %v7434_v19 = vld [vmem:[%s8475_s10 + $0xb60] sm:$0xff] }
 0x3b4   : > { %v6645_v25 = vmax.f32 %v6547_v24, 0.0  ;;  %6937 = vmatmul.msk.f32.gmra.mxu0 %vm3479_vm1, %v3446_v21  ;;  %7134 = vmatmul.msk.f32.gmra.mxu1 %vm3479_vm1, %v7035_v23  ;;  %v3451_v24 = vld [vmem:[%s8475_s10 + $0x230] sm:$0xff] }
 0x3b5   : > { %v5350_v27 = vpop.f32.mrf.mxu2  ;;  %v6054_v28 = vpop.f32.mrf.mxu3 }
 0x3b6   : > { %6743 = vst [vmem:[%s8630_s20 + $0x180] sm:$0xff] %v6645_v25  ;;  %v6348_v29 = vmax.f32 %v5350_v27, %v6054_v28  ;;  %v7040_v25 = vld [vmem:[%s8475_s10 + $0x540] sm:$0xff] }
 0x3b8   : > { %v6446_v32 = vmax.f32 %v6250_v26, %v6348_v29 }
 0x3b9   : > { %v3945_v33 = vpop.f32.mrf.mxu0  ;;  %v4649_v34 = vpop.f32.mrf.mxu1 }
 0x3ba   : > { %v6548_v37 = vadd.f32 %v8912_v14, %v6446_v32  ;;  %7332 = vmatmul.msk.f32.gmra.mxu2 %vm3479_vm1, %v7233_v30  ;;  %7529 = vmatmul.msk.f32.gmra.mxu3 %vm3479_vm1, %v7430_v31  ;;  %v6251_v39 = vmax.f32 %v3945_v33, %v4649_v34  ;;  %v7238_v32 = vld [vmem:[%s8475_s10 + $0x858] sm:$0xff]  ;;  %v7435_v33 = vld [vmem:[%s8475_s10 + $0xb68] sm:$0xff] }
 0x3bc   : > { %v6646_v38 = vmax.f32 %v6548_v37, 0.0  ;;  %6938 = vmatmul.msk.f32.gmra.mxu0 %vm3479_vm1, %v3447_v35  ;;  %7135 = vmatmul.msk.f32.gmra.mxu1 %vm3479_vm1, %v7036_v36  ;;  %v3452_v37 = vld [vmem:[%s8475_s10 + $0x238] sm:$0xff] }
 0x3bd   : > { %v5353_v40 = vpop.f32.mrf.mxu2  ;;  %v6057_v41 = vpop.f32.mrf.mxu3 }
 0x3be   : > { %6744 = vst [vmem:[%s8630_s20 + $0x188] sm:$0xff] %v6646_v38  ;;  %v6349_v42 = vmax.f32 %v5353_v40, %v6057_v41  ;;  %v7041_v38 = vld [vmem:[%s8475_s10 + $0x548] sm:$0xff] }
 0x3c0   : > { %v6447_v45 = vmax.f32 %v6251_v39, %v6349_v42 }
 0x3c1   : > { %v3948_v46 = vpop.f32.mrf.mxu0  ;;  %v4652_v47 = vpop.f32.mrf.mxu1 }
 0x3c2   : > { %v6549_v50 = vadd.f32 %v8912_v14, %v6447_v45  ;;  %7333 = vmatmul.msk.f32.gmra.mxu2 %vm3479_vm1, %v7234_v43  ;;  %7530 = vmatmul.msk.f32.gmra.mxu3 %vm3479_vm1, %v7431_v44  ;;  %v6252_v52 = vmax.f32 %v3948_v46, %v4652_v47  ;;  %v7239_v45 = vld [vmem:[%s8475_s10 + $0x860] sm:$0xff]  ;;  %v7436_v46 = vld [vmem:[%s8475_s10 + $0xb70] sm:$0xff] }
 0x3c4   : > { %v6647_v51 = vmax.f32 %v6549_v50, 0.0  ;;  %6939 = vmatmul.msk.f32.gmra.mxu0 %vm3479_vm1, %v3448_v48  ;;  %7136 = vmatmul.msk.f32.gmra.mxu1 %vm3479_vm1, %v7037_v49  ;;  %v3453_v50 = vld [vmem:[%s8475_s10 + $0x240] sm:$0xff] }
 0x3c5   : > { %v5356_v53 = vpop.f32.mrf.mxu2  ;;  %v6060_v54 = vpop.f32.mrf.mxu3 }
 0x3c6   : > { %6745 = vst [vmem:[%s8630_s20 + $0x190] sm:$0xff] %v6647_v51  ;;  %v6350_v55 = vmax.f32 %v5356_v53, %v6060_v54  ;;  %v7042_v51 = vld [vmem:[%s8475_s10 + $0x550] sm:$0xff] }
 0x3c8   : > { %v6448_v58 = vmax.f32 %v6252_v52, %v6350_v55 }
 0x3c9   : > { %v3951_v59 = vpop.f32.mrf.mxu0  ;;  %v4655_v60 = vpop.f32.mrf.mxu1 }
 0x3ca   : > { %v6550_v63 = vadd.f32 %v8912_v14, %v6448_v58  ;;  %7334 = vmatmul.msk.f32.gmra.mxu2 %vm3479_vm1, %v7235_v56  ;;  %7531 = vmatmul.msk.f32.gmra.mxu3 %vm3479_vm1, %v7432_v57  ;;  %v6253_v1 = vmax.f32 %v3951_v59, %v4655_v60  ;;  %v7240_v58 = vld [vmem:[%s8475_s10 + $0x868] sm:$0xff]  ;;  %v7437_v59 = vld [vmem:[%s8475_s10 + $0xb78] sm:$0xff] }
 0x3cc   : > { %v6648_v0 = vmax.f32 %v6550_v63, 0.0  ;;  %6940 = vmatmul.msk.f32.gmra.mxu0 %vm3479_vm1, %v3449_v61  ;;  %7137 = vmatmul.msk.f32.gmra.mxu1 %vm3479_vm1, %v7038_v62  ;;  %v3454_v63 = vld [vmem:[%s8475_s10 + $0x248] sm:$0xff] }
 0x3cd   : > { %v5359_v2 = vpop.f32.mrf.mxu2  ;;  %v6063_v3 = vpop.f32.mrf.mxu3 }
 0x3ce   : > { %6746 = vst [vmem:[%s8630_s20 + $0x198] sm:$0xff] %v6648_v0  ;;  %v6351_v4 = vmax.f32 %v5359_v2, %v6063_v3  ;;  %v7043_v0 = vld [vmem:[%s8475_s10 + $0x558] sm:$0xff] }
 0x3d0   : > { %v6449_v7 = vmax.f32 %v6253_v1, %v6351_v4 }
 0x3d1   : > { %v3954_v8 = vpop.f32.mrf.mxu0  ;;  %v4658_v9 = vpop.f32.mrf.mxu1 }
 0x3d2   : > { %v6551_v11 = vadd.f32 %v8912_v14, %v6449_v7  ;;  %7335 = vmatmul.msk.f32.gmra.mxu2 %vm3479_vm1, %v7236_v5  ;;  %7532 = vmatmul.msk.f32.gmra.mxu3 %vm3479_vm1, %v7433_v6  ;;  %v6254_v13 = vmax.f32 %v3954_v8, %v4658_v9  ;;  %v7241_v7 = vld [vmem:[%s8475_s10 + $0x870] sm:$0xff]  ;;  %v7438_v8 = vld [vmem:[%s8475_s10 + $0xb80] sm:$0xff] }
 0x3d4   : > { %v6649_v12 = vmax.f32 %v6551_v11, 0.0  ;;  %6941 = vmatmul.msk.f32.gmra.mxu0 %vm3479_vm1, %v3450_v22  ;;  %7138 = vmatmul.msk.f32.gmra.mxu1 %vm3479_vm1, %v7039_v10  ;;  %v3455_v10 = vld [vmem:[%s8475_s10 + $0x250] sm:$0xff]  ;;  %v7044_v11 = vld [vmem:[%s8475_s10 + $0x560] sm:$0xff] }
 0x3d5   : > { %v5362_v15 = vpop.f32.mrf.mxu2  ;;  %v6066_v16 = vpop.f32.mrf.mxu3 }
 0x3d6   : > { %6747 = vst [vmem:[%s8630_s20 + $0x1a0] sm:$0xff] %v6649_v12  ;;  %v6352_v17 = vmax.f32 %v5362_v15, %v6066_v16  ;;  %v9207_v12 = vld [vmem:[%s9496_s2] ss:$0 sm:$0xff] }
 0x3d8   : > { %v6450_v20 = vmax.f32 %v6254_v13, %v6352_v17 }
 0x3d9   : > { %v3957_v21 = vpop.f32.mrf.mxu0  ;;  %v4661_v23 = vpop.f32.mrf.mxu1 }
 0x3da   : > { %v6552_v26 = vadd.f32 %v8912_v14, %v6450_v20  ;;  %7336 = vmatmul.msk.f32.gmra.mxu2 %vm3479_vm1, %v7237_v18  ;;  %7533 = vmatmul.msk.f32.gmra.mxu3 %vm3479_vm1, %v7434_v19  ;;  %v6255_v28 = vmax.f32 %v3957_v21, %v4661_v23  ;;  %v7242_v20 = vld [vmem:[%s8475_s10 + $0x878] sm:$0xff]  ;;  %v7439_v21 = vld [vmem:[%s8475_s10 + $0xb88] sm:$0xff] }
 0x3dc   : > { %v6650_v27 = vmax.f32 %v6552_v26, 0.0  ;;  %6942 = vmatmul.msk.f32.gmra.mxu0 %vm3479_vm1, %v3451_v24  ;;  %7139 = vmatmul.msk.f32.gmra.mxu1 %vm3479_vm1, %v7040_v25  ;;  %v3456_v26 = vld [vmem:[%s8475_s10 + $0x258] sm:$0xff] }
 0x3dd   : > { %v5365_v29 = vpop.f32.mrf.mxu2  ;;  %v6069_v30 = vpop.f32.mrf.mxu3 }
 0x3de   : > { %6748 = vst [vmem:[%s8630_s20 + $0x1a8] sm:$0xff] %v6650_v27  ;;  %v6353_v31 = vmax.f32 %v5365_v29, %v6069_v30  ;;  %v7045_v27 = vld [vmem:[%s8475_s10 + $0x568] sm:$0xff] }
 0x3e0   : > { %v6451_v34 = vmax.f32 %v6255_v28, %v6353_v31 }
 0x3e1   : > { %v3960_v35 = vpop.f32.mrf.mxu0  ;;  %v4664_v36 = vpop.f32.mrf.mxu1 }
 0x3e2   : > { %v6553_v39 = vadd.f32 %v8912_v14, %v6451_v34  ;;  %7337 = vmatmul.msk.f32.gmra.mxu2 %vm3479_vm1, %v7238_v32  ;;  %7534 = vmatmul.msk.f32.gmra.mxu3 %vm3479_vm1, %v7435_v33  ;;  %v6256_v41 = vmax.f32 %v3960_v35, %v4664_v36  ;;  %v7243_v34 = vld [vmem:[%s8475_s10 + $0x880] sm:$0xff]  ;;  %v7440_v35 = vld [vmem:[%s8475_s10 + $0xb90] sm:$0xff] }
 0x3e4   : > { %v6651_v40 = vmax.f32 %v6553_v39, 0.0  ;;  %6943 = vmatmul.msk.f32.gmra.mxu0 %vm3479_vm1, %v3452_v37  ;;  %7140 = vmatmul.msk.f32.gmra.mxu1 %vm3479_vm1, %v7041_v38  ;;  %v3457_v39 = vld [vmem:[%s8475_s10 + $0x260] sm:$0xff] }
 0x3e5   : > { %v5368_v42 = vpop.f32.mrf.mxu2  ;;  %v6072_v43 = vpop.f32.mrf.mxu3 }
 0x3e6   : > { %6749 = vst [vmem:[%s8630_s20 + $0x1b0] sm:$0xff] %v6651_v40  ;;  %v6354_v44 = vmax.f32 %v5368_v42, %v6072_v43  ;;  %v7046_v40 = vld [vmem:[%s8475_s10 + $0x570] sm:$0xff] }
 0x3e8   : > { %v6452_v47 = vmax.f32 %v6256_v41, %v6354_v44 }
 0x3e9   : > { %v3963_v48 = vpop.f32.mrf.mxu0  ;;  %v4667_v49 = vpop.f32.mrf.mxu1 }
 0x3ea   : > { %v6554_v52 = vadd.f32 %v8912_v14, %v6452_v47  ;;  %7338 = vmatmul.msk.f32.gmra.mxu2 %vm3479_vm1, %v7239_v45  ;;  %7535 = vmatmul.msk.f32.gmra.mxu3 %vm3479_vm1, %v7436_v46  ;;  %v6257_v54 = vmax.f32 %v3963_v48, %v4667_v49  ;;  %v7244_v47 = vld [vmem:[%s8475_s10 + $0x888] sm:$0xff]  ;;  %v7441_v48 = vld [vmem:[%s8475_s10 + $0xb98] sm:$0xff] }
 0x3ec   : > { %v6652_v53 = vmax.f32 %v6554_v52, 0.0  ;;  %6944 = vmatmul.msk.f32.gmra.mxu0 %vm3479_vm1, %v3453_v50  ;;  %7141 = vmatmul.msk.f32.gmra.mxu1 %vm3479_vm1, %v7042_v51  ;;  %v3458_v52 = vld [vmem:[%s8475_s10 + $0x268] sm:$0xff] }
 0x3ed   : > { %v5371_v55 = vpop.f32.mrf.mxu2  ;;  %v6075_v56 = vpop.f32.mrf.mxu3 }
 0x3ee   : > { %6750 = vst [vmem:[%s8630_s20 + $0x1b8] sm:$0xff] %v6652_v53  ;;  %v6355_v57 = vmax.f32 %v5371_v55, %v6075_v56  ;;  %v7047_v53 = vld [vmem:[%s8475_s10 + $0x578] sm:$0xff] }
 0x3f0   : > { %v6453_v60 = vmax.f32 %v6257_v54, %v6355_v57 }
 0x3f1   : > { %v3966_v61 = vpop.f32.mrf.mxu0  ;;  %v4670_v62 = vpop.f32.mrf.mxu1 }
 0x3f2   : > { %v6555_v1 = vadd.f32 %v8912_v14, %v6453_v60  ;;  %7339 = vmatmul.msk.f32.gmra.mxu2 %vm3479_vm1, %v7240_v58  ;;  %7536 = vmatmul.msk.f32.gmra.mxu3 %vm3479_vm1, %v7437_v59  ;;  %v6258_v3 = vmax.f32 %v3966_v61, %v4670_v62  ;;  %v7245_v60 = vld [vmem:[%s8475_s10 + $0x890] sm:$0xff]  ;;  %v7442_v61 = vld [vmem:[%s8475_s10 + $0xba0] sm:$0xff] }
 0x3f4   : > { %v6653_v2 = vmax.f32 %v6555_v1, 0.0  ;;  %6945 = vmatmul.msk.f32.gmra.mxu0 %vm3479_vm1, %v3454_v63  ;;  %7142 = vmatmul.msk.f32.gmra.mxu1 %vm3479_vm1, %v7043_v0  ;;  %v3459_v1 = vld [vmem:[%s8475_s10 + $0x270] sm:$0xff] }
 0x3f5   : > { %v5374_v4 = vpop.f32.mrf.mxu2  ;;  %v6078_v5 = vpop.f32.mrf.mxu3 }
 0x3f6   : > { %6751 = vst [vmem:[%s8630_s20 + $0x1c0] sm:$0xff] %v6653_v2  ;;  %v6356_v6 = vmax.f32 %v5374_v4, %v6078_v5  ;;  %v7048_v2 = vld [vmem:[%s8475_s10 + $0x580] sm:$0xff] }
 0x3f8   : > { %v6454_v14 = vmax.f32 %v6258_v3, %v6356_v6 }
 0x3f9   : > { %v3969_v9 = vpop.f32.mrf.mxu0  ;;  %v4673_v22 = vpop.f32.mrf.mxu1 }
 0x3fa   : > { %v6556_v13 = vadd.f32 %v9207_v12, %v6454_v14  ;;  %7340 = vmatmul.msk.f32.gmra.mxu2 %vm3479_vm1, %v7241_v7  ;;  %7537 = vmatmul.msk.f32.gmra.mxu3 %vm3479_vm1, %v7438_v8  ;;  %v6259_v16 = vmax.f32 %v3969_v9, %v4673_v22  ;;  %v7246_v14 = vld [vmem:[%s8475_s10 + $0x898] sm:$0xff]  ;;  %v7443_v9 = vld [vmem:[%s8475_s10 + $0xba8] sm:$0xff] }
 0x3fc   : > { %v6654_v15 = vmax.f32 %v6556_v13, 0.0  ;;  %6946 = vmatmul.msk.f32.gmra.mxu0 %vm3479_vm1, %v3455_v10  ;;  %7143 = vmatmul.msk.f32.gmra.mxu1 %vm3479_vm1, %v7044_v11  ;;  %v3460_v13 = vld [vmem:[%s8475_s10 + $0x278] sm:$0xff] }
 0x3fd   : > { %v5377_v17 = vpop.f32.mrf.mxu2  ;;  %v6081_v18 = vpop.f32.mrf.mxu3 }
 0x3fe   : > { %6752 = vst [vmem:[%s8630_s20 + $0x1c8] sm:$0xff] %v6654_v15  ;;  %v6357_v19 = vmax.f32 %v5377_v17, %v6081_v18  ;;  %v7049_v15 = vld [vmem:[%s8475_s10 + $0x588] sm:$0xff] }
 0x400   : > { %v6455_v23 = vmax.f32 %v6259_v16, %v6357_v19 }
 0x401   : > { %v3972_v24 = vpop.f32.mrf.mxu0  ;;  %v4676_v25 = vpop.f32.mrf.mxu1 }
 0x402   : > { %v6557_v28 = vadd.f32 %v9207_v12, %v6455_v23  ;;  %7341 = vmatmul.msk.f32.gmra.mxu2 %vm3479_vm1, %v7242_v20  ;;  %7538 = vmatmul.msk.f32.gmra.mxu3 %vm3479_vm1, %v7439_v21  ;;  %v6260_v30 = vmax.f32 %v3972_v24, %v4676_v25  ;;  %v7247_v23 = vld [vmem:[%s8475_s10 + $0x8a0] sm:$0xff]  ;;  %v7444_v24 = vld [vmem:[%s8475_s10 + $0xbb0] sm:$0xff] }
 0x404   : > { %v6655_v29 = vmax.f32 %v6557_v28, 0.0  ;;  %6947 = vmatmul.msk.f32.gmra.mxu0 %vm3479_vm1, %v3456_v26  ;;  %7144 = vmatmul.msk.f32.gmra.mxu1 %vm3479_vm1, %v7045_v27  ;;  %v3461_v28 = vld [vmem:[%s8475_s10 + $0x280] sm:$0xff] }
 0x405   : > { %v5380_v31 = vpop.f32.mrf.mxu2  ;;  %v6084_v32 = vpop.f32.mrf.mxu3 }
 0x406   : > { %6753 = vst [vmem:[%s8630_s20 + $0x1d0] sm:$0xff] %v6655_v29  ;;  %v6358_v33 = vmax.f32 %v5380_v31, %v6084_v32  ;;  %v7050_v29 = vld [vmem:[%s8475_s10 + $0x590] sm:$0xff] }
 0x408   : > { %v6456_v36 = vmax.f32 %v6260_v30, %v6358_v33 }
 0x409   : > { %v3975_v37 = vpop.f32.mrf.mxu0  ;;  %v4679_v38 = vpop.f32.mrf.mxu1 }
 0x40a   : > { %v6558_v41 = vadd.f32 %v9207_v12, %v6456_v36  ;;  %7342 = vmatmul.msk.f32.gmra.mxu2 %vm3479_vm1, %v7243_v34  ;;  %7539 = vmatmul.msk.f32.gmra.mxu3 %vm3479_vm1, %v7440_v35  ;;  %v6261_v43 = vmax.f32 %v3975_v37, %v4679_v38  ;;  %v7248_v36 = vld [vmem:[%s8475_s10 + $0x8a8] sm:$0xff]  ;;  %v7445_v37 = vld [vmem:[%s8475_s10 + $0xbb8] sm:$0xff] }
 0x40c   : > { %v6656_v42 = vmax.f32 %v6558_v41, 0.0  ;;  %6948 = vmatmul.msk.f32.gmra.mxu0 %vm3479_vm1, %v3457_v39  ;;  %7145 = vmatmul.msk.f32.gmra.mxu1 %vm3479_vm1, %v7046_v40  ;;  %v3462_v41 = vld [vmem:[%s8475_s10 + $0x288] sm:$0xff] }
 0x40d   : > { %v5383_v44 = vpop.f32.mrf.mxu2  ;;  %v6087_v45 = vpop.f32.mrf.mxu3 }
 0x40e   : > { %6754 = vst [vmem:[%s8630_s20 + $0x1d8] sm:$0xff] %v6656_v42  ;;  %v6359_v46 = vmax.f32 %v5383_v44, %v6087_v45  ;;  %v7051_v42 = vld [vmem:[%s8475_s10 + $0x598] sm:$0xff] }
 0x410   : > { %v6457_v49 = vmax.f32 %v6261_v43, %v6359_v46 }
 0x411   : > { %v3978_v50 = vpop.f32.mrf.mxu0  ;;  %v4682_v51 = vpop.f32.mrf.mxu1 }
 0x412   : > { %v6559_v54 = vadd.f32 %v9207_v12, %v6457_v49  ;;  %7343 = vmatmul.msk.f32.gmra.mxu2 %vm3479_vm1, %v7244_v47  ;;  %7540 = vmatmul.msk.f32.gmra.mxu3 %vm3479_vm1, %v7441_v48  ;;  %v6262_v56 = vmax.f32 %v3978_v50, %v4682_v51  ;;  %v7249_v49 = vld [vmem:[%s8475_s10 + $0x8b0] sm:$0xff]  ;;  %v7446_v50 = vld [vmem:[%s8475_s10 + $0xbc0] sm:$0xff] }
 0x414   : > { %v6657_v55 = vmax.f32 %v6559_v54, 0.0  ;;  %6949 = vmatmul.msk.f32.gmra.mxu0 %vm3479_vm1, %v3458_v52  ;;  %7146 = vmatmul.msk.f32.gmra.mxu1 %vm3479_vm1, %v7047_v53  ;;  %v3463_v54 = vld [vmem:[%s8475_s10 + $0x290] sm:$0xff] }
 0x415   : > { %v5386_v57 = vpop.f32.mrf.mxu2  ;;  %v6090_v58 = vpop.f32.mrf.mxu3 }
 0x416   : > { %6755 = vst [vmem:[%s8630_s20 + $0x1e0] sm:$0xff] %v6657_v55  ;;  %v6360_v59 = vmax.f32 %v5386_v57, %v6090_v58  ;;  %v7052_v55 = vld [vmem:[%s8475_s10 + $0x5a0] sm:$0xff] }
 0x418   : > { %v6458_v62 = vmax.f32 %v6262_v56, %v6360_v59 }
 0x419   : > { %v3981_v63 = vpop.f32.mrf.mxu0  ;;  %v4685_v0 = vpop.f32.mrf.mxu1 }
 0x41a   : > { %v6560_v3 = vadd.f32 %v9207_v12, %v6458_v62  ;;  %7344 = vmatmul.msk.f32.gmra.mxu2 %vm3479_vm1, %v7245_v60  ;;  %7541 = vmatmul.msk.f32.gmra.mxu3 %vm3479_vm1, %v7442_v61  ;;  %v6263_v5 = vmax.f32 %v3981_v63, %v4685_v0  ;;  %v7250_v62 = vld [vmem:[%s8475_s10 + $0x8b8] sm:$0xff]  ;;  %v7447_v63 = vld [vmem:[%s8475_s10 + $0xbc8] sm:$0xff] }
 0x41c   : > { %v6658_v4 = vmax.f32 %v6560_v3, 0.0  ;;  %6950 = vmatmul.msk.f32.gmra.mxu0 %vm3479_vm1, %v3459_v1  ;;  %7147 = vmatmul.msk.f32.gmra.mxu1 %vm3479_vm1, %v7048_v2  ;;  %v3464_v3 = vld [vmem:[%s8475_s10 + $0x298] sm:$0xff] }
 0x41d   : > { %v5389_v6 = vpop.f32.mrf.mxu2  ;;  %v6093_v7 = vpop.f32.mrf.mxu3 }
 0x41e   : > { %6756 = vst [vmem:[%s8630_s20 + $0x1e8] sm:$0xff] %v6658_v4  ;;  %v6361_v8 = vmax.f32 %v5389_v6, %v6093_v7  ;;  %v7053_v4 = vld [vmem:[%s8475_s10 + $0x5a8] sm:$0xff] }
 0x420   : > { %v6459_v22 = vmax.f32 %v6263_v5, %v6361_v8 }
 0x421   : > { %v3984_v10 = vpop.f32.mrf.mxu0  ;;  %v4688_v11 = vpop.f32.mrf.mxu1 }
 0x422   : > { %v6561_v16 = vadd.f32 %v9207_v12, %v6459_v22  ;;  %7345 = vmatmul.msk.f32.gmra.mxu2 %vm3479_vm1, %v7246_v14  ;;  %7542 = vmatmul.msk.f32.gmra.mxu3 %vm3479_vm1, %v7443_v9  ;;  %v6264_v18 = vmax.f32 %v3984_v10, %v4688_v11  ;;  %v7251_v22 = vld [vmem:[%s8475_s10 + $0x8c0] sm:$0xff]  ;;  %v7448_v10 = vld [vmem:[%s8475_s10 + $0xbd0] sm:$0xff] }
 0x424   : > { %v6659_v17 = vmax.f32 %v6561_v16, 0.0  ;;  %6951 = vmatmul.msk.f32.gmra.mxu0 %vm3479_vm1, %v3460_v13  ;;  %7148 = vmatmul.msk.f32.gmra.mxu1 %vm3479_vm1, %v7049_v15  ;;  %v3465_v16 = vld [vmem:[%s8475_s10 + $0x2a0] sm:$0xff] }
 0x425   : > { %v5392_v19 = vpop.f32.mrf.mxu2  ;;  %v6096_v20 = vpop.f32.mrf.mxu3 }
 0x426   : > { %6757 = vst [vmem:[%s8630_s20 + $0x1f0] sm:$0xff] %v6659_v17  ;;  %v6362_v21 = vmax.f32 %v5392_v19, %v6096_v20  ;;  %v7054_v17 = vld [vmem:[%s8475_s10 + $0x5b0] sm:$0xff] }
 0x428   : > { %v6460_v25 = vmax.f32 %v6264_v18, %v6362_v21 }
 0x429   : > { %v3987_v26 = vpop.f32.mrf.mxu0  ;;  %v4691_v27 = vpop.f32.mrf.mxu1 }
 0x42a   : > { %v6562_v30 = vadd.f32 %v9207_v12, %v6460_v25  ;;  %7346 = vmatmul.msk.f32.gmra.mxu2 %vm3479_vm1, %v7247_v23  ;;  %7543 = vmatmul.msk.f32.gmra.mxu3 %vm3479_vm1, %v7444_v24  ;;  %v6265_v32 = vmax.f32 %v3987_v26, %v4691_v27  ;;  %v7252_v25 = vld [vmem:[%s8475_s10 + $0x8c8] sm:$0xff]  ;;  %v7449_v26 = vld [vmem:[%s8475_s10 + $0xbd8] sm:$0xff] }
 0x42c   : > { %v6660_v31 = vmax.f32 %v6562_v30, 0.0  ;;  %6952 = vmatmul.msk.f32.gmra.mxu0 %vm3479_vm1, %v3461_v28  ;;  %7149 = vmatmul.msk.f32.gmra.mxu1 %vm3479_vm1, %v7050_v29  ;;  %v3466_v30 = vld [vmem:[%s8475_s10 + $0x2a8] sm:$0xff] }
 0x42d   : > { %v5395_v33 = vpop.f32.mrf.mxu2  ;;  %v6099_v34 = vpop.f32.mrf.mxu3 }
 0x42e   : > { %6758 = vst [vmem:[%s8630_s20 + $0x1f8] sm:$0xff] %v6660_v31  ;;  %v6363_v35 = vmax.f32 %v5395_v33, %v6099_v34  ;;  %v7055_v31 = vld [vmem:[%s8475_s10 + $0x5b8] sm:$0xff] }
 0x430   : > { %v6461_v38 = vmax.f32 %v6265_v32, %v6363_v35 }
 0x431   : > { %v3990_v39 = vpop.f32.mrf.mxu0  ;;  %v4694_v40 = vpop.f32.mrf.mxu1 }
 0x432   : > { %v6563_v43 = vadd.f32 %v9207_v12, %v6461_v38  ;;  %7347 = vmatmul.msk.f32.gmra.mxu2 %vm3479_vm1, %v7248_v36  ;;  %7544 = vmatmul.msk.f32.gmra.mxu3 %vm3479_vm1, %v7445_v37  ;;  %v6266_v45 = vmax.f32 %v3990_v39, %v4694_v40  ;;  %v7253_v38 = vld [vmem:[%s8475_s10 + $0x8d0] sm:$0xff]  ;;  %v7450_v39 = vld [vmem:[%s8475_s10 + $0xbe0] sm:$0xff] }
 0x434   : > { %v6661_v44 = vmax.f32 %v6563_v43, 0.0  ;;  %6953 = vmatmul.msk.f32.gmra.mxu0 %vm3479_vm1, %v3462_v41  ;;  %7150 = vmatmul.msk.f32.gmra.mxu1 %vm3479_vm1, %v7051_v42  ;;  %v3467_v43 = vld [vmem:[%s8475_s10 + $0x2b0] sm:$0xff] }
 0x435   : > { %v5398_v46 = vpop.f32.mrf.mxu2  ;;  %v6102_v47 = vpop.f32.mrf.mxu3 }
 0x436   : > { %6759 = vst [vmem:[%s8630_s20 + $0x200] sm:$0xff] %v6661_v44  ;;  %v6364_v48 = vmax.f32 %v5398_v46, %v6102_v47  ;;  %v7056_v44 = vld [vmem:[%s8475_s10 + $0x5c0] sm:$0xff] }
 0x438   : > { %v6462_v51 = vmax.f32 %v6266_v45, %v6364_v48 }
 0x439   : > { %v3993_v52 = vpop.f32.mrf.mxu0  ;;  %v4697_v53 = vpop.f32.mrf.mxu1 }
 0x43a   : > { %v6564_v56 = vadd.f32 %v9207_v12, %v6462_v51  ;;  %7348 = vmatmul.msk.f32.gmra.mxu2 %vm3479_vm1, %v7249_v49  ;;  %7545 = vmatmul.msk.f32.gmra.mxu3 %vm3479_vm1, %v7446_v50  ;;  %v6267_v58 = vmax.f32 %v3993_v52, %v4697_v53  ;;  %v7254_v51 = vld [vmem:[%s8475_s10 + $0x8d8] sm:$0xff]  ;;  %v7451_v52 = vld [vmem:[%s8475_s10 + $0xbe8] sm:$0xff] }
 0x43c   : > { %v6662_v57 = vmax.f32 %v6564_v56, 0.0  ;;  %6954 = vmatmul.msk.f32.gmra.mxu0 %vm3479_vm1, %v3463_v54  ;;  %7151 = vmatmul.msk.f32.gmra.mxu1 %vm3479_vm1, %v7052_v55  ;;  %v3468_v56 = vld [vmem:[%s8475_s10 + $0x2b8] sm:$0xff] }
 0x43d   : > { %v5401_v59 = vpop.f32.mrf.mxu2  ;;  %v6105_v60 = vpop.f32.mrf.mxu3 }
 0x43e   : > { %6760 = vst [vmem:[%s8630_s20 + $0x208] sm:$0xff] %v6662_v57  ;;  %v6365_v61 = vmax.f32 %v5401_v59, %v6105_v60  ;;  %v7057_v57 = vld [vmem:[%s8475_s10 + $0x5c8] sm:$0xff] }
 0x440   : > { %v6463_v0 = vmax.f32 %v6267_v58, %v6365_v61 }
 0x441   : > { %v3996_v1 = vpop.f32.mrf.mxu0  ;;  %v4700_v2 = vpop.f32.mrf.mxu1 }
 0x442   : > { %v6565_v5 = vadd.f32 %v9207_v12, %v6463_v0  ;;  %7349 = vmatmul.msk.f32.gmra.mxu2 %vm3479_vm1, %v7250_v62  ;;  %7546 = vmatmul.msk.f32.gmra.mxu3 %vm3479_vm1, %v7447_v63  ;;  %v6268_v7 = vmax.f32 %v3996_v1, %v4700_v2  ;;  %v7255_v0 = vld [vmem:[%s8475_s10 + $0x8e0] sm:$0xff]  ;;  %v7452_v1 = vld [vmem:[%s8475_s10 + $0xbf0] sm:$0xff] }
 0x444   : > { %v6663_v6 = vmax.f32 %v6565_v5, 0.0  ;;  %6955 = vmatmul.msk.f32.gmra.mxu0 %vm3479_vm1, %v3464_v3  ;;  %7152 = vmatmul.msk.f32.gmra.mxu1 %vm3479_vm1, %v7053_v4  ;;  %v3469_v5 = vld [vmem:[%s8475_s10 + $0x2c0] sm:$0xff] }
 0x445   : > { %v5404_v8 = vpop.f32.mrf.mxu2  ;;  %v6108_v14 = vpop.f32.mrf.mxu3 }
 0x446   : > { %6761 = vst [vmem:[%s8630_s20 + $0x210] sm:$0xff] %v6663_v6  ;;  %v6366_v9 = vmax.f32 %v5404_v8, %v6108_v14  ;;  %v7058_v6 = vld [vmem:[%s8475_s10 + $0x5d0] sm:$0xff] }
 0x448   : > { %v6464_v11 = vmax.f32 %v6268_v7, %v6366_v9 }
 0x449   : > { %v3999_v13 = vpop.f32.mrf.mxu0  ;;  %v4703_v15 = vpop.f32.mrf.mxu1 }
 0x44a   : > { %v6566_v18 = vadd.f32 %v9207_v12, %v6464_v11  ;;  %7350 = vmatmul.msk.f32.gmra.mxu2 %vm3479_vm1, %v7251_v22  ;;  %7547 = vmatmul.msk.f32.gmra.mxu3 %vm3479_vm1, %v7448_v10  ;;  %v6269_v20 = vmax.f32 %v3999_v13, %v4703_v15  ;;  %v7256_v11 = vld [vmem:[%s8475_s10 + $0x8e8] sm:$0xff]  ;;  %v7453_v13 = vld [vmem:[%s8475_s10 + $0xbf8] sm:$0xff] }
 0x44c   : > { %v6664_v19 = vmax.f32 %v6566_v18, 0.0  ;;  %6956 = vmatmul.msk.f32.gmra.mxu0 %vm3479_vm1, %v3465_v16  ;;  %7153 = vmatmul.msk.f32.gmra.mxu1 %vm3479_vm1, %v7054_v17  ;;  %v3470_v18 = vld [vmem:[%s8475_s10 + $0x2c8] sm:$0xff] }
 0x44d   : > { %v5407_v21 = vpop.f32.mrf.mxu2  ;;  %v6111_v23 = vpop.f32.mrf.mxu3 }
 0x44e   : > { %6762 = vst [vmem:[%s8630_s20 + $0x218] sm:$0xff] %v6664_v19  ;;  %v6367_v24 = vmax.f32 %v5407_v21, %v6111_v23  ;;  %v7059_v19 = vld [vmem:[%s8475_s10 + $0x5d8] sm:$0xff] }
 0x450   : > { %v6465_v27 = vmax.f32 %v6269_v20, %v6367_v24 }
 0x451   : > { %v4002_v28 = vpop.f32.mrf.mxu0  ;;  %v4706_v29 = vpop.f32.mrf.mxu1 }
 0x452   : > { %v6567_v32 = vadd.f32 %v9207_v12, %v6465_v27  ;;  %7351 = vmatmul.msk.f32.gmra.mxu2 %vm3479_vm1, %v7252_v25  ;;  %7548 = vmatmul.msk.f32.gmra.mxu3 %vm3479_vm1, %v7449_v26  ;;  %v6270_v34 = vmax.f32 %v4002_v28, %v4706_v29  ;;  %v7257_v27 = vld [vmem:[%s8475_s10 + $0x8f0] sm:$0xff]  ;;  %v7454_v28 = vld [vmem:[%s8475_s10 + $0xc00] sm:$0xff] }
 0x454   : > { %v6665_v33 = vmax.f32 %v6567_v32, 0.0  ;;  %6957 = vmatmul.msk.f32.gmra.mxu0 %vm3479_vm1, %v3466_v30  ;;  %7154 = vmatmul.msk.f32.gmra.mxu1 %vm3479_vm1, %v7055_v31  ;;  %v3471_v32 = vld [vmem:[%s8475_s10 + $0x2d0] sm:$0xff] }
 0x455   : > { %v5410_v35 = vpop.f32.mrf.mxu2  ;;  %v6114_v36 = vpop.f32.mrf.mxu3 }
 0x456   : > { %6763 = vst [vmem:[%s8630_s20 + $0x220] sm:$0xff] %v6665_v33  ;;  %v6368_v37 = vmax.f32 %v5410_v35, %v6114_v36  ;;  %v7060_v33 = vld [vmem:[%s8475_s10 + $0x5e0] sm:$0xff] }
 0x458   : > { %v6466_v40 = vmax.f32 %v6270_v34, %v6368_v37 }
 0x459   : > { %v4005_v41 = vpop.f32.mrf.mxu0  ;;  %v4709_v42 = vpop.f32.mrf.mxu1 }
 0x45a   : > { %v6568_v45 = vadd.f32 %v9207_v12, %v6466_v40  ;;  %7352 = vmatmul.msk.f32.gmra.mxu2 %vm3479_vm1, %v7253_v38  ;;  %7549 = vmatmul.msk.f32.gmra.mxu3 %vm3479_vm1, %v7450_v39  ;;  %v6271_v47 = vmax.f32 %v4005_v41, %v4709_v42  ;;  %v7258_v40 = vld [vmem:[%s8475_s10 + $0x8f8] sm:$0xff]  ;;  %v7455_v41 = vld [vmem:[%s8475_s10 + $0xc08] sm:$0xff] }
 0x45c   : > { %v6666_v46 = vmax.f32 %v6568_v45, 0.0  ;;  %6958 = vmatmul.msk.f32.gmra.mxu0 %vm3479_vm1, %v3467_v43  ;;  %7155 = vmatmul.msk.f32.gmra.mxu1 %vm3479_vm1, %v7056_v44  ;;  %v3472_v45 = vld [vmem:[%s8475_s10 + $0x2d8] sm:$0xff] }
 0x45d   : > { %v5413_v48 = vpop.f32.mrf.mxu2  ;;  %v6117_v49 = vpop.f32.mrf.mxu3 }
 0x45e   : > { %6764 = vst [vmem:[%s8630_s20 + $0x228] sm:$0xff] %v6666_v46  ;;  %v6369_v50 = vmax.f32 %v5413_v48, %v6117_v49  ;;  %v7061_v46 = vld [vmem:[%s8475_s10 + $0x5e8] sm:$0xff] }
 0x460   : > { %v6467_v53 = vmax.f32 %v6271_v47, %v6369_v50 }
 0x461   : > { %v4008_v54 = vpop.f32.mrf.mxu0  ;;  %v4712_v55 = vpop.f32.mrf.mxu1 }
 0x462   : > { %v6569_v58 = vadd.f32 %v9207_v12, %v6467_v53  ;;  %7353 = vmatmul.msk.f32.gmra.mxu2 %vm3479_vm1, %v7254_v51  ;;  %7550 = vmatmul.msk.f32.gmra.mxu3 %vm3479_vm1, %v7451_v52  ;;  %v6272_v60 = vmax.f32 %v4008_v54, %v4712_v55  ;;  %v7259_v53 = vld [vmem:[%s8475_s10 + $0x900] sm:$0xff]  ;;  %v7456_v54 = vld [vmem:[%s8475_s10 + $0xc10] sm:$0xff] }
 0x464   : > { %v6667_v59 = vmax.f32 %v6569_v58, 0.0  ;;  %6959 = vmatmul.msk.f32.gmra.mxu0 %vm3479_vm1, %v3468_v56  ;;  %7156 = vmatmul.msk.f32.gmra.mxu1 %vm3479_vm1, %v7057_v57  ;;  %v3473_v58 = vld [vmem:[%s8475_s10 + $0x2e0] sm:$0xff] }
 0x465   : > { %v5416_v61 = vpop.f32.mrf.mxu2  ;;  %v6120_v62 = vpop.f32.mrf.mxu3 }
 0x466   : > { %6765 = vst [vmem:[%s8630_s20 + $0x230] sm:$0xff] %v6667_v59  ;;  %v6370_v63 = vmax.f32 %v5416_v61, %v6120_v62  ;;  %v7062_v59 = vld [vmem:[%s8475_s10 + $0x5f0] sm:$0xff] }
 0x468   : > { %v6468_v2 = vmax.f32 %v6272_v60, %v6370_v63 }
 0x469   : > { %v4011_v3 = vpop.f32.mrf.mxu0  ;;  %v4715_v4 = vpop.f32.mrf.mxu1 }
 0x46a   : > { %v6570_v7 = vadd.f32 %v9207_v12, %v6468_v2  ;;  %7354 = vmatmul.msk.f32.gmra.mxu2 %vm3479_vm1, %v7255_v0  ;;  %7551 = vmatmul.msk.f32.gmra.mxu3 %vm3479_vm1, %v7452_v1  ;;  %v6273_v14 = vmax.f32 %v4011_v3, %v4715_v4  ;;  %v7260_v2 = vld [vmem:[%s8475_s10 + $0x908] sm:$0xff]  ;;  %v7457_v3 = vld [vmem:[%s8475_s10 + $0xc18] sm:$0xff] }
 0x46c   : > { %v6668_v8 = vmax.f32 %v6570_v7, 0.0  ;;  %6960 = vmatmul.msk.f32.gmra.mxu0 %vm3479_vm1, %v3469_v5  ;;  %7157 = vmatmul.msk.f32.gmra.mxu1 %vm3479_vm1, %v7058_v6  ;;  %v3474_v7 = vld [vmem:[%s8475_s10 + $0x2e8] sm:$0xff] }
 0x46d   : > { %v5419_v9 = vpop.f32.mrf.mxu2  ;;  %v6123_v22 = vpop.f32.mrf.mxu3 }
 0x46e   : > { %6766 = vst [vmem:[%s8630_s20 + $0x238] sm:$0xff] %v6668_v8  ;;  %v6371_v10 = vmax.f32 %v5419_v9, %v6123_v22  ;;  %v7063_v8 = vld [vmem:[%s8475_s10 + $0x5f8] sm:$0xff] }
 0x470   : > { %v6469_v15 = vmax.f32 %v6273_v14, %v6371_v10 }
 0x471   : > { %v4014_v16 = vpop.f32.mrf.mxu0  ;;  %v4718_v17 = vpop.f32.mrf.mxu1 }
 0x472   : > { %v6571_v20 = vadd.f32 %v9207_v12, %v6469_v15  ;;  %7355 = vmatmul.msk.f32.gmra.mxu2 %vm3479_vm1, %v7256_v11  ;;  %7552 = vmatmul.msk.f32.gmra.mxu3 %vm3479_vm1, %v7453_v13  ;;  %v6274_v23 = vmax.f32 %v4014_v16, %v4718_v17  ;;  %v7261_v15 = vld [vmem:[%s8475_s10 + $0x910] sm:$0xff]  ;;  %v7458_v16 = vld [vmem:[%s8475_s10 + $0xc20] sm:$0xff] }
 0x474   : > { %v6669_v21 = vmax.f32 %v6571_v20, 0.0  ;;  %6961 = vmatmul.msk.f32.gmra.mxu0 %vm3479_vm1, %v3470_v18  ;;  %7158 = vmatmul.msk.f32.gmra.mxu1 %vm3479_vm1, %v7059_v19  ;;  %v3475_v20 = vld [vmem:[%s8475_s10 + $0x2f0] sm:$0xff] }
 0x475   : > { %v5422_v24 = vpop.f32.mrf.mxu2  ;;  %v6126_v25 = vpop.f32.mrf.mxu3 }
 0x476   : > { %6767 = vst [vmem:[%s8630_s20 + $0x240] sm:$0xff] %v6669_v21  ;;  %v6372_v26 = vmax.f32 %v5422_v24, %v6126_v25  ;;  %v7064_v21 = vld [vmem:[%s8475_s10 + $0x600] sm:$0xff] }
 0x478   : > { %v6470_v29 = vmax.f32 %v6274_v23, %v6372_v26 }
 0x479   : > { %v4017_v30 = vpop.f32.mrf.mxu0  ;;  %v4721_v31 = vpop.f32.mrf.mxu1 }
 0x47a   : > { %v6572_v34 = vadd.f32 %v9207_v12, %v6470_v29  ;;  %7356 = vmatmul.msk.f32.gmra.mxu2 %vm3479_vm1, %v7257_v27  ;;  %7553 = vmatmul.msk.f32.gmra.mxu3 %vm3479_vm1, %v7454_v28  ;;  %v6275_v36 = vmax.f32 %v4017_v30, %v4721_v31  ;;  %v7262_v29 = vld [vmem:[%s8475_s10 + $0x918] sm:$0xff]  ;;  %v7459_v30 = vld [vmem:[%s8475_s10 + $0xc28] sm:$0xff] }
 0x47c   : > { %v6670_v35 = vmax.f32 %v6572_v34, 0.0  ;;  %6962 = vmatmul.msk.f32.gmra.mxu0 %vm3479_vm1, %v3471_v32  ;;  %7159 = vmatmul.msk.f32.gmra.mxu1 %vm3479_vm1, %v7060_v33  ;;  %v3476_v34 = vld [vmem:[%s8475_s10 + $0x2f8] sm:$0xff] }
 0x47d   : > { %v5425_v37 = vpop.f32.mrf.mxu2  ;;  %v6129_v38 = vpop.f32.mrf.mxu3 }
 0x47e   : > { %6768 = vst [vmem:[%s8630_s20 + $0x248] sm:$0xff] %v6670_v35  ;;  %v6373_v39 = vmax.f32 %v5425_v37, %v6129_v38  ;;  %v7065_v35 = vld [vmem:[%s8475_s10 + $0x608] sm:$0xff] }
 0x480   : > { %v6471_v42 = vmax.f32 %v6275_v36, %v6373_v39 }
 0x481   : > { %v4020_v43 = vpop.f32.mrf.mxu0  ;;  %v4724_v44 = vpop.f32.mrf.mxu1 }
 0x482   : > { %v6573_v47 = vadd.f32 %v9207_v12, %v6471_v42  ;;  %7357 = vmatmul.msk.f32.gmra.mxu2 %vm3479_vm1, %v7258_v40  ;;  %7554 = vmatmul.msk.f32.gmra.mxu3 %vm3479_vm1, %v7455_v41  ;;  %v6276_v49 = vmax.f32 %v4020_v43, %v4724_v44  ;;  %v7263_v42 = vld [vmem:[%s8475_s10 + $0x920] sm:$0xff]  ;;  %v7460_v43 = vld [vmem:[%s8475_s10 + $0xc30] sm:$0xff] }
 0x484   : > { %v6671_v48 = vmax.f32 %v6573_v47, 0.0  ;;  %6963 = vmatmul.msk.f32.gmra.mxu0 %vm3479_vm1, %v3472_v45  ;;  %7160 = vmatmul.msk.f32.gmra.mxu1 %vm3479_vm1, %v7061_v46  ;;  %v3477_v47 = vld [vmem:[%s8475_s10 + $0x300] sm:$0xff] }
 0x485   : > { %v5428_v50 = vpop.f32.mrf.mxu2  ;;  %v6132_v51 = vpop.f32.mrf.mxu3 }
 0x486   : > { %6769 = vst [vmem:[%s8630_s20 + $0x250] sm:$0xff] %v6671_v48  ;;  %v6374_v52 = vmax.f32 %v5428_v50, %v6132_v51  ;;  %v7066_v48 = vld [vmem:[%s8475_s10 + $0x610] sm:$0xff] }
 0x488   : > { %v6472_v55 = vmax.f32 %v6276_v49, %v6374_v52 }
 0x489   : > { %v4023_v56 = vpop.f32.mrf.mxu0  ;;  %v4727_v57 = vpop.f32.mrf.mxu1 }
 0x48a   : > { %v6574_v60 = vadd.f32 %v9207_v12, %v6472_v55  ;;  %7358 = vmatmul.msk.f32.gmra.mxu2 %vm3479_vm1, %v7259_v53  ;;  %7555 = vmatmul.msk.f32.gmra.mxu3 %vm3479_vm1, %v7456_v54  ;;  %v6277_v62 = vmax.f32 %v4023_v56, %v4727_v57  ;;  %v7264_v55 = vld [vmem:[%s8475_s10 + $0x928] sm:$0xff]  ;;  %v7461_v56 = vld [vmem:[%s8475_s10 + $0xc38] sm:$0xff] }
 0x48c   : > { %v6672_v61 = vmax.f32 %v6574_v60, 0.0  ;;  %6964 = vmatmul.msk.f32.gmra.mxu0 %vm3479_vm1, %v3473_v58  ;;  %7161 = vmatmul.msk.f32.gmra.mxu1 %vm3479_vm1, %v7062_v59  ;;  %v3478_v60 = vld [vmem:[%s8475_s10 + $0x308] sm:$0xff] }
 0x48d   : > { %v5431_v63 = vpop.f32.mrf.mxu2  ;;  %v6135_v0 = vpop.f32.mrf.mxu3 }
 0x48e   : > { %6770 = vst [vmem:[%s8630_s20 + $0x258] sm:$0xff] %v6672_v61  ;;  %v6375_v1 = vmax.f32 %v5431_v63, %v6135_v0  ;;  %v7067_v61 = vld [vmem:[%s8475_s10 + $0x618] sm:$0xff] }
 0x490   : > { %v6473_v4 = vmax.f32 %v6277_v62, %v6375_v1 }
 0x491   : > { %v4026_v5 = vpop.f32.mrf.mxu0  ;;  %v4730_v6 = vpop.f32.mrf.mxu1 }
 0x492   : > { %v6575_v14 = vadd.f32 %v9207_v12, %v6473_v4  ;;  %7359 = vmatmul.msk.f32.gmra.mxu2 %vm3479_vm1, %v7260_v2  ;;  %7556 = vmatmul.msk.f32.gmra.mxu3 %vm3479_vm1, %v7457_v3  ;;  %v6278_v22 = vmax.f32 %v4026_v5, %v4730_v6 }
 0x494   : > { %v6673_v9 = vmax.f32 %v6575_v14, 0.0  ;;  %6965 = vmatmul.msk.f32.gmra.mxu0 %vm3479_vm1, %v3474_v7  ;;  %7162 = vmatmul.msk.f32.gmra.mxu1 %vm3479_vm1, %v7063_v8 }
 0x495   : > { %v5434_v10 = vpop.f32.mrf.mxu2  ;;  %v6138_v11 = vpop.f32.mrf.mxu3 }
 0x496   : > { %6771 = vst [vmem:[%s8630_s20 + $0x260] sm:$0xff] %v6673_v9  ;;  %v6376_v13 = vmax.f32 %v5434_v10, %v6138_v11 }
 0x498   : > { %v6474_v17 = vmax.f32 %v6278_v22, %v6376_v13 }
 0x499   : > { %v4029_v18 = vpop.f32.mrf.mxu0  ;;  %v4733_v19 = vpop.f32.mrf.mxu1 }
 0x49a   : > { %v6576_v23 = vadd.f32 %v9207_v12, %v6474_v17  ;;  %7360 = vmatmul.msk.f32.gmra.mxu2 %vm3479_vm1, %v7261_v15  ;;  %7557 = vmatmul.msk.f32.gmra.mxu3 %vm3479_vm1, %v7458_v16  ;;  %v6279_v25 = vmax.f32 %v4029_v18, %v4733_v19 }
 0x49c   : > { %v6674_v24 = vmax.f32 %v6576_v23, 0.0  ;;  %6966 = vmatmul.msk.f32.gmra.mxu0 %vm3479_vm1, %v3475_v20  ;;  %7163 = vmatmul.msk.f32.gmra.mxu1 %vm3479_vm1, %v7064_v21 }
 0x49d   : > { %v5437_v26 = vpop.f32.mrf.mxu2  ;;  %v6141_v27 = vpop.f32.mrf.mxu3 }
 0x49e   : > { %6772 = vst [vmem:[%s8630_s20 + $0x268] sm:$0xff] %v6674_v24  ;;  %v6377_v28 = vmax.f32 %v5437_v26, %v6141_v27 }
 0x4a0   : > { %v6475_v31 = vmax.f32 %v6279_v25, %v6377_v28 }
 0x4a1   : > { %v4032_v32 = vpop.f32.mrf.mxu0  ;;  %v4736_v33 = vpop.f32.mrf.mxu1 }
 0x4a2   : > { %v6577_v36 = vadd.f32 %v9207_v12, %v6475_v31  ;;  %7361 = vmatmul.msk.f32.gmra.mxu2 %vm3479_vm1, %v7262_v29  ;;  %7558 = vmatmul.msk.f32.gmra.mxu3 %vm3479_vm1, %v7459_v30  ;;  %v6280_v38 = vmax.f32 %v4032_v32, %v4736_v33 }
 0x4a4   : > { %v6675_v37 = vmax.f32 %v6577_v36, 0.0  ;;  %6967 = vmatmul.msk.f32.gmra.mxu0 %vm3479_vm1, %v3476_v34  ;;  %7164 = vmatmul.msk.f32.gmra.mxu1 %vm3479_vm1, %v7065_v35 }
 0x4a5   : > { %v5440_v39 = vpop.f32.mrf.mxu2  ;;  %v6144_v40 = vpop.f32.mrf.mxu3 }
 0x4a6   : > { %6773 = vst [vmem:[%s8630_s20 + $0x270] sm:$0xff] %v6675_v37  ;;  %v6378_v41 = vmax.f32 %v5440_v39, %v6144_v40 }
 0x4a8   : > { %v6476_v44 = vmax.f32 %v6280_v38, %v6378_v41 }
 0x4a9   : > { %v4035_v45 = vpop.f32.mrf.mxu0  ;;  %v4739_v46 = vpop.f32.mrf.mxu1 }
 0x4aa   : > { %v6578_v49 = vadd.f32 %v9207_v12, %v6476_v44  ;;  %7362 = vmatmul.msk.f32.gmra.mxu2 %vm3479_vm1, %v7263_v42  ;;  %7559 = vmatmul.msk.f32.gmra.mxu3 %vm3479_vm1, %v7460_v43  ;;  %v6281_v51 = vmax.f32 %v4035_v45, %v4739_v46 }
 0x4ac   : > { %v6676_v50 = vmax.f32 %v6578_v49, 0.0  ;;  %6968 = vmatmul.msk.f32.gmra.mxu0 %vm3479_vm1, %v3477_v47  ;;  %7165 = vmatmul.msk.f32.gmra.mxu1 %vm3479_vm1, %v7066_v48 }
 0x4ad   : > { %v5443_v52 = vpop.f32.mrf.mxu2  ;;  %v6147_v53 = vpop.f32.mrf.mxu3 }
 0x4ae   : > { %6774 = vst [vmem:[%s8630_s20 + $0x278] sm:$0xff] %v6676_v50  ;;  %v6379_v54 = vmax.f32 %v5443_v52, %v6147_v53 }
 0x4b0   : > { %v6477_v57 = vmax.f32 %v6281_v51, %v6379_v54 }
 0x4b1   : > { %v4038_v58 = vpop.f32.mrf.mxu0  ;;  %v4742_v59 = vpop.f32.mrf.mxu1 }
 0x4b2   : > { %v6579_v62 = vadd.f32 %v9207_v12, %v6477_v57  ;;  %7363 = vmatmul.msk.f32.gmra.mxu2 %vm3479_vm1, %v7264_v55  ;;  %7560 = vmatmul.msk.f32.gmra.mxu3 %vm3479_vm1, %v7461_v56  ;;  %v6282_v0 = vmax.f32 %v4038_v58, %v4742_v59 }
 0x4b4   : > { %v6677_v63 = vmax.f32 %v6579_v62, 0.0  ;;  %6969 = vmatmul.msk.f32.gmra.mxu0 %vm3479_vm1, %v3478_v60  ;;  %7166 = vmatmul.msk.f32.gmra.mxu1 %vm3479_vm1, %v7067_v61 }
 0x4b5   : > { %v5446_v1 = vpop.f32.mrf.mxu2  ;;  %v6150_v2 = vpop.f32.mrf.mxu3 }
 0x4b6   : > { %6775 = vst [vmem:[%s8630_s20 + $0x280] sm:$0xff] %v6677_v63  ;;  %v6380_v3 = vmax.f32 %v5446_v1, %v6150_v2 }
 0x4b8   : > { %v6478_v4 = vmax.f32 %v6282_v0, %v6380_v3 }
 0x4b9   : > { %v4041_v5 = vpop.f32.mrf.mxu0  ;;  %v4745_v6 = vpop.f32.mrf.mxu1 }
 0x4ba   : > { %v6580_v7 = vadd.f32 %v9207_v12, %v6478_v4  ;;  %v6283_v14 = vmax.f32 %v4041_v5, %v4745_v6 }
 0x4bc   : > { %v6678_v8 = vmax.f32 %v6580_v7, 0.0 }
 0x4bd   : > { %v5449_v9 = vpop.f32.mrf.mxu2  ;;  %v6153_v22 = vpop.f32.mrf.mxu3 }
 0x4be   : > { %6776 = vst [vmem:[%s8630_s20 + $0x288] sm:$0xff] %v6678_v8  ;;  %v6381_v10 = vmax.f32 %v5449_v9, %v6153_v22 }
 0x4c0   : > { %v6479_v11 = vmax.f32 %v6283_v14, %v6381_v10 }
 0x4c1   : > { %v4044_v13 = vpop.f32.mrf.mxu0  ;;  %v4748_v15 = vpop.f32.mrf.mxu1 }
 0x4c2   : > { %v6581_v16 = vadd.f32 %v9207_v12, %v6479_v11  ;;  %v6284_v18 = vmax.f32 %v4044_v13, %v4748_v15 }
 0x4c4   : > { %v6679_v17 = vmax.f32 %v6581_v16, 0.0 }
 0x4c5   : > { %v5452_v19 = vpop.f32.mrf.mxu2  ;;  %v6156_v20 = vpop.f32.mrf.mxu3 }
 0x4c6   : > { %6777 = vst [vmem:[%s8630_s20 + $0x290] sm:$0xff] %v6679_v17  ;;  %v6382_v21 = vmax.f32 %v5452_v19, %v6156_v20 }
 0x4c8   : > { %v6480_v23 = vmax.f32 %v6284_v18, %v6382_v21 }
 0x4c9   : > { %v4047_v24 = vpop.f32.mrf.mxu0  ;;  %v4751_v25 = vpop.f32.mrf.mxu1 }
 0x4ca   : > { %v6582_v26 = vadd.f32 %v9207_v12, %v6480_v23  ;;  %v6285_v28 = vmax.f32 %v4047_v24, %v4751_v25 }
 0x4cc   : > { %v6680_v27 = vmax.f32 %v6582_v26, 0.0  ;;  %v9466_v26 = vld [vmem:[%s9496_s2] ss:$0 sm:$0xff] }
 0x4cd   : > { %v5455_v29 = vpop.f32.mrf.mxu2  ;;  %v6159_v30 = vpop.f32.mrf.mxu3 }
 0x4ce   : > { %6778 = vst [vmem:[%s8630_s20 + $0x298] sm:$0xff] %v6680_v27  ;;  %v6383_v31 = vmax.f32 %v5455_v29, %v6159_v30 }
 0x4d0   : > { %v6481_v32 = vmax.f32 %v6285_v28, %v6383_v31 }
 0x4d1   : > { %v4050_v33 = vpop.f32.mrf.mxu0  ;;  %v4754_v34 = vpop.f32.mrf.mxu1 }
 0x4d2   : > { %v6583_v35 = vadd.f32 %v9207_v12, %v6481_v32  ;;  %v6286_v37 = vmax.f32 %v4050_v33, %v4754_v34 }
 0x4d4   : > { %v6681_v36 = vmax.f32 %v6583_v35, 0.0 }
 0x4d5   : > { %v5458_v38 = vpop.f32.mrf.mxu2  ;;  %v6162_v39 = vpop.f32.mrf.mxu3 }
 0x4d6   : > { %6779 = vst [vmem:[%s8630_s20 + $0x2a0] sm:$0xff] %v6681_v36  ;;  %v6384_v40 = vmax.f32 %v5458_v38, %v6162_v39 }
 0x4d8   : > { %v6482_v41 = vmax.f32 %v6286_v37, %v6384_v40 }
 0x4d9   : > { %v4053_v42 = vpop.f32.mrf.mxu0  ;;  %v4757_v43 = vpop.f32.mrf.mxu1 }
 0x4da   : > { %v6584_v44 = vadd.f32 %v9207_v12, %v6482_v41  ;;  %v6287_v46 = vmax.f32 %v4053_v42, %v4757_v43 }
 0x4dc   : > { %v6682_v45 = vmax.f32 %v6584_v44, 0.0 }
 0x4dd   : > { %v5461_v47 = vpop.f32.mrf.mxu2  ;;  %v6165_v48 = vpop.f32.mrf.mxu3 }
 0x4de   : > { %6780 = vst [vmem:[%s8630_s20 + $0x2a8] sm:$0xff] %v6682_v45  ;;  %v6385_v49 = vmax.f32 %v5461_v47, %v6165_v48 }
 0x4e0   : > { %v6483_v50 = vmax.f32 %v6287_v46, %v6385_v49 }
 0x4e1   : > { %v4056_v51 = vpop.f32.mrf.mxu0  ;;  %v4760_v52 = vpop.f32.mrf.mxu1 }
 0x4e2   : > { %v6585_v53 = vadd.f32 %v9207_v12, %v6483_v50  ;;  %v6288_v55 = vmax.f32 %v4056_v51, %v4760_v52 }
 0x4e4   : > { %v6683_v54 = vmax.f32 %v6585_v53, 0.0 }
 0x4e5   : > { %v5464_v56 = vpop.f32.mrf.mxu2  ;;  %v6168_v57 = vpop.f32.mrf.mxu3 }
 0x4e6   : > { %6781 = vst [vmem:[%s8630_s20 + $0x2b0] sm:$0xff] %v6683_v54  ;;  %v6386_v58 = vmax.f32 %v5464_v56, %v6168_v57 }
 0x4e8   : > { %v6484_v59 = vmax.f32 %v6288_v55, %v6386_v58 }
 0x4e9   : > { %v4059_v60 = vpop.f32.mrf.mxu0  ;;  %v4763_v61 = vpop.f32.mrf.mxu1 }
 0x4ea   : > { %v6586_v62 = vadd.f32 %v9207_v12, %v6484_v59  ;;  %v6289_v0 = vmax.f32 %v4059_v60, %v4763_v61 }
 0x4ec   : > { %v6684_v63 = vmax.f32 %v6586_v62, 0.0 }
 0x4ed   : > { %v5467_v1 = vpop.f32.mrf.mxu2  ;;  %v6171_v2 = vpop.f32.mrf.mxu3 }
 0x4ee   : > { %6782 = vst [vmem:[%s8630_s20 + $0x2b8] sm:$0xff] %v6684_v63  ;;  %v6387_v3 = vmax.f32 %v5467_v1, %v6171_v2 }
 0x4f0   : > { %v6485_v4 = vmax.f32 %v6289_v0, %v6387_v3 }
 0x4f1   : > { %v4062_v5 = vpop.f32.mrf.mxu0  ;;  %v4766_v6 = vpop.f32.mrf.mxu1 }
 0x4f2   : > { %v6587_v7 = vadd.f32 %v9207_v12, %v6485_v4  ;;  %v6290_v14 = vmax.f32 %v4062_v5, %v4766_v6 }
 0x4f4   : > { %v6685_v8 = vmax.f32 %v6587_v7, 0.0 }
 0x4f5   : > { %v5470_v9 = vpop.f32.mrf.mxu2  ;;  %v6174_v22 = vpop.f32.mrf.mxu3 }
 0x4f6   : > { %6783 = vst [vmem:[%s8630_s20 + $0x2c0] sm:$0xff] %v6685_v8  ;;  %v6388_v10 = vmax.f32 %v5470_v9, %v6174_v22 }
 0x4f8   : > { %v6486_v11 = vmax.f32 %v6290_v14, %v6388_v10 }
 0x4f9   : > { %v4065_v13 = vpop.f32.mrf.mxu0  ;;  %v4769_v15 = vpop.f32.mrf.mxu1 }
 0x4fa   : > { %v6588_v16 = vadd.f32 %v9207_v12, %v6486_v11  ;;  %v6291_v18 = vmax.f32 %v4065_v13, %v4769_v15 }
 0x4fc   : > { %v6686_v17 = vmax.f32 %v6588_v16, 0.0 }
 0x4fd   : > { %v5473_v19 = vpop.f32.mrf.mxu2  ;;  %v6177_v20 = vpop.f32.mrf.mxu3 }
 0x4fe   : > { %6784 = vst [vmem:[%s8630_s20 + $0x2c8] sm:$0xff] %v6686_v17  ;;  %v6389_v21 = vmax.f32 %v5473_v19, %v6177_v20 }
 0x500   : > { %v6487_v23 = vmax.f32 %v6291_v18, %v6389_v21 }
 0x501   : > { %v4068_v24 = vpop.f32.mrf.mxu0  ;;  %v4772_v25 = vpop.f32.mrf.mxu1 }
 0x502   : > { %v6589_v27 = vadd.f32 %v9466_v26, %v6487_v23  ;;  %v6292_v12 = vmax.f32 %v4068_v24, %v4772_v25 }
 0x504   : > { %v6687_v28 = vmax.f32 %v6589_v27, 0.0 }
 0x505   : > { %v5476_v29 = vpop.f32.mrf.mxu2  ;;  %v6180_v30 = vpop.f32.mrf.mxu3 }
 0x506   : > { %6785 = vst [vmem:[%s8630_s20 + $0x2d0] sm:$0xff] %v6687_v28  ;;  %v6390_v31 = vmax.f32 %v5476_v29, %v6180_v30 }
 0x508   : > { %v6488_v32 = vmax.f32 %v6292_v12, %v6390_v31 }
 0x509   : > { %v4071_v33 = vpop.f32.mrf.mxu0  ;;  %v4775_v34 = vpop.f32.mrf.mxu1 }
 0x50a   : > { %v6590_v35 = vadd.f32 %v9466_v26, %v6488_v32  ;;  %v6293_v37 = vmax.f32 %v4071_v33, %v4775_v34 }
 0x50c   : > { %v6688_v36 = vmax.f32 %v6590_v35, 0.0 }
 0x50d   : > { %v5479_v38 = vpop.f32.mrf.mxu2  ;;  %v6183_v39 = vpop.f32.mrf.mxu3 }
 0x50e   : > { %6786 = vst [vmem:[%s8630_s20 + $0x2d8] sm:$0xff] %v6688_v36  ;;  %v6391_v40 = vmax.f32 %v5479_v38, %v6183_v39 }
 0x510   : > { %v6489_v41 = vmax.f32 %v6293_v37, %v6391_v40 }
 0x511   : > { %v4074_v42 = vpop.f32.mrf.mxu0  ;;  %v4778_v43 = vpop.f32.mrf.mxu1 }
 0x512   : > { %v6591_v44 = vadd.f32 %v9466_v26, %v6489_v41  ;;  %v6294_v46 = vmax.f32 %v4074_v42, %v4778_v43 }
 0x514   : > { %v6689_v45 = vmax.f32 %v6591_v44, 0.0 }
 0x515   : > { %v5482_v47 = vpop.f32.mrf.mxu2  ;;  %v6186_v48 = vpop.f32.mrf.mxu3 }
 0x516   : > { %6787 = vst [vmem:[%s8630_s20 + $0x2e0] sm:$0xff] %v6689_v45  ;;  %v6392_v49 = vmax.f32 %v5482_v47, %v6186_v48 }
 0x518   : > { %v6490_v50 = vmax.f32 %v6294_v46, %v6392_v49 }
 0x519   : > { %v4077_v51 = vpop.f32.mrf.mxu0  ;;  %v4781_v52 = vpop.f32.mrf.mxu1 }
 0x51a   : > { %v6592_v53 = vadd.f32 %v9466_v26, %v6490_v50  ;;  %v6295_v55 = vmax.f32 %v4077_v51, %v4781_v52 }
 0x51c   : > { %v6690_v54 = vmax.f32 %v6592_v53, 0.0 }
 0x51d   : > { %v5485_v56 = vpop.f32.mrf.mxu2  ;;  %v6189_v57 = vpop.f32.mrf.mxu3 }
 0x51e   : > { %6788 = vst [vmem:[%s8630_s20 + $0x2e8] sm:$0xff] %v6690_v54  ;;  %v6393_v58 = vmax.f32 %v5485_v56, %v6189_v57 }
 0x520   : > { %v6491_v59 = vmax.f32 %v6295_v55, %v6393_v58 }
 0x521   : > { %v4080_v60 = vpop.f32.mrf.mxu0  ;;  %v4784_v61 = vpop.f32.mrf.mxu1 }
 0x522   : > { %v6593_v62 = vadd.f32 %v9466_v26, %v6491_v59  ;;  %v6296_v0 = vmax.f32 %v4080_v60, %v4784_v61 }
 0x524   : > { %v6691_v63 = vmax.f32 %v6593_v62, 0.0 }
 0x525   : > { %v5488_v1 = vpop.f32.mrf.mxu2  ;;  %v6192_v2 = vpop.f32.mrf.mxu3 }
 0x526   : > { %6789 = vst [vmem:[%s8630_s20 + $0x2f0] sm:$0xff] %v6691_v63  ;;  %v6394_v3 = vmax.f32 %v5488_v1, %v6192_v2 }
 0x528   : > { %v6492_v4 = vmax.f32 %v6296_v0, %v6394_v3 }
 0x529   : > { %v4083_v5 = vpop.f32.mrf.mxu0  ;;  %v4787_v6 = vpop.f32.mrf.mxu1 }
 0x52a   : > { %v6594_v7 = vadd.f32 %v9466_v26, %v6492_v4  ;;  %v6297_v14 = vmax.f32 %v4083_v5, %v4787_v6 }
 0x52c   : > { %v6692_v8 = vmax.f32 %v6594_v7, 0.0 }
 0x52d   : > { %v5491_v9 = vpop.f32.mrf.mxu2  ;;  %v6195_v22 = vpop.f32.mrf.mxu3 }
 0x52e   : > { %6790 = vst [vmem:[%s8630_s20 + $0x2f8] sm:$0xff] %v6692_v8  ;;  %v6395_v10 = vmax.f32 %v5491_v9, %v6195_v22 }
 0x530   : > { %v6493_v11 = vmax.f32 %v6297_v14, %v6395_v10 }
 0x531   : > { %v4086_v13 = vpop.f32.mrf.mxu0  ;;  %v4790_v15 = vpop.f32.mrf.mxu1 }
 0x532   : > { %v6595_v16 = vadd.f32 %v9466_v26, %v6493_v11  ;;  %v6298_v18 = vmax.f32 %v4086_v13, %v4790_v15 }
 0x534   : > { %v6693_v17 = vmax.f32 %v6595_v16, 0.0 }
 0x535   : > { %v5494_v19 = vpop.f32.mrf.mxu2  ;;  %v6198_v20 = vpop.f32.mrf.mxu3 }
 0x536   : > { %6791 = vst [vmem:[%s8630_s20 + $0x300] sm:$0xff] %v6693_v17  ;;  %v6396_v21 = vmax.f32 %v5494_v19, %v6198_v20 }
 0x538   : > { %v6494_v23 = vmax.f32 %v6298_v18, %v6396_v21 }
 0x53a   : > { %v6596_v24 = vadd.f32 %v9466_v26, %v6494_v23 }
 0x53c   : > { %v6694_v25 = vmax.f32 %v6596_v24, 0.0 }
 0x53e   : > { %6792 = vst [vmem:[%s8630_s20 + $0x308] sm:$0xff] %v6694_v25 }
 0x53f PF: > { %p10_p9 = scmp.ge.s32.totalorder %s7655_s16, 4   ;;  %s9498_s12 = smov %s7612_s13 }
 0x540   : > { %s9499_s13 = smov %s7664_s19  ;;  %s9500_s14 = smov %s7655_s16 }
 0x541   :  { %12 = sbr.rel (!%p10_p9) target bundleno = 2 (0x2), region = 128 }

// kernel: lenet_forward.3
= control target key start
LH: loop header
LB: loop body
LE: loop exit
PB: predicated region body
PF: predicated region fallthrough
CT: control target
= control target key end

     0   :  { %vm177_vm0 = vcmask 1045504   ;;  %vm101_vm1 = vcmask 179200   ;;  %vm1429_vm2 = vcmask 130048   ;;  %s4117_s1 = inlined_call_operand.vmem [shape: f32[150,128], index: 1, kind: input, shape index: {}]   ;;  %s4118_s0 = inlined_call_operand.vmem [shape: f32[4,200,150], index: 0, kind: input, shape index: {}]   ;;  %s4119_s2 = inlined_call_operand.vmem [shape: f32[1,128], index: 2, kind: input, shape index: {}]   ;;  %s4120_s3 = inlined_call_operand.vmem [shape: f32[25,16,128], index: 3, kind: input, shape index: {}]   ;;  %s4121_s4 = inlined_call_operand.vmem [shape: f32[1,128], index: 4, kind: input, shape index: {}]   ;;  %s4122_s6 = inlined_call_operand.vmem [shape: f32[1,128], index: 6, kind: input, shape index: {}]   ;;  %s4123_s5 = inlined_call_operand.vmem [shape: f32[128,128], index: 5, kind: input, shape index: {}]   ;;  %s4124_s7 = inlined_call_operand.vmem [shape: f32[128,128], index: 7, kind: input, shape index: {}]   ;;  %s4125_s8 = inlined_call_operand.vmem [shape: f32[1,128], index: 8, kind: input, shape index: {}]   ;;  %s4126_s9 = inlined_call_operand.vmem [shape: f32[8,128], index: 9, kind: output, shape index: {}]  }
   0x1   :  { %v2579_v0 = vld [vmem:[%s4117_s1 + $0x78] sm:$0xff]  ;;  %v2584_v1 = vld [vmem:[%s4117_s1 + $0x90] sm:$0x3f]  ;;  %v2597_v3 = vld [vmem:[%s4117_s1 + $0x88] sm:$0xff] }
   0x2   :  { %v2589_v2 = vld [vmem:[%s4117_s1 + $0x70] sm:$0xff]  ;;  %181 = vmatpush.msra.mxu0 %v2579_v0  ;;  %2189 = vmatpush.msk.msra.mxu1 %vm177_vm0, %v2584_v1  ;;  %v2603_v4 = vld [vmem:[%s4117_s1 + $0x68] sm:$0xff]  ;;  %v2610_v5 = vld [vmem:[%s4117_s1 + $0x80] sm:$0xff] }
   0x3   :  { %491 = vmatpush.msra.mxu2 %v2579_v0  ;;  %2516 = vmatpush.msk.msra.mxu3 %vm177_vm0, %v2584_v1  ;;  %v52_v6 = vld [vmem:[%s4118_s0 + $0x8] sm:$0xff]  ;;  %v2621_v7 = vld [vmem:[%s4117_s1 + $0x60] sm:$0xff]  ;;  %v98_v8 = vld [vmem:[%s4118_s0 + $0x178] sm:$0xff] }
   0x4   :  { %182 = vmatpush.msra.mxu0 %v2589_v2  ;;  %287 = vmatpush.msra.mxu1 %v2597_v3  ;;  %v2634_v9 = vld [vmem:[%s4117_s1 + $0x58] sm:$0xff]  ;;  %v2643_v10 = vld [vmem:[%s4117_s1 + $0x50] sm:$0xff]  ;;  %v2652_v11 = vld [vmem:[%s4117_s1 + $0x48] sm:$0xff] }
   0x5   :  { %492 = vmatpush.msra.mxu2 %v2589_v2  ;;  %2517 = vmatpush.msra.mxu3 %v2597_v3  ;;  %v54_v12 = vld [vmem:[%s4118_s0 + $0x18] sm:$0xff]  ;;  %v2664_v13 = vld [vmem:[%s4117_s1 + $0x40] sm:$0xff]  ;;  %v100_v14 = vld [vmem:[%s4118_s0 + $0x188] sm:$0xff] }
   0x6   :  { %183 = vmatpush.msra.mxu0 %v2603_v4  ;;  %288 = vmatpush.msra.mxu1 %v2610_v5  ;;  %v2677_v15 = vld [vmem:[%s4117_s1 + $0x38] sm:$0xff]  ;;  %v2687_v16 = vld [vmem:[%s4117_s1 + $0x30] sm:$0xff]  ;;  %v2695_v17 = vld [vmem:[%s4117_s1 + $0x28] sm:$0xff] }
   0x7   :  { %493 = vmatpush.msra.mxu2 %v2603_v4  ;;  %2190 = vmatmul.msk.f32.vlgmr.msra.gmra.mxu1 %vm101_vm1, %v52_v6  ;;  %v56_v18 = vld [vmem:[%s4118_s0 + $0x28] sm:$0xff]  ;;  %v2707_v19 = vld [vmem:[%s4117_s1 + $0x20] sm:$0xff]  ;;  %v2216_v20 = vld [vmem:[%s4118_s0 + $0x198] sm:$0xff] }
   0x8   :  { %184 = vmatpush.msra.mxu0 %v2621_v7  ;;  %2518 = vmatpush.msra.mxu3 %v2610_v5  ;;  %v2720_v21 = vld [vmem:[%s4117_s1 + $0x18] sm:$0xff]  ;;  %v2729_v22 = vld [vmem:[%s4117_s1 + $0x10] sm:$0xff]  ;;  %v2737_v23 = vld [vmem:[%s4117_s1 + $0x8] sm:$0xff] }
   0x9   :  { %494 = vmatpush.msra.mxu2 %v2621_v7  ;;  %2213 = vmatmul.msk.f32.vlgmr.msra.gmra.mxu3 %vm101_vm1, %v98_v8  ;;  %v58_v24 = vld [vmem:[%s4118_s0 + $0x38] sm:$0xff]  ;;  %v2748_v25 = vld [vmem:[%s4117_s1] sm:$0xff]  ;;  %v2215_v27 = vld [vmem:[%s4118_s0 + $0x190] sm:$0xff] }
   0xa   :  { %185 = vmatpush.msra.mxu0 %v2634_v9  ;;  %2265 = vmatpush.msk.msrb.mxu3 %vm177_vm0, %v2584_v1  ;;  %v51_v26 = vld [vmem:[%s4118_s0] sm:$0xff]  ;;  %v2218_v28 = vld [vmem:[%s4118_s0 + $0x1a8] sm:$0xff]  ;;  %v53_v30 = vld [vmem:[%s4118_s0 + $0x10] sm:$0xff] }
   0xb   :  { %495 = vmatpush.msra.mxu2 %v2634_v9  ;;  %801 = vmatpush.msrb.mxu1 %v2579_v0  ;;  %v60_v29 = vld [vmem:[%s4118_s0 + $0x48] sm:$0xff]  ;;  %v2217_v31 = vld [vmem:[%s4118_s0 + $0x1a0] sm:$0xff]  ;;  %v2220_v32 = vld [vmem:[%s4118_s0 + $0x1b8] sm:$0xff] }
   0xc   :  { %186 = vmatpush.msra.mxu0 %v2643_v10  ;;  %597 = vmatpush.msrb.mxu3 %v2597_v3  ;;  %v62_v33 = vld [vmem:[%s4118_s0 + $0x58] sm:$0xff]  ;;  %v55_v34 = vld [vmem:[%s4118_s0 + $0x20] sm:$0xff]  ;;  %v2219_v35 = vld [vmem:[%s4118_s0 + $0x1b0] sm:$0xff] }
   0xd   :  { %496 = vmatpush.msra.mxu2 %v2643_v10  ;;  %802 = vmatpush.msrb.mxu1 %v2589_v2  ;;  %v2222_v36 = vld [vmem:[%s4118_s0 + $0x1c8] sm:$0xff]  ;;  %v57_v38 = vld [vmem:[%s4118_s0 + $0x30] sm:$0xff]  ;;  %v2221_v39 = vld [vmem:[%s4118_s0 + $0x1c0] sm:$0xff] }
   0xe   :  { %187 = vmatpush.msra.mxu0 %v2652_v11  ;;  %598 = vmatpush.msrb.mxu3 %v2610_v5  ;;  %v64_v37 = vld [vmem:[%s4118_s0 + $0x68] sm:$0xff]  ;;  %v2224_v40 = vld [vmem:[%s4118_s0 + $0x1d8] sm:$0xff]  ;;  %v59_v42 = vld [vmem:[%s4118_s0 + $0x40] sm:$0xff] }
   0xf   :  { %497 = vmatpush.msra.mxu2 %v2652_v11  ;;  %2191 = vmatmul.msk.f32.gmra.mxu1 %vm101_vm1, %v54_v12  ;;  %v66_v41 = vld [vmem:[%s4118_s0 + $0x78] sm:$0xff]  ;;  %v2223_v43 = vld [vmem:[%s4118_s0 + $0x1d0] sm:$0xff]  ;;  %v2226_v44 = vld [vmem:[%s4118_s0 + $0x1e8] sm:$0xff] }
  0x10   :  { %188 = vmatpush.msra.mxu0 %v2664_v13  ;;  %2341 = vmatpush.msk.msra.mxu3 %vm177_vm0, %v2584_v1  ;;  %v68_v45 = vld [vmem:[%s4118_s0 + $0x88] sm:$0xff]  ;;  %v61_v46 = vld [vmem:[%s4118_s0 + $0x50] sm:$0xff]  ;;  %v2225_v47 = vld [vmem:[%s4118_s0 + $0x1e0] sm:$0xff] }
  0x11   :  { %498 = vmatpush.msra.mxu2 %v2664_v13  ;;  %2214 = vmatmul.msk.f32.gmra.mxu3 %vm101_vm1, %v100_v14  ;;  %v2228_v48 = vld [vmem:[%s4118_s0 + $0x1f8] sm:$0xff]  ;;  %v63_v50 = vld [vmem:[%s4118_s0 + $0x60] sm:$0xff]  ;;  %v2227_v51 = vld [vmem:[%s4118_s0 + $0x1f0] sm:$0xff] }
  0x12   :  { %189 = vmatpush.msra.mxu0 %v2677_v15  ;;  %803 = vmatpush.msrb.mxu1 %v2603_v4  ;;  %v70_v49 = vld [vmem:[%s4118_s0 + $0x98] sm:$0xff]  ;;  %v2230_v52 = vld [vmem:[%s4118_s0 + $0x208] sm:$0xff]  ;;  %v65_v54 = vld [vmem:[%s4118_s0 + $0x70] sm:$0xff] }
  0x13   :  { %499 = vmatpush.msra.mxu2 %v2677_v15  ;;  %907 = vmatpush.msra.mxu3 %v2597_v3  ;;  %v72_v53 = vld [vmem:[%s4118_s0 + $0xa8] sm:$0xff]  ;;  %v2229_v55 = vld [vmem:[%s4118_s0 + $0x200] sm:$0xff]  ;;  %v2232_v56 = vld [vmem:[%s4118_s0 + $0x218] sm:$0xff] }
  0x14   :  { %190 = vmatpush.msra.mxu0 %v2687_v16  ;;  %804 = vmatpush.msrb.mxu1 %v2621_v7  ;;  %v74_v57 = vld [vmem:[%s4118_s0 + $0xb8] sm:$0xff]  ;;  %v67_v58 = vld [vmem:[%s4118_s0 + $0x80] sm:$0xff]  ;;  %v2231_v59 = vld [vmem:[%s4118_s0 + $0x210] sm:$0xff] }
  0x15   :  { %500 = vmatpush.msra.mxu2 %v2687_v16  ;;  %908 = vmatpush.msra.mxu3 %v2610_v5  ;;  %v2234_v60 = vld [vmem:[%s4118_s0 + $0x228] sm:$0xff]  ;;  %v69_v62 = vld [vmem:[%s4118_s0 + $0x90] sm:$0xff]  ;;  %v2233_v63 = vld [vmem:[%s4118_s0 + $0x220] sm:$0xff] }
  0x16   :  { %191 = vmatpush.msra.mxu0 %v2695_v17  ;;  %805 = vmatpush.msrb.mxu1 %v2634_v9  ;;  %v76_v61 = vld [vmem:[%s4118_s0 + $0xc8] sm:$0xff]  ;;  %v73_v6 = vld [vmem:[%s4118_s0 + $0xb0] sm:$0xff]  ;;  %v2240_v8 = vld [vmem:[%s4118_s0 + $0x258] sm:$0xff] }
  0x17   :  { %501 = vmatpush.msra.mxu2 %v2695_v17  ;;  %2192 = vmatmul.msk.f32.gmra.mxu1 %vm101_vm1, %v56_v18  ;;  %v2242_v12 = vld [vmem:[%s4118_s0 + $0x268] sm:$0xff] }
  0x18   :  { %192 = vmatpush.msra.mxu0 %v2707_v19  ;;  %806 = vmatpush.msrb.mxu1 %v2643_v10  ;;  %v84_v14 = vld [vmem:[%s4118_s0 + $0x108] sm:$0xff] }
  0x19   :  { %502 = vmatpush.msra.mxu2 %v2707_v19  ;;  %2266 = vmatmul.msk.f32.vlgmr.msrb.gmra.mxu3 %vm101_vm1, %v2216_v20  ;;  %v86_v20 = vld [vmem:[%s4118_s0 + $0x118] sm:$0xff] }
  0x1a   :  { %193 = vmatpush.msra.mxu0 %v2720_v21  ;;  %807 = vmatpush.msrb.mxu1 %v2652_v11 }
  0x1b   :  { %503 = vmatpush.msra.mxu2 %v2720_v21 }
  0x1c   :  { %194 = vmatpush.msra.mxu0 %v2729_v22  ;;  %808 = vmatpush.msrb.mxu1 %v2664_v13 }
  0x1d   :  { %504 = vmatpush.msra.mxu2 %v2729_v22 }
  0x1e   :  { %195 = vmatpush.msra.mxu0 %v2737_v23  ;;  %809 = vmatpush.msrb.mxu1 %v2677_v15 }
  0x1f   :  { %505 = vmatpush.msra.mxu2 %v2737_v23  ;;  %2193 = vmatmul.msk.f32.gmra.mxu1 %vm101_vm1, %v58_v24 }
  0x20   :  { %196 = vmatpush.msra.mxu0 %v2748_v25  ;;  %810 = vmatpush.msrb.mxu1 %v2687_v16 }
  0x21   :  { %506 = vmatpush.msra.mxu2 %v2748_v25  ;;  %197 = vmatmul.f32.vlgmr.msra.gmra.mxu0 %v51_v26  ;;  %v88_v26 = vld [vmem:[%s4118_s0 + $0x128] sm:$0xff] }
  0x22   :  { %507 = vmatmul.f32.vlgmr.msra.gmra.mxu2 %v2215_v27  ;;  %1111 = vmatpush.msrb.mxu0 %v2579_v0  ;;  %v2236_v0 = vld [vmem:[%s4118_s0 + $0x238] sm:$0xff]  ;;  %v81_v27 = vld [vmem:[%s4118_s0 + $0xf0] sm:$0xff] }
  0x23   :  { %2267 = vmatmul.msk.f32.gmra.mxu3 %vm101_vm1, %v2218_v28  ;;  %2519 = vmatpush.msk.msrb.mxu2 %vm177_vm0, %v2584_v1  ;;  %v2245_v28 = vld [vmem:[%s4118_s0 + $0x280] sm:$0xff] }
  0x24   :  { %1112 = vmatpush.msrb.mxu0 %v2589_v2  ;;  %811 = vmatpush.msrb.mxu1 %v2695_v17  ;;  %v71_v2 = vld [vmem:[%s4118_s0 + $0xa0] sm:$0xff] }
  0x25   :  { %2520 = vmatpush.msrb.mxu2 %v2597_v3 }
  0x26   :  { %1113 = vmatpush.msrb.mxu0 %v2603_v4  ;;  %812 = vmatpush.msrb.mxu1 %v2707_v19  ;;  %v2238_v4 = vld [vmem:[%s4118_s0 + $0x248] sm:$0xff] }
  0x27   :  { %2194 = vmatmul.msk.f32.gmra.mxu1 %vm101_vm1, %v60_v29  ;;  %2521 = vmatpush.msrb.mxu2 %v2610_v5  ;;  %v2248_v29 = vld [vmem:[%s4118_s0 + $0x298] sm:$0xff] }
  0x28   :  { %1114 = vmatpush.msrb.mxu0 %v2621_v7  ;;  %813 = vmatpush.msrb.mxu1 %v2720_v21  ;;  %v2237_v7 = vld [vmem:[%s4118_s0 + $0x240] sm:$0xff] }
  0x29   :  { %200 = vmatmul.f32.gmra.mxu0 %v53_v30 }
  0x2a   :  { %510 = vmatmul.f32.gmra.mxu2 %v2217_v31  ;;  %1115 = vmatpush.msrb.mxu0 %v2634_v9  ;;  %v82_v9 = vld [vmem:[%s4118_s0 + $0xf8] sm:$0xff] }
  0x2b   :  { %2268 = vmatmul.msk.f32.gmra.mxu3 %vm101_vm1, %v2220_v32  ;;  %814 = vmatpush.msrb.mxu1 %v2729_v22  ;;  %v90_v32 = vld [vmem:[%s4118_s0 + $0x138] sm:$0xff] }
  0x2c   :  { %1116 = vmatpush.msrb.mxu0 %v2643_v10  ;;  %v75_v10 = vld [vmem:[%s4118_s0 + $0xc0] sm:$0xff] }
  0x2d   :  { %815 = vmatpush.msrb.mxu1 %v2737_v23 }
  0x2e   :  { %1117 = vmatpush.msrb.mxu0 %v2652_v11  ;;  %v2239_v11 = vld [vmem:[%s4118_s0 + $0x250] sm:$0xff] }
  0x2f   :  { %2195 = vmatmul.msk.f32.gmra.mxu1 %vm101_vm1, %v62_v33 }
  0x30   :  { %1118 = vmatpush.msrb.mxu0 %v2664_v13  ;;  %816 = vmatpush.msrb.mxu1 %v2748_v25 }
  0x31   :  { %203 = vmatmul.f32.gmra.mxu0 %v55_v34  ;;  %v83_v34 = vld [vmem:[%s4118_s0 + $0x100] sm:$0xff] }
  0x32   :  { %513 = vmatmul.f32.gmra.mxu2 %v2219_v35  ;;  %1119 = vmatpush.msrb.mxu0 %v2677_v15  ;;  %v77_v15 = vld [vmem:[%s4118_s0 + $0xd0] sm:$0xff] }
  0x33   :  { %2269 = vmatmul.msk.f32.gmra.mxu3 %vm101_vm1, %v2222_v36  ;;  %v2247_v35 = vld [vmem:[%s4118_s0 + $0x290] sm:$0xff]  ;;  %v2250_v36 = vld [vmem:[%s4118_s0 + $0x2a8] sm:$0xff] }
  0x34   :  { %1120 = vmatpush.msrb.mxu0 %v2687_v16  ;;  %v2241_v16 = vld [vmem:[%s4118_s0 + $0x260] sm:$0xff] }
  0x36   :  { %1121 = vmatpush.msrb.mxu0 %v2695_v17  ;;  %v2244_v17 = vld [vmem:[%s4118_s0 + $0x278] sm:$0xff] }
  0x37   :  { %2196 = vmatmul.msk.f32.gmra.mxu1 %vm101_vm1, %v64_v37 }
  0x38   :  { %1122 = vmatpush.msrb.mxu0 %v2707_v19 }
  0x39   :  { %206 = vmatmul.f32.gmra.mxu0 %v57_v38  ;;  %v92_v38 = vld [vmem:[%s4118_s0 + $0x148] sm:$0xff] }
  0x3a   :  { %516 = vmatmul.f32.gmra.mxu2 %v2221_v39  ;;  %1123 = vmatpush.msrb.mxu0 %v2720_v21  ;;  %v79_v21 = vld [vmem:[%s4118_s0 + $0xe0] sm:$0xff] }
  0x3b   :  { %2270 = vmatmul.msk.f32.gmra.mxu3 %vm101_vm1, %v2224_v40 }
  0x3c   :  { %1124 = vmatpush.msrb.mxu0 %v2729_v22  ;;  %v2243_v22 = vld [vmem:[%s4118_s0 + $0x270] sm:$0xff] }
  0x3e   :  { %1125 = vmatpush.msrb.mxu0 %v2737_v23  ;;  %v2246_v23 = vld [vmem:[%s4118_s0 + $0x288] sm:$0xff] }
  0x3f   :  { %2197 = vmatmul.msk.f32.gmra.mxu1 %vm101_vm1, %v66_v41 }
  0x40   :  { %1126 = vmatpush.msrb.mxu0 %v2748_v25 }
  0x41   :  { %209 = vmatmul.f32.gmra.mxu0 %v59_v42 }
  0x42   :  { %519 = vmatmul.f32.gmra.mxu2 %v2223_v43  ;;  %2417 = vmatpush.msk.msra.mxu0 %vm177_vm0, %v2584_v1  ;;  %v78_v1 = vld [vmem:[%s4118_s0 + $0xd8] sm:$0xff] }
  0x43   :  { %2271 = vmatmul.msk.f32.gmra.mxu3 %vm101_vm1, %v2226_v44  ;;  %v85_v44 = vld [vmem:[%s4118_s0 + $0x110] sm:$0xff] }
  0x44   :  { %1217 = vmatpush.msra.mxu0 %v2597_v3  ;;  %v2235_v3 = vld [vmem:[%s4118_s0 + $0x230] sm:$0xff] }
  0x46   :  { %1218 = vmatpush.msra.mxu0 %v2610_v5  ;;  %v80_v5 = vld [vmem:[%s4118_s0 + $0xe8] sm:$0xff] }
  0x47   :  { %2198 = vmatmul.msk.f32.gmra.mxu1 %vm101_vm1, %v68_v45  ;;  %v2249_v45 = vld [vmem:[%s4118_s0 + $0x2a0] sm:$0xff] }
  0x49   :  { %212 = vmatmul.f32.gmra.mxu0 %v61_v46 }
  0x4a   :  { %522 = vmatmul.f32.gmra.mxu2 %v2225_v47  ;;  %v2252_v47 = vld [vmem:[%s4118_s0 + $0x2b8] sm:$0xff] }
  0x4b   :  { %2272 = vmatmul.msk.f32.gmra.mxu3 %vm101_vm1, %v2228_v48 }
  0x4f   :  { %2199 = vmatmul.msk.f32.gmra.mxu1 %vm101_vm1, %v70_v49  ;;  %v94_v49 = vld [vmem:[%s4118_s0 + $0x158] sm:$0xff] }
  0x51   :  { %215 = vmatmul.f32.gmra.mxu0 %v63_v50 }
  0x52   :  { %525 = vmatmul.f32.gmra.mxu2 %v2227_v51 }
  0x53   :  { %2273 = vmatmul.msk.f32.gmra.mxu3 %vm101_vm1, %v2230_v52 }
  0x57   :  { %2200 = vmatmul.msk.f32.gmra.mxu1 %vm101_vm1, %v72_v53 }
  0x59   :  { %218 = vmatmul.f32.gmra.mxu0 %v65_v54 }
  0x5a   :  { %528 = vmatmul.f32.gmra.mxu2 %v2229_v55  ;;  %v87_v55 = vld [vmem:[%s4118_s0 + $0x120] sm:$0xff] }
  0x5b   :  { %2274 = vmatmul.msk.f32.gmra.mxu3 %vm101_vm1, %v2232_v56  ;;  %v2251_v56 = vld [vmem:[%s4118_s0 + $0x2b0] sm:$0xff] }
  0x5f   :  { %2201 = vmatmul.msk.f32.gmra.mxu1 %vm101_vm1, %v74_v57 }
  0x61   :  { %221 = vmatmul.f32.gmra.mxu0 %v67_v58  ;;  %v2254_v58 = vld [vmem:[%s4118_s0 + $0x2c8] sm:$0xff] }
  0x62   :  { %531 = vmatmul.f32.gmra.mxu2 %v2231_v59 }
  0x63   :  { %2275 = vmatmul.msk.f32.gmra.mxu3 %vm101_vm1, %v2234_v60  ;;  %v96_v60 = vld [vmem:[%s4118_s0 + $0x168] sm:$0xff] }
  0x67   :  { %2202 = vmatmul.msk.f32.gmra.mxu1 %vm101_vm1, %v76_v61 }
  0x69   :  { %224 = vmatmul.f32.gmra.mxu0 %v69_v62 }
  0x6a   :  { %534 = vmatmul.f32.gmra.mxu2 %v2233_v63 }
  0x6b   :  { %2276 = vmatmul.msk.f32.gmra.mxu3 %vm101_vm1, %v2236_v0 }
  0x6f   :  { %2203 = vmatmul.msk.f32.gmra.mxu1 %vm101_vm1, %v78_v1 }
  0x71   :  { %227 = vmatmul.f32.gmra.mxu0 %v71_v2  ;;  %v89_v2 = vld [vmem:[%s4118_s0 + $0x130] sm:$0xff] }
  0x72   :  { %537 = vmatmul.f32.gmra.mxu2 %v2235_v3  ;;  %v2253_v3 = vld [vmem:[%s4118_s0 + $0x2c0] sm:$0xff] }
  0x73   :  { %2277 = vmatmul.msk.f32.gmra.mxu3 %vm101_vm1, %v2238_v4 }
  0x77   :  { %2204 = vmatmul.msk.f32.gmra.mxu1 %vm101_vm1, %v80_v5  ;;  %v2256_v5 = vld [vmem:[%s4118_s0 + $0x2d8] sm:$0xff] }
  0x79   :  { %230 = vmatmul.f32.gmra.mxu0 %v73_v6 }
  0x7a   :  { %540 = vmatmul.f32.gmra.mxu2 %v2237_v7  ;;  %v2291_v7 = vld [vmem:[%s4118_s0 + $0x320] sm:$0xff] }
  0x7b   :  { %2278 = vmatmul.msk.f32.gmra.mxu3 %vm101_vm1, %v2240_v8 }
  0x7f   :  { %2205 = vmatmul.msk.f32.gmra.mxu1 %vm101_vm1, %v82_v9 }
  0x81   :  { %233 = vmatmul.f32.gmra.mxu0 %v75_v10 }
  0x82   :  { %543 = vmatmul.f32.gmra.mxu2 %v2239_v11 }
  0x83   :  { %2279 = vmatmul.msk.f32.gmra.mxu3 %vm101_vm1, %v2242_v12 }
  0x84   :  { %v290_v13 = vpop.f32.mrf.mxu1 }
  0x87   :  { %2206 = vmatmul.msk.f32.gmra.mxu1 %vm101_vm1, %v84_v14  ;;  %v2255_v14 = vld [vmem:[%s4118_s0 + $0x2d0] sm:$0xff] }
  0x89   :  { %236 = vmatmul.f32.gmra.mxu0 %v77_v15 }
  0x8a   :  { %546 = vmatmul.f32.gmra.mxu2 %v2241_v16  ;;  %v2258_v16 = vld [vmem:[%s4118_s0 + $0x2e8] sm:$0xff] }
  0x8b   :  { %2280 = vmatmul.msk.f32.gmra.mxu3 %vm101_vm1, %v2244_v17 }
  0x8c   :  { %v293_v18 = vpop.f32.mrf.mxu1  ;;  %v2979_v19 = vpop.f32.mrf.mxu3 }
  0x8d   :  { %4131 = vst [vmem:[#allocation2_spill] sm:$0xff] %v2979_v19 }
  0x8f   :  { %2207 = vmatmul.msk.f32.gmra.mxu1 %vm101_vm1, %v86_v20 }
  0x91   :  { %239 = vmatmul.f32.gmra.mxu0 %v79_v21 }
  0x92   :  { %549 = vmatmul.f32.gmra.mxu2 %v2243_v22 }
  0x93   :  { %2281 = vmatmul.msk.f32.gmra.mxu3 %vm101_vm1, %v2246_v23 }
  0x94   :  { %v296_v24 = vpop.f32.mrf.mxu1  ;;  %v2995_v25 = vpop.f32.mrf.mxu3 }
  0x95   :  { %4132 = vst [vmem:[#allocation3_spill] sm:$0xff] %v2995_v25 }
  0x97   :  { %2208 = vmatmul.msk.f32.gmra.mxu1 %vm101_vm1, %v88_v26  ;;  %v93_v26 = vld [vmem:[%s4118_s0 + $0x150] sm:$0xff] }
  0x99   :  { %242 = vmatmul.f32.gmra.mxu0 %v81_v27  ;;  %v2257_v27 = vld [vmem:[%s4118_s0 + $0x2e0] sm:$0xff] }
  0x9a   :  { %552 = vmatmul.f32.gmra.mxu2 %v2245_v28 }
  0x9b   :  { %2282 = vmatmul.msk.f32.gmra.mxu3 %vm101_vm1, %v2248_v29  ;;  %v2260_v29 = vld [vmem:[%s4118_s0 + $0x2f8] sm:$0xff] }
  0x9c   :  { %v299_v30 = vpop.f32.mrf.mxu1  ;;  %v600_v31 = vpop.f32.mrf.mxu3 }
  0x9e   :  { %v198_v33 = vpop.f32.mrf.mxu0 }
  0x9f   :  { %2209 = vmatmul.msk.f32.gmra.mxu1 %vm101_vm1, %v90_v32  ;;  %v3030_v40 = vadd.f32 %v290_v13, %v198_v33  ;;  %v91_v13 = vld [vmem:[%s4118_s0 + $0x140] sm:$0xff] }
  0xa1   :  { %245 = vmatmul.f32.gmra.mxu0 %v83_v34  ;;  %4133 = vst [vmem:[#allocation4_spill] sm:$0xff] %v3030_v40 }
  0xa2   :  { %555 = vmatmul.f32.gmra.mxu2 %v2247_v35 }
  0xa3   :  { %2283 = vmatmul.msk.f32.gmra.mxu3 %vm101_vm1, %v2250_v36 }
  0xa4   :  { %v3025_v37 = vpop.f32.mrf.mxu1 }
  0xa5   :  { %v508_v39 = vpop.f32.mrf.mxu2 }
  0xa6   :  { %v3032_v41 = vadd.f32 %v600_v31, %v508_v39  ;;  %v201_v42 = vpop.f32.mrf.mxu0  ;;  %v603_v43 = vpop.f32.mrf.mxu3  ;;  %v2295_v31 = vld [vmem:[%s4118_s0 + $0x340] sm:$0xff] }
  0xa7   :  { %2210 = vmatmul.msk.f32.gmra.mxu1 %vm101_vm1, %v92_v38  ;;  %v3052_v51 = vadd.f32 %v293_v18, %v201_v42  ;;  %v2293_v18 = vld [vmem:[%s4118_s0 + $0x330] sm:$0xff]  ;;  %v2262_v42 = vld [vmem:[%s4118_s0 + $0x308] sm:$0xff] }
  0xa8   :  { %4134 = vst [vmem:[#allocation5_spill] sm:$0xff] %v3032_v41  ;;  %v2259_v38 = vld [vmem:[%s4118_s0 + $0x2f0] sm:$0xff] }
  0xa9   :  { %248 = vmatmul.f32.gmra.mxu0 %v85_v44  ;;  %v2297_v44 = vld [vmem:[%s4118_s0 + $0x350] sm:$0xff] }
  0xaa   :  { %558 = vmatmul.f32.gmra.mxu2 %v2249_v45 }
  0xab   :  { %2284 = vmatmul.msk.f32.gmra.mxu3 %vm101_vm1, %v2252_v47 }
  0xac   :  { %v3047_v48 = vpop.f32.mrf.mxu1 }
  0xad   :  { %v511_v50 = vpop.f32.mrf.mxu2 }
  0xae   :  { %v3054_v52 = vadd.f32 %v603_v43, %v511_v50  ;;  %v204_v53 = vpop.f32.mrf.mxu0  ;;  %v606_v54 = vpop.f32.mrf.mxu3 }
  0xaf   :  { %2211 = vmatmul.msk.f32.gmra.mxu1 %vm101_vm1, %v94_v49  ;;  %v3074_v62 = vadd.f32 %v296_v24, %v204_v53  ;;  %v97_v53 = vld [vmem:[%s4118_s0 + $0x170] sm:$0xff] }
  0xb1   :  { %251 = vmatmul.f32.gmra.mxu0 %v87_v55 }
  0xb2   :  { %561 = vmatmul.f32.gmra.mxu2 %v2251_v56  ;;  %v2264_v56 = vld [vmem:[%s4118_s0 + $0x318] sm:$0xff] }
  0xb3   :  { %2285 = vmatmul.msk.f32.gmra.mxu3 %vm101_vm1, %v2254_v58 }
  0xb4   :  { %v3069_v59 = vpop.f32.mrf.mxu1 }
  0xb5   :  { %v514_v61 = vpop.f32.mrf.mxu2 }
  0xb6   :  { %v3076_v63 = vadd.f32 %v606_v54, %v514_v61  ;;  %v207_v0 = vpop.f32.mrf.mxu0  ;;  %v609_v1 = vpop.f32.mrf.mxu3  ;;  %v2261_v54 = vld [vmem:[%s4118_s0 + $0x300] sm:$0xff] }
  0xb7   :  { %2212 = vmatmul.msk.f32.gmra.mxu1 %vm101_vm1, %v96_v60  ;;  %v3096_v9 = vadd.f32 %v299_v30, %v207_v0 }
  0xb9   :  { %254 = vmatmul.f32.gmra.mxu0 %v89_v2 }
  0xba   :  { %564 = vmatmul.f32.gmra.mxu2 %v2253_v3  ;;  %v99_v3 = vld [vmem:[%s4118_s0 + $0x180] sm:$0xff] }
  0xbb   :  { %2286 = vmatmul.msk.f32.gmra.mxu3 %vm101_vm1, %v2256_v5  ;;  %v2263_v5 = vld [vmem:[%s4118_s0 + $0x310] sm:$0xff] }
  0xbc   :  { %v3091_v6 = vpop.f32.mrf.mxu1 }
  0xbd   :  { %v517_v8 = vpop.f32.mrf.mxu2 }
  0xbe   :  { %v3098_v10 = vadd.f32 %v609_v1, %v517_v8  ;;  %v210_v11 = vpop.f32.mrf.mxu0  ;;  %v612_v12 = vpop.f32.mrf.mxu3 }
  0xbf   :  { %817 = vmatmul.f32.vlgmr.msrb.gmra.mxu1 %v2291_v7  ;;  %v3118_v21 = vadd.f32 %v3025_v37, %v210_v11  ;;  %v95_v37 = vld [vmem:[%s4118_s0 + $0x160] sm:$0xff]  ;;  %v2301_v11 = vld [vmem:[%s4118_s0 + $0x370] sm:$0xff] }
  0xc1   :  { %257 = vmatmul.f32.gmra.mxu0 %v91_v13 }
  0xc2   :  { %567 = vmatmul.f32.gmra.mxu2 %v2255_v14 }
  0xc3   :  { %2287 = vmatmul.msk.f32.gmra.mxu3 %vm101_vm1, %v2258_v16 }
  0xc4   :  { %v3112_v17 = vpop.f32.mrf.mxu1 }
  0xc5   :  { %v520_v20 = vpop.f32.mrf.mxu2 }
  0xc6   :  { %v3120_v22 = vadd.f32 %v612_v12, %v520_v20  ;;  %v213_v23 = vpop.f32.mrf.mxu0  ;;  %v615_v24 = vpop.f32.mrf.mxu3  ;;  %v2367_v20 = vld [vmem:[%s4118_s0 + $0x4b0] sm:$0xff] }
  0xc7   :  { %820 = vmatmul.f32.gmra.mxu1 %v2293_v18  ;;  %v3140_v33 = vadd.f32 %v3047_v48, %v213_v23  ;;  %v2370_v23 = vld [vmem:[%s4118_s0 + $0x4c8] sm:$0xff] }
  0xc9   :  { %260 = vmatmul.f32.gmra.mxu0 %v93_v26  ;;  %4135 = vst [vmem:[#allocation6_spill] sm:$0xff] %v3140_v33  ;;  %v2399_v33 = vld [vmem:[%s4118_s0 + $0x5b0] sm:$0xff] }
  0xca   :  { %570 = vmatmul.f32.gmra.mxu2 %v2257_v27  ;;  %v2303_v27 = vld [vmem:[%s4118_s0 + $0x380] sm:$0xff] }
  0xcb   :  { %2288 = vmatmul.msk.f32.gmra.mxu3 %vm101_vm1, %v2260_v29 }
  0xcc   :  { %v3134_v30 = vpop.f32.mrf.mxu1 }
  0xcd   :  { %v523_v32 = vpop.f32.mrf.mxu2 }
  0xce   :  { %v3142_v34 = vadd.f32 %v615_v24, %v523_v32  ;;  %v216_v35 = vpop.f32.mrf.mxu0  ;;  %v618_v36 = vpop.f32.mrf.mxu3 }
  0xcf   :  { %823 = vmatmul.f32.gmra.mxu1 %v2295_v31  ;;  %v3162_v47 = vadd.f32 %v3069_v59, %v216_v35  ;;  %v2299_v59 = vld [vmem:[%s4118_s0 + $0x360] sm:$0xff] }
  0xd0   :  { %4136 = vst [vmem:[#allocation7_spill] sm:$0xff] %v3142_v34 }
  0xd1   :  { %263 = vmatmul.f32.gmra.mxu0 %v95_v37  ;;  %v2369_v37 = vld [vmem:[%s4118_s0 + $0x4c0] sm:$0xff] }
  0xd2   :  { %573 = vmatmul.f32.gmra.mxu2 %v2259_v38  ;;  %v2372_v38 = vld [vmem:[%s4118_s0 + $0x4d8] sm:$0xff] }
  0xd3   :  { %2289 = vmatmul.msk.f32.gmra.mxu3 %vm101_vm1, %v2262_v42 }
  0xd4   :  { %v3156_v43 = vpop.f32.mrf.mxu1 }
  0xd5   :  { %v526_v45 = vpop.f32.mrf.mxu2 }
  0xd6   :  { %v3164_v48 = vadd.f32 %v618_v36, %v526_v45  ;;  %v219_v49 = vpop.f32.mrf.mxu0  ;;  %v621_v50 = vpop.f32.mrf.mxu3  ;;  %v2305_v45 = vld [vmem:[%s4118_s0 + $0x390] sm:$0xff] }
  0xd7   :  { %826 = vmatmul.f32.gmra.mxu1 %v2297_v44  ;;  %v3184_v61 = vadd.f32 %v3091_v6, %v219_v49  ;;  %v2292_v6 = vld [vmem:[%s4118_s0 + $0x328] sm:$0xff] }
  0xd9   :  { %266 = vmatmul.f32.gmra.mxu0 %v97_v53 }
  0xda   :  { %576 = vmatmul.f32.gmra.mxu2 %v2261_v54 }
  0xdb   :  { %2290 = vmatmul.msk.f32.gmra.mxu3 %vm101_vm1, %v2264_v56 }
  0xdc   :  { %v3178_v58 = vpop.f32.mrf.mxu1 }
  0xdd   :  { %v529_v60 = vpop.f32.mrf.mxu2 }
  0xde   :  { %v3186_v0 = vadd.f32 %v621_v50, %v529_v60  ;;  %v222_v1 = vpop.f32.mrf.mxu0  ;;  %v624_v2 = vpop.f32.mrf.mxu3  ;;  %v2374_v60 = vld [vmem:[%s4118_s0 + $0x4e8] sm:$0xff] }
  0xdf   :  { %829 = vmatmul.f32.gmra.mxu1 %v2299_v59  ;;  %v3206_v13 = vadd.f32 %v3112_v17, %v222_v1  ;;  %v2294_v17 = vld [vmem:[%s4118_s0 + $0x338] sm:$0xff]  ;;  %v2371_v59 = vld [vmem:[%s4118_s0 + $0x4d0] sm:$0xff] }
  0xe1   :  { %269 = vmatmul.f32.gmra.mxu0 %v99_v3  ;;  %v2307_v3 = vld [vmem:[%s4118_s0 + $0x3a0] sm:$0xff] }
  0xe2   :  { %579 = vmatmul.f32.gmra.mxu2 %v2263_v5 }
  0xe3   :  { %2342 = vmatmul.msk.f32.vlgmr.msra.gmra.mxu3 %vm101_vm1, %v2292_v6 }
  0xe4   :  { %v3200_v8 = vpop.f32.mrf.mxu1 }
  0xe5   :  { %v532_v12 = vpop.f32.mrf.mxu2 }
  0xe6   :  { %v3208_v14 = vadd.f32 %v624_v2, %v532_v12  ;;  %v225_v16 = vpop.f32.mrf.mxu0  ;;  %v627_v18 = vpop.f32.mrf.mxu3 }
  0xe7   :  { %832 = vmatmul.f32.gmra.mxu1 %v2301_v11  ;;  %v3229_v31 = vadd.f32 %v3134_v30, %v225_v16  ;;  %v2296_v30 = vld [vmem:[%s4118_s0 + $0x348] sm:$0xff] }
  0xe9   :  { %1127 = vmatmul.f32.vlgmr.msrb.gmra.mxu0 %v2367_v20  ;;  %v2376_v20 = vld [vmem:[%s4118_s0 + $0x4f8] sm:$0xff] }
  0xea   :  { %2419 = vmatmul.msk.f32.vlgmr.msrb.gmra.mxu2 %vm101_vm1, %v2370_v23 }
  0xeb   :  { %2343 = vmatmul.msk.f32.gmra.mxu3 %vm101_vm1, %v2294_v17 }
  0xec   :  { %v3223_v26 = vpop.f32.mrf.mxu1 }
  0xed   :  { %v535_v29 = vpop.f32.mrf.mxu2 }
  0xee   :  { %v3231_v32 = vadd.f32 %v627_v18, %v535_v29  ;;  %v228_v35 = vpop.f32.mrf.mxu0  ;;  %v630_v36 = vpop.f32.mrf.mxu3  ;;  %v2373_v18 = vld [vmem:[%s4118_s0 + $0x4e0] sm:$0xff] }
  0xef   :  { %835 = vmatmul.f32.gmra.mxu1 %v2303_v27  ;;  %v3252_v50 = vadd.f32 %v3156_v43, %v228_v35  ;;  %v2298_v43 = vld [vmem:[%s4118_s0 + $0x358] sm:$0xff]  ;;  %v2309_v27 = vld [vmem:[%s4118_s0 + $0x3b0] sm:$0xff] }
  0xf1   :  { %1130 = vmatmul.f32.gmra.mxu0 %v2369_v37 }
  0xf2   :  { %2420 = vmatmul.msk.f32.gmra.mxu2 %vm101_vm1, %v2372_v38 }
  0xf3   :  { %2344 = vmatmul.msk.f32.gmra.mxu3 %vm101_vm1, %v2296_v30  ;;  %v2375_v30 = vld [vmem:[%s4118_s0 + $0x4f0] sm:$0xff] }
  0xf4   :  { %v3246_v44 = vpop.f32.mrf.mxu1 }
  0xf5   :  { %v538_v49 = vpop.f32.mrf.mxu2 }
  0xf6   :  { %v3254_v53 = vadd.f32 %v630_v36, %v538_v49  ;;  %v231_v54 = vpop.f32.mrf.mxu0  ;;  %v633_v56 = vpop.f32.mrf.mxu3 }
  0xf7   :  { %838 = vmatmul.f32.gmra.mxu1 %v2305_v45  ;;  %v3275_v6 = vadd.f32 %v3178_v58, %v231_v54  ;;  %v2300_v58 = vld [vmem:[%s4118_s0 + $0x368] sm:$0xff] }
  0xf8   :  { %v2378_v45 = vld [vmem:[%s4118_s0 + $0x508] sm:$0xff] }
  0xf9   :  { %1133 = vmatmul.f32.gmra.mxu0 %v2371_v59 }
  0xfa   :  { %2421 = vmatmul.msk.f32.gmra.mxu2 %vm101_vm1, %v2374_v60 }
  0xfb   :  { %2345 = vmatmul.msk.f32.gmra.mxu3 %vm101_vm1, %v2298_v43 }
  0xfc   :  { %v3269_v2 = vpop.f32.mrf.mxu1 }
  0xfd   :  { %v541_v5 = vpop.f32.mrf.mxu2 }
  0xfe   :  { %v3277_v11 = vadd.f32 %v633_v56, %v541_v5  ;;  %v234_v12 = vpop.f32.mrf.mxu0  ;;  %v636_v16 = vpop.f32.mrf.mxu3  ;;  %v2311_v56 = vld [vmem:[%s4118_s0 + $0x3c0] sm:$0xff] }
  0xff   :  { %841 = vmatmul.f32.gmra.mxu1 %v2307_v3  ;;  %v3298_v35 = vadd.f32 %v3200_v8, %v234_v12  ;;  %v2302_v8 = vld [vmem:[%s4118_s0 + $0x378] sm:$0xff]  ;;  %v2377_v12 = vld [vmem:[%s4118_s0 + $0x500] sm:$0xff] }
 0x101   :  { %1136 = vmatmul.f32.gmra.mxu0 %v2373_v18 }
 0x102   :  { %2422 = vmatmul.msk.f32.gmra.mxu2 %vm101_vm1, %v2376_v20 }
 0x103   :  { %2346 = vmatmul.msk.f32.gmra.mxu3 %vm101_vm1, %v2300_v58  ;;  %v2313_v58 = vld [vmem:[%s4118_s0 + $0x3d0] sm:$0xff] }
 0x104   :  { %v3292_v17 = vpop.f32.mrf.mxu1 }
 0x105   :  { %v544_v29 = vpop.f32.mrf.mxu2 }
 0x106   :  { %v3300_v36 = vadd.f32 %v636_v16, %v544_v29  ;;  %v237_v37 = vpop.f32.mrf.mxu0  ;;  %v639_v38 = vpop.f32.mrf.mxu3  ;;  %v2380_v16 = vld [vmem:[%s4118_s0 + $0x518] sm:$0xff] }
 0x107   :  { %844 = vmatmul.f32.gmra.mxu1 %v2309_v27  ;;  %v3321_v60 = vadd.f32 %v3223_v26, %v237_v37  ;;  %v2304_v26 = vld [vmem:[%s4118_s0 + $0x388] sm:$0xff] }
 0x109   :  { %1139 = vmatmul.f32.gmra.mxu0 %v2375_v30 }
 0x10a   :  { %2423 = vmatmul.msk.f32.gmra.mxu2 %vm101_vm1, %v2378_v45  ;;  %v2379_v45 = vld [vmem:[%s4118_s0 + $0x510] sm:$0xff] }
 0x10b   :  { %2347 = vmatmul.msk.f32.gmra.mxu3 %vm101_vm1, %v2302_v8  ;;  %v2382_v8 = vld [vmem:[%s4118_s0 + $0x528] sm:$0xff] }
 0x10c   :  { %v3315_v54 = vpop.f32.mrf.mxu1 }
 0x10d   :  { %v547_v59 = vpop.f32.mrf.mxu2 }
 0x10e   :  { %v3323_v43 = vadd.f32 %v639_v38, %v547_v59  ;;  %v240_v3 = vpop.f32.mrf.mxu0  ;;  %v642_v5 = vpop.f32.mrf.mxu3 }
 0x10f   :  { %847 = vmatmul.f32.gmra.mxu1 %v2311_v56  ;;  %v3344_v29 = vadd.f32 %v3246_v44, %v240_v3  ;;  %v2306_v44 = vld [vmem:[%s4118_s0 + $0x398] sm:$0xff]  ;;  %v2315_v3 = vld [vmem:[%s4118_s0 + $0x3e0] sm:$0xff] }
 0x111   :  { %1142 = vmatmul.f32.gmra.mxu0 %v2377_v12 }
 0x112   :  { %2424 = vmatmul.msk.f32.gmra.mxu2 %vm101_vm1, %v2380_v16 }
 0x113   :  { %2348 = vmatmul.msk.f32.gmra.mxu3 %vm101_vm1, %v2304_v26 }
 0x114   :  { %v3338_v20 = vpop.f32.mrf.mxu1 }
 0x115   :  { %v550_v27 = vpop.f32.mrf.mxu2 }
 0x116   :  { %v3346_v37 = vadd.f32 %v642_v5, %v550_v27  ;;  %v243_v38 = vpop.f32.mrf.mxu0  ;;  %v645_v30 = vpop.f32.mrf.mxu3  ;;  %v2381_v27 = vld [vmem:[%s4118_s0 + $0x520] sm:$0xff] }
 0x117   :  { %850 = vmatmul.f32.gmra.mxu1 %v2313_v58  ;;  %v3367_v12 = vadd.f32 %v3269_v2, %v243_v38  ;;  %v2308_v2 = vld [vmem:[%s4118_s0 + $0x3a8] sm:$0xff] }
 0x119   :  { %1145 = vmatmul.f32.gmra.mxu0 %v2379_v45  ;;  %v2384_v45 = vld [vmem:[%s4118_s0 + $0x538] sm:$0xff] }
 0x11a   :  { %2425 = vmatmul.msk.f32.gmra.mxu2 %vm101_vm1, %v2382_v8 }
 0x11b   :  { %2349 = vmatmul.msk.f32.gmra.mxu3 %vm101_vm1, %v2306_v44 }
 0x11c   :  { %v3361_v59 = vpop.f32.mrf.mxu1 }
 0x11d   :  { %v553_v5 = vpop.f32.mrf.mxu2 }
 0x11e   :  { %v3369_v16 = vadd.f32 %v645_v30, %v553_v5  ;;  %v246_v26 = vpop.f32.mrf.mxu0  ;;  %v648_v58 = vpop.f32.mrf.mxu3  ;;  %v2317_v30 = vld [vmem:[%s4118_s0 + $0x3f0] sm:$0xff] }
 0x11f   :  { %853 = vmatmul.f32.gmra.mxu1 %v2315_v3  ;;  %v3390_v3 = vadd.f32 %v3292_v17, %v246_v26  ;;  %v2310_v17 = vld [vmem:[%s4118_s0 + $0x3b8] sm:$0xff] }
 0x121   :  { %1148 = vmatmul.f32.gmra.mxu0 %v2381_v27  ;;  %v2383_v27 = vld [vmem:[%s4118_s0 + $0x530] sm:$0xff] }
 0x122   :  { %2426 = vmatmul.msk.f32.gmra.mxu2 %vm101_vm1, %v2384_v45  ;;  %v2386_v45 = vld [vmem:[%s4118_s0 + $0x548] sm:$0xff] }
 0x123   :  { %2350 = vmatmul.msk.f32.gmra.mxu3 %vm101_vm1, %v2308_v2 }
 0x124   :  { %v3384_v38 = vpop.f32.mrf.mxu1 }
 0x125   :  { %v556_v44 = vpop.f32.mrf.mxu2 }
 0x126   :  { %v3392_v5 = vadd.f32 %v648_v58, %v556_v44  ;;  %v249_v39 = vpop.f32.mrf.mxu0  ;;  %v651_v46 = vpop.f32.mrf.mxu3  ;;  %v2319_v58 = vld [vmem:[%s4118_s0 + $0x400] sm:$0xff] }
 0x127   :  { %856 = vmatmul.f32.gmra.mxu1 %v2317_v30  ;;  %v3413_v44 = vadd.f32 %v3315_v54, %v249_v39  ;;  %v2312_v39 = vld [vmem:[%s4118_s0 + $0x3c8] sm:$0xff]  ;;  %v2321_v54 = vld [vmem:[%s4118_s0 + $0x410] sm:$0xff] }
 0x129   :  { %1151 = vmatmul.f32.gmra.mxu0 %v2383_v27  ;;  %v2385_v27 = vld [vmem:[%s4118_s0 + $0x540] sm:$0xff] }
 0x12a   :  { %2427 = vmatmul.msk.f32.gmra.mxu2 %vm101_vm1, %v2386_v45  ;;  %v2388_v45 = vld [vmem:[%s4118_s0 + $0x558] sm:$0xff] }
 0x12b   :  { %2351 = vmatmul.msk.f32.gmra.mxu3 %vm101_vm1, %v2310_v17 }
 0x12c   :  { %v3407_v26 = vpop.f32.mrf.mxu1 }
 0x12d   :  { %v559_v30 = vpop.f32.mrf.mxu2 }
 0x12e   :  { %v3415_v2 = vadd.f32 %v651_v46, %v559_v30  ;;  %v252_v8 = vpop.f32.mrf.mxu0  ;;  %v654_v56 = vpop.f32.mrf.mxu3 }
 0x12f   :  { %859 = vmatmul.f32.gmra.mxu1 %v2319_v58  ;;  %v3436_v30 = vadd.f32 %v3338_v20, %v252_v8  ;;  %v2314_v20 = vld [vmem:[%s4118_s0 + $0x3d8] sm:$0xff]  ;;  %v2323_v8 = vld [vmem:[%s4118_s0 + $0x420] sm:$0xff] }
 0x131   :  { %1154 = vmatmul.f32.gmra.mxu0 %v2385_v27  ;;  %v2387_v27 = vld [vmem:[%s4118_s0 + $0x550] sm:$0xff] }
 0x132   :  { %2428 = vmatmul.msk.f32.gmra.mxu2 %vm101_vm1, %v2388_v45  ;;  %v2390_v45 = vld [vmem:[%s4118_s0 + $0x568] sm:$0xff] }
 0x133   :  { %2352 = vmatmul.msk.f32.gmra.mxu3 %vm101_vm1, %v2312_v39 }
 0x134   :  { %v3430_v46 = vpop.f32.mrf.mxu1 }
 0x135   :  { %v562_v58 = vpop.f32.mrf.mxu2 }
 0x136   :  { %v3438_v17 = vadd.f32 %v654_v56, %v562_v58  ;;  %v255_v18 = vpop.f32.mrf.mxu0  ;;  %v657_v49 = vpop.f32.mrf.mxu3 }
 0x137   :  { %862 = vmatmul.f32.gmra.mxu1 %v2321_v54  ;;  %v3459_v58 = vadd.f32 %v3361_v59, %v255_v18  ;;  %v2316_v18 = vld [vmem:[%s4118_s0 + $0x3e8] sm:$0xff]  ;;  %v2325_v59 = vld [vmem:[%s4118_s0 + $0x430] sm:$0xff] }
 0x139   :  { %1157 = vmatmul.f32.gmra.mxu0 %v2387_v27  ;;  %v2389_v27 = vld [vmem:[%s4118_s0 + $0x560] sm:$0xff] }
 0x13a   :  { %2429 = vmatmul.msk.f32.gmra.mxu2 %vm101_vm1, %v2390_v45  ;;  %v2392_v45 = vld [vmem:[%s4118_s0 + $0x578] sm:$0xff] }
 0x13b   :  { %2353 = vmatmul.msk.f32.gmra.mxu3 %vm101_vm1, %v2314_v20 }
 0x13c   :  { %v3453_v56 = vpop.f32.mrf.mxu1 }
 0x13d   :  { %v565_v54 = vpop.f32.mrf.mxu2 }
 0x13e   :  { %v3461_v39 = vadd.f32 %v657_v49, %v565_v54  ;;  %v258_v23 = vpop.f32.mrf.mxu0  ;;  %v660_v1 = vpop.f32.mrf.mxu3 }
 0x13f   :  { %865 = vmatmul.f32.gmra.mxu1 %v2323_v8  ;;  %v3482_v54 = vadd.f32 %v3384_v38, %v258_v23  ;;  %v2318_v23 = vld [vmem:[%s4118_s0 + $0x3f8] sm:$0xff]  ;;  %v2327_v38 = vld [vmem:[%s4118_s0 + $0x440] sm:$0xff] }
 0x141   :  { %1160 = vmatmul.f32.gmra.mxu0 %v2389_v27  ;;  %v2391_v27 = vld [vmem:[%s4118_s0 + $0x570] sm:$0xff] }
 0x142   :  { %2430 = vmatmul.msk.f32.gmra.mxu2 %vm101_vm1, %v2392_v45  ;;  %v2394_v45 = vld [vmem:[%s4118_s0 + $0x588] sm:$0xff] }
 0x143   :  { %2354 = vmatmul.msk.f32.gmra.mxu3 %vm101_vm1, %v2316_v18 }
 0x144   :  { %v3476_v49 = vpop.f32.mrf.mxu1 }
 0x145   :  { %v568_v8 = vpop.f32.mrf.mxu2 }
 0x146   :  { %v3484_v20 = vadd.f32 %v660_v1, %v568_v8  ;;  %v261_v42 = vpop.f32.mrf.mxu0  ;;  %v663_v24 = vpop.f32.mrf.mxu3 }
 0x147   :  { %868 = vmatmul.f32.gmra.mxu1 %v2325_v59  ;;  %v3505_v8 = vadd.f32 %v3407_v26, %v261_v42  ;;  %v2320_v42 = vld [vmem:[%s4118_s0 + $0x408] sm:$0xff]  ;;  %v2329_v26 = vld [vmem:[%s4118_s0 + $0x450] sm:$0xff] }
 0x149   :  { %1163 = vmatmul.f32.gmra.mxu0 %v2391_v27  ;;  %v2393_v27 = vld [vmem:[%s4118_s0 + $0x580] sm:$0xff] }
 0x14a   :  { %2431 = vmatmul.msk.f32.gmra.mxu2 %vm101_vm1, %v2394_v45  ;;  %v2396_v45 = vld [vmem:[%s4118_s0 + $0x598] sm:$0xff] }
 0x14b   :  { %2355 = vmatmul.msk.f32.gmra.mxu3 %vm101_vm1, %v2318_v23 }
 0x14c   :  { %v3499_v1 = vpop.f32.mrf.mxu1 }
 0x14d   :  { %v571_v59 = vpop.f32.mrf.mxu2 }
 0x14e   :  { %v3507_v18 = vadd.f32 %v663_v24, %v571_v59  ;;  %v264_v7 = vpop.f32.mrf.mxu0  ;;  %v666_v55 = vpop.f32.mrf.mxu3 }
 0x14f   :  { %871 = vmatmul.f32.gmra.mxu1 %v2327_v38  ;;  %v3528_v59 = vadd.f32 %v3430_v46, %v264_v7  ;;  %v2322_v46 = vld [vmem:[%s4118_s0 + $0x418] sm:$0xff] }
 0x151   :  { %1166 = vmatmul.f32.gmra.mxu0 %v2393_v27  ;;  %v2395_v27 = vld [vmem:[%s4118_s0 + $0x590] sm:$0xff] }
 0x152   :  { %2432 = vmatmul.msk.f32.gmra.mxu2 %vm101_vm1, %v2396_v45  ;;  %v2398_v45 = vld [vmem:[%s4118_s0 + $0x5a8] sm:$0xff] }
 0x153   :  { %2356 = vmatmul.msk.f32.gmra.mxu3 %vm101_vm1, %v2320_v42  ;;  %v1425_v42 = vld [vmem:[%s4120_s3 + $0x8] sm:$0xff] }
 0x154   :  { %v3522_v24 = vpop.f32.mrf.mxu1  ;;  %1470 = vmatpush.msrb.mxu3 %v1425_v42  ;;  %v2324_v42 = vld [vmem:[%s4118_s0 + $0x428] sm:$0xff] }
 0x155   :  { %v574_v38 = vpop.f32.mrf.mxu2 }
 0x156   :  { %v3530_v23 = vadd.f32 %v666_v55, %v574_v38  ;;  %v3532_v28 = vpop.f32.mrf.mxu0  ;;  %v669_v4 = vpop.f32.mrf.mxu3  ;;  %v2444_v55 = vld [vmem:[%s4120_s3 + $0x18] sm:$0xff] }
 0x157   :  { %874 = vmatmul.f32.gmra.mxu1 %v2329_v26  ;;  %v2331_v26 = vld [vmem:[%s4118_s0 + $0x460] sm:$0xff] }
 0x158   :  { %1447 = vmatpush.msra.mxu1 %v2444_v55 }
 0x159   :  { %1169 = vmatmul.f32.gmra.mxu0 %v2395_v27  ;;  %v2397_v27 = vld [vmem:[%s4118_s0 + $0x5a0] sm:$0xff] }
 0x15a   :  { %2433 = vmatmul.msk.f32.gmra.mxu2 %vm101_vm1, %v2398_v45  ;;  %v2400_v45 = vld [vmem:[%s4118_s0 + $0x5b8] sm:$0xff] }
 0x15b   :  { %2357 = vmatmul.msk.f32.gmra.mxu3 %vm101_vm1, %v2322_v46 }
 0x15c   :  { %v3556_v15 = vpop.f32.mrf.mxu1 }
 0x15d   :  { %v577_v38 = vpop.f32.mrf.mxu2 }
 0x15e   :  { %v3558_v57 = vadd.f32 %v669_v4, %v577_v38  ;;  %v3560_v7 = vpop.f32.mrf.mxu0  ;;  %v672_v34 = vpop.f32.mrf.mxu3  ;;  %v2333_v4 = vld [vmem:[%s4118_s0 + $0x470] sm:$0xff] }
 0x15f   :  { %4138 = vst [vmem:[#allocation9_spill] sm:$0xff] %v3560_v7  ;;  %877 = vmatmul.f32.gmra.mxu1 %v2331_v26 }
 0x160   :  { %4137 = vst [vmem:[#allocation8_spill] sm:$0xff] %v3558_v57 }
 0x161   :  { %1172 = vmatmul.f32.gmra.mxu0 %v2397_v27  ;;  %v2443_v27 = vld [vmem:[%s4120_s3 + $0x10] sm:$0xff] }
 0x162   :  { %2434 = vmatmul.msk.f32.gmra.mxu2 %vm101_vm1, %v2400_v45  ;;  %1448 = vmatpush.msra.mxu1 %v2443_v27  ;;  %v2447_v27 = vld [vmem:[%s4120_s3 + $0x20] sm:$0xff] }
 0x163   :  { %2358 = vmatmul.msk.f32.gmra.mxu3 %vm101_vm1, %v2324_v42 }
 0x164   :  { %v3586_v45 = vpop.f32.mrf.mxu1 }
 0x165   :  { %v580_v55 = vpop.f32.mrf.mxu2  ;;  %4141 = vst [vmem:[#allocation12_spill] sm:$0xff] %v3586_v45 }
 0x166   :  { %v3576_v46 = vadd.f32 %v672_v34, %v580_v55  ;;  %v910_v26 = vpop.f32.mrf.mxu3  ;;  %v3578_v38 = vpop.f32.mrf.mxu0  ;;  %v2402_v34 = vld [vmem:[%s4118_s0 + $0x5c8] sm:$0xff]  ;;  %v2326_v55 = vld [vmem:[%s4118_s0 + $0x438] sm:$0xff] }
 0x167   :  { %4140 = vst [vmem:[#allocation11_spill] sm:$0xff] %v3578_v38  ;;  %v3589_v42 = vadd.f32 %v910_v26, %v3453_v56  ;;  %880 = vmatmul.f32.gmra.mxu1 %v2333_v4  ;;  %v2335_v56 = vld [vmem:[%s4118_s0 + $0x480] sm:$0xff]  ;;  %v2448_v4 = vld [vmem:[%s4120_s3 + $0x28] sm:$0xff] }
 0x168   :  { %4139 = vst [vmem:[#allocation10_spill] sm:$0xff] %v3576_v46  ;;  %1496 = vmatpush.msrb.mxu1 %v2448_v4 }
 0x169   :  { %4142 = vst [vmem:[#allocation13_spill] sm:$0xff] %v3589_v42  ;;  %1175 = vmatmul.f32.gmra.mxu0 %v2399_v33  ;;  %v2401_v33 = vld [vmem:[%s4118_s0 + $0x5c0] sm:$0xff] }
 0x16a   :  { %2435 = vmatmul.msk.f32.gmra.mxu2 %vm101_vm1, %v2402_v34  ;;  %v2404_v34 = vld [vmem:[%s4118_s0 + $0x5d8] sm:$0xff]  ;;  %1497 = vmatpush.msrb.mxu1 %v2447_v27  ;;  %v2403_v27 = vld [vmem:[%s4118_s0 + $0x5d0] sm:$0xff] }
 0x16b   :  { %2359 = vmatmul.msk.f32.gmra.mxu3 %vm101_vm1, %v2326_v55  ;;  %v2328_v55 = vld [vmem:[%s4118_s0 + $0x448] sm:$0xff] }
 0x16c   :  { %v3617_v4 = vpop.f32.mrf.mxu1 }
 0x16d   :  { %v1223_v26 = vpop.f32.mrf.mxu2 }
 0x16e   :  { %v913_v45 = vpop.f32.mrf.mxu3  ;;  %v1131_v41 = vpop.f32.mrf.mxu0 }
 0x16f   :  { %883 = vmatmul.f32.gmra.mxu1 %v2335_v56  ;;  %v2337_v56 = vld [vmem:[%s4118_s0 + $0x490] sm:$0xff]  ;;  %v914_v40 = vadd.f32 %v913_v45, %v3476_v49  ;;  %v1224_v42 = vadd.f32 %v1223_v26, %v1131_v41  ;;  %v2330_v41 = vld [vmem:[%s4118_s0 + $0x458] sm:$0xff]  ;;  %v2339_v26 = vld [vmem:[%s4118_s0 + $0x4a0] sm:$0xff] }
 0x171   :  { %1178 = vmatmul.f32.gmra.mxu0 %v2401_v33  ;;  %v2406_v33 = vld [vmem:[%s4118_s0 + $0x5e8] sm:$0xff]  ;;  %v1321_v49 = vmax.f32 %v914_v40, %v1224_v42 }
 0x172   :  { %2436 = vmatmul.msk.f32.gmra.mxu2 %vm101_vm1, %v2404_v34  ;;  %v2469_v34 = vld [vmem:[%s4120_s3 + $0x98] sm:$0xff] }
 0x173   :  { %2360 = vmatmul.msk.f32.gmra.mxu3 %vm101_vm1, %v2328_v55  ;;  %1685 = vmatpush.msra.mxu2 %v2469_v34  ;;  %v4143_v55 = vmax.f32 %v3052_v51, %v3054_v52  ;;  %v3650_v34 = vld [vmem:[%s4119_s2] ss:$0 sm:$0xff]  ;;  %v2408_v51 = vld [vmem:[%s4118_s0 + $0x5f8] sm:$0xff]  ;;  %v2332_v52 = vld [vmem:[%s4118_s0 + $0x468] sm:$0xff] }
 0x174   :  { %v3638_v45 = vpop.f32.mrf.mxu1 }
 0x175   :  { %v1226_v38 = vpop.f32.mrf.mxu2 }
 0x176   :  { %v916_v46 = vpop.f32.mrf.mxu3  ;;  %v1134_v25 = vpop.f32.mrf.mxu0 }
 0x177   :  { %886 = vmatmul.f32.gmra.mxu1 %v2337_v56  ;;  %v1346_v56 = vmax.f32 %v4143_v55, %v1321_v49  ;;  %v917_v40 = vadd.f32 %v916_v46, %v3499_v1  ;;  %v1227_v42 = vadd.f32 %v1226_v38, %v1134_v25  ;;  %v4145_v49 = vmax.f32 %v3074_v62, %v3076_v63  ;;  %v2410_v62 = vld [vmem:[%s4118_s0 + $0x608] sm:$0xff]  ;;  %v2453_v63 = vld [vmem:[%s4120_s3 + $0x40] sm:$0xff] }
 0x179   :  { %1181 = vmatmul.f32.gmra.mxu0 %v2403_v27  ;;  %v1375_v25 = vadd.f32 %v3650_v34, %v1346_v56  ;;  %v1322_v1 = vmax.f32 %v917_v40, %v1227_v42 }
 0x17a   :  { %2437 = vmatmul.msk.f32.gmra.mxu2 %vm101_vm1, %v2406_v33 }
 0x17b   :  { %2361 = vmatmul.msk.f32.gmra.mxu3 %vm101_vm1, %v2330_v41  ;;  %v2405_v41 = vld [vmem:[%s4118_s0 + $0x5e0] sm:$0xff]  ;;  %v1400_v38 = vmax.f32 %v1375_v25, 0.0 }
 0x17c   :  { %v3674_v55 = vpop.f32.mrf.mxu1 }
 0x17d   :  { %v1229_v27 = vpop.f32.mrf.mxu2 }
 0x17e   :  { %v919_v33 = vpop.f32.mrf.mxu3  ;;  %v1137_v7 = vpop.f32.mrf.mxu0 }
 0x17f   :  { %v920_v57 = vadd.f32 %v919_v33, %v3522_v24  ;;  %v1230_v19 = vadd.f32 %v1229_v27, %v1137_v7  ;;  %889 = vmatmul.f32.gmra.mxu1 %v2339_v26  ;;  %v4144_v24 = vmax.f32 %v3096_v9, %v3098_v10  ;;  %v1347_v26 = vmax.f32 %v4145_v49, %v1322_v1  ;;  %v2407_v9 = vld [vmem:[%s4118_s0 + $0x5f0] sm:$0xff]  ;;  %v2334_v27 = vld [vmem:[%s4118_s0 + $0x478] sm:$0xff]  ;;  %v2460_v1 = vld [vmem:[%s4120_s3 + $0x68] sm:$0xff] }
 0x181   :  { %v1323_v46 = vmax.f32 %v920_v57, %v1230_v19  ;;  %1184 = vmatmul.f32.gmra.mxu0 %v2405_v41  ;;  %v2454_v19 = vld [vmem:[%s4120_s3 + $0x48] sm:$0xff]  ;;  %v1376_v33 = vadd.f32 %v3650_v34, %v1347_v26 }
 0x182   :  { %2438 = vmatmul.msk.f32.gmra.mxu2 %vm101_vm1, %v2408_v51  ;;  %v4146_v51 = vmax.f32 %v3118_v21, %v3120_v22  ;;  %v2412_v21 = vld [vmem:[%s4118_s0 + $0x618] sm:$0xff]  ;;  %v2459_v22 = vld [vmem:[%s4120_s3 + $0x60] sm:$0xff]  ;;  %v2336_v26 = vld [vmem:[%s4118_s0 + $0x488] sm:$0xff] }
 0x183   :  { %v3668_v7 = vmax.f32 %v4144_v24, %v1323_v46  ;;  %2362 = vmatmul.msk.f32.gmra.mxu3 %vm101_vm1, %v2332_v52 }
 0x184   :  { %v3711_v49 = vpop.f32.mrf.mxu1 }
 0x185   :  { %v1232_v56 = vpop.f32.mrf.mxu2 }
 0x186   :  { %v922_v57 = vpop.f32.mrf.mxu3  ;;  %v1140_v40 = vpop.f32.mrf.mxu0 }
 0x187   :  { %v923_v10 = vadd.f32 %v922_v57, %v3556_v15  ;;  %v1233_v42 = vadd.f32 %v1232_v56, %v1140_v40  ;;  %2445 = vmatmul.msk.f32.vlgmr.msra.gmra.mxu1 %vm1429_vm2, %v1400_v38  ;;  %v1401_v15 = vmax.f32 %v1376_v33, 0.0  ;;  %v2409_v38 = vld [vmem:[%s4118_s0 + $0x600] sm:$0xff]  ;;  %v2338_v33 = vld [vmem:[%s4118_s0 + $0x498] sm:$0xff] }
 0x188   :  { %1550 = vmatpush.msra.mxu1 %v2454_v19 }
 0x189   :  { %v1324_v41 = vmax.f32 %v923_v10, %v1233_v42  ;;  %1187 = vmatmul.f32.gmra.mxu0 %v2407_v9  ;;  %v2411_v10 = vld [vmem:[%s4118_s0 + $0x610] sm:$0xff]  ;;  %v2466_v42 = vld [vmem:[%s4120_s3 + $0x88] sm:$0xff] }
 0x18a   :  { %2439 = vmatmul.msk.f32.gmra.mxu2 %vm101_vm1, %v2410_v62  ;;  %1551 = vmatpush.msra.mxu1 %v2453_v63 }
 0x18b   :  { %2363 = vmatmul.msk.f32.gmra.mxu3 %vm101_vm1, %v2334_v27  ;;  %v1349_v52 = vmax.f32 %v4146_v51, %v1324_v41  ;;  %v2414_v27 = vld [vmem:[%s4118_s0 + $0x628] sm:$0xff]  ;;  %1658 = vmatpush.msrb.mxu0 %v2466_v42  ;;  %v2465_v41 = vld [vmem:[%s4120_s3 + $0x80] sm:$0xff] }
 0x18d   :  { %v3699_v25 = vpop.f32.mrf.mxu2  ;;  %v1378_v56 = vadd.f32 %v3650_v34, %v1349_v52  ;;  %1659 = vmatpush.msrb.mxu0 %v2465_v41  ;;  %v4147_v52 = vmax.f32 %v3162_v47, %v3164_v48  ;;  %v2416_v48 = vld [vmem:[%s4118_s0 + $0x638] sm:$0xff] }
 0x18e   :  { %v3704_v46 = vpop.f32.mrf.mxu3  ;;  %v3706_v24 = vpop.f32.mrf.mxu0 }
 0x18f   :  { %2449 = vmatmul.msk.f32.vlgmr.msrb.gmra.mxu1 %vm1429_vm2, %v1401_v15  ;;  %v1403_v19 = vmax.f32 %v1378_v56, 0.0  ;;  %v848_v15 = vpop.f32.mrf.mxu1  ;;  %v2413_v56 = vld [vmem:[%s4118_s0 + $0x620] sm:$0xff] }
 0x190   :  { %1604 = vmatpush.msrb.mxu1 %v2460_v1 }
 0x191   :  { %1190 = vmatmul.f32.gmra.mxu0 %v2409_v38 }
 0x192   :  { %2440 = vmatmul.msk.f32.gmra.mxu2 %vm101_vm1, %v2412_v21  ;;  %1605 = vmatpush.msrb.mxu1 %v2459_v22 }
 0x193   :  { %2364 = vmatmul.msk.f32.gmra.mxu3 %vm101_vm1, %v2336_v26 }
 0x195   :  { %v1238_v57 = vpop.f32.mrf.mxu2 }
 0x196   :  { %v928_v40 = vpop.f32.mrf.mxu3  ;;  %v1146_v9 = vpop.f32.mrf.mxu0 }
 0x197   :  { %v929_v62 = vadd.f32 %v928_v40, %v3617_v4  ;;  %v1239_v63 = vadd.f32 %v1238_v57, %v1146_v9  ;;  %2455 = vmatmul.msk.f32.vlgmr.msra.gmra.mxu1 %vm1429_vm2, %v1403_v19  ;;  %v2468_v4 = vld [vmem:[%s4120_s3 + $0x90] sm:$0xff]  ;;  %v2472_v19 = vld [vmem:[%s4120_s3 + $0xa8] sm:$0xff] }
 0x198   :  { %1686 = vmatpush.msra.mxu2 %v2468_v4  ;;  %1712 = vmatpush.msra.mxu1 %v2472_v19  ;;  %v2340_v9 = vld [vmem:[%s4118_s0 + $0x4a8] sm:$0xff]  ;;  %v2415_v4 = vld [vmem:[%s4118_s0 + $0x630] sm:$0xff] }
 0x199   :  { %v1326_v51 = vmax.f32 %v929_v62, %v1239_v63  ;;  %1193 = vmatmul.f32.gmra.mxu0 %v2411_v10  ;;  %v2471_v10 = vld [vmem:[%s4120_s3 + $0xa0] sm:$0xff]  ;;  %v4148_v62 = vmax.f32 %v3184_v61, %v3186_v0  ;;  %v2368_v0 = vld [vmem:[%s4118_s0 + $0x4b8] sm:$0xff] }
 0x19a   :  { %2441 = vmatmul.msk.f32.gmra.mxu2 %vm101_vm1, %v2414_v27  ;;  %1713 = vmatpush.msra.mxu1 %v2471_v10 }
 0x19b   :  { %v1351_v1 = vmax.f32 %v4147_v52, %v1326_v51  ;;  %2365 = vmatmul.msk.f32.gmra.mxu3 %vm101_vm1, %v2338_v33 }
 0x19d   :  { %v1380_v38 = vadd.f32 %v3650_v34, %v1351_v1  ;;  %v1241_v21 = vpop.f32.mrf.mxu2 }
 0x19e   :  { %v931_v22 = vpop.f32.mrf.mxu3  ;;  %v1149_v26 = vpop.f32.mrf.mxu0 }
 0x19f   :  { %v1405_v57 = vmax.f32 %v1380_v38, 0.0  ;;  %v932_v40 = vadd.f32 %v931_v22, %v3638_v45  ;;  %v1242_v47 = vadd.f32 %v1241_v21, %v1149_v26  ;;  %v851_v45 = vpop.f32.mrf.mxu1  ;;  %v4149_v26 = vmax.f32 %v3206_v13, %v3208_v14 }
 0x1a0   :  { %v4150_v13 = vmax.f32 %v3229_v31, %v3231_v32  ;;  %v1424_v31 = vld [vmem:[%s4120_s3] sm:$0xff]  ;;  %v2480_v32 = vld [vmem:[%s4120_s3 + $0xd0] sm:$0xff] }
 0x1a1   :  { %v1327_v42 = vmax.f32 %v932_v40, %v1242_v47  ;;  %1196 = vmatmul.f32.gmra.mxu0 %v2413_v56  ;;  %2461 = vmatmul.msk.f32.vlgmr.msrb.gmra.mxu1 %vm1429_vm2, %v1405_v57  ;;  %v2477_v47 = vld [vmem:[%s4120_s3 + $0xc0] sm:$0xff] }
 0x1a2   :  { %2442 = vmatmul.msk.f32.gmra.mxu2 %vm101_vm1, %v2416_v48  ;;  %1471 = vmatpush.msrb.mxu3 %v1424_v31 }
 0x1a3   :  { %v3773_v63 = vmax.f32 %v4148_v62, %v1327_v42  ;;  %2366 = vmatmul.msk.f32.gmra.mxu3 %vm101_vm1, %v2340_v9  ;;  %v2481_v62 = vld [vmem:[%s4120_s3 + $0xd8] sm:$0xff] }
 0x1a4   :  { %1793 = vmatpush.msrb.mxu2 %v2481_v62 }
 0x1a5   :  { %v1244_v27 = vpop.f32.mrf.mxu2 }
 0x1a6   :  { %v934_v33 = vpop.f32.mrf.mxu3  ;;  %v1152_v41 = vpop.f32.mrf.mxu0  ;;  %1794 = vmatpush.msrb.mxu2 %v2480_v32 }
 0x1a7   :  { %v935_v51 = vadd.f32 %v934_v33, %v3674_v55  ;;  %v1245_v52 = vadd.f32 %v1244_v27, %v1152_v41  ;;  %v854_v38 = vpop.f32.mrf.mxu1  ;;  %v2478_v55 = vld [vmem:[%s4120_s3 + $0xc8] sm:$0xff] }
 0x1a9   :  { %1199 = vmatmul.f32.gmra.mxu0 %v2415_v4  ;;  %v1328_v1 = vmax.f32 %v935_v51, %v1245_v52 }
 0x1ab   :  { %v1353_v56 = vmax.f32 %v4149_v26, %v1328_v1  ;;  %v2484_v26 = vld [vmem:[%s4120_s3 + $0xe8] sm:$0xff] }
 0x1ac   :  { %1820 = vmatpush.msrb.mxu1 %v2484_v26 }
 0x1ad   :  { %v1247_v21 = vpop.f32.mrf.mxu2  ;;  %v1382_v48 = vadd.f32 %v3650_v34, %v1353_v56 }
 0x1ae   :  { %v937_v22 = vpop.f32.mrf.mxu3  ;;  %v1155_v61 = vpop.f32.mrf.mxu0 }
 0x1af   :  { %v938_v19 = vadd.f32 %v937_v22, %v3711_v49  ;;  %v1248_v57 = vadd.f32 %v1247_v21, %v1155_v61  ;;  %v857_v27 = vpop.f32.mrf.mxu1  ;;  %v1407_v33 = vmax.f32 %v1382_v48, 0.0 }
 0x1b1   :  { %v1329_v40 = vmax.f32 %v938_v19, %v1248_v57  ;;  %2418 = vmatmul.msk.f32.vlgmr.msra.gmra.mxu0 %vm101_vm1, %v2368_v0 }
 0x1b2   :  { %1766 = vmatpush.msra.mxu0 %v2478_v55  ;;  %v2483_v55 = vld [vmem:[%s4120_s3 + $0xe0] sm:$0xff] }
 0x1b3   :  { %v1354_v14 = vmax.f32 %v4150_v13, %v1329_v40  ;;  %1821 = vmatpush.msrb.mxu1 %v2483_v55 }
 0x1b4   :  { %1767 = vmatpush.msra.mxu0 %v2477_v47 }
 0x1b5   :  { %v1383_v49 = vadd.f32 %v3650_v34, %v1354_v14  ;;  %v1250_v9 = vpop.f32.mrf.mxu2 }
 0x1b6   :  { %v940_v10 = vpop.f32.mrf.mxu3  ;;  %v1158_v42 = vpop.f32.mrf.mxu0 }
 0x1b7   :  { %v1408_v41 = vmax.f32 %v1383_v49, 0.0  ;;  %v941_v4 = vadd.f32 %v940_v10, %v848_v15  ;;  %v1251_v51 = vadd.f32 %v1250_v9, %v1158_v42  ;;  %v4151_v15 = vmax.f32 %v3252_v50, %v3254_v53  ;;  %v860_v40 = vpop.f32.mrf.mxu1 }
 0x1b8   :  { %v4152_v53 = vmax.f32 %v3275_v6, %v3277_v11  ;;  %v4153_v42 = vmax.f32 %v3298_v35, %v3300_v36  ;;  %v2490_v6 = vld [vmem:[%s4120_s3 + $0x108] sm:$0xff]  ;;  %v4154_v35 = vmax.f32 %v3321_v60, %v3323_v43  ;;  %v4155_v43 = vmax.f32 %v3344_v29, %v3346_v37 }
 0x1b9   :  { %v1330_v52 = vmax.f32 %v941_v4, %v1251_v51  ;;  %2467 = vmatmul.msk.f32.vlgmr.msrb.gmra.mxu0 %vm1429_vm2, %v1407_v33  ;;  %2470 = vmatmul.msk.f32.vlgmr.msra.gmra.mxu2 %vm1429_vm2, %v1408_v41  ;;  %v4156_v37 = vmax.f32 %v3367_v12, %v3369_v16  ;;  %v2502_v12 = vld [vmem:[%s4120_s3 + $0x148] sm:$0xff] }
 0x1ba   :  { %1874 = vmatpush.msrb.mxu0 %v2490_v6 }
 0x1bb   :  { %v1355_v1 = vmax.f32 %v4151_v15, %v1330_v52 }
 0x1bd   :  { %v1384_v21 = vadd.f32 %v3650_v34, %v1355_v1  ;;  %v1253_v22 = vpop.f32.mrf.mxu2 }
 0x1be   :  { %v943_v61 = vpop.f32.mrf.mxu3  ;;  %v1161_v0 = vpop.f32.mrf.mxu0 }
 0x1bf   :  { %v1409_v56 = vmax.f32 %v1384_v21, 0.0  ;;  %v944_v19 = vadd.f32 %v943_v61, %v851_v45  ;;  %v1254_v57 = vadd.f32 %v1253_v22, %v1161_v0  ;;  %v863_v10 = vpop.f32.mrf.mxu1  ;;  %v2493_v61 = vld [vmem:[%s4120_s3 + $0x118] sm:$0xff] }
 0x1c0   :  { %1901 = vmatpush.msra.mxu2 %v2493_v61 }
 0x1c1   :  { %v1331_v50 = vmax.f32 %v944_v19, %v1254_v57  ;;  %2473 = vmatmul.msk.f32.vlgmr.msra.gmra.mxu1 %vm1429_vm2, %v1409_v56  ;;  %v2492_v19 = vld [vmem:[%s4120_s3 + $0x110] sm:$0xff] }
 0x1c2   :  { %1902 = vmatpush.msra.mxu2 %v2492_v19 }
 0x1c3   :  { %v3824_v47 = vmax.f32 %v4152_v53, %v1331_v50 }
 0x1c5   :  { %v1256_v48 = vpop.f32.mrf.mxu2 }
 0x1c6   :  { %v946_v13 = vpop.f32.mrf.mxu3  ;;  %v1164_v14 = vpop.f32.mrf.mxu0 }
 0x1c7   :  { %v947_v45 = vadd.f32 %v946_v13, %v854_v38  ;;  %v1257_v49 = vadd.f32 %v1256_v48, %v1164_v14  ;;  %v2489_v38 = vld [vmem:[%s4120_s3 + $0x100] sm:$0xff]  ;;  %v866_v15 = vpop.f32.mrf.mxu1 }
 0x1c8   :  { %1875 = vmatpush.msrb.mxu0 %v2489_v38 }
 0x1c9   :  { %v1332_v9 = vmax.f32 %v947_v45, %v1257_v49 }
 0x1cb   :  { %v1357_v62 = vmax.f32 %v4153_v42, %v1332_v9  ;;  %v2495_v9 = vld [vmem:[%s4120_s3 + $0x120] sm:$0xff] }
 0x1cd   :  { %v1386_v33 = vadd.f32 %v3650_v34, %v1357_v62  ;;  %v1259_v41 = vpop.f32.mrf.mxu2 }
 0x1ce   :  { %v949_v4 = vpop.f32.mrf.mxu3  ;;  %v1167_v51 = vpop.f32.mrf.mxu0 }
 0x1cf   :  { %v1411_v11 = vmax.f32 %v1386_v33, 0.0  ;;  %v950_v31 = vadd.f32 %v949_v4, %v857_v27  ;;  %v1260_v32 = vadd.f32 %v1259_v41, %v1167_v51  ;;  %v869_v13 = vpop.f32.mrf.mxu1 }
 0x1d1   :  { %v1333_v52 = vmax.f32 %v950_v31, %v1260_v32  ;;  %2479 = vmatmul.msk.f32.vlgmr.msra.gmra.mxu0 %vm1429_vm2, %v1411_v11  ;;  %v4157_v11 = vmax.f32 %v3390_v3, %v3392_v5  ;;  %v4158_v5 = vmax.f32 %v3413_v44, %v3415_v2  ;;  %v4159_v2 = vmax.f32 %v3436_v30, %v3438_v17 }
 0x1d2   :  { %1982 = vmatpush.msra.mxu0 %v2502_v12  ;;  %v4160_v30 = vmax.f32 %v3459_v58, %v3461_v39  ;;  %v2514_v39 = vld [vmem:[%s4120_s3 + $0x188] sm:$0xff] }
 0x1d3   :  { %v1358_v36 = vmax.f32 %v4154_v35, %v1333_v52 }
 0x1d5   :  { %v1387_v1 = vadd.f32 %v3650_v34, %v1358_v36  ;;  %v1262_v21 = vpop.f32.mrf.mxu2 }
 0x1d6   :  { %v952_v22 = vpop.f32.mrf.mxu3  ;;  %v1170_v27 = vpop.f32.mrf.mxu0 }
 0x1d7   :  { %v1412_v0 = vmax.f32 %v1387_v1, 0.0  ;;  %v953_v26 = vadd.f32 %v952_v22, %v860_v40  ;;  %v1263_v56 = vadd.f32 %v1262_v21, %v1170_v27  ;;  %v2496_v40 = vld [vmem:[%s4120_s3 + $0x128] sm:$0xff]  ;;  %v872_v51 = vpop.f32.mrf.mxu1 }
 0x1d8   :  { %1928 = vmatpush.msra.mxu1 %v2496_v40 }
 0x1d9   :  { %v1334_v60 = vmax.f32 %v953_v26, %v1263_v56  ;;  %2482 = vmatmul.msk.f32.vlgmr.msrb.gmra.mxu2 %vm1429_vm2, %v1412_v0  ;;  %v2505_v56 = vld [vmem:[%s4120_s3 + $0x158] sm:$0xff] }
 0x1da   :  { %1929 = vmatpush.msra.mxu1 %v2495_v9  ;;  %2009 = vmatpush.msrb.mxu2 %v2505_v56  ;;  %v2451_v56 = vld [vmem:[%s4120_s3 + $0x38] sm:$0xff] }
 0x1db   :  { %v1359_v57 = vmax.f32 %v4155_v43, %v1334_v60  ;;  %1523 = vmatpush.msra.mxu3 %v2451_v56 }
 0x1dd   :  { %v1388_v55 = vadd.f32 %v3650_v34, %v1359_v57  ;;  %v1265_v50 = vpop.f32.mrf.mxu2  ;;  %v2504_v57 = vld [vmem:[%s4120_s3 + $0x150] sm:$0xff] }
 0x1de   :  { %v955_v53 = vpop.f32.mrf.mxu3  ;;  %v1173_v48 = vpop.f32.mrf.mxu0  ;;  %2010 = vmatpush.msrb.mxu2 %v2504_v57 }
 0x1df   :  { %v1413_v14 = vmax.f32 %v1388_v55, 0.0  ;;  %v956_v45 = vadd.f32 %v955_v53, %v863_v10  ;;  %v1266_v49 = vadd.f32 %v1265_v50, %v1173_v48  ;;  %v875_v3 = vpop.f32.mrf.mxu1 }
 0x1e1   :  { %v1335_v29 = vmax.f32 %v956_v45, %v1266_v49  ;;  %2485 = vmatmul.msk.f32.vlgmr.msrb.gmra.mxu1 %vm1429_vm2, %v1413_v14  ;;  %v2508_v14 = vld [vmem:[%s4120_s3 + $0x168] sm:$0xff] }
 0x1e2   :  { %2036 = vmatpush.msrb.mxu1 %v2508_v14 }
 0x1e3   :  { %v3862_v42 = vmax.f32 %v4156_v37, %v1335_v29  ;;  %v2507_v29 = vld [vmem:[%s4120_s3 + $0x160] sm:$0xff] }
 0x1e4   :  { %2037 = vmatpush.msrb.mxu1 %v2507_v29 }
 0x1e5   :  { %v1268_v62 = vpop.f32.mrf.mxu2 }
 0x1e6   :  { %v958_v33 = vpop.f32.mrf.mxu3  ;;  %v1176_v41 = vpop.f32.mrf.mxu0 }
 0x1e7   :  { %v959_v4 = vadd.f32 %v958_v33, %v866_v15  ;;  %v1269_v10 = vadd.f32 %v1268_v62, %v1176_v41  ;;  %v2501_v15 = vld [vmem:[%s4120_s3 + $0x140] sm:$0xff]  ;;  %v878_v50 = vpop.f32.mrf.mxu1 }
 0x1e8   :  { %1983 = vmatpush.msra.mxu0 %v2501_v15 }
 0x1e9   :  { %v1336_v6 = vmax.f32 %v959_v4, %v1269_v10 }
 0x1eb   :  { %v1361_v31 = vmax.f32 %v4157_v11, %v1336_v6  ;;  %v4161_v11 = vmax.f32 %v3482_v54, %v3484_v20  ;;  %v4162_v54 = vmax.f32 %v3505_v8, %v3507_v18  ;;  %v4163_v18 = vmax.f32 %v3528_v59, %v3530_v23 }
 0x1ed   :  { %v1390_v32 = vadd.f32 %v3650_v34, %v1361_v31  ;;  %v1271_v38 = vpop.f32.mrf.mxu2 }
 0x1ee   :  { %v961_v52 = vpop.f32.mrf.mxu3  ;;  %v1179_v35 = vpop.f32.mrf.mxu0 }
 0x1ef   :  { %v1415_v16 = vmax.f32 %v1390_v32, 0.0  ;;  %v962_v36 = vadd.f32 %v961_v52, %v869_v13  ;;  %v1272_v1 = vadd.f32 %v1271_v38, %v1179_v35  ;;  %v881_v4 = vpop.f32.mrf.mxu1 }
 0x1f1   :  { %v1337_v21 = vmax.f32 %v962_v36, %v1272_v1  ;;  %2491 = vmatmul.msk.f32.vlgmr.msrb.gmra.mxu0 %vm1429_vm2, %v1415_v16  ;;  %v2513_v36 = vld [vmem:[%s4120_s3 + $0x180] sm:$0xff] }
 0x1f2   :  { %2090 = vmatpush.msrb.mxu0 %v2514_v39  ;;  %v4171_v39 = vld [vmem:[#allocation4_spill] sm:$0xff] }
 0x1f3   :  { %v1362_v22 = vmax.f32 %v4158_v5, %v1337_v21 }
 0x1f4   :  { %2091 = vmatpush.msrb.mxu0 %v2513_v36 }
 0x1f5   :  { %v1391_v27 = vadd.f32 %v3650_v34, %v1362_v22  ;;  %v1274_v61 = vpop.f32.mrf.mxu2 }
 0x1f6   :  { %v964_v0 = vpop.f32.mrf.mxu3  ;;  %v1182_v26 = vpop.f32.mrf.mxu0 }
 0x1f7   :  { %v1416_v19 = vmax.f32 %v1391_v27, 0.0  ;;  %v965_v60 = vadd.f32 %v964_v0, %v872_v51  ;;  %v1275_v43 = vadd.f32 %v1274_v61, %v1182_v26  ;;  %v884_v1 = vpop.f32.mrf.mxu1 }
 0x1f9   :  { %v1338_v55 = vmax.f32 %v965_v60, %v1275_v43  ;;  %2494 = vmatmul.msk.f32.vlgmr.msra.gmra.mxu2 %vm1429_vm2, %v1416_v19  ;;  %v2450_v60 = vld [vmem:[%s4120_s3 + $0x30] sm:$0xff] }
 0x1fa   :  { %1524 = vmatpush.msra.mxu3 %v2450_v60 }
 0x1fb   :  { %v1363_v44 = vmax.f32 %v4159_v2, %v1338_v55 }
 0x1fd   :  { %v1392_v53 = vadd.f32 %v3650_v34, %v1363_v44  ;;  %v1277_v48 = vpop.f32.mrf.mxu2  ;;  %v4164_v44 = vld [vmem:[#allocation2_spill] sm:$0xff] }
 0x1fe   :  { %v967_v40 = vpop.f32.mrf.mxu3  ;;  %v1185_v13 = vpop.f32.mrf.mxu0 }
 0x1ff   :  { %v1417_v45 = vmax.f32 %v1392_v53, 0.0  ;;  %v968_v49 = vadd.f32 %v967_v40, %v875_v3  ;;  %v1278_v9 = vadd.f32 %v1277_v48, %v1185_v13  ;;  %v887_v19 = vpop.f32.mrf.mxu1  ;;  %v4165_v13 = vld [vmem:[#allocation8_spill] sm:$0xff] }
 0x201   :  { %v1339_v17 = vmax.f32 %v968_v49, %v1278_v9  ;;  %2497 = vmatmul.msk.f32.vlgmr.msra.gmra.mxu1 %vm1429_vm2, %v1417_v45 }
 0x203   :  { %v3900_v37 = vmax.f32 %v4160_v30, %v1339_v17  ;;  %v4166_v17 = vld [vmem:[#allocation9_spill] sm:$0xff]  ;;  %v4167_v30 = vld [vmem:[#allocation3_spill] sm:$0xff] }
 0x205   :  { %v1280_v62 = vpop.f32.mrf.mxu2 }
 0x206   :  { %v970_v33 = vpop.f32.mrf.mxu3  ;;  %v1188_v41 = vpop.f32.mrf.mxu0 }
 0x207   :  { %v971_v10 = vadd.f32 %v970_v33, %v878_v50  ;;  %v1281_v51 = vadd.f32 %v1280_v62, %v1188_v41  ;;  %v360_v50 = vadd.f32 %v4164_v44, %v3532_v28  ;;  %v890_v45 = vpop.f32.mrf.mxu1  ;;  %v363_v62 = vadd.f32 %v4167_v30, %v4166_v17  ;;  %v4168_v28 = vld [vmem:[#allocation10_spill] sm:$0xff]  ;;  %v2498_v44 = vld [vmem:[%s4120_s3 + $0x130] sm:$0xff]  ;;  %v2114_v30 = vld [vmem:[%s4123_s5 + $0x58] sm:$0xff] }
 0x208   :  { %v2115_v17 = vld [vmem:[%s4123_s5 + $0x60] sm:$0xff] }
 0x209   :  { %v1340_v6 = vmax.f32 %v971_v10, %v1281_v51  ;;  %v1318_v14 = vmax.f32 %v360_v50, %v4165_v13  ;;  %v1389_v50 = vadd.f32 %v3650_v34, %v3862_v42 }
 0x20b   :  { %v1365_v31 = vmax.f32 %v4161_v11, %v1340_v6 }
 0x20d   :  { %v1394_v32 = vadd.f32 %v3650_v34, %v1365_v31  ;;  %v1283_v38 = vpop.f32.mrf.mxu2 }
 0x20e   :  { %v973_v52 = vpop.f32.mrf.mxu3  ;;  %v1191_v35 = vpop.f32.mrf.mxu0 }
 0x20f   :  { %v1419_v58 = vmax.f32 %v1394_v32, 0.0  ;;  %v974_v12 = vadd.f32 %v973_v52, %v881_v4  ;;  %v1284_v16 = vadd.f32 %v1283_v38, %v1191_v35  ;;  %v1319_v4 = vmax.f32 %v363_v62, %v4168_v28  ;;  %v4169_v32 = vld [vmem:[#allocation11_spill] sm:$0xff]  ;;  %v4170_v52 = vld [vmem:[#allocation13_spill] sm:$0xff] }
 0x211   :  { %v1341_v20 = vmax.f32 %v974_v12, %v1284_v16  ;;  %2503 = vmatmul.msk.f32.vlgmr.msra.gmra.mxu0 %vm1429_vm2, %v1419_v58  ;;  %v4172_v58 = vld [vmem:[#allocation5_spill] sm:$0xff] }
 0x212   :  { %v4173_v12 = vmax.f32 %v4171_v39, %v4172_v58  ;;  %v2107_v58 = vld [vmem:[%s4123_s5 + $0x20] sm:$0xff] }
 0x213   :  { %v1366_v15 = vmax.f32 %v4162_v54, %v1341_v20  ;;  %v1236_v54 = vadd.f32 %v3699_v25, %v3706_v24  ;;  %v4176_v25 = vld [vmem:[#allocation7_spill] sm:$0xff] }
 0x215   :  { %v1395_v21 = vadd.f32 %v3650_v34, %v1366_v15  ;;  %v1286_v3 = vpop.f32.mrf.mxu2 }
 0x216   :  { %v976_v5 = vpop.f32.mrf.mxu3  ;;  %v1194_v22 = vpop.f32.mrf.mxu0 }
 0x217   :  { %v1420_v27 = vmax.f32 %v1395_v21, 0.0  ;;  %v977_v61 = vadd.f32 %v976_v5, %v884_v1  ;;  %v1287_v0 = vadd.f32 %v1286_v3, %v1194_v22  ;;  %v4174_v1 = vld [vmem:[#allocation12_spill] sm:$0xff]  ;;  %v2457_v21 = vld [vmem:[%s4120_s3 + $0x58] sm:$0xff]  ;;  %v1377_v5 = vadd.f32 %v3650_v34, %v3668_v7 }
 0x218   :  { %v926_v20 = vadd.f32 %v3704_v46, %v4174_v1  ;;  %v2456_v3 = vld [vmem:[%s4120_s3 + $0x50] sm:$0xff] }
 0x219   :  { %v1342_v26 = vmax.f32 %v977_v61, %v1287_v0  ;;  %2506 = vmatmul.msk.f32.vlgmr.msrb.gmra.mxu2 %vm1429_vm2, %v1420_v27  ;;  %v1402_v46 = vmax.f32 %v1377_v5, 0.0  ;;  %v4175_v27 = vld [vmem:[#allocation6_spill] sm:$0xff]  ;;  %v2463_v0 = vld [vmem:[%s4120_s3 + $0x78] sm:$0xff] }
 0x21a   :  { %v1325_v22 = vmax.f32 %v926_v20, %v1236_v54  ;;  %v4177_v24 = vmax.f32 %v4175_v27, %v4176_v25  ;;  %v2105_v54 = vld [vmem:[%s4123_s5 + $0x10] sm:$0xff]  ;;  %v2159_v25 = vld [vmem:[%s4124_s7 + $0x78] sm:$0xff] }
 0x21b   :  { %v1367_v8 = vmax.f32 %v4163_v18, %v1342_v26  ;;  %v2462_v26 = vld [vmem:[%s4120_s3 + $0x70] sm:$0xff]  ;;  %2164 = vmatpush.msra.mxu1 %v2159_v25 }
 0x21c   :  { %v1350_v61 = vmax.f32 %v4177_v24, %v1325_v22  ;;  %v2474_v18 = vld [vmem:[%s4120_s3 + $0xb0] sm:$0xff]  ;;  %v2103_v22 = vld [vmem:[%s4123_s5] sm:$0xff] }
 0x21d   :  { %v1396_v43 = vadd.f32 %v3650_v34, %v1367_v8  ;;  %v1289_v57 = vpop.f32.mrf.mxu2  ;;  %v1381_v8 = vadd.f32 %v3650_v34, %v3773_v63  ;;  %v2499_v63 = vld [vmem:[%s4120_s3 + $0x138] sm:$0xff]  ;;  %v2158_v24 = vld [vmem:[%s4124_s7 + $0x70] sm:$0xff] }
 0x21e   :  { %v979_v55 = vpop.f32.mrf.mxu3  ;;  %v1197_v2 = vpop.f32.mrf.mxu0  ;;  %v1379_v7 = vadd.f32 %v3650_v34, %v1350_v61  ;;  %2165 = vmatpush.msra.mxu1 %v2158_v24 }
 0x21f   :  { %v1421_v53 = vmax.f32 %v1396_v43, 0.0  ;;  %v980_v48 = vadd.f32 %v979_v55, %v887_v19  ;;  %v1290_v40 = vadd.f32 %v1289_v57, %v1197_v2  ;;  %v2475_v19 = vld [vmem:[%s4120_s3 + $0xb8] sm:$0xff]  ;;  %v1406_v60 = vmax.f32 %v1381_v8, 0.0  ;;  %v2486_v57 = vld [vmem:[%s4120_s3 + $0xf0] sm:$0xff] }
 0x220   :  { %v1404_v56 = vmax.f32 %v1379_v7, 0.0  ;;  %v2487_v43 = vld [vmem:[%s4120_s3 + $0xf8] sm:$0xff]  ;;  %v1385_v55 = vadd.f32 %v3650_v34, %v3824_v47 }
 0x221   :  { %v1343_v23 = vmax.f32 %v980_v48, %v1290_v40  ;;  %2509 = vmatmul.msk.f32.vlgmr.msrb.gmra.mxu1 %vm1429_vm2, %v1421_v53  ;;  %v1414_v53 = vmax.f32 %v1389_v50, 0.0  ;;  %v2511_v47 = vld [vmem:[%s4120_s3 + $0x178] sm:$0xff]  ;;  %v2510_v48 = vld [vmem:[%s4120_s3 + $0x170] sm:$0xff]  ;;  %v1393_v40 = vadd.f32 %v3650_v34, %v3900_v37 }
 0x222   :  { %v1410_v2 = vmax.f32 %v1385_v55, 0.0  ;;  %v2117_v37 = vld [vmem:[%s4123_s5 + $0x70] sm:$0xff] }
 0x223   :  { %v3932_v59 = vmax.f32 %v1318_v14, %v1343_v23  ;;  %v1418_v13 = vmax.f32 %v1393_v40, 0.0  ;;  %v1450_v23 = vpop.f32.mrf.mxu1  ;;  %v2154_v55 = vld [vmem:[%s4124_s7 + $0x50] sm:$0xff] }
 0x225   :  { %v1292_v49 = vpop.f32.mrf.mxu2  ;;  %v1397_v42 = vadd.f32 %v3650_v34, %v3932_v59 }
 0x226   :  { %v982_v9 = vpop.f32.mrf.mxu3  ;;  %v1200_v29 = vpop.f32.mrf.mxu0 }
 0x227   :  { %v983_v33 = vadd.f32 %v982_v9, %v890_v45  ;;  %v1293_v41 = vadd.f32 %v1292_v49, %v1200_v29  ;;  %v1422_v14 = vmax.f32 %v1397_v42, 0.0  ;;  %v2118_v49 = vld [vmem:[%s4123_s5 + $0x78] sm:$0xff]  ;;  %v2116_v29 = vld [vmem:[%s4123_s5 + $0x68] sm:$0xff] }
 0x228   :  { %2123 = vmatpush.msra.mxu2 %v2118_v49 }
 0x229   :  { %v1344_v10 = vmax.f32 %v983_v33, %v1293_v41  ;;  %v2113_v33 = vld [vmem:[%s4123_s5 + $0x50] sm:$0xff]  ;;  %v2112_v41 = vld [vmem:[%s4123_s5 + $0x48] sm:$0xff] }
 0x22a   :  { %2124 = vmatpush.msra.mxu2 %v2117_v37  ;;  %v2149_v37 = vld [vmem:[%s4124_s7 + $0x28] sm:$0xff] }
 0x22b   :  { %v1369_v51 = vmax.f32 %v1319_v4, %v1344_v10  ;;  %v1499_v9 = vpop.f32.mrf.mxu1 }
 0x22c   :  { %2125 = vmatpush.msra.mxu2 %v2116_v29 }
 0x22d   :  { %v1398_v6 = vadd.f32 %v3650_v34, %v1369_v51  ;;  %v2111_v51 = vld [vmem:[%s4123_s5 + $0x40] sm:$0xff] }
 0x22e   :  { %v1220_v11 = vpop.f32.mrf.mxu0  ;;  %2126 = vmatpush.msra.mxu2 %v2115_v17 }
 0x22f   :  { %v1423_v31 = vmax.f32 %v1398_v6, 0.0  ;;  %v1221_v38 = vadd.f32 %v1220_v11, %v4169_v32  ;;  %v2110_v11 = vld [vmem:[%s4123_s5 + $0x38] sm:$0xff]  ;;  %v2109_v32 = vld [vmem:[%s4123_s5 + $0x30] sm:$0xff] }
 0x230   :  { %2127 = vmatpush.msra.mxu2 %v2114_v30  ;;  %v2147_v30 = vld [vmem:[%s4124_s7 + $0x18] sm:$0xff] }
 0x231   :  { %v1320_v35 = vmax.f32 %v4170_v52, %v1221_v38  ;;  %2515 = vmatmul.msk.f32.vlgmr.msrb.gmra.mxu0 %vm1429_vm2, %v1423_v31  ;;  %v2108_v38 = vld [vmem:[%s4123_s5 + $0x28] sm:$0xff] }
 0x232   :  { %2128 = vmatpush.msra.mxu2 %v2113_v33 }
 0x233   :  { %v1345_v16 = vmax.f32 %v4173_v12, %v1320_v35  ;;  %v1553_v4 = vpop.f32.mrf.mxu1 }
 0x234   :  { %2129 = vmatpush.msra.mxu2 %v2112_v41  ;;  %v2523_v41 = vld [vmem:[%s4121_s4] ss:$0 sm:$0xff] }
 0x235   :  { %v1374_v36 = vadd.f32 %v3650_v34, %v1345_v16 }
 0x236   :  { %2130 = vmatpush.msra.mxu2 %v2111_v51  ;;  %v1661_v16 = vpop.f32.mrf.mxu0 }
 0x237   :  { %v1399_v15 = vmax.f32 %v1374_v36, 0.0  ;;  %v2106_v36 = vld [vmem:[%s4123_s5 + $0x18] sm:$0xff] }
 0x238   :  { %2131 = vmatpush.msra.mxu2 %v2110_v11  ;;  %v2145_v11 = vld [vmem:[%s4124_s7 + $0x8] sm:$0xff] }
 0x239   :  { %2446 = vmatmul.msk.f32.vlgmr.msrb.gmra.mxu3 %vm1429_vm2, %v1399_v15 }
 0x23a   :  { %1577 = vmatpush.msrb.mxu3 %v2457_v21  ;;  %2132 = vmatpush.msra.mxu2 %v2109_v32  ;;  %v2524_v32 = vld [vmem:[%s4122_s6] ss:$0 sm:$0xff] }
 0x23b   :  { %v1607_v52 = vpop.f32.mrf.mxu1 }
 0x23c   :  { %1578 = vmatpush.msrb.mxu3 %v2456_v3  ;;  %2133 = vmatpush.msra.mxu2 %v2108_v38  ;;  %v1688_v20 = vpop.f32.mrf.mxu2  ;;  %v2104_v3 = vld [vmem:[%s4123_s5 + $0x8] sm:$0xff] }
 0x23e   :  { %2134 = vmatpush.msra.mxu2 %v2107_v58 }
 0x240   :  { %2135 = vmatpush.msra.mxu2 %v2106_v36 }
 0x241   :  { %2452 = vmatmul.msk.f32.vlgmr.msra.gmra.mxu3 %vm1429_vm2, %v1402_v46 }
 0x242   :  { %1631 = vmatpush.msra.mxu3 %v2463_v0  ;;  %2136 = vmatpush.msra.mxu2 %v2105_v54 }
 0x243   :  { %v1715_v21 = vpop.f32.mrf.mxu1 }
 0x244   :  { %1632 = vmatpush.msra.mxu3 %v2462_v26  ;;  %2137 = vmatpush.msra.mxu2 %v2104_v3  ;;  %v2157_v26 = vld [vmem:[%s4124_s7 + $0x68] sm:$0xff] }
 0x245   :  { %2166 = vmatpush.msra.mxu1 %v2157_v26 }
 0x246   :  { %2138 = vmatpush.msra.mxu2 %v2103_v22 }
 0x249   :  { %2458 = vmatmul.msk.f32.vlgmr.msrb.gmra.mxu3 %vm1429_vm2, %v1404_v56 }
 0x24a   :  { %1739 = vmatpush.msrb.mxu3 %v2475_v19  ;;  %v2156_v19 = vld [vmem:[%s4124_s7 + $0x60] sm:$0xff] }
 0x24b   :  { %2167 = vmatpush.msra.mxu1 %v2156_v19 }
 0x24c   :  { %1740 = vmatpush.msrb.mxu3 %v2474_v18 }
 0x24e   :  { %v1769_v61 = vpop.f32.mrf.mxu0 }
 0x251   :  { %2464 = vmatmul.msk.f32.vlgmr.msra.gmra.mxu3 %vm1429_vm2, %v1406_v60  ;;  %v2155_v60 = vld [vmem:[%s4124_s7 + $0x58] sm:$0xff] }
 0x252   :  { %1847 = vmatpush.msra.mxu3 %v2487_v43  ;;  %2168 = vmatpush.msra.mxu1 %v2155_v60 }
 0x254   :  { %1848 = vmatpush.msra.mxu3 %v2486_v57  ;;  %2169 = vmatpush.msra.mxu1 %v2154_v55 }
 0x259   :  { %2476 = vmatmul.msk.f32.vlgmr.msrb.gmra.mxu3 %vm1429_vm2, %v1410_v2 }
 0x25a   :  { %1955 = vmatpush.msrb.mxu3 %v2499_v63 }
 0x25c   :  { %1956 = vmatpush.msrb.mxu3 %v2498_v44  ;;  %v1796_v7 = vpop.f32.mrf.mxu2  ;;  %v2153_v44 = vld [vmem:[%s4124_s7 + $0x48] sm:$0xff] }
 0x25d   :  { %2170 = vmatpush.msra.mxu1 %v2153_v44 }
 0x25e   :  { %v1823_v18 = vpop.f32.mrf.mxu1 }
 0x261   :  { %2488 = vmatmul.msk.f32.vlgmr.msra.gmra.mxu3 %vm1429_vm2, %v1414_v53 }
 0x262   :  { %2063 = vmatpush.msra.mxu3 %v2511_v47  ;;  %v2152_v47 = vld [vmem:[%s4124_s7 + $0x40] sm:$0xff] }
 0x263   :  { %2171 = vmatpush.msra.mxu1 %v2152_v47 }
 0x264   :  { %2064 = vmatpush.msra.mxu3 %v2510_v48 }
 0x269   :  { %2500 = vmatmul.msk.f32.vlgmr.msrb.gmra.mxu3 %vm1429_vm2, %v1418_v13  ;;  %v2151_v13 = vld [vmem:[%s4124_s7 + $0x38] sm:$0xff] }
 0x26a   :  { %2172 = vmatpush.msra.mxu1 %v2151_v13 }
 0x26e   :  { %v1877_v2 = vpop.f32.mrf.mxu0 }
 0x271   :  { %2512 = vmatmul.msk.f32.vlgmr.msra.gmra.mxu3 %vm1429_vm2, %v1422_v14 }
 0x27c   :  { %v1904_v50 = vpop.f32.mrf.mxu2 }
 0x27e   :  { %v1931_v48 = vpop.f32.mrf.mxu1 }
 0x2bc   :  { %v1473_v45 = vpop.f32.mrf.mxu3 }
 0x2bd   :  { %v1474_v34 = vadd.f32 %v1473_v45, %v1450_v23  ;;  %v2150_v23 = vld [vmem:[%s4124_s7 + $0x30] sm:$0xff]  ;;  %v1985_v45 = vpop.f32.mrf.mxu0 }
 0x2be   :  { %2173 = vmatpush.msra.mxu1 %v2150_v23 }
 0x2bf   :  { %v1502_v62 = vadd.f32 %v1499_v9, %v1474_v34  ;;  %v2012_v9 = vpop.f32.mrf.mxu2  ;;  %v2148_v34 = vld [vmem:[%s4124_s7 + $0x20] sm:$0xff] }
 0x2c0   :  { %2174 = vmatpush.msra.mxu1 %v2149_v37 }
 0x2c2   :  { %2175 = vmatpush.msra.mxu1 %v2148_v34 }
 0x2c4   :  { %v1526_v59 = vpop.f32.mrf.mxu3  ;;  %2176 = vmatpush.msra.mxu1 %v2147_v30 }
 0x2c5   :  { %v1529_v28 = vadd.f32 %v1526_v59, %v1502_v62  ;;  %v2039_v59 = vpop.f32.mrf.mxu1 }
 0x2c7   :  { %v1556_v6 = vadd.f32 %v1553_v4, %v1529_v28  ;;  %v2093_v28 = vpop.f32.mrf.mxu0 }
 0x2cc   :  { %v1580_v10 = vpop.f32.mrf.mxu3 }
 0x2cd   :  { %v1583_v31 = vadd.f32 %v1580_v10, %v1556_v6  ;;  %v2146_v6 = vld [vmem:[%s4124_s7 + $0x10] sm:$0xff] }
 0x2ce   :  { %2177 = vmatpush.msra.mxu1 %v2146_v6 }
 0x2cf   :  { %v1610_v35 = vadd.f32 %v1607_v52, %v1583_v31  ;;  %v2144_v31 = vld [vmem:[%s4124_s7] sm:$0xff] }
 0x2d0   :  { %2178 = vmatpush.msra.mxu1 %v2145_v11 }
 0x2d2   :  { %2179 = vmatpush.msra.mxu1 %v2144_v31 }
 0x2d4   :  { %v1634_v39 = vpop.f32.mrf.mxu3 }
 0x2d5   :  { %v1637_v12 = vadd.f32 %v1634_v39, %v1610_v35  ;;  %v2525_v39 = vld [vmem:[%s4125_s8] ss:$0 sm:$0xff] }
 0x2d7   :  { %v1664_v1 = vadd.f32 %v1661_v16, %v1637_v12 }
 0x2d9   :  { %v1691_v15 = vadd.f32 %v1688_v20, %v1664_v1 }
 0x2db   :  { %v1718_v5 = vadd.f32 %v1715_v21, %v1691_v15 }
 0x2dc   :  { %v1742_v46 = vpop.f32.mrf.mxu3 }
 0x2dd   :  { %v1745_v27 = vadd.f32 %v1742_v46, %v1718_v5 }
 0x2df   :  { %v1772_v0 = vadd.f32 %v1769_v61, %v1745_v27 }
 0x2e1   :  { %v1799_v56 = vadd.f32 %v1796_v7, %v1772_v0 }
 0x2e3   :  { %v1826_v8 = vadd.f32 %v1823_v18, %v1799_v56 }
 0x2e4   :  { %v1850_v43 = vpop.f32.mrf.mxu3 }
 0x2e5   :  { %v1853_v57 = vadd.f32 %v1850_v43, %v1826_v8 }
 0x2e7   :  { %v1880_v63 = vadd.f32 %v1877_v2, %v1853_v57 }
 0x2e9   :  { %v1907_v53 = vadd.f32 %v1904_v50, %v1880_v63 }
 0x2eb   :  { %v1934_v40 = vadd.f32 %v1931_v48, %v1907_v53 }
 0x2ec   :  { %v1958_v42 = vpop.f32.mrf.mxu3 }
 0x2ed   :  { %v1961_v14 = vadd.f32 %v1958_v42, %v1934_v40 }
 0x2ef   :  { %v1988_v49 = vadd.f32 %v1985_v45, %v1961_v14 }
 0x2f1   :  { %v2015_v29 = vadd.f32 %v2012_v9, %v1988_v49 }
 0x2f3   :  { %v2042_v17 = vadd.f32 %v2039_v59, %v2015_v29 }
 0x2f4   :  { %v2066_v62 = vpop.f32.mrf.mxu3 }
 0x2f5   :  { %v2069_v33 = vadd.f32 %v2066_v62, %v2042_v17 }
 0x2f7   :  { %v2096_v4 = vadd.f32 %v2093_v28, %v2069_v33 }
 0x2f9   :  { %v2101_v10 = vadd.f32 %v2523_v41, %v2096_v4 }
 0x2fb   :  { %v2102_v51 = vmax.f32 %v2101_v10, 0.0 }
 0x2fd   :  { %2139 = vmatmul.f32.vlgmr.msra.gmra.mxu2 %v2102_v51 }
 0x380   :  { %v2140_v38 = vpop.f32.mrf.mxu2 }
 0x381   :  { %v2141_v52 = vadd.f32 %v2524_v32, %v2140_v38 }
 0x383   :  { %v2143_v35 = vmax.f32 %v2141_v52, 0.0 }
 0x385   :  { %2180 = vmatmul.f32.vlgmr.msra.gmra.mxu1 %v2143_v35 }
 0x402   :  { %v2181_v58 = vpop.f32.mrf.mxu1 }
 0x403   :  { %v2182_v12 = vadd.f32 %v2525_v39, %v2181_v58 }
 0x405   :  { %2184 = vst [vmem:[%s4126_s9] sm:$0xff] %v2182_v12 }

</bundles_post_ra>
